<compile_context>
chip_gen: v6e
topology: v6e:2x2x1
jax: 0.10.0
libtpu: 0.0.40
codegen_flags: <defaults>
</compile_context>

<pallas_src>
import functools

import jax
import jax.numpy as jnp
from jax.experimental import pallas as pl
from jax.experimental.pallas import tpu as pltpu


# ----------------------------- shared in-kernel helpers -----------------------------

def _mm(a, w):
    """bf16 MXU matmul with f32 accumulation."""
    return jnp.dot(a.astype(jnp.bfloat16), w.astype(jnp.bfloat16),
                   preferred_element_type=jnp.float32)


def _ln(x, g, b, eps=1e-5):
    mu = jnp.mean(x, axis=-1, keepdims=True)
    var = jnp.mean((x - mu) ** 2, axis=-1, keepdims=True)
    return (x - mu) * jax.lax.rsqrt(var + eps) * g + b


# ----------------------------- fused transformer layer -----------------------------

def _encoder_layer_kernel(x_ref, in_w, in_b, out_w, out_b, ln1g, ln1b,
                          ff1w, ff1b, ff2w, ff2b, ln2g, ln2b, fng, fnb,
                          o_ref, *, nhead, final_norm):
    B, S, D = x_ref.shape
    dh = D // nhead
    scale = 1.0 / float(dh) ** 0.5

    x = x_ref[...].astype(jnp.float32)
    xf = x.reshape(B * S, D)

    # Fused QKV projection (single MXU call), [q;k;v] packed along output dim.
    qkv = _mm(xf, in_w[...]) + in_b[...]                      # (B*S, 3D) f32
    ow = out_w[...]

    # Per-head attention; concat(heads) @ W_out is folded into per-head partial
    # projections summed together (avoids an in-kernel concat + extra copies).
    sa = None
    for h in range(nhead):
        lo, hi = h * dh, (h + 1) * dh
        q = qkv[:, lo:hi].reshape(B, S, dh) * scale           # fold 1/sqrt(dh) into q
        k = qkv[:, D + lo:D + hi].reshape(B, S, dh)
        v = qkv[:, 2 * D + lo:2 * D + hi].reshape(B, S, dh)
        s = jnp.einsum('bqd,bkd->bqk',
                       q.astype(jnp.bfloat16), k.astype(jnp.bfloat16),
                       preferred_element_type=jnp.float32)
        s = s - jnp.max(s, axis=-1, keepdims=True)
        p = jnp.exp(s)
        p = p * pl.reciprocal(jnp.sum(p, axis=-1, keepdims=True), approx=True)
        o = jnp.einsum('bqk,bkd->bqd',
                       p.astype(jnp.bfloat16), v.astype(jnp.bfloat16),
                       preferred_element_type=jnp.float32)
        contrib = _mm(o.reshape(B * S, dh), ow[lo:hi, :])
        sa = contrib if sa is None else sa + contrib
    sa = sa + out_b[...]

    # Post-norm encoder layer (norm_first=False).
    x1 = _ln(xf + sa, ln1g[...], ln1b[...])
    hmid = jnp.maximum(_mm(x1, ff1w[...]) + ff1b[...], 0.0)    # relu
    ff = _mm(hmid, ff2w[...]) + ff2b[...]
    x2 = _ln(x1 + ff, ln2g[...], ln2b[...])
    if final_norm:                                             # TransformerEncoder norm
        x2 = _ln(x2, fng[...], fnb[...])
    o_ref[...] = x2.reshape(B, S, D)


def transformer_layer(x, p, nhead, final_norm_params=None):
    b, s, d = x.shape
    apply_final = final_norm_params is not None
    fng, fnb = final_norm_params if apply_final else (p["ln2_g"], p["ln2_b"])
    kernel = functools.partial(_encoder_layer_kernel, nhead=nhead,
                               final_norm=apply_final)
    return pl.pallas_call(
        kernel,
        out_shape=jax.ShapeDtypeStruct((b, s, d), jnp.float32),
    )(x,
      p["in_w"], p["in_b"].reshape(1, -1),
      p["out_w"], p["out_b"].reshape(1, -1),
      p["ln1_g"].reshape(1, -1), p["ln1_b"].reshape(1, -1),
      p["ff1_w"], p["ff1_b"].reshape(1, -1),
      p["ff2_w"], p["ff2_b"].reshape(1, -1),
      p["ln2_g"].reshape(1, -1), p["ln2_b"].reshape(1, -1),
      fng.reshape(1, -1), fnb.reshape(1, -1))


def transformer_encoder(x, p, nhead):
    layers = p["layers"]
    for i, lp in enumerate(layers):
        fin = (p["norm_g"], p["norm_b"]) if i == len(layers) - 1 else None
        x = transformer_layer(x, lp, nhead, final_norm_params=fin)
    return x


# --------------------------------- fused 2-layer GRU --------------------------------

def _gru2_kernel(x_ref, wi1, bi1, wh1, bh1, wi2, bi2, wh2, bh2,
                 y_ref, xg_scr, y1_scr):
    S, B, Din = x_ref.shape
    H = wh1.shape[0]

    def run_layer(xg_ref, wh_ref, bh_ref, out_ref):
        wh = wh_ref[...]
        bh = bh_ref[...]

        def step(t, h):
            xg = xg_ref[t]                          # (B, 3H) precomputed input gates
            hg = _mm(h, wh) + bh                    # single fused hidden matmul
            r = jax.nn.sigmoid(xg[:, 0:H] + hg[:, 0:H])
            z = jax.nn.sigmoid(xg[:, H:2 * H] + hg[:, H:2 * H])
            n = jnp.tanh(xg[:, 2 * H:3 * H] + r * hg[:, 2 * H:3 * H])
            h_new = (1.0 - z) * n + z * h
            out_ref[t] = h_new
            return h_new

        jax.lax.fori_loop(0, S, step, jnp.zeros((B, H), jnp.float32), unroll=True)

    # Layer 1: hoist all S input-gate matmuls into one MXU call.
    xg_scr[...] = (_mm(x_ref[...].reshape(S * B, Din), wi1[...])
                   + bi1[...]).reshape(S, B, 3 * H)
    run_layer(xg_scr, wh1, bh1, y1_scr)

    # Layer 2: same, fed by layer-1 outputs held in VMEM.
    xg_scr[...] = (_mm(y1_scr[...].reshape(S * B, H), wi2[...])
                   + bi2[...]).reshape(S, B, 3 * H)
    run_layer(xg_scr, wh2, bh2, y_ref)


def gru2(x_bsd, p1, p2):
    x = jnp.transpose(x_bsd, (1, 0, 2))             # (S, B, Din) time-major
    s, b, _ = x.shape
    h = p1["wh"].shape[0]
    y = pl.pallas_call(
        _gru2_kernel,
        out_shape=jax.ShapeDtypeStruct((s, b, h), jnp.float32),
        scratch_shapes=[pltpu.VMEM((s, b, 3 * h), jnp.float32),
                        pltpu.VMEM((s, b, h), jnp.float32)],
    )(x,
      p1["wi"], p1["bi"].reshape(1, -1), p1["wh"], p1["bh"].reshape(1, -1),
      p2["wi"], p2["bi"].reshape(1, -1), p2["wh"], p2["bh"].reshape(1, -1))
    return jnp.transpose(y, (1, 0, 2))              # (B, S, H)


# ------------------- fused bottleneck: proj + fc_enc + VQ x2 + fc_dec ----------------

def _bottleneck_kernel(enc_ref, gru_ref,
                       proj_w, proj_b, se_w, se_b, te_w, te_b,
                       s_emb, t_emb, sd_w, sd_b, td_w, td_b,
                       ds_ref, dt_ref, loss_s_ref, loss_t_ref, *, commitment_cost):

    def vq(xq, emb):
        n, e = xq.shape
        k = emb.shape[0]
        et = emb.T                                                   # (E, K)
        d = (jnp.sum(xq * xq, axis=1, keepdims=True)
             - 2.0 * _mm(xq, et)
             + jnp.sum(et * et, axis=0, keepdims=True))              # (N, K)
        col = jax.lax.broadcasted_iota(jnp.int32, d.shape, 1)
        dmin = jnp.min(d, axis=1, keepdims=True)
        idx = jnp.min(jnp.where(d <= dmin, col, k), axis=1, keepdims=True)
        onehot = (col == idx).astype(jnp.float32)
        # keep the value path (codebook gather) in f32 for fidelity
        quant = jnp.dot(onehot, emb, preferred_element_type=jnp.float32)
        diff = quant - xq
        sse = jnp.sum(jnp.sum(diff * diff, axis=1, keepdims=True),
                      axis=0, keepdims=True)                         # (1, 1)
        mse = sse / float(n * e)
        # forward value: q_latent_loss == e_latent_loss == mse
        return quant, (1.0 + commitment_cost) * mse

    enc = enc_ref[...].astype(jnp.float32)                           # (N, Din)
    gru = gru_ref[...].astype(jnp.float32)                           # (N, H)

    states = _mm(_mm(enc, proj_w[...]) + proj_b[...], se_w[...]) + se_b[...]
    trans = _mm(gru, te_w[...]) + te_b[...]

    qs, ls = vq(states, s_emb[...])
    qt, lt = vq(trans, t_emb[...])

    ds_ref[...] = _mm(qs, sd_w[...]) + sd_b[...]
    dt_ref[...] = _mm(qt, td_w[...]) + td_b[...]
    loss_s_ref[...] = ls
    loss_t_ref[...] = lt


def bottleneck(enc_flat, gru_flat, params, commitment_cost):
    n = enc_flat.shape[0]
    h = params["state_fc_dec_w"].shape[1]
    ds, dt, ls, lt = pl.pallas_call(
        functools.partial(_bottleneck_kernel, commitment_cost=commitment_cost),
        out_shape=(jax.ShapeDtypeStruct((n, h), jnp.float32),
                   jax.ShapeDtypeStruct((n, h), jnp.float32),
                   jax.ShapeDtypeStruct((1, 1), jnp.float32),
                   jax.ShapeDtypeStruct((1, 1), jnp.float32)),
    )(enc_flat, gru_flat,
      params["state_proj_w"], params["state_proj_b"].reshape(1, -1),
      params["state_fc_enc_w"], params["state_fc_enc_b"].reshape(1, -1),
      params["trans_fc_enc_w"], params["trans_fc_enc_b"].reshape(1, -1),
      params["state_emb"], params["trans_emb"],
      params["state_fc_dec_w"], params["state_fc_dec_b"].reshape(1, -1),
      params["trans_fc_dec_w"], params["trans_fc_dec_b"].reshape(1, -1))
    decoded = jnp.concatenate([ds, dt], axis=-1)
    return decoded, ls[0, 0], lt[0, 0]


# ----------------------------------- predict linear ----------------------------------

def _linear_kernel(x_ref, w_ref, b_ref, o_ref):
    o_ref[...] = (_mm(x_ref[...], w_ref[...]) + b_ref[...]).astype(o_ref.dtype)


def linear(x, w, b):
    n = x.shape[0]
    dout = w.shape[1]
    return pl.pallas_call(
        _linear_kernel,
        out_shape=jax.ShapeDtypeStruct((n, dout), jnp.float32),
    )(x, w, b.reshape(1, dout))


# --------------------------------------- forward -------------------------------------

def vqvae_forward(params, x, commitment_cost):
    b, s, din = x.shape
    enc = transformer_encoder(x, params["state_encoder"], nhead=2)        # (B,S,Din)
    gru_out = gru2(enc, params["gru_layers"][0], params["gru_layers"][1])  # (B,S,H)

    decoded, loss_state, loss_trans = bottleneck(
        enc.reshape(b * s, din), gru_out.reshape(b * s, -1), params, commitment_cost)

    h2 = decoded.shape[1]
    y = transformer_encoder(decoded.reshape(b, s, h2), params["decoder"], nhead=2)
    y = linear(y.reshape(b * s, h2), params["predict_w"], params["predict_b"])
    return y.reshape(b, s, din), loss_state, loss_trans


# ------------------------------- deterministic params --------------------------------

def init_params(key, input_dim, hidden_dim, k_state, k_trans, emb_dim):
    keys = iter(jax.random.split(key, 256))

    def u(shape, scale=0.1):
        return jax.random.uniform(next(keys), shape, jnp.float32, -scale, scale)

    def enc_layer(d_model, d_ff):
        return dict(
            in_w=u((d_model, 3 * d_model)), in_b=u((3 * d_model,)),
            out_w=u((d_model, d_model)), out_b=u((d_model,)),
            ln1_g=jnp.ones((d_model,), jnp.float32), ln1_b=jnp.zeros((d_model,), jnp.float32),
            ff1_w=u((d_model, d_ff)), ff1_b=u((d_ff,)),
            ff2_w=u((d_ff, d_model)), ff2_b=u((d_model,)),
            ln2_g=jnp.ones((d_model,), jnp.float32), ln2_b=jnp.zeros((d_model,), jnp.float32),
        )

    def encoder(d_model, d_ff, n_layers):
        return dict(layers=[enc_layer(d_model, d_ff) for _ in range(n_layers)],
                    norm_g=jnp.ones((d_model,), jnp.float32),
                    norm_b=jnp.zeros((d_model,), jnp.float32))

    def gru_p(din, h):
        # gate columns packed [r | z | n], matching the in-kernel slicing
        return dict(wi=u((din, 3 * h)), bi=u((3 * h,)),
                    wh=u((h, 3 * h)), bh=u((3 * h,)))

    return dict(
        state_encoder=encoder(input_dim, hidden_dim, 2),
        gru_layers=[gru_p(input_dim, hidden_dim), gru_p(hidden_dim, hidden_dim)],
        state_proj_w=u((input_dim, hidden_dim)), state_proj_b=u((hidden_dim,)),
        state_fc_enc_w=u((hidden_dim, emb_dim)), state_fc_enc_b=u((emb_dim,)),
        trans_fc_enc_w=u((hidden_dim, emb_dim)), trans_fc_enc_b=u((emb_dim,)),
        state_emb=jax.random.uniform(next(keys), (k_state, emb_dim), jnp.float32,
                                     -1.0 / k_state, 1.0 / k_state),
        trans_emb=jax.random.uniform(next(keys), (k_trans, emb_dim), jnp.float32,
                                     -1.0 / k_trans, 1.0 / k_trans),
        state_fc_dec_w=u((emb_dim, hidden_dim)), state_fc_dec_b=u((hidden_dim,)),
        trans_fc_dec_w=u((emb_dim, hidden_dim)), trans_fc_dec_b=u((hidden_dim,)),
        decoder=encoder(2 * hidden_dim, 2 * hidden_dim, 2),
        predict_w=u((2 * hidden_dim, input_dim)), predict_b=u((input_dim,)),
    )


if __name__ == "__main__":
    B, S = 2, 8
    input_dim, hidden_dim, emb_dim = 16, 32, 16
    k_state, k_trans, commitment_cost = 32, 32, 0.25

    key = jax.random.PRNGKey(0)
    pkey, xkey = jax.random.split(key)
    params = init_params(pkey, input_dim, hidden_dim, k_state, k_trans, emb_dim)
    x = jax.random.normal(xkey, (B, S, input_dim), jnp.float32)

    fwd = jax.jit(functools.partial(vqvae_forward, commitment_cost=commitment_cost))
    y, loss_state, loss_transition = fwd(params, x)
    jax.block_until_ready((y, loss_state, loss_transition))

    assert y.shape == (B, S, input_dim)
    assert loss_state.shape == () and loss_transition.shape == ()
    assert bool(jnp.all(jnp.isfinite(y)))
    print("KERNEL_OK")
</pallas_src>

<mosaic_0001>
module attributes {stable_mosaic.version = 11 : i64} {
  func.func @_encoder_layer_kernel(%arg0: memref<2x8x16xf32, #tpu.memory_space<vmem>>, %arg1: memref<16x48xf32, #tpu.memory_space<vmem>>, %arg2: memref<1x48xf32, #tpu.memory_space<vmem>>, %arg3: memref<16x16xf32, #tpu.memory_space<vmem>>, %arg4: memref<1x16xf32, #tpu.memory_space<vmem>>, %arg5: memref<1x16xf32, #tpu.memory_space<vmem>>, %arg6: memref<1x16xf32, #tpu.memory_space<vmem>>, %arg7: memref<16x32xf32, #tpu.memory_space<vmem>>, %arg8: memref<1x32xf32, #tpu.memory_space<vmem>>, %arg9: memref<32x16xf32, #tpu.memory_space<vmem>>, %arg10: memref<1x16xf32, #tpu.memory_space<vmem>>, %arg11: memref<1x16xf32, #tpu.memory_space<vmem>>, %arg12: memref<1x16xf32, #tpu.memory_space<vmem>>, %arg13: memref<1x16xf32, #tpu.memory_space<vmem>>, %arg14: memref<1x16xf32, #tpu.memory_space<vmem>>, %arg15: memref<2x8x16xf32, #tpu.memory_space<vmem>>) attributes {dimension_semantics = [], scalar_prefetch = 0 : i64, scratch_operands = 0 : i64, tpu.core_type = #tpu.core_type<tc>} {
    %c0 = arith.constant 0 : index
    %c0_0 = arith.constant 0 : index
    %c0_1 = arith.constant 0 : index
    %0 = vector.load %arg0[%c0, %c0_0, %c0_1] : memref<2x8x16xf32, #tpu.memory_space<vmem>>, vector<2x8x16xf32>
    %1 = vector.shape_cast %0 : vector<2x8x16xf32> to vector<16x16xf32>
    %c0_2 = arith.constant 0 : index
    %c0_3 = arith.constant 0 : index
    %2 = vector.load %arg1[%c0_2, %c0_3] : memref<16x48xf32, #tpu.memory_space<vmem>>, vector<16x48xf32>
    %3 = arith.truncf %1 : vector<16x16xf32> to vector<16x16xbf16>
    %4 = arith.truncf %2 : vector<16x48xf32> to vector<16x48xbf16>
    %cst = arith.constant dense<0.000000e+00> : vector<16x48xf32>
    %5 = tpu.matmul %3, %4, %cst {dimension_numbers = #tpu.dot_dimension_numbers<[1], [0], [0], [1], [0, 0, 1, 1], [], []>} : vector<16x16xbf16>, vector<16x48xbf16>, vector<16x48xf32> -> vector<16x48xf32>
    %c0_4 = arith.constant 0 : index
    %c0_5 = arith.constant 0 : index
    %6 = vector.load %arg2[%c0_4, %c0_5] : memref<1x48xf32, #tpu.memory_space<vmem>>, vector<1x48xf32>
    %7 = vector.broadcast %6 : vector<1x48xf32> to vector<16x48xf32>
    %8 = arith.addf %5, %7 : vector<16x48xf32>
    %c0_6 = arith.constant 0 : index
    %c0_7 = arith.constant 0 : index
    %9 = vector.load %arg3[%c0_6, %c0_7] : memref<16x16xf32, #tpu.memory_space<vmem>>, vector<16x16xf32>
    %10 = vector.extract_strided_slice %8 {offsets = [0, 0], sizes = [16, 8], strides = [1, 1]} : vector<16x48xf32> to vector<16x8xf32>
    %11 = vector.shape_cast %10 : vector<16x8xf32> to vector<2x8x8xf32>
    %cst_8 = arith.constant 0.353553385 : f32
    %12 = vector.broadcast %cst_8 : f32 to vector<2x8x8xf32>
    %13 = arith.mulf %11, %12 : vector<2x8x8xf32>
    %14 = vector.extract_strided_slice %8 {offsets = [0, 16], sizes = [16, 8], strides = [1, 1]} : vector<16x48xf32> to vector<16x8xf32>
    %15 = vector.shape_cast %14 : vector<16x8xf32> to vector<2x8x8xf32>
    %16 = vector.extract_strided_slice %8 {offsets = [0, 32], sizes = [16, 8], strides = [1, 1]} : vector<16x48xf32> to vector<16x8xf32>
    %17 = vector.shape_cast %16 : vector<16x8xf32> to vector<2x8x8xf32>
    %18 = arith.truncf %13 : vector<2x8x8xf32> to vector<2x8x8xbf16>
    %19 = arith.truncf %15 : vector<2x8x8xf32> to vector<2x8x8xbf16>
    "tpu.trace_start"() <{level = 10 : i32, message = "bqd,bkd->bqk"}> : () -> ()
    %cst_9 = arith.constant dense<0.000000e+00> : vector<2x8x8xf32>
    %20 = tpu.matmul %18, %19, %cst_9 {dimension_numbers = #tpu.dot_dimension_numbers<[2], [2], [1], [1], [0, 0, 0, 1, 1, 1], [0], [0]>} : vector<2x8x8xbf16>, vector<2x8x8xbf16>, vector<2x8x8xf32> -> vector<2x8x8xf32>
    "tpu.trace_stop"() : () -> ()
    %cst_10 = arith.constant dense<0xFF800000> : vector<2x8xf32>
    %21 = vector.multi_reduction <maximumf>, %20, %cst_10 [2] : vector<2x8x8xf32> to vector<2x8xf32>
    %22 = vector.shape_cast %21 : vector<2x8xf32> to vector<2x8x1xf32>
    %23 = vector.broadcast %22 : vector<2x8x1xf32> to vector<2x8x8xf32>
    %24 = arith.subf %20, %23 : vector<2x8x8xf32>
    %25 = math.exp %24 : vector<2x8x8xf32>
    %cst_11 = arith.constant dense<0.000000e+00> : vector<2x8xf32>
    %26 = vector.multi_reduction <add>, %25, %cst_11 [2] : vector<2x8x8xf32> to vector<2x8xf32>
    %27 = vector.shape_cast %26 : vector<2x8xf32> to vector<2x8x1xf32>
    %28 = tpu.reciprocal %27 {approx = true} : vector<2x8x1xf32> -> vector<2x8x1xf32>
    %29 = vector.broadcast %28 : vector<2x8x1xf32> to vector<2x8x8xf32>
    %30 = arith.mulf %25, %29 : vector<2x8x8xf32>
    %31 = arith.truncf %30 : vector<2x8x8xf32> to vector<2x8x8xbf16>
    %32 = arith.truncf %17 : vector<2x8x8xf32> to vector<2x8x8xbf16>
    "tpu.trace_start"() <{level = 10 : i32, message = "bqk,bkd->bqd"}> : () -> ()
    %cst_12 = arith.constant dense<0.000000e+00> : vector<2x8x8xf32>
    %33 = tpu.matmul %31, %32, %cst_12 {dimension_numbers = #tpu.dot_dimension_numbers<[2], [1], [1], [2], [0, 0, 0, 1, 1, 2], [0], [0]>} : vector<2x8x8xbf16>, vector<2x8x8xbf16>, vector<2x8x8xf32> -> vector<2x8x8xf32>
    "tpu.trace_stop"() : () -> ()
    %34 = vector.shape_cast %33 : vector<2x8x8xf32> to vector<16x8xf32>
    %35 = vector.extract_strided_slice %9 {offsets = [0, 0], sizes = [8, 16], strides = [1, 1]} : vector<16x16xf32> to vector<8x16xf32>
    %36 = arith.truncf %34 : vector<16x8xf32> to vector<16x8xbf16>
    %37 = arith.truncf %35 : vector<8x16xf32> to vector<8x16xbf16>
    %cst_13 = arith.constant dense<0.000000e+00> : vector<16x16xf32>
    %38 = tpu.matmul %36, %37, %cst_13 {dimension_numbers = #tpu.dot_dimension_numbers<[1], [0], [0], [1], [0, 0, 1, 1], [], []>} : vector<16x8xbf16>, vector<8x16xbf16>, vector<16x16xf32> -> vector<16x16xf32>
    %39 = vector.extract_strided_slice %8 {offsets = [0, 8], sizes = [16, 8], strides = [1, 1]} : vector<16x48xf32> to vector<16x8xf32>
    %40 = vector.shape_cast %39 : vector<16x8xf32> to vector<2x8x8xf32>
    %cst_14 = arith.constant 0.353553385 : f32
    %41 = vector.broadcast %cst_14 : f32 to vector<2x8x8xf32>
    %42 = arith.mulf %40, %41 : vector<2x8x8xf32>
    %43 = vector.extract_strided_slice %8 {offsets = [0, 24], sizes = [16, 8], strides = [1, 1]} : vector<16x48xf32> to vector<16x8xf32>
    %44 = vector.shape_cast %43 : vector<16x8xf32> to vector<2x8x8xf32>
    %45 = vector.extract_strided_slice %8 {offsets = [0, 40], sizes = [16, 8], strides = [1, 1]} : vector<16x48xf32> to vector<16x8xf32>
    %46 = vector.shape_cast %45 : vector<16x8xf32> to vector<2x8x8xf32>
    %47 = arith.truncf %42 : vector<2x8x8xf32> to vector<2x8x8xbf16>
    %48 = arith.truncf %44 : vector<2x8x8xf32> to vector<2x8x8xbf16>
    "tpu.trace_start"() <{level = 10 : i32, message = "bqd,bkd->bqk"}> : () -> ()
    %cst_15 = arith.constant dense<0.000000e+00> : vector<2x8x8xf32>
    %49 = tpu.matmul %47, %48, %cst_15 {dimension_numbers = #tpu.dot_dimension_numbers<[2], [2], [1], [1], [0, 0, 0, 1, 1, 1], [0], [0]>} : vector<2x8x8xbf16>, vector<2x8x8xbf16>, vector<2x8x8xf32> -> vector<2x8x8xf32>
    "tpu.trace_stop"() : () -> ()
    %cst_16 = arith.constant dense<0xFF800000> : vector<2x8xf32>
    %50 = vector.multi_reduction <maximumf>, %49, %cst_16 [2] : vector<2x8x8xf32> to vector<2x8xf32>
    %51 = vector.shape_cast %50 : vector<2x8xf32> to vector<2x8x1xf32>
    %52 = vector.broadcast %51 : vector<2x8x1xf32> to vector<2x8x8xf32>
    %53 = arith.subf %49, %52 : vector<2x8x8xf32>
    %54 = math.exp %53 : vector<2x8x8xf32>
    %cst_17 = arith.constant dense<0.000000e+00> : vector<2x8xf32>
    %55 = vector.multi_reduction <add>, %54, %cst_17 [2] : vector<2x8x8xf32> to vector<2x8xf32>
    %56 = vector.shape_cast %55 : vector<2x8xf32> to vector<2x8x1xf32>
    %57 = tpu.reciprocal %56 {approx = true} : vector<2x8x1xf32> -> vector<2x8x1xf32>
    %58 = vector.broadcast %57 : vector<2x8x1xf32> to vector<2x8x8xf32>
    %59 = arith.mulf %54, %58 : vector<2x8x8xf32>
    %60 = arith.truncf %59 : vector<2x8x8xf32> to vector<2x8x8xbf16>
    %61 = arith.truncf %46 : vector<2x8x8xf32> to vector<2x8x8xbf16>
    "tpu.trace_start"() <{level = 10 : i32, message = "bqk,bkd->bqd"}> : () -> ()
    %cst_18 = arith.constant dense<0.000000e+00> : vector<2x8x8xf32>
    %62 = tpu.matmul %60, %61, %cst_18 {dimension_numbers = #tpu.dot_dimension_numbers<[2], [1], [1], [2], [0, 0, 0, 1, 1, 2], [0], [0]>} : vector<2x8x8xbf16>, vector<2x8x8xbf16>, vector<2x8x8xf32> -> vector<2x8x8xf32>
    "tpu.trace_stop"() : () -> ()
    %63 = vector.shape_cast %62 : vector<2x8x8xf32> to vector<16x8xf32>
    %64 = vector.extract_strided_slice %9 {offsets = [8, 0], sizes = [8, 16], strides = [1, 1]} : vector<16x16xf32> to vector<8x16xf32>
    %65 = arith.truncf %63 : vector<16x8xf32> to vector<16x8xbf16>
    %66 = arith.truncf %64 : vector<8x16xf32> to vector<8x16xbf16>
    %cst_19 = arith.constant dense<0.000000e+00> : vector<16x16xf32>
    %67 = tpu.matmul %65, %66, %cst_19 {dimension_numbers = #tpu.dot_dimension_numbers<[1], [0], [0], [1], [0, 0, 1, 1], [], []>} : vector<16x8xbf16>, vector<8x16xbf16>, vector<16x16xf32> -> vector<16x16xf32>
    %68 = arith.addf %38, %67 : vector<16x16xf32>
    %c0_20 = arith.constant 0 : index
    %c0_21 = arith.constant 0 : index
    %69 = vector.load %arg4[%c0_20, %c0_21] : memref<1x16xf32, #tpu.memory_space<vmem>>, vector<1x16xf32>
    %70 = vector.broadcast %69 : vector<1x16xf32> to vector<16x16xf32>
    %71 = arith.addf %68, %70 : vector<16x16xf32>
    %72 = arith.addf %1, %71 : vector<16x16xf32>
    %c0_22 = arith.constant 0 : index
    %c0_23 = arith.constant 0 : index
    %73 = vector.load %arg5[%c0_22, %c0_23] : memref<1x16xf32, #tpu.memory_space<vmem>>, vector<1x16xf32>
    %c0_24 = arith.constant 0 : index
    %c0_25 = arith.constant 0 : index
    %74 = vector.load %arg6[%c0_24, %c0_25] : memref<1x16xf32, #tpu.memory_space<vmem>>, vector<1x16xf32>
    %cst_26 = arith.constant dense<0.000000e+00> : vector<16xf32>
    %75 = vector.multi_reduction <add>, %72, %cst_26 [1] : vector<16x16xf32> to vector<16xf32>
    %76 = vector.shape_cast %75 : vector<16xf32> to vector<16x1xf32>
    %cst_27 = arith.constant 1.600000e+01 : f32
    %77 = vector.broadcast %cst_27 : f32 to vector<16x1xf32>
    %78 = arith.divf %76, %77 : vector<16x1xf32>
    %79 = vector.broadcast %78 : vector<16x1xf32> to vector<16x16xf32>
    %80 = arith.subf %72, %79 : vector<16x16xf32>
    %81 = arith.mulf %80, %80 : vector<16x16xf32>
    %cst_28 = arith.constant dense<0.000000e+00> : vector<16xf32>
    %82 = vector.multi_reduction <add>, %81, %cst_28 [1] : vector<16x16xf32> to vector<16xf32>
    %83 = vector.shape_cast %82 : vector<16xf32> to vector<16x1xf32>
    %cst_29 = arith.constant 1.600000e+01 : f32
    %84 = vector.broadcast %cst_29 : f32 to vector<16x1xf32>
    %85 = arith.divf %83, %84 : vector<16x1xf32>
    %86 = vector.broadcast %78 : vector<16x1xf32> to vector<16x16xf32>
    %87 = arith.subf %72, %86 : vector<16x16xf32>
    %cst_30 = arith.constant 9.99999974E-6 : f32
    %88 = vector.broadcast %cst_30 : f32 to vector<16x1xf32>
    %89 = arith.addf %85, %88 : vector<16x1xf32>
    %90 = math.rsqrt %89 : vector<16x1xf32>
    %91 = vector.broadcast %90 : vector<16x1xf32> to vector<16x16xf32>
    %92 = arith.mulf %87, %91 : vector<16x16xf32>
    %93 = vector.broadcast %73 : vector<1x16xf32> to vector<16x16xf32>
    %94 = arith.mulf %92, %93 : vector<16x16xf32>
    %95 = vector.broadcast %74 : vector<1x16xf32> to vector<16x16xf32>
    %96 = arith.addf %94, %95 : vector<16x16xf32>
    %c0_31 = arith.constant 0 : index
    %c0_32 = arith.constant 0 : index
    %97 = vector.load %arg7[%c0_31, %c0_32] : memref<16x32xf32, #tpu.memory_space<vmem>>, vector<16x32xf32>
    %98 = arith.truncf %96 : vector<16x16xf32> to vector<16x16xbf16>
    %99 = arith.truncf %97 : vector<16x32xf32> to vector<16x32xbf16>
    %cst_33 = arith.constant dense<0.000000e+00> : vector<16x32xf32>
    %100 = tpu.matmul %98, %99, %cst_33 {dimension_numbers = #tpu.dot_dimension_numbers<[1], [0], [0], [1], [0, 0, 1, 1], [], []>} : vector<16x16xbf16>, vector<16x32xbf16>, vector<16x32xf32> -> vector<16x32xf32>
    %c0_34 = arith.constant 0 : index
    %c0_35 = arith.constant 0 : index
    %101 = vector.load %arg8[%c0_34, %c0_35] : memref<1x32xf32, #tpu.memory_space<vmem>>, vector<1x32xf32>
    %102 = vector.broadcast %101 : vector<1x32xf32> to vector<16x32xf32>
    %103 = arith.addf %100, %102 : vector<16x32xf32>
    %cst_36 = arith.constant 0.000000e+00 : f32
    %104 = vector.broadcast %cst_36 : f32 to vector<16x32xf32>
    %105 = arith.maximumf %103, %104 : vector<16x32xf32>
    %c0_37 = arith.constant 0 : index
    %c0_38 = arith.constant 0 : index
    %106 = vector.load %arg9[%c0_37, %c0_38] : memref<32x16xf32, #tpu.memory_space<vmem>>, vector<32x16xf32>
    %107 = arith.truncf %105 : vector<16x32xf32> to vector<16x32xbf16>
    %108 = arith.truncf %106 : vector<32x16xf32> to vector<32x16xbf16>
    %cst_39 = arith.constant dense<0.000000e+00> : vector<16x16xf32>
    %109 = tpu.matmul %107, %108, %cst_39 {dimension_numbers = #tpu.dot_dimension_numbers<[1], [0], [0], [1], [0, 0, 1, 1], [], []>} : vector<16x32xbf16>, vector<32x16xbf16>, vector<16x16xf32> -> vector<16x16xf32>
    %c0_40 = arith.constant 0 : index
    %c0_41 = arith.constant 0 : index
    %110 = vector.load %arg10[%c0_40, %c0_41] : memref<1x16xf32, #tpu.memory_space<vmem>>, vector<1x16xf32>
    %111 = vector.broadcast %110 : vector<1x16xf32> to vector<16x16xf32>
    %112 = arith.addf %109, %111 : vector<16x16xf32>
    %113 = arith.addf %96, %112 : vector<16x16xf32>
    %c0_42 = arith.constant 0 : index
    %c0_43 = arith.constant 0 : index
    %114 = vector.load %arg11[%c0_42, %c0_43] : memref<1x16xf32, #tpu.memory_space<vmem>>, vector<1x16xf32>
    %c0_44 = arith.constant 0 : index
    %c0_45 = arith.constant 0 : index
    %115 = vector.load %arg12[%c0_44, %c0_45] : memref<1x16xf32, #tpu.memory_space<vmem>>, vector<1x16xf32>
    %cst_46 = arith.constant dense<0.000000e+00> : vector<16xf32>
    %116 = vector.multi_reduction <add>, %113, %cst_46 [1] : vector<16x16xf32> to vector<16xf32>
    %117 = vector.shape_cast %116 : vector<16xf32> to vector<16x1xf32>
    %cst_47 = arith.constant 1.600000e+01 : f32
    %118 = vector.broadcast %cst_47 : f32 to vector<16x1xf32>
    %119 = arith.divf %117, %118 : vector<16x1xf32>
    %120 = vector.broadcast %119 : vector<16x1xf32> to vector<16x16xf32>
    %121 = arith.subf %113, %120 : vector<16x16xf32>
    %122 = arith.mulf %121, %121 : vector<16x16xf32>
    %cst_48 = arith.constant dense<0.000000e+00> : vector<16xf32>
    %123 = vector.multi_reduction <add>, %122, %cst_48 [1] : vector<16x16xf32> to vector<16xf32>
    %124 = vector.shape_cast %123 : vector<16xf32> to vector<16x1xf32>
    %cst_49 = arith.constant 1.600000e+01 : f32
    %125 = vector.broadcast %cst_49 : f32 to vector<16x1xf32>
    %126 = arith.divf %124, %125 : vector<16x1xf32>
    %127 = vector.broadcast %119 : vector<16x1xf32> to vector<16x16xf32>
    %128 = arith.subf %113, %127 : vector<16x16xf32>
    %cst_50 = arith.constant 9.99999974E-6 : f32
    %129 = vector.broadcast %cst_50 : f32 to vector<16x1xf32>
    %130 = arith.addf %126, %129 : vector<16x1xf32>
    %131 = math.rsqrt %130 : vector<16x1xf32>
    %132 = vector.broadcast %131 : vector<16x1xf32> to vector<16x16xf32>
    %133 = arith.mulf %128, %132 : vector<16x16xf32>
    %134 = vector.broadcast %114 : vector<1x16xf32> to vector<16x16xf32>
    %135 = arith.mulf %133, %134 : vector<16x16xf32>
    %136 = vector.broadcast %115 : vector<1x16xf32> to vector<16x16xf32>
    %137 = arith.addf %135, %136 : vector<16x16xf32>
    %c0_51 = arith.constant 0 : index
    %c0_52 = arith.constant 0 : index
    %138 = vector.load %arg13[%c0_51, %c0_52] : memref<1x16xf32, #tpu.memory_space<vmem>>, vector<1x16xf32>
    %c0_53 = arith.constant 0 : index
    %c0_54 = arith.constant 0 : index
    %139 = vector.load %arg14[%c0_53, %c0_54] : memref<1x16xf32, #tpu.memory_space<vmem>>, vector<1x16xf32>
    %cst_55 = arith.constant dense<0.000000e+00> : vector<16xf32>
    %140 = vector.multi_reduction <add>, %137, %cst_55 [1] : vector<16x16xf32> to vector<16xf32>
    %141 = vector.shape_cast %140 : vector<16xf32> to vector<16x1xf32>
    %cst_56 = arith.constant 1.600000e+01 : f32
    %142 = vector.broadcast %cst_56 : f32 to vector<16x1xf32>
    %143 = arith.divf %141, %142 : vector<16x1xf32>
    %144 = vector.broadcast %143 : vector<16x1xf32> to vector<16x16xf32>
    %145 = arith.subf %137, %144 : vector<16x16xf32>
    %146 = arith.mulf %145, %145 : vector<16x16xf32>
    %cst_57 = arith.constant dense<0.000000e+00> : vector<16xf32>
    %147 = vector.multi_reduction <add>, %146, %cst_57 [1] : vector<16x16xf32> to vector<16xf32>
    %148 = vector.shape_cast %147 : vector<16xf32> to vector<16x1xf32>
    %cst_58 = arith.constant 1.600000e+01 : f32
    %149 = vector.broadcast %cst_58 : f32 to vector<16x1xf32>
    %150 = arith.divf %148, %149 : vector<16x1xf32>
    %151 = vector.broadcast %143 : vector<16x1xf32> to vector<16x16xf32>
    %152 = arith.subf %137, %151 : vector<16x16xf32>
    %cst_59 = arith.constant 9.99999974E-6 : f32
    %153 = vector.broadcast %cst_59 : f32 to vector<16x1xf32>
    %154 = arith.addf %150, %153 : vector<16x1xf32>
    %155 = math.rsqrt %154 : vector<16x1xf32>
    %156 = vector.broadcast %155 : vector<16x1xf32> to vector<16x16xf32>
    %157 = arith.mulf %152, %156 : vector<16x16xf32>
    %158 = vector.broadcast %138 : vector<1x16xf32> to vector<16x16xf32>
    %159 = arith.mulf %157, %158 : vector<16x16xf32>
    %160 = vector.broadcast %139 : vector<1x16xf32> to vector<16x16xf32>
    %161 = arith.addf %159, %160 : vector<16x16xf32>
    %162 = vector.shape_cast %161 : vector<16x16xf32> to vector<2x8x16xf32>
    %c0_60 = arith.constant 0 : index
    %c0_61 = arith.constant 0 : index
    %c0_62 = arith.constant 0 : index
    %163 = vector.load %arg15[%c0_60, %c0_61, %c0_62] : memref<2x8x16xf32, #tpu.memory_space<vmem>>, vector<2x8x16xf32>
    tpu.vector_store %arg15[%c0_60, %c0_61, %c0_62], %162 {strides = array<i32>} : memref<2x8x16xf32, #tpu.memory_space<vmem>>, vector<2x8x16xf32>,
    return
  }
}

module attributes {stable_mosaic.version = 11 : i64} {
  func.func @_encoder_layer_kernel(%arg0: memref<2x8x16xf32, #tpu.memory_space<vmem>>, %arg1: memref<16x48xf32, #tpu.memory_space<vmem>>, %arg2: memref<1x48xf32, #tpu.memory_space<vmem>>, %arg3: memref<16x16xf32, #tpu.memory_space<vmem>>, %arg4: memref<1x16xf32, #tpu.memory_space<vmem>>, %arg5: memref<1x16xf32, #tpu.memory_space<vmem>>, %arg6: memref<1x16xf32, #tpu.memory_space<vmem>>, %arg7: memref<16x32xf32, #tpu.memory_space<vmem>>, %arg8: memref<1x32xf32, #tpu.memory_space<vmem>>, %arg9: memref<32x16xf32, #tpu.memory_space<vmem>>, %arg10: memref<1x16xf32, #tpu.memory_space<vmem>>, %arg11: memref<1x16xf32, #tpu.memory_space<vmem>>, %arg12: memref<1x16xf32, #tpu.memory_space<vmem>>, %arg13: memref<1x16xf32, #tpu.memory_space<vmem>>, %arg14: memref<1x16xf32, #tpu.memory_space<vmem>>, %arg15: memref<2x8x16xf32, #tpu.memory_space<vmem>>) attributes {dimension_semantics = [], scalar_prefetch = 0 : i64, scratch_operands = 0 : i64, tpu.core_type = #tpu.core_type<tc>} {
    %c0 = arith.constant 0 : index
    %c0_0 = arith.constant 0 : index
    %c0_1 = arith.constant 0 : index
    %0 = vector.load %arg0[%c0, %c0_0, %c0_1] : memref<2x8x16xf32, #tpu.memory_space<vmem>>, vector<2x8x16xf32>
    %1 = vector.shape_cast %0 : vector<2x8x16xf32> to vector<16x16xf32>
    %c0_2 = arith.constant 0 : index
    %c0_3 = arith.constant 0 : index
    %2 = vector.load %arg1[%c0_2, %c0_3] : memref<16x48xf32, #tpu.memory_space<vmem>>, vector<16x48xf32>
    %3 = arith.truncf %1 : vector<16x16xf32> to vector<16x16xbf16>
    %4 = arith.truncf %2 : vector<16x48xf32> to vector<16x48xbf16>
    %cst = arith.constant dense<0.000000e+00> : vector<16x48xf32>
    %5 = tpu.matmul %3, %4, %cst {dimension_numbers = #tpu.dot_dimension_numbers<[1], [0], [0], [1], [0, 0, 1, 1], [], []>} : vector<16x16xbf16>, vector<16x48xbf16>, vector<16x48xf32> -> vector<16x48xf32>
    %c0_4 = arith.constant 0 : index
    %c0_5 = arith.constant 0 : index
    %6 = vector.load %arg2[%c0_4, %c0_5] : memref<1x48xf32, #tpu.memory_space<vmem>>, vector<1x48xf32>
    %7 = vector.broadcast %6 : vector<1x48xf32> to vector<16x48xf32>
    %8 = arith.addf %5, %7 : vector<16x48xf32>
    %c0_6 = arith.constant 0 : index
    %c0_7 = arith.constant 0 : index
    %9 = vector.load %arg3[%c0_6, %c0_7] : memref<16x16xf32, #tpu.memory_space<vmem>>, vector<16x16xf32>
    %10 = vector.extract_strided_slice %8 {offsets = [0, 0], sizes = [16, 8], strides = [1, 1]} : vector<16x48xf32> to vector<16x8xf32>
    %11 = vector.shape_cast %10 : vector<16x8xf32> to vector<2x8x8xf32>
    %cst_8 = arith.constant 0.353553385 : f32
    %12 = vector.broadcast %cst_8 : f32 to vector<2x8x8xf32>
    %13 = arith.mulf %11, %12 : vector<2x8x8xf32>
    %14 = vector.extract_strided_slice %8 {offsets = [0, 16], sizes = [16, 8], strides = [1, 1]} : vector<16x48xf32> to vector<16x8xf32>
    %15 = vector.shape_cast %14 : vector<16x8xf32> to vector<2x8x8xf32>
    %16 = vector.extract_strided_slice %8 {offsets = [0, 32], sizes = [16, 8], strides = [1, 1]} : vector<16x48xf32> to vector<16x8xf32>
    %17 = vector.shape_cast %16 : vector<16x8xf32> to vector<2x8x8xf32>
    %18 = arith.truncf %13 : vector<2x8x8xf32> to vector<2x8x8xbf16>
    %19 = arith.truncf %15 : vector<2x8x8xf32> to vector<2x8x8xbf16>
    "tpu.trace_start"() <{level = 10 : i32, message = "bqd,bkd->bqk"}> : () -> ()
    %cst_9 = arith.constant dense<0.000000e+00> : vector<2x8x8xf32>
    %20 = tpu.matmul %18, %19, %cst_9 {dimension_numbers = #tpu.dot_dimension_numbers<[2], [2], [1], [1], [0, 0, 0, 1, 1, 1], [0], [0]>} : vector<2x8x8xbf16>, vector<2x8x8xbf16>, vector<2x8x8xf32> -> vector<2x8x8xf32>
    "tpu.trace_stop"() : () -> ()
    %cst_10 = arith.constant dense<0xFF800000> : vector<2x8xf32>
    %21 = vector.multi_reduction <maximumf>, %20, %cst_10 [2] : vector<2x8x8xf32> to vector<2x8xf32>
    %22 = vector.shape_cast %21 : vector<2x8xf32> to vector<2x8x1xf32>
    %23 = vector.broadcast %22 : vector<2x8x1xf32> to vector<2x8x8xf32>
    %24 = arith.subf %20, %23 : vector<2x8x8xf32>
    %25 = math.exp %24 : vector<2x8x8xf32>
    %cst_11 = arith.constant dense<0.000000e+00> : vector<2x8xf32>
    %26 = vector.multi_reduction <add>, %25, %cst_11 [2] : vector<2x8x8xf32> to vector<2x8xf32>
    %27 = vector.shape_cast %26 : vector<2x8xf32> to vector<2x8x1xf32>
    %28 = tpu.reciprocal %27 {approx = true} : vector<2x8x1xf32> -> vector<2x8x1xf32>
    %29 = vector.broadcast %28 : vector<2x8x1xf32> to vector<2x8x8xf32>
    %30 = arith.mulf %25, %29 : vector<2x8x8xf32>
    %31 = arith.truncf %30 : vector<2x8x8xf32> to vector<2x8x8xbf16>
    %32 = arith.truncf %17 : vector<2x8x8xf32> to vector<2x8x8xbf16>
    "tpu.trace_start"() <{level = 10 : i32, message = "bqk,bkd->bqd"}> : () -> ()
    %cst_12 = arith.constant dense<0.000000e+00> : vector<2x8x8xf32>
    %33 = tpu.matmul %31, %32, %cst_12 {dimension_numbers = #tpu.dot_dimension_numbers<[2], [1], [1], [2], [0, 0, 0, 1, 1, 2], [0], [0]>} : vector<2x8x8xbf16>, vector<2x8x8xbf16>, vector<2x8x8xf32> -> vector<2x8x8xf32>
    "tpu.trace_stop"() : () -> ()
    %34 = vector.shape_cast %33 : vector<2x8x8xf32> to vector<16x8xf32>
    %35 = vector.extract_strided_slice %9 {offsets = [0, 0], sizes = [8, 16], strides = [1, 1]} : vector<16x16xf32> to vector<8x16xf32>
    %36 = arith.truncf %34 : vector<16x8xf32> to vector<16x8xbf16>
    %37 = arith.truncf %35 : vector<8x16xf32> to vector<8x16xbf16>
    %cst_13 = arith.constant dense<0.000000e+00> : vector<16x16xf32>
    %38 = tpu.matmul %36, %37, %cst_13 {dimension_numbers = #tpu.dot_dimension_numbers<[1], [0], [0], [1], [0, 0, 1, 1], [], []>} : vector<16x8xbf16>, vector<8x16xbf16>, vector<16x16xf32> -> vector<16x16xf32>
    %39 = vector.extract_strided_slice %8 {offsets = [0, 8], sizes = [16, 8], strides = [1, 1]} : vector<16x48xf32> to vector<16x8xf32>
    %40 = vector.shape_cast %39 : vector<16x8xf32> to vector<2x8x8xf32>
    %cst_14 = arith.constant 0.353553385 : f32
    %41 = vector.broadcast %cst_14 : f32 to vector<2x8x8xf32>
    %42 = arith.mulf %40, %41 : vector<2x8x8xf32>
    %43 = vector.extract_strided_slice %8 {offsets = [0, 24], sizes = [16, 8], strides = [1, 1]} : vector<16x48xf32> to vector<16x8xf32>
    %44 = vector.shape_cast %43 : vector<16x8xf32> to vector<2x8x8xf32>
    %45 = vector.extract_strided_slice %8 {offsets = [0, 40], sizes = [16, 8], strides = [1, 1]} : vector<16x48xf32> to vector<16x8xf32>
    %46 = vector.shape_cast %45 : vector<16x8xf32> to vector<2x8x8xf32>
    %47 = arith.truncf %42 : vector<2x8x8xf32> to vector<2x8x8xbf16>
    %48 = arith.truncf %44 : vector<2x8x8xf32> to vector<2x8x8xbf16>
    "tpu.trace_start"() <{level = 10 : i32, message = "bqd,bkd->bqk"}> : () -> ()
    %cst_15 = arith.constant dense<0.000000e+00> : vector<2x8x8xf32>
    %49 = tpu.matmul %47, %48, %cst_15 {dimension_numbers = #tpu.dot_dimension_numbers<[2], [2], [1], [1], [0, 0, 0, 1, 1, 1], [0], [0]>} : vector<2x8x8xbf16>, vector<2x8x8xbf16>, vector<2x8x8xf32> -> vector<2x8x8xf32>
    "tpu.trace_stop"() : () -> ()
    %cst_16 = arith.constant dense<0xFF800000> : vector<2x8xf32>
    %50 = vector.multi_reduction <maximumf>, %49, %cst_16 [2] : vector<2x8x8xf32> to vector<2x8xf32>
    %51 = vector.shape_cast %50 : vector<2x8xf32> to vector<2x8x1xf32>
    %52 = vector.broadcast %51 : vector<2x8x1xf32> to vector<2x8x8xf32>
    %53 = arith.subf %49, %52 : vector<2x8x8xf32>
    %54 = math.exp %53 : vector<2x8x8xf32>
    %cst_17 = arith.constant dense<0.000000e+00> : vector<2x8xf32>
    %55 = vector.multi_reduction <add>, %54, %cst_17 [2] : vector<2x8x8xf32> to vector<2x8xf32>
    %56 = vector.shape_cast %55 : vector<2x8xf32> to vector<2x8x1xf32>
    %57 = tpu.reciprocal %56 {approx = true} : vector<2x8x1xf32> -> vector<2x8x1xf32>
    %58 = vector.broadcast %57 : vector<2x8x1xf32> to vector<2x8x8xf32>
    %59 = arith.mulf %54, %58 : vector<2x8x8xf32>
    %60 = arith.truncf %59 : vector<2x8x8xf32> to vector<2x8x8xbf16>
    %61 = arith.truncf %46 : vector<2x8x8xf32> to vector<2x8x8xbf16>
    "tpu.trace_start"() <{level = 10 : i32, message = "bqk,bkd->bqd"}> : () -> ()
    %cst_18 = arith.constant dense<0.000000e+00> : vector<2x8x8xf32>
    %62 = tpu.matmul %60, %61, %cst_18 {dimension_numbers = #tpu.dot_dimension_numbers<[2], [1], [1], [2], [0, 0, 0, 1, 1, 2], [0], [0]>} : vector<2x8x8xbf16>, vector<2x8x8xbf16>, vector<2x8x8xf32> -> vector<2x8x8xf32>
    "tpu.trace_stop"() : () -> ()
    %63 = vector.shape_cast %62 : vector<2x8x8xf32> to vector<16x8xf32>
    %64 = vector.extract_strided_slice %9 {offsets = [8, 0], sizes = [8, 16], strides = [1, 1]} : vector<16x16xf32> to vector<8x16xf32>
    %65 = arith.truncf %63 : vector<16x8xf32> to vector<16x8xbf16>
    %66 = arith.truncf %64 : vector<8x16xf32> to vector<8x16xbf16>
    %cst_19 = arith.constant dense<0.000000e+00> : vector<16x16xf32>
    %67 = tpu.matmul %65, %66, %cst_19 {dimension_numbers = #tpu.dot_dimension_numbers<[1], [0], [0], [1], [0, 0, 1, 1], [], []>} : vector<16x8xbf16>, vector<8x16xbf16>, vector<16x16xf32> -> vector<16x16xf32>
    %68 = arith.addf %38, %67 : vector<16x16xf32>
    %c0_20 = arith.constant 0 : index
    %c0_21 = arith.constant 0 : index
    %69 = vector.load %arg4[%c0_20, %c0_21] : memref<1x16xf32, #tpu.memory_space<vmem>>, vector<1x16xf32>
    %70 = vector.broadcast %69 : vector<1x16xf32> to vector<16x16xf32>
    %71 = arith.addf %68, %70 : vector<16x16xf32>
    %72 = arith.addf %1, %71 : vector<16x16xf32>
    %c0_22 = arith.constant 0 : index
    %c0_23 = arith.constant 0 : index
    %73 = vector.load %arg5[%c0_22, %c0_23] : memref<1x16xf32, #tpu.memory_space<vmem>>, vector<1x16xf32>
    %c0_24 = arith.constant 0 : index
    %c0_25 = arith.constant 0 : index
    %74 = vector.load %arg6[%c0_24, %c0_25] : memref<1x16xf32, #tpu.memory_space<vmem>>, vector<1x16xf32>
    %cst_26 = arith.constant dense<0.000000e+00> : vector<16xf32>
    %75 = vector.multi_reduction <add>, %72, %cst_26 [1] : vector<16x16xf32> to vector<16xf32>
    %76 = vector.shape_cast %75 : vector<16xf32> to vector<16x1xf32>
    %cst_27 = arith.constant 1.600000e+01 : f32
    %77 = vector.broadcast %cst_27 : f32 to vector<16x1xf32>
    %78 = arith.divf %76, %77 : vector<16x1xf32>
    %79 = vector.broadcast %78 : vector<16x1xf32> to vector<16x16xf32>
    %80 = arith.subf %72, %79 : vector<16x16xf32>
    %81 = arith.mulf %80, %80 : vector<16x16xf32>
    %cst_28 = arith.constant dense<0.000000e+00> : vector<16xf32>
    %82 = vector.multi_reduction <add>, %81, %cst_28 [1] : vector<16x16xf32> to vector<16xf32>
    %83 = vector.shape_cast %82 : vector<16xf32> to vector<16x1xf32>
    %cst_29 = arith.constant 1.600000e+01 : f32
    %84 = vector.broadcast %cst_29 : f32 to vector<16x1xf32>
    %85 = arith.divf %83, %84 : vector<16x1xf32>
    %86 = vector.broadcast %78 : vector<16x1xf32> to vector<16x16xf32>
    %87 = arith.subf %72, %86 : vector<16x16xf32>
    %cst_30 = arith.constant 9.99999974E-6 : f32
    %88 = vector.broadcast %cst_30 : f32 to vector<16x1xf32>
    %89 = arith.addf %85, %88 : vector<16x1xf32>
    %90 = math.rsqrt %89 : vector<16x1xf32>
    %91 = vector.broadcast %90 : vector<16x1xf32> to vector<16x16xf32>
    %92 = arith.mulf %87, %91 : vector<16x16xf32>
    %93 = vector.broadcast %73 : vector<1x16xf32> to vector<16x16xf32>
    %94 = arith.mulf %92, %93 : vector<16x16xf32>
    %95 = vector.broadcast %74 : vector<1x16xf32> to vector<16x16xf32>
    %96 = arith.addf %94, %95 : vector<16x16xf32>
    %c0_31 = arith.constant 0 : index
    %c0_32 = arith.constant 0 : index
    %97 = vector.load %arg7[%c0_31, %c0_32] : memref<16x32xf32, #tpu.memory_space<vmem>>, vector<16x32xf32>
    %98 = arith.truncf %96 : vector<16x16xf32> to vector<16x16xbf16>
    %99 = arith.truncf %97 : vector<16x32xf32> to vector<16x32xbf16>
    %cst_33 = arith.constant dense<0.000000e+00> : vector<16x32xf32>
    %100 = tpu.matmul %98, %99, %cst_33 {dimension_numbers = #tpu.dot_dimension_numbers<[1], [0], [0], [1], [0, 0, 1, 1], [], []>} : vector<16x16xbf16>, vector<16x32xbf16>, vector<16x32xf32> -> vector<16x32xf32>
    %c0_34 = arith.constant 0 : index
    %c0_35 = arith.constant 0 : index
    %101 = vector.load %arg8[%c0_34, %c0_35] : memref<1x32xf32, #tpu.memory_space<vmem>>, vector<1x32xf32>
    %102 = vector.broadcast %101 : vector<1x32xf32> to vector<16x32xf32>
    %103 = arith.addf %100, %102 : vector<16x32xf32>
    %cst_36 = arith.constant 0.000000e+00 : f32
    %104 = vector.broadcast %cst_36 : f32 to vector<16x32xf32>
    %105 = arith.maximumf %103, %104 : vector<16x32xf32>
    %c0_37 = arith.constant 0 : index
    %c0_38 = arith.constant 0 : index
    %106 = vector.load %arg9[%c0_37, %c0_38] : memref<32x16xf32, #tpu.memory_space<vmem>>, vector<32x16xf32>
    %107 = arith.truncf %105 : vector<16x32xf32> to vector<16x32xbf16>
    %108 = arith.truncf %106 : vector<32x16xf32> to vector<32x16xbf16>
    %cst_39 = arith.constant dense<0.000000e+00> : vector<16x16xf32>
    %109 = tpu.matmul %107, %108, %cst_39 {dimension_numbers = #tpu.dot_dimension_numbers<[1], [0], [0], [1], [0, 0, 1, 1], [], []>} : vector<16x32xbf16>, vector<32x16xbf16>, vector<16x16xf32> -> vector<16x16xf32>
    %c0_40 = arith.constant 0 : index
    %c0_41 = arith.constant 0 : index
    %110 = vector.load %arg10[%c0_40, %c0_41] : memref<1x16xf32, #tpu.memory_space<vmem>>, vector<1x16xf32>
    %111 = vector.broadcast %110 : vector<1x16xf32> to vector<16x16xf32>
    %112 = arith.addf %109, %111 : vector<16x16xf32>
    %113 = arith.addf %96, %112 : vector<16x16xf32>
    %c0_42 = arith.constant 0 : index
    %c0_43 = arith.constant 0 : index
    %114 = vector.load %arg11[%c0_42, %c0_43] : memref<1x16xf32, #tpu.memory_space<vmem>>, vector<1x16xf32>
    %c0_44 = arith.constant 0 : index
    %c0_45 = arith.constant 0 : index
    %115 = vector.load %arg12[%c0_44, %c0_45] : memref<1x16xf32, #tpu.memory_space<vmem>>, vector<1x16xf32>
    %cst_46 = arith.constant dense<0.000000e+00> : vector<16xf32>
    %116 = vector.multi_reduction <add>, %113, %cst_46 [1] : vector<16x16xf32> to vector<16xf32>
    %117 = vector.shape_cast %116 : vector<16xf32> to vector<16x1xf32>
    %cst_47 = arith.constant 1.600000e+01 : f32
    %118 = vector.broadcast %cst_47 : f32 to vector<16x1xf32>
    %119 = arith.divf %117, %118 : vector<16x1xf32>
    %120 = vector.broadcast %119 : vector<16x1xf32> to vector<16x16xf32>
    %121 = arith.subf %113, %120 : vector<16x16xf32>
    %122 = arith.mulf %121, %121 : vector<16x16xf32>
    %cst_48 = arith.constant dense<0.000000e+00> : vector<16xf32>
    %123 = vector.multi_reduction <add>, %122, %cst_48 [1] : vector<16x16xf32> to vector<16xf32>
    %124 = vector.shape_cast %123 : vector<16xf32> to vector<16x1xf32>
    %cst_49 = arith.constant 1.600000e+01 : f32
    %125 = vector.broadcast %cst_49 : f32 to vector<16x1xf32>
    %126 = arith.divf %124, %125 : vector<16x1xf32>
    %127 = vector.broadcast %119 : vector<16x1xf32> to vector<16x16xf32>
    %128 = arith.subf %113, %127 : vector<16x16xf32>
    %cst_50 = arith.constant 9.99999974E-6 : f32
    %129 = vector.broadcast %cst_50 : f32 to vector<16x1xf32>
    %130 = arith.addf %126, %129 : vector<16x1xf32>
    %131 = math.rsqrt %130 : vector<16x1xf32>
    %132 = vector.broadcast %131 : vector<16x1xf32> to vector<16x16xf32>
    %133 = arith.mulf %128, %132 : vector<16x16xf32>
    %134 = vector.broadcast %114 : vector<1x16xf32> to vector<16x16xf32>
    %135 = arith.mulf %133, %134 : vector<16x16xf32>
    %136 = vector.broadcast %115 : vector<1x16xf32> to vector<16x16xf32>
    %137 = arith.addf %135, %136 : vector<16x16xf32>
    %138 = vector.shape_cast %137 : vector<16x16xf32> to vector<2x8x16xf32>
    %c0_51 = arith.constant 0 : index
    %c0_52 = arith.constant 0 : index
    %c0_53 = arith.constant 0 : index
    %139 = vector.load %arg15[%c0_51, %c0_52, %c0_53] : memref<2x8x16xf32, #tpu.memory_space<vmem>>, vector<2x8x16xf32>
    tpu.vector_store %arg15[%c0_51, %c0_52, %c0_53], %138 {strides = array<i32>} : memref<2x8x16xf32, #tpu.memory_space<vmem>>, vector<2x8x16xf32>,
    return
  }
}

module attributes {stable_mosaic.version = 11 : i64} {
  func.func @_gru2_kernel(%arg0: memref<8x2x16xf32, #tpu.memory_space<vmem>>, %arg1: memref<16x96xf32, #tpu.memory_space<vmem>>, %arg2: memref<1x96xf32, #tpu.memory_space<vmem>>, %arg3: memref<32x96xf32, #tpu.memory_space<vmem>>, %arg4: memref<1x96xf32, #tpu.memory_space<vmem>>, %arg5: memref<32x96xf32, #tpu.memory_space<vmem>>, %arg6: memref<1x96xf32, #tpu.memory_space<vmem>>, %arg7: memref<32x96xf32, #tpu.memory_space<vmem>>, %arg8: memref<1x96xf32, #tpu.memory_space<vmem>>, %arg9: memref<8x2x32xf32, #tpu.memory_space<vmem>>, %arg10: memref<8x2x96xf32, #tpu.memory_space<vmem>>, %arg11: memref<8x2x32xf32, #tpu.memory_space<vmem>>) attributes {dimension_semantics = [], scalar_prefetch = 0 : i64, scratch_operands = 2 : i64, tpu.core_type = #tpu.core_type<tc>} {
    %c0 = arith.constant 0 : index
    %c0_0 = arith.constant 0 : index
    %c0_1 = arith.constant 0 : index
    %0 = vector.load %arg0[%c0, %c0_0, %c0_1] : memref<8x2x16xf32, #tpu.memory_space<vmem>>, vector<8x2x16xf32>
    %1 = vector.shape_cast %0 : vector<8x2x16xf32> to vector<16x16xf32>
    %c0_2 = arith.constant 0 : index
    %c0_3 = arith.constant 0 : index
    %2 = vector.load %arg1[%c0_2, %c0_3] : memref<16x96xf32, #tpu.memory_space<vmem>>, vector<16x96xf32>
    %3 = arith.truncf %1 : vector<16x16xf32> to vector<16x16xbf16>
    %4 = arith.truncf %2 : vector<16x96xf32> to vector<16x96xbf16>
    %cst = arith.constant dense<0.000000e+00> : vector<16x96xf32>
    %5 = tpu.matmul %3, %4, %cst {dimension_numbers = #tpu.dot_dimension_numbers<[1], [0], [0], [1], [0, 0, 1, 1], [], []>} : vector<16x16xbf16>, vector<16x96xbf16>, vector<16x96xf32> -> vector<16x96xf32>
    %c0_4 = arith.constant 0 : index
    %c0_5 = arith.constant 0 : index
    %6 = vector.load %arg2[%c0_4, %c0_5] : memref<1x96xf32, #tpu.memory_space<vmem>>, vector<1x96xf32>
    %7 = vector.broadcast %6 : vector<1x96xf32> to vector<16x96xf32>
    %8 = arith.addf %5, %7 : vector<16x96xf32>
    %9 = vector.shape_cast %8 : vector<16x96xf32> to vector<8x2x96xf32>
    %c0_6 = arith.constant 0 : index
    %c0_7 = arith.constant 0 : index
    %c0_8 = arith.constant 0 : index
    %10 = vector.load %arg10[%c0_6, %c0_7, %c0_8] : memref<8x2x96xf32, #tpu.memory_space<vmem>>, vector<8x2x96xf32>
    tpu.vector_store %arg10[%c0_6, %c0_7, %c0_8], %9 {strides = array<i32>} : memref<8x2x96xf32, #tpu.memory_space<vmem>>, vector<8x2x96xf32>,
    %c0_9 = arith.constant 0 : index
    %c0_10 = arith.constant 0 : index
    %11 = vector.load %arg3[%c0_9, %c0_10] : memref<32x96xf32, #tpu.memory_space<vmem>>, vector<32x96xf32>
    %c0_11 = arith.constant 0 : index
    %c0_12 = arith.constant 0 : index
    %12 = vector.load %arg4[%c0_11, %c0_12] : memref<1x96xf32, #tpu.memory_space<vmem>>, vector<1x96xf32>
    %cst_13 = arith.constant 0.000000e+00 : f32
    %13 = vector.broadcast %cst_13 : f32 to vector<2x32xf32>
    %c0_i32 = arith.constant 0 : i32
    %14 = arith.index_cast %c0_i32 : i32 to index
    %c0_14 = arith.constant 0 : index
    %c0_15 = arith.constant 0 : index
    %15 = vector.load %arg10[%14, %c0_14, %c0_15] : memref<8x2x96xf32, #tpu.memory_space<vmem>>, vector<1x2x96xf32>
    %16 = vector.shape_cast %15 : vector<1x2x96xf32> to vector<2x96xf32>
    %17 = arith.truncf %13 : vector<2x32xf32> to vector<2x32xbf16>
    %18 = arith.truncf %11 : vector<32x96xf32> to vector<32x96xbf16>
    %cst_16 = arith.constant dense<0.000000e+00> : vector<2x96xf32>
    %19 = tpu.matmul %17, %18, %cst_16 {dimension_numbers = #tpu.dot_dimension_numbers<[1], [0], [0], [1], [0, 0, 1, 1], [], []>} : vector<2x32xbf16>, vector<32x96xbf16>, vector<2x96xf32> -> vector<2x96xf32>
    %20 = vector.broadcast %12 : vector<1x96xf32> to vector<2x96xf32>
    %21 = arith.addf %19, %20 : vector<2x96xf32>
    %22 = vector.extract_strided_slice %16 {offsets = [0, 0], sizes = [2, 32], strides = [1, 1]} : vector<2x96xf32> to vector<2x32xf32>
    %23 = vector.extract_strided_slice %21 {offsets = [0, 0], sizes = [2, 32], strides = [1, 1]} : vector<2x96xf32> to vector<2x32xf32>
    %24 = arith.addf %22, %23 : vector<2x32xf32>
    %25 = arith.negf %24 : vector<2x32xf32>
    %26 = math.exp %25 : vector<2x32xf32>
    %cst_17 = arith.constant 1.000000e+00 : f32
    %27 = vector.broadcast %cst_17 : f32 to vector<2x32xf32>
    %28 = arith.addf %27, %26 : vector<2x32xf32>
    %29 = arith.divf %27, %28 : vector<2x32xf32>
    %30 = vector.extract_strided_slice %16 {offsets = [0, 32], sizes = [2, 32], strides = [1, 1]} : vector<2x96xf32> to vector<2x32xf32>
    %31 = vector.extract_strided_slice %21 {offsets = [0, 32], sizes = [2, 32], strides = [1, 1]} : vector<2x96xf32> to vector<2x32xf32>
    %32 = arith.addf %30, %31 : vector<2x32xf32>
    %33 = arith.negf %32 : vector<2x32xf32>
    %34 = math.exp %33 : vector<2x32xf32>
    %cst_18 = arith.constant 1.000000e+00 : f32
    %35 = vector.broadcast %cst_18 : f32 to vector<2x32xf32>
    %36 = arith.addf %35, %34 : vector<2x32xf32>
    %37 = arith.divf %35, %36 : vector<2x32xf32>
    %38 = vector.extract_strided_slice %16 {offsets = [0, 64], sizes = [2, 32], strides = [1, 1]} : vector<2x96xf32> to vector<2x32xf32>
    %39 = vector.extract_strided_slice %21 {offsets = [0, 64], sizes = [2, 32], strides = [1, 1]} : vector<2x96xf32> to vector<2x32xf32>
    %40 = arith.mulf %29, %39 : vector<2x32xf32>
    %41 = arith.addf %38, %40 : vector<2x32xf32>
    %42 = math.tanh %41 : vector<2x32xf32>
    %cst_19 = arith.constant 1.000000e+00 : f32
    %43 = vector.broadcast %cst_19 : f32 to vector<2x32xf32>
    %44 = arith.subf %43, %37 : vector<2x32xf32>
    %45 = arith.mulf %44, %42 : vector<2x32xf32>
    %46 = arith.mulf %37, %13 : vector<2x32xf32>
    %47 = arith.addf %45, %46 : vector<2x32xf32>
    %48 = arith.index_cast %c0_i32 : i32 to index
    %c0_20 = arith.constant 0 : index
    %c0_21 = arith.constant 0 : index
    %49 = vector.load %arg11[%48, %c0_20, %c0_21] : memref<8x2x32xf32, #tpu.memory_space<vmem>>, vector<1x2x32xf32>
    %50 = vector.shape_cast %49 : vector<1x2x32xf32> to vector<2x32xf32>
    %51 = vector.shape_cast %47 : vector<2x32xf32> to vector<1x2x32xf32>
    tpu.vector_store %arg11[%48, %c0_20, %c0_21], %51 {strides = array<i32>} : memref<8x2x32xf32, #tpu.memory_space<vmem>>, vector<1x2x32xf32>,
    %c1_i32 = arith.constant 1 : i32
    %52 = arith.index_cast %c1_i32 : i32 to index
    %c0_22 = arith.constant 0 : index
    %c0_23 = arith.constant 0 : index
    %53 = vector.load %arg10[%52, %c0_22, %c0_23] : memref<8x2x96xf32, #tpu.memory_space<vmem>>, vector<1x2x96xf32>
    %54 = vector.shape_cast %53 : vector<1x2x96xf32> to vector<2x96xf32>
    %55 = arith.truncf %47 : vector<2x32xf32> to vector<2x32xbf16>
    %56 = arith.truncf %11 : vector<32x96xf32> to vector<32x96xbf16>
    %cst_24 = arith.constant dense<0.000000e+00> : vector<2x96xf32>
    %57 = tpu.matmul %55, %56, %cst_24 {dimension_numbers = #tpu.dot_dimension_numbers<[1], [0], [0], [1], [0, 0, 1, 1], [], []>} : vector<2x32xbf16>, vector<32x96xbf16>, vector<2x96xf32> -> vector<2x96xf32>
    %58 = vector.broadcast %12 : vector<1x96xf32> to vector<2x96xf32>
    %59 = arith.addf %57, %58 : vector<2x96xf32>
    %60 = vector.extract_strided_slice %54 {offsets = [0, 0], sizes = [2, 32], strides = [1, 1]} : vector<2x96xf32> to vector<2x32xf32>
    %61 = vector.extract_strided_slice %59 {offsets = [0, 0], sizes = [2, 32], strides = [1, 1]} : vector<2x96xf32> to vector<2x32xf32>
    %62 = arith.addf %60, %61 : vector<2x32xf32>
    %63 = arith.negf %62 : vector<2x32xf32>
    %64 = math.exp %63 : vector<2x32xf32>
    %cst_25 = arith.constant 1.000000e+00 : f32
    %65 = vector.broadcast %cst_25 : f32 to vector<2x32xf32>
    %66 = arith.addf %65, %64 : vector<2x32xf32>
    %67 = arith.divf %65, %66 : vector<2x32xf32>
    %68 = vector.extract_strided_slice %54 {offsets = [0, 32], sizes = [2, 32], strides = [1, 1]} : vector<2x96xf32> to vector<2x32xf32>
    %69 = vector.extract_strided_slice %59 {offsets = [0, 32], sizes = [2, 32], strides = [1, 1]} : vector<2x96xf32> to vector<2x32xf32>
    %70 = arith.addf %68, %69 : vector<2x32xf32>
    %71 = arith.negf %70 : vector<2x32xf32>
    %72 = math.exp %71 : vector<2x32xf32>
    %cst_26 = arith.constant 1.000000e+00 : f32
    %73 = vector.broadcast %cst_26 : f32 to vector<2x32xf32>
    %74 = arith.addf %73, %72 : vector<2x32xf32>
    %75 = arith.divf %73, %74 : vector<2x32xf32>
    %76 = vector.extract_strided_slice %54 {offsets = [0, 64], sizes = [2, 32], strides = [1, 1]} : vector<2x96xf32> to vector<2x32xf32>
    %77 = vector.extract_strided_slice %59 {offsets = [0, 64], sizes = [2, 32], strides = [1, 1]} : vector<2x96xf32> to vector<2x32xf32>
    %78 = arith.mulf %67, %77 : vector<2x32xf32>
    %79 = arith.addf %76, %78 : vector<2x32xf32>
    %80 = math.tanh %79 : vector<2x32xf32>
    %cst_27 = arith.constant 1.000000e+00 : f32
    %81 = vector.broadcast %cst_27 : f32 to vector<2x32xf32>
    %82 = arith.subf %81, %75 : vector<2x32xf32>
    %83 = arith.mulf %82, %80 : vector<2x32xf32>
    %84 = arith.mulf %75, %47 : vector<2x32xf32>
    %85 = arith.addf %83, %84 : vector<2x32xf32>
    %86 = arith.index_cast %c1_i32 : i32 to index
    %c0_28 = arith.constant 0 : index
    %c0_29 = arith.constant 0 : index
    %87 = vector.load %arg11[%86, %c0_28, %c0_29] : memref<8x2x32xf32, #tpu.memory_space<vmem>>, vector<1x2x32xf32>
    %88 = vector.shape_cast %87 : vector<1x2x32xf32> to vector<2x32xf32>
    %89 = vector.shape_cast %85 : vector<2x32xf32> to vector<1x2x32xf32>
    tpu.vector_store %arg11[%86, %c0_28, %c0_29], %89 {strides = array<i32>} : memref<8x2x32xf32, #tpu.memory_space<vmem>>, vector<1x2x32xf32>,
    %c2_i32 = arith.constant 2 : i32
    %90 = arith.index_cast %c2_i32 : i32 to index
    %c0_30 = arith.constant 0 : index
    %c0_31 = arith.constant 0 : index
    %91 = vector.load %arg10[%90, %c0_30, %c0_31] : memref<8x2x96xf32, #tpu.memory_space<vmem>>, vector<1x2x96xf32>
    %92 = vector.shape_cast %91 : vector<1x2x96xf32> to vector<2x96xf32>
    %93 = arith.truncf %85 : vector<2x32xf32> to vector<2x32xbf16>
    %94 = arith.truncf %11 : vector<32x96xf32> to vector<32x96xbf16>
    %cst_32 = arith.constant dense<0.000000e+00> : vector<2x96xf32>
    %95 = tpu.matmul %93, %94, %cst_32 {dimension_numbers = #tpu.dot_dimension_numbers<[1], [0], [0], [1], [0, 0, 1, 1], [], []>} : vector<2x32xbf16>, vector<32x96xbf16>, vector<2x96xf32> -> vector<2x96xf32>
    %96 = vector.broadcast %12 : vector<1x96xf32> to vector<2x96xf32>
    %97 = arith.addf %95, %96 : vector<2x96xf32>
    %98 = vector.extract_strided_slice %92 {offsets = [0, 0], sizes = [2, 32], strides = [1, 1]} : vector<2x96xf32> to vector<2x32xf32>
    %99 = vector.extract_strided_slice %97 {offsets = [0, 0], sizes = [2, 32], strides = [1, 1]} : vector<2x96xf32> to vector<2x32xf32>
    %100 = arith.addf %98, %99 : vector<2x32xf32>
    %101 = arith.negf %100 : vector<2x32xf32>
    %102 = math.exp %101 : vector<2x32xf32>
    %cst_33 = arith.constant 1.000000e+00 : f32
    %103 = vector.broadcast %cst_33 : f32 to vector<2x32xf32>
    %104 = arith.addf %103, %102 : vector<2x32xf32>
    %105 = arith.divf %103, %104 : vector<2x32xf32>
    %106 = vector.extract_strided_slice %92 {offsets = [0, 32], sizes = [2, 32], strides = [1, 1]} : vector<2x96xf32> to vector<2x32xf32>
    %107 = vector.extract_strided_slice %97 {offsets = [0, 32], sizes = [2, 32], strides = [1, 1]} : vector<2x96xf32> to vector<2x32xf32>
    %108 = arith.addf %106, %107 : vector<2x32xf32>
    %109 = arith.negf %108 : vector<2x32xf32>
    %110 = math.exp %109 : vector<2x32xf32>
    %cst_34 = arith.constant 1.000000e+00 : f32
    %111 = vector.broadcast %cst_34 : f32 to vector<2x32xf32>
    %112 = arith.addf %111, %110 : vector<2x32xf32>
    %113 = arith.divf %111, %112 : vector<2x32xf32>
    %114 = vector.extract_strided_slice %92 {offsets = [0, 64], sizes = [2, 32], strides = [1, 1]} : vector<2x96xf32> to vector<2x32xf32>
    %115 = vector.extract_strided_slice %97 {offsets = [0, 64], sizes = [2, 32], strides = [1, 1]} : vector<2x96xf32> to vector<2x32xf32>
    %116 = arith.mulf %105, %115 : vector<2x32xf32>
    %117 = arith.addf %114, %116 : vector<2x32xf32>
    %118 = math.tanh %117 : vector<2x32xf32>
    %cst_35 = arith.constant 1.000000e+00 : f32
    %119 = vector.broadcast %cst_35 : f32 to vector<2x32xf32>
    %120 = arith.subf %119, %113 : vector<2x32xf32>
    %121 = arith.mulf %120, %118 : vector<2x32xf32>
    %122 = arith.mulf %113, %85 : vector<2x32xf32>
    %123 = arith.addf %121, %122 : vector<2x32xf32>
    %124 = arith.index_cast %c2_i32 : i32 to index
    %c0_36 = arith.constant 0 : index
    %c0_37 = arith.constant 0 : index
    %125 = vector.load %arg11[%124, %c0_36, %c0_37] : memref<8x2x32xf32, #tpu.memory_space<vmem>>, vector<1x2x32xf32>
    %126 = vector.shape_cast %125 : vector<1x2x32xf32> to vector<2x32xf32>
    %127 = vector.shape_cast %123 : vector<2x32xf32> to vector<1x2x32xf32>
    tpu.vector_store %arg11[%124, %c0_36, %c0_37], %127 {strides = array<i32>} : memref<8x2x32xf32, #tpu.memory_space<vmem>>, vector<1x2x32xf32>,
    %c3_i32 = arith.constant 3 : i32
    %128 = arith.index_cast %c3_i32 : i32 to index
    %c0_38 = arith.constant 0 : index
    %c0_39 = arith.constant 0 : index
    %129 = vector.load %arg10[%128, %c0_38, %c0_39] : memref<8x2x96xf32, #tpu.memory_space<vmem>>, vector<1x2x96xf32>
    %130 = vector.shape_cast %129 : vector<1x2x96xf32> to vector<2x96xf32>
    %131 = arith.truncf %123 : vector<2x32xf32> to vector<2x32xbf16>
    %132 = arith.truncf %11 : vector<32x96xf32> to vector<32x96xbf16>
    %cst_40 = arith.constant dense<0.000000e+00> : vector<2x96xf32>
    %133 = tpu.matmul %131, %132, %cst_40 {dimension_numbers = #tpu.dot_dimension_numbers<[1], [0], [0], [1], [0, 0, 1, 1], [], []>} : vector<2x32xbf16>, vector<32x96xbf16>, vector<2x96xf32> -> vector<2x96xf32>
    %134 = vector.broadcast %12 : vector<1x96xf32> to vector<2x96xf32>
    %135 = arith.addf %133, %134 : vector<2x96xf32>
    %136 = vector.extract_strided_slice %130 {offsets = [0, 0], sizes = [2, 32], strides = [1, 1]} : vector<2x96xf32> to vector<2x32xf32>
    %137 = vector.extract_strided_slice %135 {offsets = [0, 0], sizes = [2, 32], strides = [1, 1]} : vector<2x96xf32> to vector<2x32xf32>
    %138 = arith.addf %136, %137 : vector<2x32xf32>
    %139 = arith.negf %138 : vector<2x32xf32>
    %140 = math.exp %139 : vector<2x32xf32>
    %cst_41 = arith.constant 1.000000e+00 : f32
    %141 = vector.broadcast %cst_41 : f32 to vector<2x32xf32>
    %142 = arith.addf %141, %140 : vector<2x32xf32>
    %143 = arith.divf %141, %142 : vector<2x32xf32>
    %144 = vector.extract_strided_slice %130 {offsets = [0, 32], sizes = [2, 32], strides = [1, 1]} : vector<2x96xf32> to vector<2x32xf32>
    %145 = vector.extract_strided_slice %135 {offsets = [0, 32], sizes = [2, 32], strides = [1, 1]} : vector<2x96xf32> to vector<2x32xf32>
    %146 = arith.addf %144, %145 : vector<2x32xf32>
    %147 = arith.negf %146 : vector<2x32xf32>
    %148 = math.exp %147 : vector<2x32xf32>
    %cst_42 = arith.constant 1.000000e+00 : f32
    %149 = vector.broadcast %cst_42 : f32 to vector<2x32xf32>
    %150 = arith.addf %149, %148 : vector<2x32xf32>
    %151 = arith.divf %149, %150 : vector<2x32xf32>
    %152 = vector.extract_strided_slice %130 {offsets = [0, 64], sizes = [2, 32], strides = [1, 1]} : vector<2x96xf32> to vector<2x32xf32>
    %153 = vector.extract_strided_slice %135 {offsets = [0, 64], sizes = [2, 32], strides = [1, 1]} : vector<2x96xf32> to vector<2x32xf32>
    %154 = arith.mulf %143, %153 : vector<2x32xf32>
    %155 = arith.addf %152, %154 : vector<2x32xf32>
    %156 = math.tanh %155 : vector<2x32xf32>
    %cst_43 = arith.constant 1.000000e+00 : f32
    %157 = vector.broadcast %cst_43 : f32 to vector<2x32xf32>
    %158 = arith.subf %157, %151 : vector<2x32xf32>
    %159 = arith.mulf %158, %156 : vector<2x32xf32>
    %160 = arith.mulf %151, %123 : vector<2x32xf32>
    %161 = arith.addf %159, %160 : vector<2x32xf32>
    %162 = arith.index_cast %c3_i32 : i32 to index
    %c0_44 = arith.constant 0 : index
    %c0_45 = arith.constant 0 : index
    %163 = vector.load %arg11[%162, %c0_44, %c0_45] : memref<8x2x32xf32, #tpu.memory_space<vmem>>, vector<1x2x32xf32>
    %164 = vector.shape_cast %163 : vector<1x2x32xf32> to vector<2x32xf32>
    %165 = vector.shape_cast %161 : vector<2x32xf32> to vector<1x2x32xf32>
    tpu.vector_store %arg11[%162, %c0_44, %c0_45], %165 {strides = array<i32>} : memref<8x2x32xf32, #tpu.memory_space<vmem>>, vector<1x2x32xf32>,
    %c4_i32 = arith.constant 4 : i32
    %166 = arith.index_cast %c4_i32 : i32 to index
    %c0_46 = arith.constant 0 : index
    %c0_47 = arith.constant 0 : index
    %167 = vector.load %arg10[%166, %c0_46, %c0_47] : memref<8x2x96xf32, #tpu.memory_space<vmem>>, vector<1x2x96xf32>
    %168 = vector.shape_cast %167 : vector<1x2x96xf32> to vector<2x96xf32>
    %169 = arith.truncf %161 : vector<2x32xf32> to vector<2x32xbf16>
    %170 = arith.truncf %11 : vector<32x96xf32> to vector<32x96xbf16>
    %cst_48 = arith.constant dense<0.000000e+00> : vector<2x96xf32>
    %171 = tpu.matmul %169, %170, %cst_48 {dimension_numbers = #tpu.dot_dimension_numbers<[1], [0], [0], [1], [0, 0, 1, 1], [], []>} : vector<2x32xbf16>, vector<32x96xbf16>, vector<2x96xf32> -> vector<2x96xf32>
    %172 = vector.broadcast %12 : vector<1x96xf32> to vector<2x96xf32>
    %173 = arith.addf %171, %172 : vector<2x96xf32>
    %174 = vector.extract_strided_slice %168 {offsets = [0, 0], sizes = [2, 32], strides = [1, 1]} : vector<2x96xf32> to vector<2x32xf32>
    %175 = vector.extract_strided_slice %173 {offsets = [0, 0], sizes = [2, 32], strides = [1, 1]} : vector<2x96xf32> to vector<2x32xf32>
    %176 = arith.addf %174, %175 : vector<2x32xf32>
    %177 = arith.negf %176 : vector<2x32xf32>
    %178 = math.exp %177 : vector<2x32xf32>
    %cst_49 = arith.constant 1.000000e+00 : f32
    %179 = vector.broadcast %cst_49 : f32 to vector<2x32xf32>
    %180 = arith.addf %179, %178 : vector<2x32xf32>
    %181 = arith.divf %179, %180 : vector<2x32xf32>
    %182 = vector.extract_strided_slice %168 {offsets = [0, 32], sizes = [2, 32], strides = [1, 1]} : vector<2x96xf32> to vector<2x32xf32>
    %183 = vector.extract_strided_slice %173 {offsets = [0, 32], sizes = [2, 32], strides = [1, 1]} : vector<2x96xf32> to vector<2x32xf32>
    %184 = arith.addf %182, %183 : vector<2x32xf32>
    %185 = arith.negf %184 : vector<2x32xf32>
    %186 = math.exp %185 : vector<2x32xf32>
    %cst_50 = arith.constant 1.000000e+00 : f32
    %187 = vector.broadcast %cst_50 : f32 to vector<2x32xf32>
    %188 = arith.addf %187, %186 : vector<2x32xf32>
    %189 = arith.divf %187, %188 : vector<2x32xf32>
    %190 = vector.extract_strided_slice %168 {offsets = [0, 64], sizes = [2, 32], strides = [1, 1]} : vector<2x96xf32> to vector<2x32xf32>
    %191 = vector.extract_strided_slice %173 {offsets = [0, 64], sizes = [2, 32], strides = [1, 1]} : vector<2x96xf32> to vector<2x32xf32>
    %192 = arith.mulf %181, %191 : vector<2x32xf32>
    %193 = arith.addf %190, %192 : vector<2x32xf32>
    %194 = math.tanh %193 : vector<2x32xf32>
    %cst_51 = arith.constant 1.000000e+00 : f32
    %195 = vector.broadcast %cst_51 : f32 to vector<2x32xf32>
    %196 = arith.subf %195, %189 : vector<2x32xf32>
    %197 = arith.mulf %196, %194 : vector<2x32xf32>
    %198 = arith.mulf %189, %161 : vector<2x32xf32>
    %199 = arith.addf %197, %198 : vector<2x32xf32>
    %200 = arith.index_cast %c4_i32 : i32 to index
    %c0_52 = arith.constant 0 : index
    %c0_53 = arith.constant 0 : index
    %201 = vector.load %arg11[%200, %c0_52, %c0_53] : memref<8x2x32xf32, #tpu.memory_space<vmem>>, vector<1x2x32xf32>
    %202 = vector.shape_cast %201 : vector<1x2x32xf32> to vector<2x32xf32>
    %203 = vector.shape_cast %199 : vector<2x32xf32> to vector<1x2x32xf32>
    tpu.vector_store %arg11[%200, %c0_52, %c0_53], %203 {strides = array<i32>} : memref<8x2x32xf32, #tpu.memory_space<vmem>>, vector<1x2x32xf32>,
    %c5_i32 = arith.constant 5 : i32
    %204 = arith.index_cast %c5_i32 : i32 to index
    %c0_54 = arith.constant 0 : index
    %c0_55 = arith.constant 0 : index
    %205 = vector.load %arg10[%204, %c0_54, %c0_55] : memref<8x2x96xf32, #tpu.memory_space<vmem>>, vector<1x2x96xf32>
    %206 = vector.shape_cast %205 : vector<1x2x96xf32> to vector<2x96xf32>
    %207 = arith.truncf %199 : vector<2x32xf32> to vector<2x32xbf16>
    %208 = arith.truncf %11 : vector<32x96xf32> to vector<32x96xbf16>
    %cst_56 = arith.constant dense<0.000000e+00> : vector<2x96xf32>
    %209 = tpu.matmul %207, %208, %cst_56 {dimension_numbers = #tpu.dot_dimension_numbers<[1], [0], [0], [1], [0, 0, 1, 1], [], []>} : vector<2x32xbf16>, vector<32x96xbf16>, vector<2x96xf32> -> vector<2x96xf32>
    %210 = vector.broadcast %12 : vector<1x96xf32> to vector<2x96xf32>
    %211 = arith.addf %209, %210 : vector<2x96xf32>
    %212 = vector.extract_strided_slice %206 {offsets = [0, 0], sizes = [2, 32], strides = [1, 1]} : vector<2x96xf32> to vector<2x32xf32>
    %213 = vector.extract_strided_slice %211 {offsets = [0, 0], sizes = [2, 32], strides = [1, 1]} : vector<2x96xf32> to vector<2x32xf32>
    %214 = arith.addf %212, %213 : vector<2x32xf32>
    %215 = arith.negf %214 : vector<2x32xf32>
    %216 = math.exp %215 : vector<2x32xf32>
    %cst_57 = arith.constant 1.000000e+00 : f32
    %217 = vector.broadcast %cst_57 : f32 to vector<2x32xf32>
    %218 = arith.addf %217, %216 : vector<2x32xf32>
    %219 = arith.divf %217, %218 : vector<2x32xf32>
    %220 = vector.extract_strided_slice %206 {offsets = [0, 32], sizes = [2, 32], strides = [1, 1]} : vector<2x96xf32> to vector<2x32xf32>
    %221 = vector.extract_strided_slice %211 {offsets = [0, 32], sizes = [2, 32], strides = [1, 1]} : vector<2x96xf32> to vector<2x32xf32>
    %222 = arith.addf %220, %221 : vector<2x32xf32>
    %223 = arith.negf %222 : vector<2x32xf32>
    %224 = math.exp %223 : vector<2x32xf32>
    %cst_58 = arith.constant 1.000000e+00 : f32
    %225 = vector.broadcast %cst_58 : f32 to vector<2x32xf32>
    %226 = arith.addf %225, %224 : vector<2x32xf32>
    %227 = arith.divf %225, %226 : vector<2x32xf32>
    %228 = vector.extract_strided_slice %206 {offsets = [0, 64], sizes = [2, 32], strides = [1, 1]} : vector<2x96xf32> to vector<2x32xf32>
    %229 = vector.extract_strided_slice %211 {offsets = [0, 64], sizes = [2, 32], strides = [1, 1]} : vector<2x96xf32> to vector<2x32xf32>
    %230 = arith.mulf %219, %229 : vector<2x32xf32>
    %231 = arith.addf %228, %230 : vector<2x32xf32>
    %232 = math.tanh %231 : vector<2x32xf32>
    %cst_59 = arith.constant 1.000000e+00 : f32
    %233 = vector.broadcast %cst_59 : f32 to vector<2x32xf32>
    %234 = arith.subf %233, %227 : vector<2x32xf32>
    %235 = arith.mulf %234, %232 : vector<2x32xf32>
    %236 = arith.mulf %227, %199 : vector<2x32xf32>
    %237 = arith.addf %235, %236 : vector<2x32xf32>
    %238 = arith.index_cast %c5_i32 : i32 to index
    %c0_60 = arith.constant 0 : index
    %c0_61 = arith.constant 0 : index
    %239 = vector.load %arg11[%238, %c0_60, %c0_61] : memref<8x2x32xf32, #tpu.memory_space<vmem>>, vector<1x2x32xf32>
    %240 = vector.shape_cast %239 : vector<1x2x32xf32> to vector<2x32xf32>
    %241 = vector.shape_cast %237 : vector<2x32xf32> to vector<1x2x32xf32>
    tpu.vector_store %arg11[%238, %c0_60, %c0_61], %241 {strides = array<i32>} : memref<8x2x32xf32, #tpu.memory_space<vmem>>, vector<1x2x32xf32>,
    %c6_i32 = arith.constant 6 : i32
    %242 = arith.index_cast %c6_i32 : i32 to index
    %c0_62 = arith.constant 0 : index
    %c0_63 = arith.constant 0 : index
    %243 = vector.load %arg10[%242, %c0_62, %c0_63] : memref<8x2x96xf32, #tpu.memory_space<vmem>>, vector<1x2x96xf32>
    %244 = vector.shape_cast %243 : vector<1x2x96xf32> to vector<2x96xf32>
    %245 = arith.truncf %237 : vector<2x32xf32> to vector<2x32xbf16>
    %246 = arith.truncf %11 : vector<32x96xf32> to vector<32x96xbf16>
    %cst_64 = arith.constant dense<0.000000e+00> : vector<2x96xf32>
    %247 = tpu.matmul %245, %246, %cst_64 {dimension_numbers = #tpu.dot_dimension_numbers<[1], [0], [0], [1], [0, 0, 1, 1], [], []>} : vector<2x32xbf16>, vector<32x96xbf16>, vector<2x96xf32> -> vector<2x96xf32>
    %248 = vector.broadcast %12 : vector<1x96xf32> to vector<2x96xf32>
    %249 = arith.addf %247, %248 : vector<2x96xf32>
    %250 = vector.extract_strided_slice %244 {offsets = [0, 0], sizes = [2, 32], strides = [1, 1]} : vector<2x96xf32> to vector<2x32xf32>
    %251 = vector.extract_strided_slice %249 {offsets = [0, 0], sizes = [2, 32], strides = [1, 1]} : vector<2x96xf32> to vector<2x32xf32>
    %252 = arith.addf %250, %251 : vector<2x32xf32>
    %253 = arith.negf %252 : vector<2x32xf32>
    %254 = math.exp %253 : vector<2x32xf32>
    %cst_65 = arith.constant 1.000000e+00 : f32
    %255 = vector.broadcast %cst_65 : f32 to vector<2x32xf32>
    %256 = arith.addf %255, %254 : vector<2x32xf32>
    %257 = arith.divf %255, %256 : vector<2x32xf32>
    %258 = vector.extract_strided_slice %244 {offsets = [0, 32], sizes = [2, 32], strides = [1, 1]} : vector<2x96xf32> to vector<2x32xf32>
    %259 = vector.extract_strided_slice %249 {offsets = [0, 32], sizes = [2, 32], strides = [1, 1]} : vector<2x96xf32> to vector<2x32xf32>
    %260 = arith.addf %258, %259 : vector<2x32xf32>
    %261 = arith.negf %260 : vector<2x32xf32>
    %262 = math.exp %261 : vector<2x32xf32>
    %cst_66 = arith.constant 1.000000e+00 : f32
    %263 = vector.broadcast %cst_66 : f32 to vector<2x32xf32>
    %264 = arith.addf %263, %262 : vector<2x32xf32>
    %265 = arith.divf %263, %264 : vector<2x32xf32>
    %266 = vector.extract_strided_slice %244 {offsets = [0, 64], sizes = [2, 32], strides = [1, 1]} : vector<2x96xf32> to vector<2x32xf32>
    %267 = vector.extract_strided_slice %249 {offsets = [0, 64], sizes = [2, 32], strides = [1, 1]} : vector<2x96xf32> to vector<2x32xf32>
    %268 = arith.mulf %257, %267 : vector<2x32xf32>
    %269 = arith.addf %266, %268 : vector<2x32xf32>
    %270 = math.tanh %269 : vector<2x32xf32>
    %cst_67 = arith.constant 1.000000e+00 : f32
    %271 = vector.broadcast %cst_67 : f32 to vector<2x32xf32>
    %272 = arith.subf %271, %265 : vector<2x32xf32>
    %273 = arith.mulf %272, %270 : vector<2x32xf32>
    %274 = arith.mulf %265, %237 : vector<2x32xf32>
    %275 = arith.addf %273, %274 : vector<2x32xf32>
    %276 = arith.index_cast %c6_i32 : i32 to index
    %c0_68 = arith.constant 0 : index
    %c0_69 = arith.constant 0 : index
    %277 = vector.load %arg11[%276, %c0_68, %c0_69] : memref<8x2x32xf32, #tpu.memory_space<vmem>>, vector<1x2x32xf32>
    %278 = vector.shape_cast %277 : vector<1x2x32xf32> to vector<2x32xf32>
    %279 = vector.shape_cast %275 : vector<2x32xf32> to vector<1x2x32xf32>
    tpu.vector_store %arg11[%276, %c0_68, %c0_69], %279 {strides = array<i32>} : memref<8x2x32xf32, #tpu.memory_space<vmem>>, vector<1x2x32xf32>,
    %c7_i32 = arith.constant 7 : i32
    %280 = arith.index_cast %c7_i32 : i32 to index
    %c0_70 = arith.constant 0 : index
    %c0_71 = arith.constant 0 : index
    %281 = vector.load %arg10[%280, %c0_70, %c0_71] : memref<8x2x96xf32, #tpu.memory_space<vmem>>, vector<1x2x96xf32>
    %282 = vector.shape_cast %281 : vector<1x2x96xf32> to vector<2x96xf32>
    %283 = arith.truncf %275 : vector<2x32xf32> to vector<2x32xbf16>
    %284 = arith.truncf %11 : vector<32x96xf32> to vector<32x96xbf16>
    %cst_72 = arith.constant dense<0.000000e+00> : vector<2x96xf32>
    %285 = tpu.matmul %283, %284, %cst_72 {dimension_numbers = #tpu.dot_dimension_numbers<[1], [0], [0], [1], [0, 0, 1, 1], [], []>} : vector<2x32xbf16>, vector<32x96xbf16>, vector<2x96xf32> -> vector<2x96xf32>
    %286 = vector.broadcast %12 : vector<1x96xf32> to vector<2x96xf32>
    %287 = arith.addf %285, %286 : vector<2x96xf32>
    %288 = vector.extract_strided_slice %282 {offsets = [0, 0], sizes = [2, 32], strides = [1, 1]} : vector<2x96xf32> to vector<2x32xf32>
    %289 = vector.extract_strided_slice %287 {offsets = [0, 0], sizes = [2, 32], strides = [1, 1]} : vector<2x96xf32> to vector<2x32xf32>
    %290 = arith.addf %288, %289 : vector<2x32xf32>
    %291 = arith.negf %290 : vector<2x32xf32>
    %292 = math.exp %291 : vector<2x32xf32>
    %cst_73 = arith.constant 1.000000e+00 : f32
    %293 = vector.broadcast %cst_73 : f32 to vector<2x32xf32>
    %294 = arith.addf %293, %292 : vector<2x32xf32>
    %295 = arith.divf %293, %294 : vector<2x32xf32>
    %296 = vector.extract_strided_slice %282 {offsets = [0, 32], sizes = [2, 32], strides = [1, 1]} : vector<2x96xf32> to vector<2x32xf32>
    %297 = vector.extract_strided_slice %287 {offsets = [0, 32], sizes = [2, 32], strides = [1, 1]} : vector<2x96xf32> to vector<2x32xf32>
    %298 = arith.addf %296, %297 : vector<2x32xf32>
    %299 = arith.negf %298 : vector<2x32xf32>
    %300 = math.exp %299 : vector<2x32xf32>
    %cst_74 = arith.constant 1.000000e+00 : f32
    %301 = vector.broadcast %cst_74 : f32 to vector<2x32xf32>
    %302 = arith.addf %301, %300 : vector<2x32xf32>
    %303 = arith.divf %301, %302 : vector<2x32xf32>
    %304 = vector.extract_strided_slice %282 {offsets = [0, 64], sizes = [2, 32], strides = [1, 1]} : vector<2x96xf32> to vector<2x32xf32>
    %305 = vector.extract_strided_slice %287 {offsets = [0, 64], sizes = [2, 32], strides = [1, 1]} : vector<2x96xf32> to vector<2x32xf32>
    %306 = arith.mulf %295, %305 : vector<2x32xf32>
    %307 = arith.addf %304, %306 : vector<2x32xf32>
    %308 = math.tanh %307 : vector<2x32xf32>
    %cst_75 = arith.constant 1.000000e+00 : f32
    %309 = vector.broadcast %cst_75 : f32 to vector<2x32xf32>
    %310 = arith.subf %309, %303 : vector<2x32xf32>
    %311 = arith.mulf %310, %308 : vector<2x32xf32>
    %312 = arith.mulf %303, %275 : vector<2x32xf32>
    %313 = arith.addf %311, %312 : vector<2x32xf32>
    %314 = arith.index_cast %c7_i32 : i32 to index
    %c0_76 = arith.constant 0 : index
    %c0_77 = arith.constant 0 : index
    %315 = vector.load %arg11[%314, %c0_76, %c0_77] : memref<8x2x32xf32, #tpu.memory_space<vmem>>, vector<1x2x32xf32>
    %316 = vector.shape_cast %315 : vector<1x2x32xf32> to vector<2x32xf32>
    %317 = vector.shape_cast %313 : vector<2x32xf32> to vector<1x2x32xf32>
    tpu.vector_store %arg11[%314, %c0_76, %c0_77], %317 {strides = array<i32>} : memref<8x2x32xf32, #tpu.memory_space<vmem>>, vector<1x2x32xf32>,
    %c8_i32 = arith.constant 8 : i32
    %c0_78 = arith.constant 0 : index
    %c0_79 = arith.constant 0 : index
    %c0_80 = arith.constant 0 : index
    %318 = vector.load %arg11[%c0_78, %c0_79, %c0_80] : memref<8x2x32xf32, #tpu.memory_space<vmem>>, vector<8x2x32xf32>
    %319 = vector.shape_cast %318 : vector<8x2x32xf32> to vector<16x32xf32>
    %c0_81 = arith.constant 0 : index
    %c0_82 = arith.constant 0 : index
    %320 = vector.load %arg5[%c0_81, %c0_82] : memref<32x96xf32, #tpu.memory_space<vmem>>, vector<32x96xf32>
    %321 = arith.truncf %319 : vector<16x32xf32> to vector<16x32xbf16>
    %322 = arith.truncf %320 : vector<32x96xf32> to vector<32x96xbf16>
    %cst_83 = arith.constant dense<0.000000e+00> : vector<16x96xf32>
    %323 = tpu.matmul %321, %322, %cst_83 {dimension_numbers = #tpu.dot_dimension_numbers<[1], [0], [0], [1], [0, 0, 1, 1], [], []>} : vector<16x32xbf16>, vector<32x96xbf16>, vector<16x96xf32> -> vector<16x96xf32>
    %c0_84 = arith.constant 0 : index
    %c0_85 = arith.constant 0 : index
    %324 = vector.load %arg6[%c0_84, %c0_85] : memref<1x96xf32, #tpu.memory_space<vmem>>, vector<1x96xf32>
    %325 = vector.broadcast %324 : vector<1x96xf32> to vector<16x96xf32>
    %326 = arith.addf %323, %325 : vector<16x96xf32>
    %327 = vector.shape_cast %326 : vector<16x96xf32> to vector<8x2x96xf32>
    %c0_86 = arith.constant 0 : index
    %c0_87 = arith.constant 0 : index
    %c0_88 = arith.constant 0 : index
    %328 = vector.load %arg10[%c0_86, %c0_87, %c0_88] : memref<8x2x96xf32, #tpu.memory_space<vmem>>, vector<8x2x96xf32>
    tpu.vector_store %arg10[%c0_86, %c0_87, %c0_88], %327 {strides = array<i32>} : memref<8x2x96xf32, #tpu.memory_space<vmem>>, vector<8x2x96xf32>,
    %c0_89 = arith.constant 0 : index
    %c0_90 = arith.constant 0 : index
    %329 = vector.load %arg7[%c0_89, %c0_90] : memref<32x96xf32, #tpu.memory_space<vmem>>, vector<32x96xf32>
    %c0_91 = arith.constant 0 : index
    %c0_92 = arith.constant 0 : index
    %330 = vector.load %arg8[%c0_91, %c0_92] : memref<1x96xf32, #tpu.memory_space<vmem>>, vector<1x96xf32>
    %cst_93 = arith.constant 0.000000e+00 : f32
    %331 = vector.broadcast %cst_93 : f32 to vector<2x32xf32>
    %c0_i32_94 = arith.constant 0 : i32
    %332 = arith.index_cast %c0_i32_94 : i32 to index
    %c0_95 = arith.constant 0 : index
    %c0_96 = arith.constant 0 : index
    %333 = vector.load %arg10[%332, %c0_95, %c0_96] : memref<8x2x96xf32, #tpu.memory_space<vmem>>, vector<1x2x96xf32>
    %334 = vector.shape_cast %333 : vector<1x2x96xf32> to vector<2x96xf32>
    %335 = arith.truncf %331 : vector<2x32xf32> to vector<2x32xbf16>
    %336 = arith.truncf %329 : vector<32x96xf32> to vector<32x96xbf16>
    %cst_97 = arith.constant dense<0.000000e+00> : vector<2x96xf32>
    %337 = tpu.matmul %335, %336, %cst_97 {dimension_numbers = #tpu.dot_dimension_numbers<[1], [0], [0], [1], [0, 0, 1, 1], [], []>} : vector<2x32xbf16>, vector<32x96xbf16>, vector<2x96xf32> -> vector<2x96xf32>
    %338 = vector.broadcast %330 : vector<1x96xf32> to vector<2x96xf32>
    %339 = arith.addf %337, %338 : vector<2x96xf32>
    %340 = vector.extract_strided_slice %334 {offsets = [0, 0], sizes = [2, 32], strides = [1, 1]} : vector<2x96xf32> to vector<2x32xf32>
    %341 = vector.extract_strided_slice %339 {offsets = [0, 0], sizes = [2, 32], strides = [1, 1]} : vector<2x96xf32> to vector<2x32xf32>
    %342 = arith.addf %340, %341 : vector<2x32xf32>
    %343 = arith.negf %342 : vector<2x32xf32>
    %344 = math.exp %343 : vector<2x32xf32>
    %cst_98 = arith.constant 1.000000e+00 : f32
    %345 = vector.broadcast %cst_98 : f32 to vector<2x32xf32>
    %346 = arith.addf %345, %344 : vector<2x32xf32>
    %347 = arith.divf %345, %346 : vector<2x32xf32>
    %348 = vector.extract_strided_slice %334 {offsets = [0, 32], sizes = [2, 32], strides = [1, 1]} : vector<2x96xf32> to vector<2x32xf32>
    %349 = vector.extract_strided_slice %339 {offsets = [0, 32], sizes = [2, 32], strides = [1, 1]} : vector<2x96xf32> to vector<2x32xf32>
    %350 = arith.addf %348, %349 : vector<2x32xf32>
    %351 = arith.negf %350 : vector<2x32xf32>
    %352 = math.exp %351 : vector<2x32xf32>
    %cst_99 = arith.constant 1.000000e+00 : f32
    %353 = vector.broadcast %cst_99 : f32 to vector<2x32xf32>
    %354 = arith.addf %353, %352 : vector<2x32xf32>
    %355 = arith.divf %353, %354 : vector<2x32xf32>
    %356 = vector.extract_strided_slice %334 {offsets = [0, 64], sizes = [2, 32], strides = [1, 1]} : vector<2x96xf32> to vector<2x32xf32>
    %357 = vector.extract_strided_slice %339 {offsets = [0, 64], sizes = [2, 32], strides = [1, 1]} : vector<2x96xf32> to vector<2x32xf32>
    %358 = arith.mulf %347, %357 : vector<2x32xf32>
    %359 = arith.addf %356, %358 : vector<2x32xf32>
    %360 = math.tanh %359 : vector<2x32xf32>
    %cst_100 = arith.constant 1.000000e+00 : f32
    %361 = vector.broadcast %cst_100 : f32 to vector<2x32xf32>
    %362 = arith.subf %361, %355 : vector<2x32xf32>
    %363 = arith.mulf %362, %360 : vector<2x32xf32>
    %364 = arith.mulf %355, %331 : vector<2x32xf32>
    %365 = arith.addf %363, %364 : vector<2x32xf32>
    %366 = arith.index_cast %c0_i32_94 : i32 to index
    %c0_101 = arith.constant 0 : index
    %c0_102 = arith.constant 0 : index
    %367 = vector.load %arg9[%366, %c0_101, %c0_102] : memref<8x2x32xf32, #tpu.memory_space<vmem>>, vector<1x2x32xf32>
    %368 = vector.shape_cast %367 : vector<1x2x32xf32> to vector<2x32xf32>
    %369 = vector.shape_cast %365 : vector<2x32xf32> to vector<1x2x32xf32>
    tpu.vector_store %arg9[%366, %c0_101, %c0_102], %369 {strides = array<i32>} : memref<8x2x32xf32, #tpu.memory_space<vmem>>, vector<1x2x32xf32>,
    %c1_i32_103 = arith.constant 1 : i32
    %370 = arith.index_cast %c1_i32_103 : i32 to index
    %c0_104 = arith.constant 0 : index
    %c0_105 = arith.constant 0 : index
    %371 = vector.load %arg10[%370, %c0_104, %c0_105] : memref<8x2x96xf32, #tpu.memory_space<vmem>>, vector<1x2x96xf32>
    %372 = vector.shape_cast %371 : vector<1x2x96xf32> to vector<2x96xf32>
    %373 = arith.truncf %365 : vector<2x32xf32> to vector<2x32xbf16>
    %374 = arith.truncf %329 : vector<32x96xf32> to vector<32x96xbf16>
    %cst_106 = arith.constant dense<0.000000e+00> : vector<2x96xf32>
    %375 = tpu.matmul %373, %374, %cst_106 {dimension_numbers = #tpu.dot_dimension_numbers<[1], [0], [0], [1], [0, 0, 1, 1], [], []>} : vector<2x32xbf16>, vector<32x96xbf16>, vector<2x96xf32> -> vector<2x96xf32>
    %376 = vector.broadcast %330 : vector<1x96xf32> to vector<2x96xf32>
    %377 = arith.addf %375, %376 : vector<2x96xf32>
    %378 = vector.extract_strided_slice %372 {offsets = [0, 0], sizes = [2, 32], strides = [1, 1]} : vector<2x96xf32> to vector<2x32xf32>
    %379 = vector.extract_strided_slice %377 {offsets = [0, 0], sizes = [2, 32], strides = [1, 1]} : vector<2x96xf32> to vector<2x32xf32>
    %380 = arith.addf %378, %379 : vector<2x32xf32>
    %381 = arith.negf %380 : vector<2x32xf32>
    %382 = math.exp %381 : vector<2x32xf32>
    %cst_107 = arith.constant 1.000000e+00 : f32
    %383 = vector.broadcast %cst_107 : f32 to vector<2x32xf32>
    %384 = arith.addf %383, %382 : vector<2x32xf32>
    %385 = arith.divf %383, %384 : vector<2x32xf32>
    %386 = vector.extract_strided_slice %372 {offsets = [0, 32], sizes = [2, 32], strides = [1, 1]} : vector<2x96xf32> to vector<2x32xf32>
    %387 = vector.extract_strided_slice %377 {offsets = [0, 32], sizes = [2, 32], strides = [1, 1]} : vector<2x96xf32> to vector<2x32xf32>
    %388 = arith.addf %386, %387 : vector<2x32xf32>
    %389 = arith.negf %388 : vector<2x32xf32>
    %390 = math.exp %389 : vector<2x32xf32>
    %cst_108 = arith.constant 1.000000e+00 : f32
    %391 = vector.broadcast %cst_108 : f32 to vector<2x32xf32>
    %392 = arith.addf %391, %390 : vector<2x32xf32>
    %393 = arith.divf %391, %392 : vector<2x32xf32>
    %394 = vector.extract_strided_slice %372 {offsets = [0, 64], sizes = [2, 32], strides = [1, 1]} : vector<2x96xf32> to vector<2x32xf32>
    %395 = vector.extract_strided_slice %377 {offsets = [0, 64], sizes = [2, 32], strides = [1, 1]} : vector<2x96xf32> to vector<2x32xf32>
    %396 = arith.mulf %385, %395 : vector<2x32xf32>
    %397 = arith.addf %394, %396 : vector<2x32xf32>
    %398 = math.tanh %397 : vector<2x32xf32>
    %cst_109 = arith.constant 1.000000e+00 : f32
    %399 = vector.broadcast %cst_109 : f32 to vector<2x32xf32>
    %400 = arith.subf %399, %393 : vector<2x32xf32>
    %401 = arith.mulf %400, %398 : vector<2x32xf32>
    %402 = arith.mulf %393, %365 : vector<2x32xf32>
    %403 = arith.addf %401, %402 : vector<2x32xf32>
    %404 = arith.index_cast %c1_i32_103 : i32 to index
    %c0_110 = arith.constant 0 : index
    %c0_111 = arith.constant 0 : index
    %405 = vector.load %arg9[%404, %c0_110, %c0_111] : memref<8x2x32xf32, #tpu.memory_space<vmem>>, vector<1x2x32xf32>
    %406 = vector.shape_cast %405 : vector<1x2x32xf32> to vector<2x32xf32>
    %407 = vector.shape_cast %403 : vector<2x32xf32> to vector<1x2x32xf32>
    tpu.vector_store %arg9[%404, %c0_110, %c0_111], %407 {strides = array<i32>} : memref<8x2x32xf32, #tpu.memory_space<vmem>>, vector<1x2x32xf32>,
    %c2_i32_112 = arith.constant 2 : i32
    %408 = arith.index_cast %c2_i32_112 : i32 to index
    %c0_113 = arith.constant 0 : index
    %c0_114 = arith.constant 0 : index
    %409 = vector.load %arg10[%408, %c0_113, %c0_114] : memref<8x2x96xf32, #tpu.memory_space<vmem>>, vector<1x2x96xf32>
    %410 = vector.shape_cast %409 : vector<1x2x96xf32> to vector<2x96xf32>
    %411 = arith.truncf %403 : vector<2x32xf32> to vector<2x32xbf16>
    %412 = arith.truncf %329 : vector<32x96xf32> to vector<32x96xbf16>
    %cst_115 = arith.constant dense<0.000000e+00> : vector<2x96xf32>
    %413 = tpu.matmul %411, %412, %cst_115 {dimension_numbers = #tpu.dot_dimension_numbers<[1], [0], [0], [1], [0, 0, 1, 1], [], []>} : vector<2x32xbf16>, vector<32x96xbf16>, vector<2x96xf32> -> vector<2x96xf32>
    %414 = vector.broadcast %330 : vector<1x96xf32> to vector<2x96xf32>
    %415 = arith.addf %413, %414 : vector<2x96xf32>
    %416 = vector.extract_strided_slice %410 {offsets = [0, 0], sizes = [2, 32], strides = [1, 1]} : vector<2x96xf32> to vector<2x32xf32>
    %417 = vector.extract_strided_slice %415 {offsets = [0, 0], sizes = [2, 32], strides = [1, 1]} : vector<2x96xf32> to vector<2x32xf32>
    %418 = arith.addf %416, %417 : vector<2x32xf32>
    %419 = arith.negf %418 : vector<2x32xf32>
    %420 = math.exp %419 : vector<2x32xf32>
    %cst_116 = arith.constant 1.000000e+00 : f32
    %421 = vector.broadcast %cst_116 : f32 to vector<2x32xf32>
    %422 = arith.addf %421, %420 : vector<2x32xf32>
    %423 = arith.divf %421, %422 : vector<2x32xf32>
    %424 = vector.extract_strided_slice %410 {offsets = [0, 32], sizes = [2, 32], strides = [1, 1]} : vector<2x96xf32> to vector<2x32xf32>
    %425 = vector.extract_strided_slice %415 {offsets = [0, 32], sizes = [2, 32], strides = [1, 1]} : vector<2x96xf32> to vector<2x32xf32>
    %426 = arith.addf %424, %425 : vector<2x32xf32>
    %427 = arith.negf %426 : vector<2x32xf32>
    %428 = math.exp %427 : vector<2x32xf32>
    %cst_117 = arith.constant 1.000000e+00 : f32
    %429 = vector.broadcast %cst_117 : f32 to vector<2x32xf32>
    %430 = arith.addf %429, %428 : vector<2x32xf32>
    %431 = arith.divf %429, %430 : vector<2x32xf32>
    %432 = vector.extract_strided_slice %410 {offsets = [0, 64], sizes = [2, 32], strides = [1, 1]} : vector<2x96xf32> to vector<2x32xf32>
    %433 = vector.extract_strided_slice %415 {offsets = [0, 64], sizes = [2, 32], strides = [1, 1]} : vector<2x96xf32> to vector<2x32xf32>
    %434 = arith.mulf %423, %433 : vector<2x32xf32>
    %435 = arith.addf %432, %434 : vector<2x32xf32>
    %436 = math.tanh %435 : vector<2x32xf32>
    %cst_118 = arith.constant 1.000000e+00 : f32
    %437 = vector.broadcast %cst_118 : f32 to vector<2x32xf32>
    %438 = arith.subf %437, %431 : vector<2x32xf32>
    %439 = arith.mulf %438, %436 : vector<2x32xf32>
    %440 = arith.mulf %431, %403 : vector<2x32xf32>
    %441 = arith.addf %439, %440 : vector<2x32xf32>
    %442 = arith.index_cast %c2_i32_112 : i32 to index
    %c0_119 = arith.constant 0 : index
    %c0_120 = arith.constant 0 : index
    %443 = vector.load %arg9[%442, %c0_119, %c0_120] : memref<8x2x32xf32, #tpu.memory_space<vmem>>, vector<1x2x32xf32>
    %444 = vector.shape_cast %443 : vector<1x2x32xf32> to vector<2x32xf32>
    %445 = vector.shape_cast %441 : vector<2x32xf32> to vector<1x2x32xf32>
    tpu.vector_store %arg9[%442, %c0_119, %c0_120], %445 {strides = array<i32>} : memref<8x2x32xf32, #tpu.memory_space<vmem>>, vector<1x2x32xf32>,
    %c3_i32_121 = arith.constant 3 : i32
    %446 = arith.index_cast %c3_i32_121 : i32 to index
    %c0_122 = arith.constant 0 : index
    %c0_123 = arith.constant 0 : index
    %447 = vector.load %arg10[%446, %c0_122, %c0_123] : memref<8x2x96xf32, #tpu.memory_space<vmem>>, vector<1x2x96xf32>
    %448 = vector.shape_cast %447 : vector<1x2x96xf32> to vector<2x96xf32>
    %449 = arith.truncf %441 : vector<2x32xf32> to vector<2x32xbf16>
    %450 = arith.truncf %329 : vector<32x96xf32> to vector<32x96xbf16>
    %cst_124 = arith.constant dense<0.000000e+00> : vector<2x96xf32>
    %451 = tpu.matmul %449, %450, %cst_124 {dimension_numbers = #tpu.dot_dimension_numbers<[1], [0], [0], [1], [0, 0, 1, 1], [], []>} : vector<2x32xbf16>, vector<32x96xbf16>, vector<2x96xf32> -> vector<2x96xf32>
    %452 = vector.broadcast %330 : vector<1x96xf32> to vector<2x96xf32>
    %453 = arith.addf %451, %452 : vector<2x96xf32>
    %454 = vector.extract_strided_slice %448 {offsets = [0, 0], sizes = [2, 32], strides = [1, 1]} : vector<2x96xf32> to vector<2x32xf32>
    %455 = vector.extract_strided_slice %453 {offsets = [0, 0], sizes = [2, 32], strides = [1, 1]} : vector<2x96xf32> to vector<2x32xf32>
    %456 = arith.addf %454, %455 : vector<2x32xf32>
    %457 = arith.negf %456 : vector<2x32xf32>
    %458 = math.exp %457 : vector<2x32xf32>
    %cst_125 = arith.constant 1.000000e+00 : f32
    %459 = vector.broadcast %cst_125 : f32 to vector<2x32xf32>
    %460 = arith.addf %459, %458 : vector<2x32xf32>
    %461 = arith.divf %459, %460 : vector<2x32xf32>
    %462 = vector.extract_strided_slice %448 {offsets = [0, 32], sizes = [2, 32], strides = [1, 1]} : vector<2x96xf32> to vector<2x32xf32>
    %463 = vector.extract_strided_slice %453 {offsets = [0, 32], sizes = [2, 32], strides = [1, 1]} : vector<2x96xf32> to vector<2x32xf32>
    %464 = arith.addf %462, %463 : vector<2x32xf32>
    %465 = arith.negf %464 : vector<2x32xf32>
    %466 = math.exp %465 : vector<2x32xf32>
    %cst_126 = arith.constant 1.000000e+00 : f32
    %467 = vector.broadcast %cst_126 : f32 to vector<2x32xf32>
    %468 = arith.addf %467, %466 : vector<2x32xf32>
    %469 = arith.divf %467, %468 : vector<2x32xf32>
    %470 = vector.extract_strided_slice %448 {offsets = [0, 64], sizes = [2, 32], strides = [1, 1]} : vector<2x96xf32> to vector<2x32xf32>
    %471 = vector.extract_strided_slice %453 {offsets = [0, 64], sizes = [2, 32], strides = [1, 1]} : vector<2x96xf32> to vector<2x32xf32>
    %472 = arith.mulf %461, %471 : vector<2x32xf32>
    %473 = arith.addf %470, %472 : vector<2x32xf32>
    %474 = math.tanh %473 : vector<2x32xf32>
    %cst_127 = arith.constant 1.000000e+00 : f32
    %475 = vector.broadcast %cst_127 : f32 to vector<2x32xf32>
    %476 = arith.subf %475, %469 : vector<2x32xf32>
    %477 = arith.mulf %476, %474 : vector<2x32xf32>
    %478 = arith.mulf %469, %441 : vector<2x32xf32>
    %479 = arith.addf %477, %478 : vector<2x32xf32>
    %480 = arith.index_cast %c3_i32_121 : i32 to index
    %c0_128 = arith.constant 0 : index
    %c0_129 = arith.constant 0 : index
    %481 = vector.load %arg9[%480, %c0_128, %c0_129] : memref<8x2x32xf32, #tpu.memory_space<vmem>>, vector<1x2x32xf32>
    %482 = vector.shape_cast %481 : vector<1x2x32xf32> to vector<2x32xf32>
    %483 = vector.shape_cast %479 : vector<2x32xf32> to vector<1x2x32xf32>
    tpu.vector_store %arg9[%480, %c0_128, %c0_129], %483 {strides = array<i32>} : memref<8x2x32xf32, #tpu.memory_space<vmem>>, vector<1x2x32xf32>,
    %c4_i32_130 = arith.constant 4 : i32
    %484 = arith.index_cast %c4_i32_130 : i32 to index
    %c0_131 = arith.constant 0 : index
    %c0_132 = arith.constant 0 : index
    %485 = vector.load %arg10[%484, %c0_131, %c0_132] : memref<8x2x96xf32, #tpu.memory_space<vmem>>, vector<1x2x96xf32>
    %486 = vector.shape_cast %485 : vector<1x2x96xf32> to vector<2x96xf32>
    %487 = arith.truncf %479 : vector<2x32xf32> to vector<2x32xbf16>
    %488 = arith.truncf %329 : vector<32x96xf32> to vector<32x96xbf16>
    %cst_133 = arith.constant dense<0.000000e+00> : vector<2x96xf32>
    %489 = tpu.matmul %487, %488, %cst_133 {dimension_numbers = #tpu.dot_dimension_numbers<[1], [0], [0], [1], [0, 0, 1, 1], [], []>} : vector<2x32xbf16>, vector<32x96xbf16>, vector<2x96xf32> -> vector<2x96xf32>
    %490 = vector.broadcast %330 : vector<1x96xf32> to vector<2x96xf32>
    %491 = arith.addf %489, %490 : vector<2x96xf32>
    %492 = vector.extract_strided_slice %486 {offsets = [0, 0], sizes = [2, 32], strides = [1, 1]} : vector<2x96xf32> to vector<2x32xf32>
    %493 = vector.extract_strided_slice %491 {offsets = [0, 0], sizes = [2, 32], strides = [1, 1]} : vector<2x96xf32> to vector<2x32xf32>
    %494 = arith.addf %492, %493 : vector<2x32xf32>
    %495 = arith.negf %494 : vector<2x32xf32>
    %496 = math.exp %495 : vector<2x32xf32>
    %cst_134 = arith.constant 1.000000e+00 : f32
    %497 = vector.broadcast %cst_134 : f32 to vector<2x32xf32>
    %498 = arith.addf %497, %496 : vector<2x32xf32>
    %499 = arith.divf %497, %498 : vector<2x32xf32>
    %500 = vector.extract_strided_slice %486 {offsets = [0, 32], sizes = [2, 32], strides = [1, 1]} : vector<2x96xf32> to vector<2x32xf32>
    %501 = vector.extract_strided_slice %491 {offsets = [0, 32], sizes = [2, 32], strides = [1, 1]} : vector<2x96xf32> to vector<2x32xf32>
    %502 = arith.addf %500, %501 : vector<2x32xf32>
    %503 = arith.negf %502 : vector<2x32xf32>
    %504 = math.exp %503 : vector<2x32xf32>
    %cst_135 = arith.constant 1.000000e+00 : f32
    %505 = vector.broadcast %cst_135 : f32 to vector<2x32xf32>
    %506 = arith.addf %505, %504 : vector<2x32xf32>
    %507 = arith.divf %505, %506 : vector<2x32xf32>
    %508 = vector.extract_strided_slice %486 {offsets = [0, 64], sizes = [2, 32], strides = [1, 1]} : vector<2x96xf32> to vector<2x32xf32>
    %509 = vector.extract_strided_slice %491 {offsets = [0, 64], sizes = [2, 32], strides = [1, 1]} : vector<2x96xf32> to vector<2x32xf32>
    %510 = arith.mulf %499, %509 : vector<2x32xf32>
    %511 = arith.addf %508, %510 : vector<2x32xf32>
    %512 = math.tanh %511 : vector<2x32xf32>
    %cst_136 = arith.constant 1.000000e+00 : f32
    %513 = vector.broadcast %cst_136 : f32 to vector<2x32xf32>
    %514 = arith.subf %513, %507 : vector<2x32xf32>
    %515 = arith.mulf %514, %512 : vector<2x32xf32>
    %516 = arith.mulf %507, %479 : vector<2x32xf32>
    %517 = arith.addf %515, %516 : vector<2x32xf32>
    %518 = arith.index_cast %c4_i32_130 : i32 to index
    %c0_137 = arith.constant 0 : index
    %c0_138 = arith.constant 0 : index
    %519 = vector.load %arg9[%518, %c0_137, %c0_138] : memref<8x2x32xf32, #tpu.memory_space<vmem>>, vector<1x2x32xf32>
    %520 = vector.shape_cast %519 : vector<1x2x32xf32> to vector<2x32xf32>
    %521 = vector.shape_cast %517 : vector<2x32xf32> to vector<1x2x32xf32>
    tpu.vector_store %arg9[%518, %c0_137, %c0_138], %521 {strides = array<i32>} : memref<8x2x32xf32, #tpu.memory_space<vmem>>, vector<1x2x32xf32>,
    %c5_i32_139 = arith.constant 5 : i32
    %522 = arith.index_cast %c5_i32_139 : i32 to index
    %c0_140 = arith.constant 0 : index
    %c0_141 = arith.constant 0 : index
    %523 = vector.load %arg10[%522, %c0_140, %c0_141] : memref<8x2x96xf32, #tpu.memory_space<vmem>>, vector<1x2x96xf32>
    %524 = vector.shape_cast %523 : vector<1x2x96xf32> to vector<2x96xf32>
    %525 = arith.truncf %517 : vector<2x32xf32> to vector<2x32xbf16>
    %526 = arith.truncf %329 : vector<32x96xf32> to vector<32x96xbf16>
    %cst_142 = arith.constant dense<0.000000e+00> : vector<2x96xf32>
    %527 = tpu.matmul %525, %526, %cst_142 {dimension_numbers = #tpu.dot_dimension_numbers<[1], [0], [0], [1], [0, 0, 1, 1], [], []>} : vector<2x32xbf16>, vector<32x96xbf16>, vector<2x96xf32> -> vector<2x96xf32>
    %528 = vector.broadcast %330 : vector<1x96xf32> to vector<2x96xf32>
    %529 = arith.addf %527, %528 : vector<2x96xf32>
    %530 = vector.extract_strided_slice %524 {offsets = [0, 0], sizes = [2, 32], strides = [1, 1]} : vector<2x96xf32> to vector<2x32xf32>
    %531 = vector.extract_strided_slice %529 {offsets = [0, 0], sizes = [2, 32], strides = [1, 1]} : vector<2x96xf32> to vector<2x32xf32>
    %532 = arith.addf %530, %531 : vector<2x32xf32>
    %533 = arith.negf %532 : vector<2x32xf32>
    %534 = math.exp %533 : vector<2x32xf32>
    %cst_143 = arith.constant 1.000000e+00 : f32
    %535 = vector.broadcast %cst_143 : f32 to vector<2x32xf32>
    %536 = arith.addf %535, %534 : vector<2x32xf32>
    %537 = arith.divf %535, %536 : vector<2x32xf32>
    %538 = vector.extract_strided_slice %524 {offsets = [0, 32], sizes = [2, 32], strides = [1, 1]} : vector<2x96xf32> to vector<2x32xf32>
    %539 = vector.extract_strided_slice %529 {offsets = [0, 32], sizes = [2, 32], strides = [1, 1]} : vector<2x96xf32> to vector<2x32xf32>
    %540 = arith.addf %538, %539 : vector<2x32xf32>
    %541 = arith.negf %540 : vector<2x32xf32>
    %542 = math.exp %541 : vector<2x32xf32>
    %cst_144 = arith.constant 1.000000e+00 : f32
    %543 = vector.broadcast %cst_144 : f32 to vector<2x32xf32>
    %544 = arith.addf %543, %542 : vector<2x32xf32>
    %545 = arith.divf %543, %544 : vector<2x32xf32>
    %546 = vector.extract_strided_slice %524 {offsets = [0, 64], sizes = [2, 32], strides = [1, 1]} : vector<2x96xf32> to vector<2x32xf32>
    %547 = vector.extract_strided_slice %529 {offsets = [0, 64], sizes = [2, 32], strides = [1, 1]} : vector<2x96xf32> to vector<2x32xf32>
    %548 = arith.mulf %537, %547 : vector<2x32xf32>
    %549 = arith.addf %546, %548 : vector<2x32xf32>
    %550 = math.tanh %549 : vector<2x32xf32>
    %cst_145 = arith.constant 1.000000e+00 : f32
    %551 = vector.broadcast %cst_145 : f32 to vector<2x32xf32>
    %552 = arith.subf %551, %545 : vector<2x32xf32>
    %553 = arith.mulf %552, %550 : vector<2x32xf32>
    %554 = arith.mulf %545, %517 : vector<2x32xf32>
    %555 = arith.addf %553, %554 : vector<2x32xf32>
    %556 = arith.index_cast %c5_i32_139 : i32 to index
    %c0_146 = arith.constant 0 : index
    %c0_147 = arith.constant 0 : index
    %557 = vector.load %arg9[%556, %c0_146, %c0_147] : memref<8x2x32xf32, #tpu.memory_space<vmem>>, vector<1x2x32xf32>
    %558 = vector.shape_cast %557 : vector<1x2x32xf32> to vector<2x32xf32>
    %559 = vector.shape_cast %555 : vector<2x32xf32> to vector<1x2x32xf32>
    tpu.vector_store %arg9[%556, %c0_146, %c0_147], %559 {strides = array<i32>} : memref<8x2x32xf32, #tpu.memory_space<vmem>>, vector<1x2x32xf32>,
    %c6_i32_148 = arith.constant 6 : i32
    %560 = arith.index_cast %c6_i32_148 : i32 to index
    %c0_149 = arith.constant 0 : index
    %c0_150 = arith.constant 0 : index
    %561 = vector.load %arg10[%560, %c0_149, %c0_150] : memref<8x2x96xf32, #tpu.memory_space<vmem>>, vector<1x2x96xf32>
    %562 = vector.shape_cast %561 : vector<1x2x96xf32> to vector<2x96xf32>
    %563 = arith.truncf %555 : vector<2x32xf32> to vector<2x32xbf16>
    %564 = arith.truncf %329 : vector<32x96xf32> to vector<32x96xbf16>
    %cst_151 = arith.constant dense<0.000000e+00> : vector<2x96xf32>
    %565 = tpu.matmul %563, %564, %cst_151 {dimension_numbers = #tpu.dot_dimension_numbers<[1], [0], [0], [1], [0, 0, 1, 1], [], []>} : vector<2x32xbf16>, vector<32x96xbf16>, vector<2x96xf32> -> vector<2x96xf32>
    %566 = vector.broadcast %330 : vector<1x96xf32> to vector<2x96xf32>
    %567 = arith.addf %565, %566 : vector<2x96xf32>
    %568 = vector.extract_strided_slice %562 {offsets = [0, 0], sizes = [2, 32], strides = [1, 1]} : vector<2x96xf32> to vector<2x32xf32>
    %569 = vector.extract_strided_slice %567 {offsets = [0, 0], sizes = [2, 32], strides = [1, 1]} : vector<2x96xf32> to vector<2x32xf32>
    %570 = arith.addf %568, %569 : vector<2x32xf32>
    %571 = arith.negf %570 : vector<2x32xf32>
    %572 = math.exp %571 : vector<2x32xf32>
    %cst_152 = arith.constant 1.000000e+00 : f32
    %573 = vector.broadcast %cst_152 : f32 to vector<2x32xf32>
    %574 = arith.addf %573, %572 : vector<2x32xf32>
    %575 = arith.divf %573, %574 : vector<2x32xf32>
    %576 = vector.extract_strided_slice %562 {offsets = [0, 32], sizes = [2, 32], strides = [1, 1]} : vector<2x96xf32> to vector<2x32xf32>
    %577 = vector.extract_strided_slice %567 {offsets = [0, 32], sizes = [2, 32], strides = [1, 1]} : vector<2x96xf32> to vector<2x32xf32>
    %578 = arith.addf %576, %577 : vector<2x32xf32>
    %579 = arith.negf %578 : vector<2x32xf32>
    %580 = math.exp %579 : vector<2x32xf32>
    %cst_153 = arith.constant 1.000000e+00 : f32
    %581 = vector.broadcast %cst_153 : f32 to vector<2x32xf32>
    %582 = arith.addf %581, %580 : vector<2x32xf32>
    %583 = arith.divf %581, %582 : vector<2x32xf32>
    %584 = vector.extract_strided_slice %562 {offsets = [0, 64], sizes = [2, 32], strides = [1, 1]} : vector<2x96xf32> to vector<2x32xf32>
    %585 = vector.extract_strided_slice %567 {offsets = [0, 64], sizes = [2, 32], strides = [1, 1]} : vector<2x96xf32> to vector<2x32xf32>
    %586 = arith.mulf %575, %585 : vector<2x32xf32>
    %587 = arith.addf %584, %586 : vector<2x32xf32>
    %588 = math.tanh %587 : vector<2x32xf32>
    %cst_154 = arith.constant 1.000000e+00 : f32
    %589 = vector.broadcast %cst_154 : f32 to vector<2x32xf32>
    %590 = arith.subf %589, %583 : vector<2x32xf32>
    %591 = arith.mulf %590, %588 : vector<2x32xf32>
    %592 = arith.mulf %583, %555 : vector<2x32xf32>
    %593 = arith.addf %591, %592 : vector<2x32xf32>
    %594 = arith.index_cast %c6_i32_148 : i32 to index
    %c0_155 = arith.constant 0 : index
    %c0_156 = arith.constant 0 : index
    %595 = vector.load %arg9[%594, %c0_155, %c0_156] : memref<8x2x32xf32, #tpu.memory_space<vmem>>, vector<1x2x32xf32>
    %596 = vector.shape_cast %595 : vector<1x2x32xf32> to vector<2x32xf32>
    %597 = vector.shape_cast %593 : vector<2x32xf32> to vector<1x2x32xf32>
    tpu.vector_store %arg9[%594, %c0_155, %c0_156], %597 {strides = array<i32>} : memref<8x2x32xf32, #tpu.memory_space<vmem>>, vector<1x2x32xf32>,
    %c7_i32_157 = arith.constant 7 : i32
    %598 = arith.index_cast %c7_i32_157 : i32 to index
    %c0_158 = arith.constant 0 : index
    %c0_159 = arith.constant 0 : index
    %599 = vector.load %arg10[%598, %c0_158, %c0_159] : memref<8x2x96xf32, #tpu.memory_space<vmem>>, vector<1x2x96xf32>
    %600 = vector.shape_cast %599 : vector<1x2x96xf32> to vector<2x96xf32>
    %601 = arith.truncf %593 : vector<2x32xf32> to vector<2x32xbf16>
    %602 = arith.truncf %329 : vector<32x96xf32> to vector<32x96xbf16>
    %cst_160 = arith.constant dense<0.000000e+00> : vector<2x96xf32>
    %603 = tpu.matmul %601, %602, %cst_160 {dimension_numbers = #tpu.dot_dimension_numbers<[1], [0], [0], [1], [0, 0, 1, 1], [], []>} : vector<2x32xbf16>, vector<32x96xbf16>, vector<2x96xf32> -> vector<2x96xf32>
    %604 = vector.broadcast %330 : vector<1x96xf32> to vector<2x96xf32>
    %605 = arith.addf %603, %604 : vector<2x96xf32>
    %606 = vector.extract_strided_slice %600 {offsets = [0, 0], sizes = [2, 32], strides = [1, 1]} : vector<2x96xf32> to vector<2x32xf32>
    %607 = vector.extract_strided_slice %605 {offsets = [0, 0], sizes = [2, 32], strides = [1, 1]} : vector<2x96xf32> to vector<2x32xf32>
    %608 = arith.addf %606, %607 : vector<2x32xf32>
    %609 = arith.negf %608 : vector<2x32xf32>
    %610 = math.exp %609 : vector<2x32xf32>
    %cst_161 = arith.constant 1.000000e+00 : f32
    %611 = vector.broadcast %cst_161 : f32 to vector<2x32xf32>
    %612 = arith.addf %611, %610 : vector<2x32xf32>
    %613 = arith.divf %611, %612 : vector<2x32xf32>
    %614 = vector.extract_strided_slice %600 {offsets = [0, 32], sizes = [2, 32], strides = [1, 1]} : vector<2x96xf32> to vector<2x32xf32>
    %615 = vector.extract_strided_slice %605 {offsets = [0, 32], sizes = [2, 32], strides = [1, 1]} : vector<2x96xf32> to vector<2x32xf32>
    %616 = arith.addf %614, %615 : vector<2x32xf32>
    %617 = arith.negf %616 : vector<2x32xf32>
    %618 = math.exp %617 : vector<2x32xf32>
    %cst_162 = arith.constant 1.000000e+00 : f32
    %619 = vector.broadcast %cst_162 : f32 to vector<2x32xf32>
    %620 = arith.addf %619, %618 : vector<2x32xf32>
    %621 = arith.divf %619, %620 : vector<2x32xf32>
    %622 = vector.extract_strided_slice %600 {offsets = [0, 64], sizes = [2, 32], strides = [1, 1]} : vector<2x96xf32> to vector<2x32xf32>
    %623 = vector.extract_strided_slice %605 {offsets = [0, 64], sizes = [2, 32], strides = [1, 1]} : vector<2x96xf32> to vector<2x32xf32>
    %624 = arith.mulf %613, %623 : vector<2x32xf32>
    %625 = arith.addf %622, %624 : vector<2x32xf32>
    %626 = math.tanh %625 : vector<2x32xf32>
    %cst_163 = arith.constant 1.000000e+00 : f32
    %627 = vector.broadcast %cst_163 : f32 to vector<2x32xf32>
    %628 = arith.subf %627, %621 : vector<2x32xf32>
    %629 = arith.mulf %628, %626 : vector<2x32xf32>
    %630 = arith.mulf %621, %593 : vector<2x32xf32>
    %631 = arith.addf %629, %630 : vector<2x32xf32>
    %632 = arith.index_cast %c7_i32_157 : i32 to index
    %c0_164 = arith.constant 0 : index
    %c0_165 = arith.constant 0 : index
    %633 = vector.load %arg9[%632, %c0_164, %c0_165] : memref<8x2x32xf32, #tpu.memory_space<vmem>>, vector<1x2x32xf32>
    %634 = vector.shape_cast %633 : vector<1x2x32xf32> to vector<2x32xf32>
    %635 = vector.shape_cast %631 : vector<2x32xf32> to vector<1x2x32xf32>
    tpu.vector_store %arg9[%632, %c0_164, %c0_165], %635 {strides = array<i32>} : memref<8x2x32xf32, #tpu.memory_space<vmem>>, vector<1x2x32xf32>,
    %c8_i32_166 = arith.constant 8 : i32
    return
  }
}

module attributes {stable_mosaic.version = 11 : i64} {
  func.func @_bottleneck_kernel(%arg0: memref<16x16xf32, #tpu.memory_space<vmem>>, %arg1: memref<16x32xf32, #tpu.memory_space<vmem>>, %arg2: memref<16x32xf32, #tpu.memory_space<vmem>>, %arg3: memref<1x32xf32, #tpu.memory_space<vmem>>, %arg4: memref<32x16xf32, #tpu.memory_space<vmem>>, %arg5: memref<1x16xf32, #tpu.memory_space<vmem>>, %arg6: memref<32x16xf32, #tpu.memory_space<vmem>>, %arg7: memref<1x16xf32, #tpu.memory_space<vmem>>, %arg8: memref<32x16xf32, #tpu.memory_space<vmem>>, %arg9: memref<32x16xf32, #tpu.memory_space<vmem>>, %arg10: memref<16x32xf32, #tpu.memory_space<vmem>>, %arg11: memref<1x32xf32, #tpu.memory_space<vmem>>, %arg12: memref<16x32xf32, #tpu.memory_space<vmem>>, %arg13: memref<1x32xf32, #tpu.memory_space<vmem>>, %arg14: memref<16x32xf32, #tpu.memory_space<vmem>>, %arg15: memref<16x32xf32, #tpu.memory_space<vmem>>, %arg16: memref<1x1xf32, #tpu.memory_space<vmem>>, %arg17: memref<1x1xf32, #tpu.memory_space<vmem>>) attributes {dimension_semantics = [], scalar_prefetch = 0 : i64, scratch_operands = 0 : i64, tpu.core_type = #tpu.core_type<tc>} {
    %c0 = arith.constant 0 : index
    %c0_0 = arith.constant 0 : index
    %0 = vector.load %arg0[%c0, %c0_0] : memref<16x16xf32, #tpu.memory_space<vmem>>, vector<16x16xf32>
    %c0_1 = arith.constant 0 : index
    %c0_2 = arith.constant 0 : index
    %1 = vector.load %arg1[%c0_1, %c0_2] : memref<16x32xf32, #tpu.memory_space<vmem>>, vector<16x32xf32>
    %c0_3 = arith.constant 0 : index
    %c0_4 = arith.constant 0 : index
    %2 = vector.load %arg2[%c0_3, %c0_4] : memref<16x32xf32, #tpu.memory_space<vmem>>, vector<16x32xf32>
    %3 = arith.truncf %0 : vector<16x16xf32> to vector<16x16xbf16>
    %4 = arith.truncf %2 : vector<16x32xf32> to vector<16x32xbf16>
    %cst = arith.constant dense<0.000000e+00> : vector<16x32xf32>
    %5 = tpu.matmul %3, %4, %cst {dimension_numbers = #tpu.dot_dimension_numbers<[1], [0], [0], [1], [0, 0, 1, 1], [], []>} : vector<16x16xbf16>, vector<16x32xbf16>, vector<16x32xf32> -> vector<16x32xf32>
    %c0_5 = arith.constant 0 : index
    %c0_6 = arith.constant 0 : index
    %6 = vector.load %arg3[%c0_5, %c0_6] : memref<1x32xf32, #tpu.memory_space<vmem>>, vector<1x32xf32>
    %7 = vector.broadcast %6 : vector<1x32xf32> to vector<16x32xf32>
    %8 = arith.addf %5, %7 : vector<16x32xf32>
    %c0_7 = arith.constant 0 : index
    %c0_8 = arith.constant 0 : index
    %9 = vector.load %arg4[%c0_7, %c0_8] : memref<32x16xf32, #tpu.memory_space<vmem>>, vector<32x16xf32>
    %10 = arith.truncf %8 : vector<16x32xf32> to vector<16x32xbf16>
    %11 = arith.truncf %9 : vector<32x16xf32> to vector<32x16xbf16>
    %cst_9 = arith.constant dense<0.000000e+00> : vector<16x16xf32>
    %12 = tpu.matmul %10, %11, %cst_9 {dimension_numbers = #tpu.dot_dimension_numbers<[1], [0], [0], [1], [0, 0, 1, 1], [], []>} : vector<16x32xbf16>, vector<32x16xbf16>, vector<16x16xf32> -> vector<16x16xf32>
    %c0_10 = arith.constant 0 : index
    %c0_11 = arith.constant 0 : index
    %13 = vector.load %arg5[%c0_10, %c0_11] : memref<1x16xf32, #tpu.memory_space<vmem>>, vector<1x16xf32>
    %14 = vector.broadcast %13 : vector<1x16xf32> to vector<16x16xf32>
    %15 = arith.addf %12, %14 : vector<16x16xf32>
    %c0_12 = arith.constant 0 : index
    %c0_13 = arith.constant 0 : index
    %16 = vector.load %arg6[%c0_12, %c0_13] : memref<32x16xf32, #tpu.memory_space<vmem>>, vector<32x16xf32>
    %17 = arith.truncf %1 : vector<16x32xf32> to vector<16x32xbf16>
    %18 = arith.truncf %16 : vector<32x16xf32> to vector<32x16xbf16>
    %cst_14 = arith.constant dense<0.000000e+00> : vector<16x16xf32>
    %19 = tpu.matmul %17, %18, %cst_14 {dimension_numbers = #tpu.dot_dimension_numbers<[1], [0], [0], [1], [0, 0, 1, 1], [], []>} : vector<16x32xbf16>, vector<32x16xbf16>, vector<16x16xf32> -> vector<16x16xf32>
    %c0_15 = arith.constant 0 : index
    %c0_16 = arith.constant 0 : index
    %20 = vector.load %arg7[%c0_15, %c0_16] : memref<1x16xf32, #tpu.memory_space<vmem>>, vector<1x16xf32>
    %21 = vector.broadcast %20 : vector<1x16xf32> to vector<16x16xf32>
    %22 = arith.addf %19, %21 : vector<16x16xf32>
    %c0_17 = arith.constant 0 : index
    %c0_18 = arith.constant 0 : index
    %23 = vector.load %arg8[%c0_17, %c0_18] : memref<32x16xf32, #tpu.memory_space<vmem>>, vector<32x16xf32>
    %24 = tpu.transpose %23, [1, 0] : vector<32x16xf32> -> vector<16x32xf32>
    %25 = arith.mulf %15, %15 : vector<16x16xf32>
    %cst_19 = arith.constant dense<0.000000e+00> : vector<16xf32>
    %26 = vector.multi_reduction <add>, %25, %cst_19 [1] : vector<16x16xf32> to vector<16xf32>
    %27 = vector.shape_cast %26 : vector<16xf32> to vector<16x1xf32>
    %28 = arith.truncf %15 : vector<16x16xf32> to vector<16x16xbf16>
    %29 = arith.truncf %24 : vector<16x32xf32> to vector<16x32xbf16>
    %cst_20 = arith.constant dense<0.000000e+00> : vector<16x32xf32>
    %30 = tpu.matmul %28, %29, %cst_20 {dimension_numbers = #tpu.dot_dimension_numbers<[1], [0], [0], [1], [0, 0, 1, 1], [], []>} : vector<16x16xbf16>, vector<16x32xbf16>, vector<16x32xf32> -> vector<16x32xf32>
    %cst_21 = arith.constant 2.000000e+00 : f32
    %31 = vector.broadcast %cst_21 : f32 to vector<16x32xf32>
    %32 = arith.mulf %31, %30 : vector<16x32xf32>
    %33 = vector.broadcast %27 : vector<16x1xf32> to vector<16x32xf32>
    %34 = arith.subf %33, %32 : vector<16x32xf32>
    %35 = arith.mulf %24, %24 : vector<16x32xf32>
    %cst_22 = arith.constant dense<0.000000e+00> : vector<32xf32>
    %36 = vector.multi_reduction <add>, %35, %cst_22 [0] : vector<16x32xf32> to vector<32xf32>
    %37 = vector.shape_cast %36 : vector<32xf32> to vector<1x32xf32>
    %38 = vector.broadcast %37 : vector<1x32xf32> to vector<16x32xf32>
    %39 = arith.addf %34, %38 : vector<16x32xf32>
    %40 = tpu.iota {dimensions = array<i32: 1>} : vector<16x32xi32>
    %cst_23 = arith.constant dense<0x7F800000> : vector<16xf32>
    %41 = vector.multi_reduction <minimumf>, %39, %cst_23 [1] : vector<16x32xf32> to vector<16xf32>
    %42 = vector.shape_cast %41 : vector<16xf32> to vector<16x1xf32>
    %43 = vector.broadcast %42 : vector<16x1xf32> to vector<16x32xf32>
    %44 = arith.cmpf ole, %39, %43 : vector<16x32xf32>
    %c32_i32 = arith.constant 32 : i32
    %45 = vector.broadcast %c32_i32 : i32 to vector<16x32xi32>
    %46 = arith.select %44, %40, %45 : vector<16x32xi1>, vector<16x32xi32>
    %cst_24 = arith.constant dense<2147483647> : vector<16xi32>
    %47 = vector.multi_reduction <minsi>, %46, %cst_24 [1] : vector<16x32xi32> to vector<16xi32>
    %48 = vector.shape_cast %47 : vector<16xi32> to vector<16x1xi32>
    %49 = vector.broadcast %48 : vector<16x1xi32> to vector<16x32xi32>
    %50 = arith.cmpi eq, %40, %49 : vector<16x32xi32>
    %51 = arith.extui %50 : vector<16x32xi1> to vector<16x32xi32>
    %52 = arith.sitofp %51 : vector<16x32xi32> to vector<16x32xf32>
    %cst_25 = arith.constant dense<0.000000e+00> : vector<16x16xf32>
    %53 = tpu.matmul %52, %23, %cst_25 {dimension_numbers = #tpu.dot_dimension_numbers<[1], [0], [0], [1], [0, 0, 1, 1], [], []>} : vector<16x32xf32>, vector<32x16xf32>, vector<16x16xf32> -> vector<16x16xf32>
    %54 = arith.subf %53, %15 : vector<16x16xf32>
    %55 = arith.mulf %54, %54 : vector<16x16xf32>
    %cst_26 = arith.constant dense<0.000000e+00> : vector<16xf32>
    %56 = vector.multi_reduction <add>, %55, %cst_26 [1] : vector<16x16xf32> to vector<16xf32>
    %57 = vector.shape_cast %56 : vector<16xf32> to vector<16x1xf32>
    %cst_27 = arith.constant dense<0.000000e+00> : vector<1xf32>
    %58 = vector.multi_reduction <add>, %57, %cst_27 [0] : vector<16x1xf32> to vector<1xf32>
    %59 = vector.shape_cast %58 : vector<1xf32> to vector<1x1xf32>
    %cst_28 = arith.constant 2.560000e+02 : f32
    %60 = vector.broadcast %cst_28 : f32 to vector<1x1xf32>
    %61 = arith.divf %59, %60 : vector<1x1xf32>
    %cst_29 = arith.constant 1.250000e+00 : f32
    %62 = vector.broadcast %cst_29 : f32 to vector<1x1xf32>
    %63 = arith.mulf %62, %61 : vector<1x1xf32>
    %c0_30 = arith.constant 0 : index
    %c0_31 = arith.constant 0 : index
    %64 = vector.load %arg9[%c0_30, %c0_31] : memref<32x16xf32, #tpu.memory_space<vmem>>, vector<32x16xf32>
    %65 = tpu.transpose %64, [1, 0] : vector<32x16xf32> -> vector<16x32xf32>
    %66 = arith.mulf %22, %22 : vector<16x16xf32>
    %cst_32 = arith.constant dense<0.000000e+00> : vector<16xf32>
    %67 = vector.multi_reduction <add>, %66, %cst_32 [1] : vector<16x16xf32> to vector<16xf32>
    %68 = vector.shape_cast %67 : vector<16xf32> to vector<16x1xf32>
    %69 = arith.truncf %22 : vector<16x16xf32> to vector<16x16xbf16>
    %70 = arith.truncf %65 : vector<16x32xf32> to vector<16x32xbf16>
    %cst_33 = arith.constant dense<0.000000e+00> : vector<16x32xf32>
    %71 = tpu.matmul %69, %70, %cst_33 {dimension_numbers = #tpu.dot_dimension_numbers<[1], [0], [0], [1], [0, 0, 1, 1], [], []>} : vector<16x16xbf16>, vector<16x32xbf16>, vector<16x32xf32> -> vector<16x32xf32>
    %cst_34 = arith.constant 2.000000e+00 : f32
    %72 = vector.broadcast %cst_34 : f32 to vector<16x32xf32>
    %73 = arith.mulf %72, %71 : vector<16x32xf32>
    %74 = vector.broadcast %68 : vector<16x1xf32> to vector<16x32xf32>
    %75 = arith.subf %74, %73 : vector<16x32xf32>
    %76 = arith.mulf %65, %65 : vector<16x32xf32>
    %cst_35 = arith.constant dense<0.000000e+00> : vector<32xf32>
    %77 = vector.multi_reduction <add>, %76, %cst_35 [0] : vector<16x32xf32> to vector<32xf32>
    %78 = vector.shape_cast %77 : vector<32xf32> to vector<1x32xf32>
    %79 = vector.broadcast %78 : vector<1x32xf32> to vector<16x32xf32>
    %80 = arith.addf %75, %79 : vector<16x32xf32>
    %81 = tpu.iota {dimensions = array<i32: 1>} : vector<16x32xi32>
    %cst_36 = arith.constant dense<0x7F800000> : vector<16xf32>
    %82 = vector.multi_reduction <minimumf>, %80, %cst_36 [1] : vector<16x32xf32> to vector<16xf32>
    %83 = vector.shape_cast %82 : vector<16xf32> to vector<16x1xf32>
    %84 = vector.broadcast %83 : vector<16x1xf32> to vector<16x32xf32>
    %85 = arith.cmpf ole, %80, %84 : vector<16x32xf32>
    %c32_i32_37 = arith.constant 32 : i32
    %86 = vector.broadcast %c32_i32_37 : i32 to vector<16x32xi32>
    %87 = arith.select %85, %81, %86 : vector<16x32xi1>, vector<16x32xi32>
    %cst_38 = arith.constant dense<2147483647> : vector<16xi32>
    %88 = vector.multi_reduction <minsi>, %87, %cst_38 [1] : vector<16x32xi32> to vector<16xi32>
    %89 = vector.shape_cast %88 : vector<16xi32> to vector<16x1xi32>
    %90 = vector.broadcast %89 : vector<16x1xi32> to vector<16x32xi32>
    %91 = arith.cmpi eq, %81, %90 : vector<16x32xi32>
    %92 = arith.extui %91 : vector<16x32xi1> to vector<16x32xi32>
    %93 = arith.sitofp %92 : vector<16x32xi32> to vector<16x32xf32>
    %cst_39 = arith.constant dense<0.000000e+00> : vector<16x16xf32>
    %94 = tpu.matmul %93, %64, %cst_39 {dimension_numbers = #tpu.dot_dimension_numbers<[1], [0], [0], [1], [0, 0, 1, 1], [], []>} : vector<16x32xf32>, vector<32x16xf32>, vector<16x16xf32> -> vector<16x16xf32>
    %95 = arith.subf %94, %22 : vector<16x16xf32>
    %96 = arith.mulf %95, %95 : vector<16x16xf32>
    %cst_40 = arith.constant dense<0.000000e+00> : vector<16xf32>
    %97 = vector.multi_reduction <add>, %96, %cst_40 [1] : vector<16x16xf32> to vector<16xf32>
    %98 = vector.shape_cast %97 : vector<16xf32> to vector<16x1xf32>
    %cst_41 = arith.constant dense<0.000000e+00> : vector<1xf32>
    %99 = vector.multi_reduction <add>, %98, %cst_41 [0] : vector<16x1xf32> to vector<1xf32>
    %100 = vector.shape_cast %99 : vector<1xf32> to vector<1x1xf32>
    %cst_42 = arith.constant 2.560000e+02 : f32
    %101 = vector.broadcast %cst_42 : f32 to vector<1x1xf32>
    %102 = arith.divf %100, %101 : vector<1x1xf32>
    %cst_43 = arith.constant 1.250000e+00 : f32
    %103 = vector.broadcast %cst_43 : f32 to vector<1x1xf32>
    %104 = arith.mulf %103, %102 : vector<1x1xf32>
    %c0_44 = arith.constant 0 : index
    %c0_45 = arith.constant 0 : index
    %105 = vector.load %arg10[%c0_44, %c0_45] : memref<16x32xf32, #tpu.memory_space<vmem>>, vector<16x32xf32>
    %106 = arith.truncf %53 : vector<16x16xf32> to vector<16x16xbf16>
    %107 = arith.truncf %105 : vector<16x32xf32> to vector<16x32xbf16>
    %cst_46 = arith.constant dense<0.000000e+00> : vector<16x32xf32>
    %108 = tpu.matmul %106, %107, %cst_46 {dimension_numbers = #tpu.dot_dimension_numbers<[1], [0], [0], [1], [0, 0, 1, 1], [], []>} : vector<16x16xbf16>, vector<16x32xbf16>, vector<16x32xf32> -> vector<16x32xf32>
    %c0_47 = arith.constant 0 : index
    %c0_48 = arith.constant 0 : index
    %109 = vector.load %arg11[%c0_47, %c0_48] : memref<1x32xf32, #tpu.memory_space<vmem>>, vector<1x32xf32>
    %110 = vector.broadcast %109 : vector<1x32xf32> to vector<16x32xf32>
    %111 = arith.addf %108, %110 : vector<16x32xf32>
    %c0_49 = arith.constant 0 : index
    %c0_50 = arith.constant 0 : index
    %112 = vector.load %arg14[%c0_49, %c0_50] : memref<16x32xf32, #tpu.memory_space<vmem>>, vector<16x32xf32>
    tpu.vector_store %arg14[%c0_49, %c0_50], %111 {strides = array<i32>} : memref<16x32xf32, #tpu.memory_space<vmem>>, vector<16x32xf32>,
    %c0_51 = arith.constant 0 : index
    %c0_52 = arith.constant 0 : index
    %113 = vector.load %arg12[%c0_51, %c0_52] : memref<16x32xf32, #tpu.memory_space<vmem>>, vector<16x32xf32>
    %114 = arith.truncf %94 : vector<16x16xf32> to vector<16x16xbf16>
    %115 = arith.truncf %113 : vector<16x32xf32> to vector<16x32xbf16>
    %cst_53 = arith.constant dense<0.000000e+00> : vector<16x32xf32>
    %116 = tpu.matmul %114, %115, %cst_53 {dimension_numbers = #tpu.dot_dimension_numbers<[1], [0], [0], [1], [0, 0, 1, 1], [], []>} : vector<16x16xbf16>, vector<16x32xbf16>, vector<16x32xf32> -> vector<16x32xf32>
    %c0_54 = arith.constant 0 : index
    %c0_55 = arith.constant 0 : index
    %117 = vector.load %arg13[%c0_54, %c0_55] : memref<1x32xf32, #tpu.memory_space<vmem>>, vector<1x32xf32>
    %118 = vector.broadcast %117 : vector<1x32xf32> to vector<16x32xf32>
    %119 = arith.addf %116, %118 : vector<16x32xf32>
    %c0_56 = arith.constant 0 : index
    %c0_57 = arith.constant 0 : index
    %120 = vector.load %arg15[%c0_56, %c0_57] : memref<16x32xf32, #tpu.memory_space<vmem>>, vector<16x32xf32>
    tpu.vector_store %arg15[%c0_56, %c0_57], %119 {strides = array<i32>} : memref<16x32xf32, #tpu.memory_space<vmem>>, vector<16x32xf32>,
    %c0_58 = arith.constant 0 : index
    %c0_59 = arith.constant 0 : index
    %121 = vector.load %arg16[%c0_58, %c0_59] : memref<1x1xf32, #tpu.memory_space<vmem>>, vector<1x1xf32>
    tpu.vector_store %arg16[%c0_58, %c0_59], %63 {strides = array<i32>} : memref<1x1xf32, #tpu.memory_space<vmem>>, vector<1x1xf32>,
    %c0_60 = arith.constant 0 : index
    %c0_61 = arith.constant 0 : index
    %122 = vector.load %arg17[%c0_60, %c0_61] : memref<1x1xf32, #tpu.memory_space<vmem>>, vector<1x1xf32>
    tpu.vector_store %arg17[%c0_60, %c0_61], %104 {strides = array<i32>} : memref<1x1xf32, #tpu.memory_space<vmem>>, vector<1x1xf32>,
    return
  }
}

module attributes {stable_mosaic.version = 11 : i64} {
  func.func @_encoder_layer_kernel(%arg0: memref<2x8x64xf32, #tpu.memory_space<vmem>>, %arg1: memref<64x192xf32, #tpu.memory_space<vmem>>, %arg2: memref<1x192xf32, #tpu.memory_space<vmem>>, %arg3: memref<64x64xf32, #tpu.memory_space<vmem>>, %arg4: memref<1x64xf32, #tpu.memory_space<vmem>>, %arg5: memref<1x64xf32, #tpu.memory_space<vmem>>, %arg6: memref<1x64xf32, #tpu.memory_space<vmem>>, %arg7: memref<64x64xf32, #tpu.memory_space<vmem>>, %arg8: memref<1x64xf32, #tpu.memory_space<vmem>>, %arg9: memref<64x64xf32, #tpu.memory_space<vmem>>, %arg10: memref<1x64xf32, #tpu.memory_space<vmem>>, %arg11: memref<1x64xf32, #tpu.memory_space<vmem>>, %arg12: memref<1x64xf32, #tpu.memory_space<vmem>>, %arg13: memref<1x64xf32, #tpu.memory_space<vmem>>, %arg14: memref<1x64xf32, #tpu.memory_space<vmem>>, %arg15: memref<2x8x64xf32, #tpu.memory_space<vmem>>) attributes {dimension_semantics = [], scalar_prefetch = 0 : i64, scratch_operands = 0 : i64, tpu.core_type = #tpu.core_type<tc>} {
    %c0 = arith.constant 0 : index
    %c0_0 = arith.constant 0 : index
    %c0_1 = arith.constant 0 : index
    %0 = vector.load %arg0[%c0, %c0_0, %c0_1] : memref<2x8x64xf32, #tpu.memory_space<vmem>>, vector<2x8x64xf32>
    %1 = vector.shape_cast %0 : vector<2x8x64xf32> to vector<16x64xf32>
    %c0_2 = arith.constant 0 : index
    %c0_3 = arith.constant 0 : index
    %2 = vector.load %arg1[%c0_2, %c0_3] : memref<64x192xf32, #tpu.memory_space<vmem>>, vector<64x192xf32>
    %3 = arith.truncf %1 : vector<16x64xf32> to vector<16x64xbf16>
    %4 = arith.truncf %2 : vector<64x192xf32> to vector<64x192xbf16>
    %cst = arith.constant dense<0.000000e+00> : vector<16x192xf32>
    %5 = tpu.matmul %3, %4, %cst {dimension_numbers = #tpu.dot_dimension_numbers<[1], [0], [0], [1], [0, 0, 1, 1], [], []>} : vector<16x64xbf16>, vector<64x192xbf16>, vector<16x192xf32> -> vector<16x192xf32>
    %c0_4 = arith.constant 0 : index
    %c0_5 = arith.constant 0 : index
    %6 = vector.load %arg2[%c0_4, %c0_5] : memref<1x192xf32, #tpu.memory_space<vmem>>, vector<1x192xf32>
    %7 = vector.broadcast %6 : vector<1x192xf32> to vector<16x192xf32>
    %8 = arith.addf %5, %7 : vector<16x192xf32>
    %c0_6 = arith.constant 0 : index
    %c0_7 = arith.constant 0 : index
    %9 = vector.load %arg3[%c0_6, %c0_7] : memref<64x64xf32, #tpu.memory_space<vmem>>, vector<64x64xf32>
    %10 = vector.extract_strided_slice %8 {offsets = [0, 0], sizes = [16, 32], strides = [1, 1]} : vector<16x192xf32> to vector<16x32xf32>
    %11 = vector.shape_cast %10 : vector<16x32xf32> to vector<2x8x32xf32>
    %cst_8 = arith.constant 0.176776692 : f32
    %12 = vector.broadcast %cst_8 : f32 to vector<2x8x32xf32>
    %13 = arith.mulf %11, %12 : vector<2x8x32xf32>
    %14 = vector.extract_strided_slice %8 {offsets = [0, 64], sizes = [16, 32], strides = [1, 1]} : vector<16x192xf32> to vector<16x32xf32>
    %15 = vector.shape_cast %14 : vector<16x32xf32> to vector<2x8x32xf32>
    %16 = vector.extract_strided_slice %8 {offsets = [0, 128], sizes = [16, 32], strides = [1, 1]} : vector<16x192xf32> to vector<16x32xf32>
    %17 = vector.shape_cast %16 : vector<16x32xf32> to vector<2x8x32xf32>
    %18 = arith.truncf %13 : vector<2x8x32xf32> to vector<2x8x32xbf16>
    %19 = arith.truncf %15 : vector<2x8x32xf32> to vector<2x8x32xbf16>
    "tpu.trace_start"() <{level = 10 : i32, message = "bqd,bkd->bqk"}> : () -> ()
    %cst_9 = arith.constant dense<0.000000e+00> : vector<2x8x8xf32>
    %20 = tpu.matmul %18, %19, %cst_9 {dimension_numbers = #tpu.dot_dimension_numbers<[2], [2], [1], [1], [0, 0, 0, 1, 1, 1], [0], [0]>} : vector<2x8x32xbf16>, vector<2x8x32xbf16>, vector<2x8x8xf32> -> vector<2x8x8xf32>
    "tpu.trace_stop"() : () -> ()
    %cst_10 = arith.constant dense<0xFF800000> : vector<2x8xf32>
    %21 = vector.multi_reduction <maximumf>, %20, %cst_10 [2] : vector<2x8x8xf32> to vector<2x8xf32>
    %22 = vector.shape_cast %21 : vector<2x8xf32> to vector<2x8x1xf32>
    %23 = vector.broadcast %22 : vector<2x8x1xf32> to vector<2x8x8xf32>
    %24 = arith.subf %20, %23 : vector<2x8x8xf32>
    %25 = math.exp %24 : vector<2x8x8xf32>
    %cst_11 = arith.constant dense<0.000000e+00> : vector<2x8xf32>
    %26 = vector.multi_reduction <add>, %25, %cst_11 [2] : vector<2x8x8xf32> to vector<2x8xf32>
    %27 = vector.shape_cast %26 : vector<2x8xf32> to vector<2x8x1xf32>
    %28 = tpu.reciprocal %27 {approx = true} : vector<2x8x1xf32> -> vector<2x8x1xf32>
    %29 = vector.broadcast %28 : vector<2x8x1xf32> to vector<2x8x8xf32>
    %30 = arith.mulf %25, %29 : vector<2x8x8xf32>
    %31 = arith.truncf %30 : vector<2x8x8xf32> to vector<2x8x8xbf16>
    %32 = arith.truncf %17 : vector<2x8x32xf32> to vector<2x8x32xbf16>
    "tpu.trace_start"() <{level = 10 : i32, message = "bqk,bkd->bqd"}> : () -> ()
    %cst_12 = arith.constant dense<0.000000e+00> : vector<2x8x32xf32>
    %33 = tpu.matmul %31, %32, %cst_12 {dimension_numbers = #tpu.dot_dimension_numbers<[2], [1], [1], [2], [0, 0, 0, 1, 1, 2], [0], [0]>} : vector<2x8x8xbf16>, vector<2x8x32xbf16>, vector<2x8x32xf32> -> vector<2x8x32xf32>
    "tpu.trace_stop"() : () -> ()
    %34 = vector.shape_cast %33 : vector<2x8x32xf32> to vector<16x32xf32>
    %35 = vector.extract_strided_slice %9 {offsets = [0, 0], sizes = [32, 64], strides = [1, 1]} : vector<64x64xf32> to vector<32x64xf32>
    %36 = arith.truncf %34 : vector<16x32xf32> to vector<16x32xbf16>
    %37 = arith.truncf %35 : vector<32x64xf32> to vector<32x64xbf16>
    %cst_13 = arith.constant dense<0.000000e+00> : vector<16x64xf32>
    %38 = tpu.matmul %36, %37, %cst_13 {dimension_numbers = #tpu.dot_dimension_numbers<[1], [0], [0], [1], [0, 0, 1, 1], [], []>} : vector<16x32xbf16>, vector<32x64xbf16>, vector<16x64xf32> -> vector<16x64xf32>
    %39 = vector.extract_strided_slice %8 {offsets = [0, 32], sizes = [16, 32], strides = [1, 1]} : vector<16x192xf32> to vector<16x32xf32>
    %40 = vector.shape_cast %39 : vector<16x32xf32> to vector<2x8x32xf32>
    %cst_14 = arith.constant 0.176776692 : f32
    %41 = vector.broadcast %cst_14 : f32 to vector<2x8x32xf32>
    %42 = arith.mulf %40, %41 : vector<2x8x32xf32>
    %43 = vector.extract_strided_slice %8 {offsets = [0, 96], sizes = [16, 32], strides = [1, 1]} : vector<16x192xf32> to vector<16x32xf32>
    %44 = vector.shape_cast %43 : vector<16x32xf32> to vector<2x8x32xf32>
    %45 = vector.extract_strided_slice %8 {offsets = [0, 160], sizes = [16, 32], strides = [1, 1]} : vector<16x192xf32> to vector<16x32xf32>
    %46 = vector.shape_cast %45 : vector<16x32xf32> to vector<2x8x32xf32>
    %47 = arith.truncf %42 : vector<2x8x32xf32> to vector<2x8x32xbf16>
    %48 = arith.truncf %44 : vector<2x8x32xf32> to vector<2x8x32xbf16>
    "tpu.trace_start"() <{level = 10 : i32, message = "bqd,bkd->bqk"}> : () -> ()
    %cst_15 = arith.constant dense<0.000000e+00> : vector<2x8x8xf32>
    %49 = tpu.matmul %47, %48, %cst_15 {dimension_numbers = #tpu.dot_dimension_numbers<[2], [2], [1], [1], [0, 0, 0, 1, 1, 1], [0], [0]>} : vector<2x8x32xbf16>, vector<2x8x32xbf16>, vector<2x8x8xf32> -> vector<2x8x8xf32>
    "tpu.trace_stop"() : () -> ()
    %cst_16 = arith.constant dense<0xFF800000> : vector<2x8xf32>
    %50 = vector.multi_reduction <maximumf>, %49, %cst_16 [2] : vector<2x8x8xf32> to vector<2x8xf32>
    %51 = vector.shape_cast %50 : vector<2x8xf32> to vector<2x8x1xf32>
    %52 = vector.broadcast %51 : vector<2x8x1xf32> to vector<2x8x8xf32>
    %53 = arith.subf %49, %52 : vector<2x8x8xf32>
    %54 = math.exp %53 : vector<2x8x8xf32>
    %cst_17 = arith.constant dense<0.000000e+00> : vector<2x8xf32>
    %55 = vector.multi_reduction <add>, %54, %cst_17 [2] : vector<2x8x8xf32> to vector<2x8xf32>
    %56 = vector.shape_cast %55 : vector<2x8xf32> to vector<2x8x1xf32>
    %57 = tpu.reciprocal %56 {approx = true} : vector<2x8x1xf32> -> vector<2x8x1xf32>
    %58 = vector.broadcast %57 : vector<2x8x1xf32> to vector<2x8x8xf32>
    %59 = arith.mulf %54, %58 : vector<2x8x8xf32>
    %60 = arith.truncf %59 : vector<2x8x8xf32> to vector<2x8x8xbf16>
    %61 = arith.truncf %46 : vector<2x8x32xf32> to vector<2x8x32xbf16>
    "tpu.trace_start"() <{level = 10 : i32, message = "bqk,bkd->bqd"}> : () -> ()
    %cst_18 = arith.constant dense<0.000000e+00> : vector<2x8x32xf32>
    %62 = tpu.matmul %60, %61, %cst_18 {dimension_numbers = #tpu.dot_dimension_numbers<[2], [1], [1], [2], [0, 0, 0, 1, 1, 2], [0], [0]>} : vector<2x8x8xbf16>, vector<2x8x32xbf16>, vector<2x8x32xf32> -> vector<2x8x32xf32>
    "tpu.trace_stop"() : () -> ()
    %63 = vector.shape_cast %62 : vector<2x8x32xf32> to vector<16x32xf32>
    %64 = vector.extract_strided_slice %9 {offsets = [32, 0], sizes = [32, 64], strides = [1, 1]} : vector<64x64xf32> to vector<32x64xf32>
    %65 = arith.truncf %63 : vector<16x32xf32> to vector<16x32xbf16>
    %66 = arith.truncf %64 : vector<32x64xf32> to vector<32x64xbf16>
    %cst_19 = arith.constant dense<0.000000e+00> : vector<16x64xf32>
    %67 = tpu.matmul %65, %66, %cst_19 {dimension_numbers = #tpu.dot_dimension_numbers<[1], [0], [0], [1], [0, 0, 1, 1], [], []>} : vector<16x32xbf16>, vector<32x64xbf16>, vector<16x64xf32> -> vector<16x64xf32>
    %68 = arith.addf %38, %67 : vector<16x64xf32>
    %c0_20 = arith.constant 0 : index
    %c0_21 = arith.constant 0 : index
    %69 = vector.load %arg4[%c0_20, %c0_21] : memref<1x64xf32, #tpu.memory_space<vmem>>, vector<1x64xf32>
    %70 = vector.broadcast %69 : vector<1x64xf32> to vector<16x64xf32>
    %71 = arith.addf %68, %70 : vector<16x64xf32>
    %72 = arith.addf %1, %71 : vector<16x64xf32>
    %c0_22 = arith.constant 0 : index
    %c0_23 = arith.constant 0 : index
    %73 = vector.load %arg5[%c0_22, %c0_23] : memref<1x64xf32, #tpu.memory_space<vmem>>, vector<1x64xf32>
    %c0_24 = arith.constant 0 : index
    %c0_25 = arith.constant 0 : index
    %74 = vector.load %arg6[%c0_24, %c0_25] : memref<1x64xf32, #tpu.memory_space<vmem>>, vector<1x64xf32>
    %cst_26 = arith.constant dense<0.000000e+00> : vector<16xf32>
    %75 = vector.multi_reduction <add>, %72, %cst_26 [1] : vector<16x64xf32> to vector<16xf32>
    %76 = vector.shape_cast %75 : vector<16xf32> to vector<16x1xf32>
    %cst_27 = arith.constant 6.400000e+01 : f32
    %77 = vector.broadcast %cst_27 : f32 to vector<16x1xf32>
    %78 = arith.divf %76, %77 : vector<16x1xf32>
    %79 = vector.broadcast %78 : vector<16x1xf32> to vector<16x64xf32>
    %80 = arith.subf %72, %79 : vector<16x64xf32>
    %81 = arith.mulf %80, %80 : vector<16x64xf32>
    %cst_28 = arith.constant dense<0.000000e+00> : vector<16xf32>
    %82 = vector.multi_reduction <add>, %81, %cst_28 [1] : vector<16x64xf32> to vector<16xf32>
    %83 = vector.shape_cast %82 : vector<16xf32> to vector<16x1xf32>
    %cst_29 = arith.constant 6.400000e+01 : f32
    %84 = vector.broadcast %cst_29 : f32 to vector<16x1xf32>
    %85 = arith.divf %83, %84 : vector<16x1xf32>
    %86 = vector.broadcast %78 : vector<16x1xf32> to vector<16x64xf32>
    %87 = arith.subf %72, %86 : vector<16x64xf32>
    %cst_30 = arith.constant 9.99999974E-6 : f32
    %88 = vector.broadcast %cst_30 : f32 to vector<16x1xf32>
    %89 = arith.addf %85, %88 : vector<16x1xf32>
    %90 = math.rsqrt %89 : vector<16x1xf32>
    %91 = vector.broadcast %90 : vector<16x1xf32> to vector<16x64xf32>
    %92 = arith.mulf %87, %91 : vector<16x64xf32>
    %93 = vector.broadcast %73 : vector<1x64xf32> to vector<16x64xf32>
    %94 = arith.mulf %92, %93 : vector<16x64xf32>
    %95 = vector.broadcast %74 : vector<1x64xf32> to vector<16x64xf32>
    %96 = arith.addf %94, %95 : vector<16x64xf32>
    %c0_31 = arith.constant 0 : index
    %c0_32 = arith.constant 0 : index
    %97 = vector.load %arg7[%c0_31, %c0_32] : memref<64x64xf32, #tpu.memory_space<vmem>>, vector<64x64xf32>
    %98 = arith.truncf %96 : vector<16x64xf32> to vector<16x64xbf16>
    %99 = arith.truncf %97 : vector<64x64xf32> to vector<64x64xbf16>
    %cst_33 = arith.constant dense<0.000000e+00> : vector<16x64xf32>
    %100 = tpu.matmul %98, %99, %cst_33 {dimension_numbers = #tpu.dot_dimension_numbers<[1], [0], [0], [1], [0, 0, 1, 1], [], []>} : vector<16x64xbf16>, vector<64x64xbf16>, vector<16x64xf32> -> vector<16x64xf32>
    %c0_34 = arith.constant 0 : index
    %c0_35 = arith.constant 0 : index
    %101 = vector.load %arg8[%c0_34, %c0_35] : memref<1x64xf32, #tpu.memory_space<vmem>>, vector<1x64xf32>
    %102 = vector.broadcast %101 : vector<1x64xf32> to vector<16x64xf32>
    %103 = arith.addf %100, %102 : vector<16x64xf32>
    %cst_36 = arith.constant 0.000000e+00 : f32
    %104 = vector.broadcast %cst_36 : f32 to vector<16x64xf32>
    %105 = arith.maximumf %103, %104 : vector<16x64xf32>
    %c0_37 = arith.constant 0 : index
    %c0_38 = arith.constant 0 : index
    %106 = vector.load %arg9[%c0_37, %c0_38] : memref<64x64xf32, #tpu.memory_space<vmem>>, vector<64x64xf32>
    %107 = arith.truncf %105 : vector<16x64xf32> to vector<16x64xbf16>
    %108 = arith.truncf %106 : vector<64x64xf32> to vector<64x64xbf16>
    %cst_39 = arith.constant dense<0.000000e+00> : vector<16x64xf32>
    %109 = tpu.matmul %107, %108, %cst_39 {dimension_numbers = #tpu.dot_dimension_numbers<[1], [0], [0], [1], [0, 0, 1, 1], [], []>} : vector<16x64xbf16>, vector<64x64xbf16>, vector<16x64xf32> -> vector<16x64xf32>
    %c0_40 = arith.constant 0 : index
    %c0_41 = arith.constant 0 : index
    %110 = vector.load %arg10[%c0_40, %c0_41] : memref<1x64xf32, #tpu.memory_space<vmem>>, vector<1x64xf32>
    %111 = vector.broadcast %110 : vector<1x64xf32> to vector<16x64xf32>
    %112 = arith.addf %109, %111 : vector<16x64xf32>
    %113 = arith.addf %96, %112 : vector<16x64xf32>
    %c0_42 = arith.constant 0 : index
    %c0_43 = arith.constant 0 : index
    %114 = vector.load %arg11[%c0_42, %c0_43] : memref<1x64xf32, #tpu.memory_space<vmem>>, vector<1x64xf32>
    %c0_44 = arith.constant 0 : index
    %c0_45 = arith.constant 0 : index
    %115 = vector.load %arg12[%c0_44, %c0_45] : memref<1x64xf32, #tpu.memory_space<vmem>>, vector<1x64xf32>
    %cst_46 = arith.constant dense<0.000000e+00> : vector<16xf32>
    %116 = vector.multi_reduction <add>, %113, %cst_46 [1] : vector<16x64xf32> to vector<16xf32>
    %117 = vector.shape_cast %116 : vector<16xf32> to vector<16x1xf32>
    %cst_47 = arith.constant 6.400000e+01 : f32
    %118 = vector.broadcast %cst_47 : f32 to vector<16x1xf32>
    %119 = arith.divf %117, %118 : vector<16x1xf32>
    %120 = vector.broadcast %119 : vector<16x1xf32> to vector<16x64xf32>
    %121 = arith.subf %113, %120 : vector<16x64xf32>
    %122 = arith.mulf %121, %121 : vector<16x64xf32>
    %cst_48 = arith.constant dense<0.000000e+00> : vector<16xf32>
    %123 = vector.multi_reduction <add>, %122, %cst_48 [1] : vector<16x64xf32> to vector<16xf32>
    %124 = vector.shape_cast %123 : vector<16xf32> to vector<16x1xf32>
    %cst_49 = arith.constant 6.400000e+01 : f32
    %125 = vector.broadcast %cst_49 : f32 to vector<16x1xf32>
    %126 = arith.divf %124, %125 : vector<16x1xf32>
    %127 = vector.broadcast %119 : vector<16x1xf32> to vector<16x64xf32>
    %128 = arith.subf %113, %127 : vector<16x64xf32>
    %cst_50 = arith.constant 9.99999974E-6 : f32
    %129 = vector.broadcast %cst_50 : f32 to vector<16x1xf32>
    %130 = arith.addf %126, %129 : vector<16x1xf32>
    %131 = math.rsqrt %130 : vector<16x1xf32>
    %132 = vector.broadcast %131 : vector<16x1xf32> to vector<16x64xf32>
    %133 = arith.mulf %128, %132 : vector<16x64xf32>
    %134 = vector.broadcast %114 : vector<1x64xf32> to vector<16x64xf32>
    %135 = arith.mulf %133, %134 : vector<16x64xf32>
    %136 = vector.broadcast %115 : vector<1x64xf32> to vector<16x64xf32>
    %137 = arith.addf %135, %136 : vector<16x64xf32>
    %138 = vector.shape_cast %137 : vector<16x64xf32> to vector<2x8x64xf32>
    %c0_51 = arith.constant 0 : index
    %c0_52 = arith.constant 0 : index
    %c0_53 = arith.constant 0 : index
    %139 = vector.load %arg15[%c0_51, %c0_52, %c0_53] : memref<2x8x64xf32, #tpu.memory_space<vmem>>, vector<2x8x64xf32>
    tpu.vector_store %arg15[%c0_51, %c0_52, %c0_53], %138 {strides = array<i32>} : memref<2x8x64xf32, #tpu.memory_space<vmem>>, vector<2x8x64xf32>,
    return
  }
}

module attributes {stable_mosaic.version = 11 : i64} {
  func.func @_encoder_layer_kernel(%arg0: memref<2x8x64xf32, #tpu.memory_space<vmem>>, %arg1: memref<64x192xf32, #tpu.memory_space<vmem>>, %arg2: memref<1x192xf32, #tpu.memory_space<vmem>>, %arg3: memref<64x64xf32, #tpu.memory_space<vmem>>, %arg4: memref<1x64xf32, #tpu.memory_space<vmem>>, %arg5: memref<1x64xf32, #tpu.memory_space<vmem>>, %arg6: memref<1x64xf32, #tpu.memory_space<vmem>>, %arg7: memref<64x64xf32, #tpu.memory_space<vmem>>, %arg8: memref<1x64xf32, #tpu.memory_space<vmem>>, %arg9: memref<64x64xf32, #tpu.memory_space<vmem>>, %arg10: memref<1x64xf32, #tpu.memory_space<vmem>>, %arg11: memref<1x64xf32, #tpu.memory_space<vmem>>, %arg12: memref<1x64xf32, #tpu.memory_space<vmem>>, %arg13: memref<1x64xf32, #tpu.memory_space<vmem>>, %arg14: memref<1x64xf32, #tpu.memory_space<vmem>>, %arg15: memref<2x8x64xf32, #tpu.memory_space<vmem>>) attributes {dimension_semantics = [], scalar_prefetch = 0 : i64, scratch_operands = 0 : i64, tpu.core_type = #tpu.core_type<tc>} {
    %c0 = arith.constant 0 : index
    %c0_0 = arith.constant 0 : index
    %c0_1 = arith.constant 0 : index
    %0 = vector.load %arg0[%c0, %c0_0, %c0_1] : memref<2x8x64xf32, #tpu.memory_space<vmem>>, vector<2x8x64xf32>
    %1 = vector.shape_cast %0 : vector<2x8x64xf32> to vector<16x64xf32>
    %c0_2 = arith.constant 0 : index
    %c0_3 = arith.constant 0 : index
    %2 = vector.load %arg1[%c0_2, %c0_3] : memref<64x192xf32, #tpu.memory_space<vmem>>, vector<64x192xf32>
    %3 = arith.truncf %1 : vector<16x64xf32> to vector<16x64xbf16>
    %4 = arith.truncf %2 : vector<64x192xf32> to vector<64x192xbf16>
    %cst = arith.constant dense<0.000000e+00> : vector<16x192xf32>
    %5 = tpu.matmul %3, %4, %cst {dimension_numbers = #tpu.dot_dimension_numbers<[1], [0], [0], [1], [0, 0, 1, 1], [], []>} : vector<16x64xbf16>, vector<64x192xbf16>, vector<16x192xf32> -> vector<16x192xf32>
    %c0_4 = arith.constant 0 : index
    %c0_5 = arith.constant 0 : index
    %6 = vector.load %arg2[%c0_4, %c0_5] : memref<1x192xf32, #tpu.memory_space<vmem>>, vector<1x192xf32>
    %7 = vector.broadcast %6 : vector<1x192xf32> to vector<16x192xf32>
    %8 = arith.addf %5, %7 : vector<16x192xf32>
    %c0_6 = arith.constant 0 : index
    %c0_7 = arith.constant 0 : index
    %9 = vector.load %arg3[%c0_6, %c0_7] : memref<64x64xf32, #tpu.memory_space<vmem>>, vector<64x64xf32>
    %10 = vector.extract_strided_slice %8 {offsets = [0, 0], sizes = [16, 32], strides = [1, 1]} : vector<16x192xf32> to vector<16x32xf32>
    %11 = vector.shape_cast %10 : vector<16x32xf32> to vector<2x8x32xf32>
    %cst_8 = arith.constant 0.176776692 : f32
    %12 = vector.broadcast %cst_8 : f32 to vector<2x8x32xf32>
    %13 = arith.mulf %11, %12 : vector<2x8x32xf32>
    %14 = vector.extract_strided_slice %8 {offsets = [0, 64], sizes = [16, 32], strides = [1, 1]} : vector<16x192xf32> to vector<16x32xf32>
    %15 = vector.shape_cast %14 : vector<16x32xf32> to vector<2x8x32xf32>
    %16 = vector.extract_strided_slice %8 {offsets = [0, 128], sizes = [16, 32], strides = [1, 1]} : vector<16x192xf32> to vector<16x32xf32>
    %17 = vector.shape_cast %16 : vector<16x32xf32> to vector<2x8x32xf32>
    %18 = arith.truncf %13 : vector<2x8x32xf32> to vector<2x8x32xbf16>
    %19 = arith.truncf %15 : vector<2x8x32xf32> to vector<2x8x32xbf16>
    "tpu.trace_start"() <{level = 10 : i32, message = "bqd,bkd->bqk"}> : () -> ()
    %cst_9 = arith.constant dense<0.000000e+00> : vector<2x8x8xf32>
    %20 = tpu.matmul %18, %19, %cst_9 {dimension_numbers = #tpu.dot_dimension_numbers<[2], [2], [1], [1], [0, 0, 0, 1, 1, 1], [0], [0]>} : vector<2x8x32xbf16>, vector<2x8x32xbf16>, vector<2x8x8xf32> -> vector<2x8x8xf32>
    "tpu.trace_stop"() : () -> ()
    %cst_10 = arith.constant dense<0xFF800000> : vector<2x8xf32>
    %21 = vector.multi_reduction <maximumf>, %20, %cst_10 [2] : vector<2x8x8xf32> to vector<2x8xf32>
    %22 = vector.shape_cast %21 : vector<2x8xf32> to vector<2x8x1xf32>
    %23 = vector.broadcast %22 : vector<2x8x1xf32> to vector<2x8x8xf32>
    %24 = arith.subf %20, %23 : vector<2x8x8xf32>
    %25 = math.exp %24 : vector<2x8x8xf32>
    %cst_11 = arith.constant dense<0.000000e+00> : vector<2x8xf32>
    %26 = vector.multi_reduction <add>, %25, %cst_11 [2] : vector<2x8x8xf32> to vector<2x8xf32>
    %27 = vector.shape_cast %26 : vector<2x8xf32> to vector<2x8x1xf32>
    %28 = tpu.reciprocal %27 {approx = true} : vector<2x8x1xf32> -> vector<2x8x1xf32>
    %29 = vector.broadcast %28 : vector<2x8x1xf32> to vector<2x8x8xf32>
    %30 = arith.mulf %25, %29 : vector<2x8x8xf32>
    %31 = arith.truncf %30 : vector<2x8x8xf32> to vector<2x8x8xbf16>
    %32 = arith.truncf %17 : vector<2x8x32xf32> to vector<2x8x32xbf16>
    "tpu.trace_start"() <{level = 10 : i32, message = "bqk,bkd->bqd"}> : () -> ()
    %cst_12 = arith.constant dense<0.000000e+00> : vector<2x8x32xf32>
    %33 = tpu.matmul %31, %32, %cst_12 {dimension_numbers = #tpu.dot_dimension_numbers<[2], [1], [1], [2], [0, 0, 0, 1, 1, 2], [0], [0]>} : vector<2x8x8xbf16>, vector<2x8x32xbf16>, vector<2x8x32xf32> -> vector<2x8x32xf32>
    "tpu.trace_stop"() : () -> ()
    %34 = vector.shape_cast %33 : vector<2x8x32xf32> to vector<16x32xf32>
    %35 = vector.extract_strided_slice %9 {offsets = [0, 0], sizes = [32, 64], strides = [1, 1]} : vector<64x64xf32> to vector<32x64xf32>
    %36 = arith.truncf %34 : vector<16x32xf32> to vector<16x32xbf16>
    %37 = arith.truncf %35 : vector<32x64xf32> to vector<32x64xbf16>
    %cst_13 = arith.constant dense<0.000000e+00> : vector<16x64xf32>
    %38 = tpu.matmul %36, %37, %cst_13 {dimension_numbers = #tpu.dot_dimension_numbers<[1], [0], [0], [1], [0, 0, 1, 1], [], []>} : vector<16x32xbf16>, vector<32x64xbf16>, vector<16x64xf32> -> vector<16x64xf32>
    %39 = vector.extract_strided_slice %8 {offsets = [0, 32], sizes = [16, 32], strides = [1, 1]} : vector<16x192xf32> to vector<16x32xf32>
    %40 = vector.shape_cast %39 : vector<16x32xf32> to vector<2x8x32xf32>
    %cst_14 = arith.constant 0.176776692 : f32
    %41 = vector.broadcast %cst_14 : f32 to vector<2x8x32xf32>
    %42 = arith.mulf %40, %41 : vector<2x8x32xf32>
    %43 = vector.extract_strided_slice %8 {offsets = [0, 96], sizes = [16, 32], strides = [1, 1]} : vector<16x192xf32> to vector<16x32xf32>
    %44 = vector.shape_cast %43 : vector<16x32xf32> to vector<2x8x32xf32>
    %45 = vector.extract_strided_slice %8 {offsets = [0, 160], sizes = [16, 32], strides = [1, 1]} : vector<16x192xf32> to vector<16x32xf32>
    %46 = vector.shape_cast %45 : vector<16x32xf32> to vector<2x8x32xf32>
    %47 = arith.truncf %42 : vector<2x8x32xf32> to vector<2x8x32xbf16>
    %48 = arith.truncf %44 : vector<2x8x32xf32> to vector<2x8x32xbf16>
    "tpu.trace_start"() <{level = 10 : i32, message = "bqd,bkd->bqk"}> : () -> ()
    %cst_15 = arith.constant dense<0.000000e+00> : vector<2x8x8xf32>
    %49 = tpu.matmul %47, %48, %cst_15 {dimension_numbers = #tpu.dot_dimension_numbers<[2], [2], [1], [1], [0, 0, 0, 1, 1, 1], [0], [0]>} : vector<2x8x32xbf16>, vector<2x8x32xbf16>, vector<2x8x8xf32> -> vector<2x8x8xf32>
    "tpu.trace_stop"() : () -> ()
    %cst_16 = arith.constant dense<0xFF800000> : vector<2x8xf32>
    %50 = vector.multi_reduction <maximumf>, %49, %cst_16 [2] : vector<2x8x8xf32> to vector<2x8xf32>
    %51 = vector.shape_cast %50 : vector<2x8xf32> to vector<2x8x1xf32>
    %52 = vector.broadcast %51 : vector<2x8x1xf32> to vector<2x8x8xf32>
    %53 = arith.subf %49, %52 : vector<2x8x8xf32>
    %54 = math.exp %53 : vector<2x8x8xf32>
    %cst_17 = arith.constant dense<0.000000e+00> : vector<2x8xf32>
    %55 = vector.multi_reduction <add>, %54, %cst_17 [2] : vector<2x8x8xf32> to vector<2x8xf32>
    %56 = vector.shape_cast %55 : vector<2x8xf32> to vector<2x8x1xf32>
    %57 = tpu.reciprocal %56 {approx = true} : vector<2x8x1xf32> -> vector<2x8x1xf32>
    %58 = vector.broadcast %57 : vector<2x8x1xf32> to vector<2x8x8xf32>
    %59 = arith.mulf %54, %58 : vector<2x8x8xf32>
    %60 = arith.truncf %59 : vector<2x8x8xf32> to vector<2x8x8xbf16>
    %61 = arith.truncf %46 : vector<2x8x32xf32> to vector<2x8x32xbf16>
    "tpu.trace_start"() <{level = 10 : i32, message = "bqk,bkd->bqd"}> : () -> ()
    %cst_18 = arith.constant dense<0.000000e+00> : vector<2x8x32xf32>
    %62 = tpu.matmul %60, %61, %cst_18 {dimension_numbers = #tpu.dot_dimension_numbers<[2], [1], [1], [2], [0, 0, 0, 1, 1, 2], [0], [0]>} : vector<2x8x8xbf16>, vector<2x8x32xbf16>, vector<2x8x32xf32> -> vector<2x8x32xf32>
    "tpu.trace_stop"() : () -> ()
    %63 = vector.shape_cast %62 : vector<2x8x32xf32> to vector<16x32xf32>
    %64 = vector.extract_strided_slice %9 {offsets = [32, 0], sizes = [32, 64], strides = [1, 1]} : vector<64x64xf32> to vector<32x64xf32>
    %65 = arith.truncf %63 : vector<16x32xf32> to vector<16x32xbf16>
    %66 = arith.truncf %64 : vector<32x64xf32> to vector<32x64xbf16>
    %cst_19 = arith.constant dense<0.000000e+00> : vector<16x64xf32>
    %67 = tpu.matmul %65, %66, %cst_19 {dimension_numbers = #tpu.dot_dimension_numbers<[1], [0], [0], [1], [0, 0, 1, 1], [], []>} : vector<16x32xbf16>, vector<32x64xbf16>, vector<16x64xf32> -> vector<16x64xf32>
    %68 = arith.addf %38, %67 : vector<16x64xf32>
    %c0_20 = arith.constant 0 : index
    %c0_21 = arith.constant 0 : index
    %69 = vector.load %arg4[%c0_20, %c0_21] : memref<1x64xf32, #tpu.memory_space<vmem>>, vector<1x64xf32>
    %70 = vector.broadcast %69 : vector<1x64xf32> to vector<16x64xf32>
    %71 = arith.addf %68, %70 : vector<16x64xf32>
    %72 = arith.addf %1, %71 : vector<16x64xf32>
    %c0_22 = arith.constant 0 : index
    %c0_23 = arith.constant 0 : index
    %73 = vector.load %arg5[%c0_22, %c0_23] : memref<1x64xf32, #tpu.memory_space<vmem>>, vector<1x64xf32>
    %c0_24 = arith.constant 0 : index
    %c0_25 = arith.constant 0 : index
    %74 = vector.load %arg6[%c0_24, %c0_25] : memref<1x64xf32, #tpu.memory_space<vmem>>, vector<1x64xf32>
    %cst_26 = arith.constant dense<0.000000e+00> : vector<16xf32>
    %75 = vector.multi_reduction <add>, %72, %cst_26 [1] : vector<16x64xf32> to vector<16xf32>
    %76 = vector.shape_cast %75 : vector<16xf32> to vector<16x1xf32>
    %cst_27 = arith.constant 6.400000e+01 : f32
    %77 = vector.broadcast %cst_27 : f32 to vector<16x1xf32>
    %78 = arith.divf %76, %77 : vector<16x1xf32>
    %79 = vector.broadcast %78 : vector<16x1xf32> to vector<16x64xf32>
    %80 = arith.subf %72, %79 : vector<16x64xf32>
    %81 = arith.mulf %80, %80 : vector<16x64xf32>
    %cst_28 = arith.constant dense<0.000000e+00> : vector<16xf32>
    %82 = vector.multi_reduction <add>, %81, %cst_28 [1] : vector<16x64xf32> to vector<16xf32>
    %83 = vector.shape_cast %82 : vector<16xf32> to vector<16x1xf32>
    %cst_29 = arith.constant 6.400000e+01 : f32
    %84 = vector.broadcast %cst_29 : f32 to vector<16x1xf32>
    %85 = arith.divf %83, %84 : vector<16x1xf32>
    %86 = vector.broadcast %78 : vector<16x1xf32> to vector<16x64xf32>
    %87 = arith.subf %72, %86 : vector<16x64xf32>
    %cst_30 = arith.constant 9.99999974E-6 : f32
    %88 = vector.broadcast %cst_30 : f32 to vector<16x1xf32>
    %89 = arith.addf %85, %88 : vector<16x1xf32>
    %90 = math.rsqrt %89 : vector<16x1xf32>
    %91 = vector.broadcast %90 : vector<16x1xf32> to vector<16x64xf32>
    %92 = arith.mulf %87, %91 : vector<16x64xf32>
    %93 = vector.broadcast %73 : vector<1x64xf32> to vector<16x64xf32>
    %94 = arith.mulf %92, %93 : vector<16x64xf32>
    %95 = vector.broadcast %74 : vector<1x64xf32> to vector<16x64xf32>
    %96 = arith.addf %94, %95 : vector<16x64xf32>
    %c0_31 = arith.constant 0 : index
    %c0_32 = arith.constant 0 : index
    %97 = vector.load %arg7[%c0_31, %c0_32] : memref<64x64xf32, #tpu.memory_space<vmem>>, vector<64x64xf32>
    %98 = arith.truncf %96 : vector<16x64xf32> to vector<16x64xbf16>
    %99 = arith.truncf %97 : vector<64x64xf32> to vector<64x64xbf16>
    %cst_33 = arith.constant dense<0.000000e+00> : vector<16x64xf32>
    %100 = tpu.matmul %98, %99, %cst_33 {dimension_numbers = #tpu.dot_dimension_numbers<[1], [0], [0], [1], [0, 0, 1, 1], [], []>} : vector<16x64xbf16>, vector<64x64xbf16>, vector<16x64xf32> -> vector<16x64xf32>
    %c0_34 = arith.constant 0 : index
    %c0_35 = arith.constant 0 : index
    %101 = vector.load %arg8[%c0_34, %c0_35] : memref<1x64xf32, #tpu.memory_space<vmem>>, vector<1x64xf32>
    %102 = vector.broadcast %101 : vector<1x64xf32> to vector<16x64xf32>
    %103 = arith.addf %100, %102 : vector<16x64xf32>
    %cst_36 = arith.constant 0.000000e+00 : f32
    %104 = vector.broadcast %cst_36 : f32 to vector<16x64xf32>
    %105 = arith.maximumf %103, %104 : vector<16x64xf32>
    %c0_37 = arith.constant 0 : index
    %c0_38 = arith.constant 0 : index
    %106 = vector.load %arg9[%c0_37, %c0_38] : memref<64x64xf32, #tpu.memory_space<vmem>>, vector<64x64xf32>
    %107 = arith.truncf %105 : vector<16x64xf32> to vector<16x64xbf16>
    %108 = arith.truncf %106 : vector<64x64xf32> to vector<64x64xbf16>
    %cst_39 = arith.constant dense<0.000000e+00> : vector<16x64xf32>
    %109 = tpu.matmul %107, %108, %cst_39 {dimension_numbers = #tpu.dot_dimension_numbers<[1], [0], [0], [1], [0, 0, 1, 1], [], []>} : vector<16x64xbf16>, vector<64x64xbf16>, vector<16x64xf32> -> vector<16x64xf32>
    %c0_40 = arith.constant 0 : index
    %c0_41 = arith.constant 0 : index
    %110 = vector.load %arg10[%c0_40, %c0_41] : memref<1x64xf32, #tpu.memory_space<vmem>>, vector<1x64xf32>
    %111 = vector.broadcast %110 : vector<1x64xf32> to vector<16x64xf32>
    %112 = arith.addf %109, %111 : vector<16x64xf32>
    %113 = arith.addf %96, %112 : vector<16x64xf32>
    %c0_42 = arith.constant 0 : index
    %c0_43 = arith.constant 0 : index
    %114 = vector.load %arg11[%c0_42, %c0_43] : memref<1x64xf32, #tpu.memory_space<vmem>>, vector<1x64xf32>
    %c0_44 = arith.constant 0 : index
    %c0_45 = arith.constant 0 : index
    %115 = vector.load %arg12[%c0_44, %c0_45] : memref<1x64xf32, #tpu.memory_space<vmem>>, vector<1x64xf32>
    %cst_46 = arith.constant dense<0.000000e+00> : vector<16xf32>
    %116 = vector.multi_reduction <add>, %113, %cst_46 [1] : vector<16x64xf32> to vector<16xf32>
    %117 = vector.shape_cast %116 : vector<16xf32> to vector<16x1xf32>
    %cst_47 = arith.constant 6.400000e+01 : f32
    %118 = vector.broadcast %cst_47 : f32 to vector<16x1xf32>
    %119 = arith.divf %117, %118 : vector<16x1xf32>
    %120 = vector.broadcast %119 : vector<16x1xf32> to vector<16x64xf32>
    %121 = arith.subf %113, %120 : vector<16x64xf32>
    %122 = arith.mulf %121, %121 : vector<16x64xf32>
    %cst_48 = arith.constant dense<0.000000e+00> : vector<16xf32>
    %123 = vector.multi_reduction <add>, %122, %cst_48 [1] : vector<16x64xf32> to vector<16xf32>
    %124 = vector.shape_cast %123 : vector<16xf32> to vector<16x1xf32>
    %cst_49 = arith.constant 6.400000e+01 : f32
    %125 = vector.broadcast %cst_49 : f32 to vector<16x1xf32>
    %126 = arith.divf %124, %125 : vector<16x1xf32>
    %127 = vector.broadcast %119 : vector<16x1xf32> to vector<16x64xf32>
    %128 = arith.subf %113, %127 : vector<16x64xf32>
    %cst_50 = arith.constant 9.99999974E-6 : f32
    %129 = vector.broadcast %cst_50 : f32 to vector<16x1xf32>
    %130 = arith.addf %126, %129 : vector<16x1xf32>
    %131 = math.rsqrt %130 : vector<16x1xf32>
    %132 = vector.broadcast %131 : vector<16x1xf32> to vector<16x64xf32>
    %133 = arith.mulf %128, %132 : vector<16x64xf32>
    %134 = vector.broadcast %114 : vector<1x64xf32> to vector<16x64xf32>
    %135 = arith.mulf %133, %134 : vector<16x64xf32>
    %136 = vector.broadcast %115 : vector<1x64xf32> to vector<16x64xf32>
    %137 = arith.addf %135, %136 : vector<16x64xf32>
    %c0_51 = arith.constant 0 : index
    %c0_52 = arith.constant 0 : index
    %138 = vector.load %arg13[%c0_51, %c0_52] : memref<1x64xf32, #tpu.memory_space<vmem>>, vector<1x64xf32>
    %c0_53 = arith.constant 0 : index
    %c0_54 = arith.constant 0 : index
    %139 = vector.load %arg14[%c0_53, %c0_54] : memref<1x64xf32, #tpu.memory_space<vmem>>, vector<1x64xf32>
    %cst_55 = arith.constant dense<0.000000e+00> : vector<16xf32>
    %140 = vector.multi_reduction <add>, %137, %cst_55 [1] : vector<16x64xf32> to vector<16xf32>
    %141 = vector.shape_cast %140 : vector<16xf32> to vector<16x1xf32>
    %cst_56 = arith.constant 6.400000e+01 : f32
    %142 = vector.broadcast %cst_56 : f32 to vector<16x1xf32>
    %143 = arith.divf %141, %142 : vector<16x1xf32>
    %144 = vector.broadcast %143 : vector<16x1xf32> to vector<16x64xf32>
    %145 = arith.subf %137, %144 : vector<16x64xf32>
    %146 = arith.mulf %145, %145 : vector<16x64xf32>
    %cst_57 = arith.constant dense<0.000000e+00> : vector<16xf32>
    %147 = vector.multi_reduction <add>, %146, %cst_57 [1] : vector<16x64xf32> to vector<16xf32>
    %148 = vector.shape_cast %147 : vector<16xf32> to vector<16x1xf32>
    %cst_58 = arith.constant 6.400000e+01 : f32
    %149 = vector.broadcast %cst_58 : f32 to vector<16x1xf32>
    %150 = arith.divf %148, %149 : vector<16x1xf32>
    %151 = vector.broadcast %143 : vector<16x1xf32> to vector<16x64xf32>
    %152 = arith.subf %137, %151 : vector<16x64xf32>
    %cst_59 = arith.constant 9.99999974E-6 : f32
    %153 = vector.broadcast %cst_59 : f32 to vector<16x1xf32>
    %154 = arith.addf %150, %153 : vector<16x1xf32>
    %155 = math.rsqrt %154 : vector<16x1xf32>
    %156 = vector.broadcast %155 : vector<16x1xf32> to vector<16x64xf32>
    %157 = arith.mulf %152, %156 : vector<16x64xf32>
    %158 = vector.broadcast %138 : vector<1x64xf32> to vector<16x64xf32>
    %159 = arith.mulf %157, %158 : vector<16x64xf32>
    %160 = vector.broadcast %139 : vector<1x64xf32> to vector<16x64xf32>
    %161 = arith.addf %159, %160 : vector<16x64xf32>
    %162 = vector.shape_cast %161 : vector<16x64xf32> to vector<2x8x64xf32>
    %c0_60 = arith.constant 0 : index
    %c0_61 = arith.constant 0 : index
    %c0_62 = arith.constant 0 : index
    %163 = vector.load %arg15[%c0_60, %c0_61, %c0_62] : memref<2x8x64xf32, #tpu.memory_space<vmem>>, vector<2x8x64xf32>
    tpu.vector_store %arg15[%c0_60, %c0_61, %c0_62], %162 {strides = array<i32>} : memref<2x8x64xf32, #tpu.memory_space<vmem>>, vector<2x8x64xf32>,
    return
  }
}

module attributes {stable_mosaic.version = 11 : i64} {
  func.func @_linear_kernel(%arg0: memref<16x64xf32, #tpu.memory_space<vmem>>, %arg1: memref<64x16xf32, #tpu.memory_space<vmem>>, %arg2: memref<1x16xf32, #tpu.memory_space<vmem>>, %arg3: memref<16x16xf32, #tpu.memory_space<vmem>>) attributes {dimension_semantics = [], scalar_prefetch = 0 : i64, scratch_operands = 0 : i64, tpu.core_type = #tpu.core_type<tc>} {
    %c0 = arith.constant 0 : index
    %c0_0 = arith.constant 0 : index
    %0 = vector.load %arg0[%c0, %c0_0] : memref<16x64xf32, #tpu.memory_space<vmem>>, vector<16x64xf32>
    %c0_1 = arith.constant 0 : index
    %c0_2 = arith.constant 0 : index
    %1 = vector.load %arg1[%c0_1, %c0_2] : memref<64x16xf32, #tpu.memory_space<vmem>>, vector<64x16xf32>
    %2 = arith.truncf %0 : vector<16x64xf32> to vector<16x64xbf16>
    %3 = arith.truncf %1 : vector<64x16xf32> to vector<64x16xbf16>
    %cst = arith.constant dense<0.000000e+00> : vector<16x16xf32>
    %4 = tpu.matmul %2, %3, %cst {dimension_numbers = #tpu.dot_dimension_numbers<[1], [0], [0], [1], [0, 0, 1, 1], [], []>} : vector<16x64xbf16>, vector<64x16xbf16>, vector<16x16xf32> -> vector<16x16xf32>
    %c0_3 = arith.constant 0 : index
    %c0_4 = arith.constant 0 : index
    %5 = vector.load %arg2[%c0_3, %c0_4] : memref<1x16xf32, #tpu.memory_space<vmem>>, vector<1x16xf32>
    %6 = vector.broadcast %5 : vector<1x16xf32> to vector<16x16xf32>
    %7 = arith.addf %4, %6 : vector<16x16xf32>
    %c0_5 = arith.constant 0 : index
    %c0_6 = arith.constant 0 : index
    %8 = vector.load %arg3[%c0_5, %c0_6] : memref<16x16xf32, #tpu.memory_space<vmem>>, vector<16x16xf32>
    tpu.vector_store %arg3[%c0_5, %c0_6], %7 {strides = array<i32>} : memref<16x16xf32, #tpu.memory_space<vmem>>, vector<16x16xf32>,
    return
  }
}

</mosaic_0001>

<bundles_post_ra>
// kernel: vqvae_forward.7
= control target key start
LH: loop header
LB: loop body
LE: loop exit
PB: predicated region body
PF: predicated region fallthrough
CT: control target
= control target key end

     0   :  { %v1040_v0 = vmov 0.0   ;;  %vm1041_vm0 = vmmov 0   ;;  %vm64_vm1 = vcmask 130048   ;;  %s1042_s22 = smov 112   ;;  %vm120_vm2 = vcmask 64512   ;;  %s1044_s23 = smov 104   ;;  %s1299_s13 = inlined_call_operand.vmem [shape: f32[1,16], index: 13, kind: input, shape index: {}, may-alias: {11,13}]   ;;  %s1300_s14 = inlined_call_operand.vmem [shape: f32[1,16], index: 14, kind: input, shape index: {}, may-alias: {12,14}]   ;;  %s1301_s1 = inlined_call_operand.vmem [shape: f32[16,48], index: 1, kind: input, shape index: {}]   ;;  %s1302_s0 = inlined_call_operand.vmem [shape: f32[2,8,16], index: 0, kind: input, shape index: {}]   ;;  %s1303_s2 = inlined_call_operand.vmem [shape: f32[1,48], index: 2, kind: input, shape index: {}]   ;;  %s1304_s3 = inlined_call_operand.vmem [shape: f32[16,16], index: 3, kind: input, shape index: {}]   ;;  %s1305_s4 = inlined_call_operand.vmem [shape: f32[1,16], index: 4, kind: input, shape index: {}]   ;;  %s1306_s7 = inlined_call_operand.vmem [shape: f32[16,32], index: 7, kind: input, shape index: {}]   ;;  %s1307_s5 = inlined_call_operand.vmem [shape: f32[1,16], index: 5, kind: input, shape index: {}]   ;;  %s1308_s6 = inlined_call_operand.vmem [shape: f32[1,16], index: 6, kind: input, shape index: {}]   ;;  %s1309_s9 = inlined_call_operand.vmem [shape: f32[32,16], index: 9, kind: input, shape index: {}]   ;;  %s1310_s8 = inlined_call_operand.vmem [shape: f32[1,32], index: 8, kind: input, shape index: {}]   ;;  %s1311_s10 = inlined_call_operand.vmem [shape: f32[1,16], index: 10, kind: input, shape index: {}]   ;;  %s1312_s11 = inlined_call_operand.vmem [shape: f32[1,16], index: 11, kind: input, shape index: {}, may-alias: {11,13}]   ;;  %s1313_s12 = inlined_call_operand.vmem [shape: f32[1,16], index: 12, kind: input, shape index: {}, may-alias: {12,14}]   ;;  %s1314_s15 = inlined_call_operand.vmem [shape: f32[2,8,16], index: 15, kind: output, shape index: {}]  }
   0x1   :  { %929 = vmatprep.subr.bf16.mxu0 %v1040_v0  ;;  %v53_v1 = vld [vmem:[%s1301_s1] sm:$0xff]  ;;  %v54_v2 = vld [vmem:[%s1301_s1 + $0x8] sm:$0xff]  ;;  %931 = vmatprep.mubr.msk.bf16.mxu0 %vm1041_vm0, %v1040_v0  ;;  %vm245_vm3 = vcmask 1043456   ;;  %s1045_s24 = smov 120   ;;  %s1046_s25 = smov 88   ;;  %vm784_vm4 = vcmask 261120  }
   0x2   :  { %v1139_v3 = vld [vmem:[%s1302_s0] sm:$0xff]  ;;  %v56_v4 = vpack.c.bf16 %v54_v2, %v53_v1  ;;  %v1144_v5 = vld [vmem:[%s1302_s0 + $0x8] sm:$0xff]  ;;  %935 = vmatprep.subr.bf16.mxu1 %v1040_v0  ;;  %937 = vmatprep.mubr.msk.bf16.mxu1 %vm1041_vm0, %v1040_v0 }
   0x3   :  { %v55_v6 = vpack.c.bf16 %v1144_v5, %v1139_v3  ;;  %v881_v7 = vld [vmem:[%s1303_s2] ss:$0 sm:$0xff]  ;;  %s1043_s2 = smov 96  }
   0x4   :  { %930 = vmatpush3.bf16.msra.mxu0 %v56_v4 }
   0x5   :  { %941 = vmatprep.subr.bf16.mxu0 %v1040_v0 }
   0x7   :  { %932 = vmatmul.mubr.msk.bf16.vlgmr.msra.gmra.mxu0 %vm64_vm1, %v55_v6 }
   0x8   :  { %943 = vmatprep.mubr.msk.bf16.mxu0 %vm1041_vm0, %v1040_v0 }
  0xc7   :  { %v102_v8 = vpop.f32.mrf.mxu0 }
  0xc8   :  { %v103_v9 = vadd.f32 %v881_v7, %v102_v8 }
  0xc9   :  { %v933_v10 = vpop.f32.mrf.mxu0 }
  0xca   :  { %v1158_v11 = vpack.c.bf16 %v103_v9, %v103_v9  ;;  %v111_v18 = vmul.f32 0.35355338, %v103_v9 }
  0xcb   :  { %v105_v12 = vpop.f32.mrf.mxu0 }
  0xcc   :  { %v106_v13 = vadd.f32 %v881_v7, %v105_v12  ;;  %118 = vrot.lane.b32.xlu0 %v1158_v11, %s1042_s22  ;;  %v113_v21 = vpack.c.bf16 %v111_v18, %v111_v18 }
  0xcd   :  { %v934_v14 = vpop.f32.mrf.mxu0 }
  0xce   :  { %v1161_v15 = vpack.c.bf16 %v106_v13, %v106_v13  ;;  %v112_v22 = vmul.f32 0.35355338, %v106_v13 }
  0xd0   :  { %168 = vrot.lane.b32.xlu0 %v1161_v15, %s1042_s22  ;;  %v114_v23 = vpack.c.bf16 %v112_v22, %v112_v22 }
 0x13e   :  { %v119_v16 = vpop.permute.xlu0 %118 }
 0x13f   :  { %v125_v17 = vsel %vm120_vm2, %v119_v16, 0 }
 0x140   :  { %936 = vmatpush3.bf16.xpose.msra.mxu1 %v125_v17 }
 0x141   :  { %947 = vmatprep.subr.bf16.mxu1 %v1040_v0 }
 0x142   :  { %v169_v19 = vpop.permute.xlu0 %168 }
 0x143   :  { %v174_v20 = vsel %vm120_vm2, %v169_v19, 0 }
 0x144   :  { %942 = vmatpush3.bf16.xpose.msra.mxu0 %v174_v20 }
 0x145   :  { %953 = vmatprep.subr.bf16.mxu0 %v1040_v0 }
 0x147   :  { %938 = vmatmul.mubr.msk.bf16.vlgmr.msra.gmra.mxu1 %vm120_vm2, %v113_v21 }
 0x148   :  { %949 = vmatprep.mubr.msk.bf16.mxu1 %vm1041_vm0, %v1040_v0 }
 0x14b   :  { %944 = vmatmul.mubr.msk.bf16.vlgmr.msra.gmra.mxu0 %vm120_vm2, %v114_v23 }
 0x14c   :  { %955 = vmatprep.mubr.msk.bf16.mxu0 %vm1041_vm0, %v1040_v0 }
 0x207   :  { %v161_v24 = vpop.f32.mrf.mxu1 }
 0x208   :  { %v216_v25 = vsel %vm120_vm2, %v161_v24, -inf }
 0x209   :  { %217 = vmax.xlane.f32.xlu1 %v216_v25  ;;  %v939_v26 = vpop.f32.mrf.mxu1 }
 0x20b   :  { %v164_v27 = vpop.f32.mrf.mxu1  ;;  %v210_v28 = vpop.f32.mrf.mxu0 }
 0x20c   :  { %v219_v29 = vsel %vm120_vm2, %v210_v28, -inf }
 0x20d   :  { %v940_v30 = vpop.f32.mrf.mxu1  ;;  %220 = vmax.xlane.f32.xlu1 %v219_v29  ;;  %v945_v31 = vpop.f32.mrf.mxu0 }
 0x20f   :  { %v213_v32 = vpop.f32.mrf.mxu0 }
 0x211   :  { %v946_v33 = vpop.f32.mrf.mxu0 }
 0x21e   :  { %240 = vrot.lane.b32.xlu1 %v1158_v11, %s1043_s2 }
 0x222   :  { %289 = vrot.lane.b32.xlu1 %v1161_v15, %s1043_s2 }
 0x226   :  { %342 = vrot.lane.b32.xlu1 %v1158_v11, %s1044_s23 }
 0x292   :  { %v218_v34 = vpop.xlane.xlu1 %217 }
 0x293   :  { %v222_v35 = vsub.f32 %v161_v24, %v218_v34 }
 0x295   :  { %v224_v36 = vmul.f32 1.442695, %v222_v35 }
 0x296   :  { %v221_v37 = vpop.xlane.xlu1 %220 }
 0x297   :  { %1016 = vpow2.f32 %v224_v36  ;;  %v223_v38 = vsub.f32 %v210_v28, %v221_v37 }
 0x299   :  { %v226_v39 = vmul.f32 1.442695, %v223_v38  ;;  %v109_v38 = vld [vmem:[%s1304_s3] sm:$0xff] }
 0x29a   :  { %v241_v40 = vpop.permute.xlu1 %240 }
 0x29b   :  { %1018 = vpow2.f32 %v226_v39  ;;  %v247_v41 = vsel %vm245_vm3, %v241_v40, 0 }
 0x29c   :  { %948 = vmatpush3.bf16.msra.mxu1 %v247_v41  ;;  %v338_v41 = vpack.c.bf16 %v109_v38, %v109_v38 }
 0x29d   :  { %959 = vmatprep.subr.bf16.mxu1 %v1040_v0 }
 0x29e   :  { %v290_v42 = vpop.permute.xlu1 %289 }
 0x29f   :  { %v295_v43 = vsel %vm245_vm3, %v290_v42, 0 }
 0x2a0   :  { %954 = vmatpush3.bf16.msra.mxu0 %v295_v43 }
 0x2a1   :  { %965 = vmatprep.subr.bf16.mxu0 %v1040_v0 }
 0x2a2   :  { %v343_v48 = vpop.permute.xlu1 %342 }
 0x2a3   :  { %v348_v55 = vsel %vm120_vm2, %v343_v48, 0 }
 0x2a4   :  { %v1017_v44 = vpop.eup %1016 }
 0x2a5   :  { %v228_v45 = vsel %vm120_vm2, %v1017_v44, 0.0 }
 0x2a6   :  { %229 = vadd.xlane.f32.xlu0 %v228_v45  ;;  %v110_v45 = vld [vmem:[%s1304_s3 + $0x8] sm:$0xff] }
 0x2a8   :  { %v1019_v46 = vpop.eup %1018 }
 0x2a9   :  { %v231_v47 = vsel %vm120_vm2, %v1019_v46, 0.0 }
 0x2aa   :  { %232 = vadd.xlane.f32.xlu1 %v231_v47 }
 0x2bb   :  { %393 = vrot.lane.b32.xlu1 %v1161_v15, %s1044_s23 }
 0x2bc   :  { %340 = vrot.lane.b32.xlu0 %v113_v21, %s1045_s24 }
 0x2bf   :  { %391 = vrot.lane.b32.xlu1 %v114_v23, %s1045_s24 }
 0x32f   :  { %v230_v49 = vpop.xlane.xlu0 %229 }
 0x330   :  { %1020 = vrcp.f32 %v230_v49 }
 0x333   :  { %v233_v50 = vpop.xlane.xlu1 %232  ;;  %v341_v60 = vpop.permute.xlu0 %340 }
 0x334   :  { %1022 = vrcp.f32 %v233_v50 }
 0x337   :  { %v394_v57 = vpop.permute.xlu1 %393 }
 0x338   :  { %v399_v59 = vsel %vm120_vm2, %v394_v57, 0 }
 0x33b   :  { %v392_v61 = vpop.permute.xlu1 %391 }
 0x33d   :  { %v1021_v51 = vpop.eup %1020 }
 0x33e   :  { %v236_v52 = vmul.f32 %v1021_v51, %v1017_v44  ;;  %v614_v44 = vsel %vm245_vm3, %v338_v41, 0 }
 0x340   :  { %v238_v53 = vpack.c.bf16 %v236_v52, %v236_v52 }
 0x341   :  { %v1023_v54 = vpop.eup %1022 }
 0x342   :  { %950 = vmatmul.mubr.msk.bf16.vlgmr.msra.gmra.mxu1 %vm120_vm2, %v238_v53  ;;  %v237_v56 = vmul.f32 %v1023_v54, %v1019_v46  ;;  %v562_v46 = vpack.c.bf16 %v110_v45, %v110_v45  ;;  %v771_v45 = vld [vmem:[%s1309_s9 + $0x8] sm:$0xff] }
 0x343   :  { %960 = vmatpush3.bf16.xpose.msra.mxu1 %v348_v55  ;;  %961 = vmatprep.mubr.msk.bf16.mxu1 %vm1041_vm0, %v1040_v0 }
 0x344   :  { %v239_v58 = vpack.c.bf16 %v237_v56, %v237_v56  ;;  %971 = vmatprep.subr.bf16.mxu1 %v1040_v0  ;;  %v567_v47 = vsel %vm245_vm3, %v562_v46, 0 }
 0x346   :  { %956 = vmatmul.mubr.msk.bf16.vlgmr.msra.gmra.mxu0 %vm120_vm2, %v239_v58 }
 0x347   :  { %966 = vmatpush3.bf16.xpose.msra.mxu0 %v399_v59  ;;  %967 = vmatprep.mubr.msk.bf16.mxu0 %vm1041_vm0, %v1040_v0 }
 0x348   :  { %977 = vmatprep.subr.bf16.mxu0 %v1040_v0 }
 0x34a   :  { %962 = vmatmul.mubr.msk.bf16.vlgmr.msra.gmra.mxu1 %vm120_vm2, %v341_v60 }
 0x34b   :  { %973 = vmatprep.mubr.msk.bf16.mxu1 %vm1041_vm0, %v1040_v0 }
 0x34e   :  { %968 = vmatmul.mubr.msk.bf16.vlgmr.msra.gmra.mxu0 %vm120_vm2, %v392_v61 }
 0x34f   :  { %979 = vmatprep.mubr.msk.bf16.mxu0 %vm1041_vm0, %v1040_v0 }
 0x402   :  { %v1202_v62 = vpop.f32.mrf.mxu1 }
 0x404   :  { %v951_v63 = vpop.f32.mrf.mxu1 }
 0x406   :  { %v286_v1 = vpop.f32.mrf.mxu1  ;;  %v1204_v2 = vpop.f32.mrf.mxu0 }
 0x407   :  { %v337_v4 = vpack.c.bf16 %v1204_v2, %v1202_v62  ;;  %v893_v62 = vld [vmem:[%s1305_s4] ss:$0 sm:$0xff] }
 0x408   :  { %v952_v6 = vpop.f32.mrf.mxu1  ;;  %v957_v7 = vpop.f32.mrf.mxu0 }
 0x40a   :  { %v334_v8 = vpop.f32.mrf.mxu0  ;;  %v384_v9 = vpop.f32.mrf.mxu1 }
 0x40b   :  { %v441_v10 = vsel %vm120_vm2, %v384_v9, -inf }
 0x40c   :  { %442 = vmax.xlane.f32.xlu1 %v441_v10  ;;  %v958_v12 = vpop.f32.mrf.mxu0  ;;  %v963_v13 = vpop.f32.mrf.mxu1 }
 0x40e   :  { %v387_v14 = vpop.f32.mrf.mxu1  ;;  %v435_v16 = vpop.f32.mrf.mxu0 }
 0x40f   :  { %v444_v17 = vsel %vm120_vm2, %v435_v16, -inf }
 0x410   :  { %v964_v18 = vpop.f32.mrf.mxu1  ;;  %445 = vmax.xlane.f32.xlu0 %v444_v17  ;;  %v969_v19 = vpop.f32.mrf.mxu0 }
 0x412   :  { %v438_v20 = vpop.f32.mrf.mxu0 }
 0x414   :  { %v970_v21 = vpop.f32.mrf.mxu0 }
 0x426   :  { %513 = vrot.lane.b32.xlu0 %v1161_v15, %s1046_s25 }
 0x495   :  { %v443_v22 = vpop.xlane.xlu1 %442 }
 0x496   :  { %v447_v23 = vsub.f32 %v384_v9, %v443_v22 }
 0x498   :  { %v449_v24 = vmul.f32 1.442695, %v447_v23 }
 0x499   :  { %v446_v25 = vpop.xlane.xlu0 %445 }
 0x49a   :  { %1024 = vpow2.f32 %v449_v24  ;;  %v448_v26 = vsub.f32 %v435_v16, %v446_v25  ;;  %v714_v24 = vld [vmem:[%s1306_s7 + $0x8] sm:$0xff] }
 0x49c   :  { %v451_v27 = vmul.f32 1.442695, %v448_v26 }
 0x49d   :  { %v514_v28 = vpop.permute.xlu0 %513 }
 0x49e   :  { %1026 = vpow2.f32 %v451_v27  ;;  %v519_v29 = vsel %vm245_vm3, %v514_v28, 0 }
 0x49f   :  { %978 = vmatpush3.bf16.msra.mxu0 %v519_v29 }
 0x4a0   :  { %989 = vmatprep.subr.bf16.mxu0 %v1040_v0 }
 0x4a7   :  { %v1025_v30 = vpop.eup %1024 }
 0x4a8   :  { %v453_v31 = vsel %vm120_vm2, %v1025_v30, 0.0 }
 0x4a9   :  { %454 = vadd.xlane.f32.xlu1 %v453_v31 }
 0x4ab   :  { %v1027_v32 = vpop.eup %1026 }
 0x4ac   :  { %v456_v15 = vsel %vm120_vm2, %v1027_v32, 0.0 }
 0x4ad   :  { %457 = vadd.xlane.f32.xlu1 %v456_v15 }
 0x4be   :  { %465 = vrot.lane.b32.xlu1 %v1158_v11, %s1046_s25 }
 0x532   :  { %v455_v33 = vpop.xlane.xlu1 %454 }
 0x533   :  { %1028 = vrcp.f32 %v455_v33  ;;  %v894_v33 = vld [vmem:[%s1307_s5] ss:$0 sm:$0xff] }
 0x536   :  { %v458_v34 = vpop.xlane.xlu1 %457 }
 0x537   :  { %1030 = vrcp.f32 %v458_v34 }
 0x53a   :  { %v466_v35 = vpop.permute.xlu1 %465 }
 0x53b   :  { %v471_v36 = vsel %vm245_vm3, %v466_v35, 0 }
 0x53c   :  { %972 = vmatpush3.bf16.msra.mxu1 %v471_v36 }
 0x53d   :  { %983 = vmatprep.subr.bf16.mxu1 %v1040_v0 }
 0x540   :  { %v1029_v37 = vpop.eup %1028 }
 0x541   :  { %v461_v39 = vmul.f32 %v1029_v37, %v1025_v30  ;;  %v895_v37 = vld [vmem:[%s1308_s6] ss:$0 sm:$0xff] }
 0x543   :  { %v463_v40 = vpack.c.bf16 %v461_v39, %v461_v39 }
 0x544   :  { %v1031_v42 = vpop.eup %1030 }
 0x545   :  { %974 = vmatmul.mubr.msk.bf16.vlgmr.msra.gmra.mxu1 %vm120_vm2, %v463_v40  ;;  %v462_v11 = vmul.f32 %v1031_v42, %v1027_v32  ;;  %v772_v42 = vld [vmem:[%s1309_s9 + $0x10] sm:$0xff] }
 0x546   :  { %985 = vmatprep.mubr.msk.bf16.mxu1 %vm1041_vm0, %v1040_v0  ;;  %984 = vmatpush3.bf16.msra.mxu1 %v567_v47  ;;  %v896_v47 = vld [vmem:[%s1310_s8] ss:$0 sm:$0xff] }
 0x547   :  { %v464_v43 = vpack.c.bf16 %v462_v11, %v462_v11  ;;  %995 = vmatprep.subr.bf16.mxu1 %v1040_v0  ;;  %v773_v11 = vld [vmem:[%s1309_s9 + $0x18] sm:$0xff] }
 0x549   :  { %980 = vmatmul.mubr.msk.bf16.vlgmr.msra.gmra.mxu0 %vm120_vm2, %v464_v43  ;;  %v776_v43 = vpack.c.bf16 %v773_v11, %v772_v42 }
 0x54a   :  { %990 = vmatpush3.bf16.msra.mxu0 %v614_v44  ;;  %991 = vmatprep.mubr.msk.bf16.mxu0 %vm1041_vm0, %v1040_v0  ;;  %v770_v44 = vld [vmem:[%s1309_s9] sm:$0xff] }
 0x54b   :  { %1001 = vmatprep.subr.bf16.mxu0 %v1040_v0  ;;  %v775_v46 = vpack.c.bf16 %v771_v45, %v770_v44 }
 0x551   :  { %992 = vmatmul.mubr.msk.bf16.vlgmr.msra.gmra.mxu0 %vm120_vm2, %v337_v4 }
 0x552   :  { %1005 = vmatprep.mubr.msk.bf16.mxu0 %vm1041_vm0, %v1040_v0  ;;  %1002 = vmatpush3.bf16.msra.mxu0 %v776_v43 }
 0x553   :  { %1003 = vmatprep.subr.bf16.mxu0 %v1040_v0 }
 0x556   :  { %1004 = vmatpush3.bf16.msra.mxu0 %v775_v46 }
 0x605   :  { %v507_v48 = vpop.f32.mrf.mxu1 }
 0x607   :  { %v975_v49 = vpop.f32.mrf.mxu1 }
 0x609   :  { %v510_v50 = vpop.f32.mrf.mxu1  ;;  %v555_v51 = vpop.f32.mrf.mxu0 }
 0x60a   :  { %v561_v52 = vpack.c.bf16 %v555_v51, %v507_v48 }
 0x60b   :  { %v976_v53 = vpop.f32.mrf.mxu1  ;;  %v981_v54 = vpop.f32.mrf.mxu0 }
 0x60c   :  { %986 = vmatmul.mubr.msk.bf16.vlgmr.msra.gmra.mxu1 %vm120_vm2, %v561_v52 }
 0x60d   :  { %v558_v55 = vpop.f32.mrf.mxu0  ;;  %997 = vmatprep.mubr.msk.bf16.mxu1 %vm1041_vm0, %v1040_v0 }
 0x60f   :  { %v982_v56 = vpop.f32.mrf.mxu0 }
 0x610   :  { %v898_v56 = vld [vmem:[%s1311_s10] ss:$0 sm:$0xff] }
 0x611   :  { %v650_v57 = vpop.f32.mrf.mxu0 }
 0x613   :  { %v993_v58 = vpop.f32.mrf.mxu0 }
 0x615   :  { %v653_v59 = vpop.f32.mrf.mxu0 }
 0x617   :  { %v994_v60 = vpop.f32.mrf.mxu0 }
 0x6cc   :  { %v603_v61 = vpop.f32.mrf.mxu1 }
 0x6cd   :  { %v651_v63 = vadd.f32 %v650_v57, %v603_v61 }
 0x6ce   :  { %v987_v1 = vpop.f32.mrf.mxu1 }
 0x6cf   :  { %v664_v2 = vadd.f32 %v893_v62, %v651_v63 }
 0x6d0   :  { %v606_v4 = vpop.f32.mrf.mxu1 }
 0x6d1   :  { %v654_v6 = vadd.f32 %v653_v59, %v606_v4  ;;  %v666_v7 = vadd.f32 %v664_v2, %v1139_v3 }
 0x6d2   :  { %v988_v8 = vpop.f32.mrf.mxu1 }
 0x6d3   :  { %v665_v9 = vadd.f32 %v893_v62, %v654_v6  ;;  %v670_v10 = vsel %vm64_vm1, %v666_v7, 0.0 }
 0x6d4   :  { %671 = vadd.xlane.f32.xlu1 %v670_v10 }
 0x6d5   :  { %v667_v12 = vadd.f32 %v665_v9, %v1144_v5  ;;  %v713_v5 = vld [vmem:[%s1306_s7] sm:$0xff] }
 0x6d6   :  { %v716_v25 = vpack.c.bf16 %v714_v24, %v713_v5  ;;  %v900_v5 = vld [vmem:[%s1312_s11] ss:$0 sm:$0xff] }
 0x6d7   :  { %v673_v13 = vsel %vm64_vm1, %v667_v12, 0.0 }
 0x6d8   :  { %674 = vadd.xlane.f32.xlu0 %v673_v13  ;;  %996 = vmatpush3.bf16.msra.mxu1 %v716_v25  ;;  %v901_v25 = vld [vmem:[%s1313_s12] ss:$0 sm:$0xff] }
 0x75d   :  { %v672_v14 = vpop.xlane.xlu1 %671 }
 0x75e   :  { %v677_v16 = vmul.f32 0.0625, %v672_v14 }
 0x760   :  { %v679_v17 = vsub.f32 %v666_v7, %v677_v16 }
 0x761   :  { %v675_v18 = vpop.xlane.xlu0 %674 }
 0x762   :  { %v678_v19 = vmul.f32 0.0625, %v675_v18  ;;  %v681_v20 = vmul.f32 %v679_v17, %v679_v17 }
 0x764   :  { %v680_v21 = vsub.f32 %v667_v12, %v678_v19  ;;  %v683_v22 = vsel %vm64_vm1, %v681_v20, 0.0 }
 0x765   :  { %684 = vadd.xlane.f32.xlu1 %v683_v22 }
 0x766   :  { %v682_v3 = vmul.f32 %v680_v21, %v680_v21 }
 0x768   :  { %v686_v23 = vsel %vm64_vm1, %v682_v3, 0.0 }
 0x769   :  { %687 = vadd.xlane.f32.xlu0 %v686_v23 }
 0x7ee   :  { %v685_v26 = vpop.xlane.xlu1 %684 }
 0x7ef   :  { %v689_v27 = vmul.f32 0.0625, %v685_v26 }
 0x7f1   :  { %v691_v28 = vadd.f32 1e-05, %v689_v27 }
 0x7f2   :  { %v688_v29 = vpop.xlane.xlu0 %687 }
 0x7f3   :  { %1032 = vrsqrt.f32 %v691_v28  ;;  %v690_v30 = vmul.f32 0.0625, %v688_v29 }
 0x7f5   :  { %v692_v31 = vadd.f32 1e-05, %v690_v30 }
 0x7f7   :  { %1034 = vrsqrt.f32 %v692_v31 }
 0x800   :  { %v1033_v32 = vpop.eup %1032 }
 0x801   :  { %v695_v15 = vmul.f32 %v1033_v32, %v679_v17 }
 0x803   :  { %v703_v36 = vmul.f32 %v894_v33, %v695_v15 }
 0x804   :  { %v1035_v34 = vpop.eup %1034 }
 0x805   :  { %v696_v35 = vmul.f32 %v1035_v34, %v680_v21  ;;  %v711_v39 = vadd.f32 %v895_v37, %v703_v36 }
 0x807   :  { %v704_v38 = vmul.f32 %v894_v33, %v696_v35 }
 0x809   :  { %v712_v40 = vadd.f32 %v895_v37, %v704_v38 }
 0x80b   :  { %v715_v41 = vpack.c.bf16 %v712_v40, %v711_v39 }
 0x80d   :  { %998 = vmatmul.mubr.msk.bf16.vlgmr.msra.gmra.mxu1 %vm64_vm1, %v715_v41 }
 0x8cd   :  { %v761_v48 = vpop.f32.mrf.mxu1 }
 0x8ce   :  { %v762_v50 = vadd.f32 %v896_v47, %v761_v48 }
 0x8cf   :  { %v999_v49 = vpop.f32.mrf.mxu1 }
 0x8d0   :  { %v768_v53 = vmax.f32 %v762_v50, 0.0 }
 0x8d1   :  { %v764_v51 = vpop.f32.mrf.mxu1 }
 0x8d2   :  { %v765_v52 = vadd.f32 %v896_v47, %v764_v51 }
 0x8d3   :  { %v1000_v0 = vpop.f32.mrf.mxu1 }
 0x8d4   :  { %v769_v54 = vmax.f32 %v765_v52, 0.0 }
 0x8d6   :  { %v774_v55 = vpack.c.bf16 %v769_v54, %v768_v53 }
 0x8d8   :  { %1006 = vmatmul.mubr.msk.bf16.vlgmr.msra.gmra.mxu0 %vm784_vm4, %v774_v55 }
 0x998   :  { %v822_v57 = vpop.f32.mrf.mxu0 }
 0x999   :  { %v823_v58 = vadd.f32 %v898_v56, %v822_v57 }
 0x99a   :  { %v1007_v59 = vpop.f32.mrf.mxu0 }
 0x99b   :  { %v829_v60 = vadd.f32 %v823_v58, %v711_v39 }
 0x99c   :  { %v825_v61 = vpop.f32.mrf.mxu0 }
 0x99d   :  { %v826_v62 = vadd.f32 %v898_v56, %v825_v61  ;;  %v833_v63 = vsel %vm64_vm1, %v829_v60, 0.0 }
 0x99e   :  { %834 = vadd.xlane.f32.xlu1 %v833_v63  ;;  %v1008_v1 = vpop.f32.mrf.mxu0 }
 0x99f   :  { %v830_v2 = vadd.f32 %v826_v62, %v712_v40 }
 0x9a1   :  { %v836_v4 = vsel %vm64_vm1, %v830_v2, 0.0 }
 0x9a2   :  { %837 = vadd.xlane.f32.xlu0 %v836_v4 }
 0xa27   :  { %v835_v6 = vpop.xlane.xlu1 %834 }
 0xa28   :  { %v839_v7 = vmul.f32 0.0625, %v835_v6 }
 0xa2a   :  { %v841_v8 = vsub.f32 %v829_v60, %v839_v7 }
 0xa2b   :  { %v838_v9 = vpop.xlane.xlu0 %837 }
 0xa2c   :  { %v840_v10 = vmul.f32 0.0625, %v838_v9  ;;  %v843_v12 = vmul.f32 %v841_v8, %v841_v8 }
 0xa2e   :  { %v842_v13 = vsub.f32 %v830_v2, %v840_v10  ;;  %v845_v14 = vsel %vm64_vm1, %v843_v12, 0.0 }
 0xa2f   :  { %846 = vadd.xlane.f32.xlu1 %v845_v14 }
 0xa30   :  { %v844_v16 = vmul.f32 %v842_v13, %v842_v13 }
 0xa32   :  { %v848_v17 = vsel %vm64_vm1, %v844_v16, 0.0 }
 0xa33   :  { %849 = vadd.xlane.f32.xlu0 %v848_v17 }
 0xab8   :  { %v847_v18 = vpop.xlane.xlu1 %846 }
 0xab9   :  { %v851_v19 = vmul.f32 0.0625, %v847_v18 }
 0xabb   :  { %v853_v20 = vadd.f32 1e-05, %v851_v19 }
 0xabc   :  { %v850_v21 = vpop.xlane.xlu0 %849 }
 0xabd   :  { %1036 = vrsqrt.f32 %v853_v20  ;;  %v852_v22 = vmul.f32 0.0625, %v850_v21 }
 0xabf   :  { %v854_v3 = vadd.f32 1e-05, %v852_v22 }
 0xac1   :  { %1038 = vrsqrt.f32 %v854_v3 }
 0xaca   :  { %v1037_v23 = vpop.eup %1036 }
 0xacb   :  { %v857_v24 = vmul.f32 %v1037_v23, %v841_v8 }
 0xacd   :  { %v865_v26 = vmul.f32 %v900_v5, %v857_v24 }
 0xace   :  { %v1039_v27 = vpop.eup %1038 }
 0xacf   :  { %v873_v28 = vadd.f32 %v901_v25, %v865_v26  ;;  %v858_v29 = vmul.f32 %v1039_v27, %v842_v13 }
 0xad1   :  { %875 = vst.msk [vmem:[%s1314_s15] sm:$0xff] %vm64_vm1, %v873_v28  ;;  %v866_v30 = vmul.f32 %v900_v5, %v858_v29 }
 0xad3   :  { %v874_v31 = vadd.f32 %v901_v25, %v866_v30 }
 0xad5   :  { %876 = vst.msk [vmem:[%s1314_s15 + $0x8] sm:$0xff] %vm64_vm1, %v874_v31 }

// kernel: vqvae_forward.8
= control target key start
LH: loop header
LB: loop body
LE: loop exit
PB: predicated region body
PF: predicated region fallthrough
CT: control target
= control target key end

     0   :  { %v1090_v0 = vmov 0.0   ;;  %vm1091_vm0 = vmmov 0   ;;  %vm64_vm1 = vcmask 130048   ;;  %s1092_s26 = smov 112   ;;  %vm120_vm2 = vcmask 64512   ;;  %s1094_s27 = smov 104   ;;  %s1359_s1 = inlined_call_operand.vmem [shape: f32[16,48], index: 1, kind: input, shape index: {}]   ;;  %s1360_s0 = inlined_call_operand.vmem [shape: f32[2,8,16], index: 0, kind: input, shape index: {}]   ;;  %s1361_s2 = inlined_call_operand.vmem [shape: f32[1,48], index: 2, kind: input, shape index: {}]   ;;  %s1362_s3 = inlined_call_operand.vmem [shape: f32[16,16], index: 3, kind: input, shape index: {}]   ;;  %s1363_s4 = inlined_call_operand.vmem [shape: f32[1,16], index: 4, kind: input, shape index: {}]   ;;  %s1364_s7 = inlined_call_operand.vmem [shape: f32[16,32], index: 7, kind: input, shape index: {}]   ;;  %s1365_s5 = inlined_call_operand.vmem [shape: f32[1,16], index: 5, kind: input, shape index: {}]   ;;  %s1366_s6 = inlined_call_operand.vmem [shape: f32[1,16], index: 6, kind: input, shape index: {}]   ;;  %s1367_s9 = inlined_call_operand.vmem [shape: f32[32,16], index: 9, kind: input, shape index: {}]   ;;  %s1368_s8 = inlined_call_operand.vmem [shape: f32[1,32], index: 8, kind: input, shape index: {}]   ;;  %s1369_s10 = inlined_call_operand.vmem [shape: f32[1,16], index: 10, kind: input, shape index: {}]   ;;  %s1370_s11 = inlined_call_operand.vmem [shape: f32[1,16], index: 11, kind: input, shape index: {}]   ;;  %s1371_s12 = inlined_call_operand.vmem [shape: f32[1,16], index: 12, kind: input, shape index: {}]   ;;  %s1372_s13 = inlined_call_operand.vmem [shape: f32[1,16], index: 13, kind: input, shape index: {}]   ;;  %s1373_s14 = inlined_call_operand.vmem [shape: f32[1,16], index: 14, kind: input, shape index: {}]   ;;  %s1374_s15 = inlined_call_operand.vmem [shape: f32[2,8,16], index: 15, kind: output, shape index: {}]  }
   0x1   :  { %975 = vmatprep.subr.bf16.mxu0 %v1090_v0  ;;  %v53_v1 = vld [vmem:[%s1359_s1] sm:$0xff]  ;;  %v54_v2 = vld [vmem:[%s1359_s1 + $0x8] sm:$0xff]  ;;  %977 = vmatprep.mubr.msk.bf16.mxu0 %vm1091_vm0, %v1090_v0  ;;  %vm245_vm3 = vcmask 1043456   ;;  %s1095_s28 = smov 120   ;;  %s1096_s29 = smov 88   ;;  %vm784_vm4 = vcmask 261120  }
   0x2   :  { %v1189_v3 = vld [vmem:[%s1360_s0] sm:$0xff]  ;;  %v56_v4 = vpack.c.bf16 %v54_v2, %v53_v1  ;;  %v1194_v5 = vld [vmem:[%s1360_s0 + $0x8] sm:$0xff]  ;;  %981 = vmatprep.subr.bf16.mxu1 %v1090_v0  ;;  %983 = vmatprep.mubr.msk.bf16.mxu1 %vm1091_vm0, %v1090_v0 }
   0x3   :  { %v55_v6 = vpack.c.bf16 %v1194_v5, %v1189_v3  ;;  %v925_v7 = vld [vmem:[%s1361_s2] ss:$0 sm:$0xff]  ;;  %s1093_s2 = smov 96  }
   0x4   :  { %976 = vmatpush3.bf16.msra.mxu0 %v56_v4 }
   0x5   :  { %987 = vmatprep.subr.bf16.mxu0 %v1090_v0 }
   0x7   :  { %978 = vmatmul.mubr.msk.bf16.vlgmr.msra.gmra.mxu0 %vm64_vm1, %v55_v6 }
   0x8   :  { %989 = vmatprep.mubr.msk.bf16.mxu0 %vm1091_vm0, %v1090_v0 }
  0xc7   :  { %v102_v8 = vpop.f32.mrf.mxu0 }
  0xc8   :  { %v103_v9 = vadd.f32 %v925_v7, %v102_v8 }
  0xc9   :  { %v979_v10 = vpop.f32.mrf.mxu0 }
  0xca   :  { %v1208_v11 = vpack.c.bf16 %v103_v9, %v103_v9  ;;  %v111_v18 = vmul.f32 0.35355338, %v103_v9 }
  0xcb   :  { %v105_v12 = vpop.f32.mrf.mxu0 }
  0xcc   :  { %v106_v13 = vadd.f32 %v925_v7, %v105_v12  ;;  %118 = vrot.lane.b32.xlu0 %v1208_v11, %s1092_s26  ;;  %v113_v21 = vpack.c.bf16 %v111_v18, %v111_v18 }
  0xcd   :  { %v980_v14 = vpop.f32.mrf.mxu0 }
  0xce   :  { %v1211_v15 = vpack.c.bf16 %v106_v13, %v106_v13  ;;  %v112_v22 = vmul.f32 0.35355338, %v106_v13 }
  0xd0   :  { %168 = vrot.lane.b32.xlu0 %v1211_v15, %s1092_s26  ;;  %v114_v23 = vpack.c.bf16 %v112_v22, %v112_v22 }
 0x13e   :  { %v119_v16 = vpop.permute.xlu0 %118 }
 0x13f   :  { %v125_v17 = vsel %vm120_vm2, %v119_v16, 0 }
 0x140   :  { %982 = vmatpush3.bf16.xpose.msra.mxu1 %v125_v17 }
 0x141   :  { %993 = vmatprep.subr.bf16.mxu1 %v1090_v0 }
 0x142   :  { %v169_v19 = vpop.permute.xlu0 %168 }
 0x143   :  { %v174_v20 = vsel %vm120_vm2, %v169_v19, 0 }
 0x144   :  { %988 = vmatpush3.bf16.xpose.msra.mxu0 %v174_v20 }
 0x145   :  { %999 = vmatprep.subr.bf16.mxu0 %v1090_v0 }
 0x147   :  { %984 = vmatmul.mubr.msk.bf16.vlgmr.msra.gmra.mxu1 %vm120_vm2, %v113_v21 }
 0x148   :  { %995 = vmatprep.mubr.msk.bf16.mxu1 %vm1091_vm0, %v1090_v0 }
 0x14b   :  { %990 = vmatmul.mubr.msk.bf16.vlgmr.msra.gmra.mxu0 %vm120_vm2, %v114_v23 }
 0x14c   :  { %1001 = vmatprep.mubr.msk.bf16.mxu0 %vm1091_vm0, %v1090_v0 }
 0x207   :  { %v161_v24 = vpop.f32.mrf.mxu1 }
 0x208   :  { %v216_v25 = vsel %vm120_vm2, %v161_v24, -inf }
 0x209   :  { %217 = vmax.xlane.f32.xlu1 %v216_v25  ;;  %v985_v26 = vpop.f32.mrf.mxu1 }
 0x20b   :  { %v164_v27 = vpop.f32.mrf.mxu1  ;;  %v210_v28 = vpop.f32.mrf.mxu0 }
 0x20c   :  { %v219_v29 = vsel %vm120_vm2, %v210_v28, -inf }
 0x20d   :  { %v986_v30 = vpop.f32.mrf.mxu1  ;;  %220 = vmax.xlane.f32.xlu1 %v219_v29  ;;  %v991_v31 = vpop.f32.mrf.mxu0 }
 0x20f   :  { %v213_v32 = vpop.f32.mrf.mxu0 }
 0x211   :  { %v992_v33 = vpop.f32.mrf.mxu0 }
 0x21e   :  { %240 = vrot.lane.b32.xlu1 %v1208_v11, %s1093_s2 }
 0x222   :  { %289 = vrot.lane.b32.xlu1 %v1211_v15, %s1093_s2 }
 0x226   :  { %342 = vrot.lane.b32.xlu1 %v1208_v11, %s1094_s27 }
 0x292   :  { %v218_v34 = vpop.xlane.xlu1 %217 }
 0x293   :  { %v222_v35 = vsub.f32 %v161_v24, %v218_v34 }
 0x295   :  { %v224_v36 = vmul.f32 1.442695, %v222_v35 }
 0x296   :  { %v221_v37 = vpop.xlane.xlu1 %220 }
 0x297   :  { %1062 = vpow2.f32 %v224_v36  ;;  %v223_v38 = vsub.f32 %v210_v28, %v221_v37 }
 0x299   :  { %v226_v39 = vmul.f32 1.442695, %v223_v38  ;;  %v109_v38 = vld [vmem:[%s1362_s3] sm:$0xff] }
 0x29a   :  { %v241_v40 = vpop.permute.xlu1 %240 }
 0x29b   :  { %1064 = vpow2.f32 %v226_v39  ;;  %v247_v41 = vsel %vm245_vm3, %v241_v40, 0 }
 0x29c   :  { %994 = vmatpush3.bf16.msra.mxu1 %v247_v41  ;;  %v338_v41 = vpack.c.bf16 %v109_v38, %v109_v38 }
 0x29d   :  { %1005 = vmatprep.subr.bf16.mxu1 %v1090_v0 }
 0x29e   :  { %v290_v42 = vpop.permute.xlu1 %289 }
 0x29f   :  { %v295_v43 = vsel %vm245_vm3, %v290_v42, 0 }
 0x2a0   :  { %1000 = vmatpush3.bf16.msra.mxu0 %v295_v43 }
 0x2a1   :  { %1011 = vmatprep.subr.bf16.mxu0 %v1090_v0 }
 0x2a2   :  { %v343_v48 = vpop.permute.xlu1 %342 }
 0x2a3   :  { %v348_v55 = vsel %vm120_vm2, %v343_v48, 0 }
 0x2a4   :  { %v1063_v44 = vpop.eup %1062 }
 0x2a5   :  { %v228_v45 = vsel %vm120_vm2, %v1063_v44, 0.0 }
 0x2a6   :  { %229 = vadd.xlane.f32.xlu0 %v228_v45  ;;  %v110_v45 = vld [vmem:[%s1362_s3 + $0x8] sm:$0xff] }
 0x2a8   :  { %v1065_v46 = vpop.eup %1064 }
 0x2a9   :  { %v231_v47 = vsel %vm120_vm2, %v1065_v46, 0.0 }
 0x2aa   :  { %232 = vadd.xlane.f32.xlu1 %v231_v47 }
 0x2bb   :  { %393 = vrot.lane.b32.xlu1 %v1211_v15, %s1094_s27 }
 0x2bc   :  { %340 = vrot.lane.b32.xlu0 %v113_v21, %s1095_s28 }
 0x2bf   :  { %391 = vrot.lane.b32.xlu1 %v114_v23, %s1095_s28 }
 0x32f   :  { %v230_v49 = vpop.xlane.xlu0 %229 }
 0x330   :  { %1066 = vrcp.f32 %v230_v49 }
 0x333   :  { %v233_v50 = vpop.xlane.xlu1 %232  ;;  %v341_v60 = vpop.permute.xlu0 %340 }
 0x334   :  { %1068 = vrcp.f32 %v233_v50 }
 0x337   :  { %v394_v57 = vpop.permute.xlu1 %393 }
 0x338   :  { %v399_v59 = vsel %vm120_vm2, %v394_v57, 0 }
 0x33b   :  { %v392_v61 = vpop.permute.xlu1 %391 }
 0x33d   :  { %v1067_v51 = vpop.eup %1066 }
 0x33e   :  { %v236_v52 = vmul.f32 %v1067_v51, %v1063_v44  ;;  %v614_v44 = vsel %vm245_vm3, %v338_v41, 0 }
 0x340   :  { %v238_v53 = vpack.c.bf16 %v236_v52, %v236_v52 }
 0x341   :  { %v1069_v54 = vpop.eup %1068 }
 0x342   :  { %996 = vmatmul.mubr.msk.bf16.vlgmr.msra.gmra.mxu1 %vm120_vm2, %v238_v53  ;;  %v237_v56 = vmul.f32 %v1069_v54, %v1065_v46  ;;  %v562_v46 = vpack.c.bf16 %v110_v45, %v110_v45  ;;  %v771_v45 = vld [vmem:[%s1367_s9 + $0x8] sm:$0xff] }
 0x343   :  { %1006 = vmatpush3.bf16.xpose.msra.mxu1 %v348_v55  ;;  %1007 = vmatprep.mubr.msk.bf16.mxu1 %vm1091_vm0, %v1090_v0 }
 0x344   :  { %v239_v58 = vpack.c.bf16 %v237_v56, %v237_v56  ;;  %1017 = vmatprep.subr.bf16.mxu1 %v1090_v0  ;;  %v567_v47 = vsel %vm245_vm3, %v562_v46, 0 }
 0x346   :  { %1002 = vmatmul.mubr.msk.bf16.vlgmr.msra.gmra.mxu0 %vm120_vm2, %v239_v58 }
 0x347   :  { %1012 = vmatpush3.bf16.xpose.msra.mxu0 %v399_v59  ;;  %1013 = vmatprep.mubr.msk.bf16.mxu0 %vm1091_vm0, %v1090_v0 }
 0x348   :  { %1023 = vmatprep.subr.bf16.mxu0 %v1090_v0 }
 0x34a   :  { %1008 = vmatmul.mubr.msk.bf16.vlgmr.msra.gmra.mxu1 %vm120_vm2, %v341_v60 }
 0x34b   :  { %1019 = vmatprep.mubr.msk.bf16.mxu1 %vm1091_vm0, %v1090_v0 }
 0x34e   :  { %1014 = vmatmul.mubr.msk.bf16.vlgmr.msra.gmra.mxu0 %vm120_vm2, %v392_v61 }
 0x34f   :  { %1025 = vmatprep.mubr.msk.bf16.mxu0 %vm1091_vm0, %v1090_v0 }
 0x402   :  { %v1252_v62 = vpop.f32.mrf.mxu1 }
 0x404   :  { %v997_v63 = vpop.f32.mrf.mxu1 }
 0x406   :  { %v286_v1 = vpop.f32.mrf.mxu1  ;;  %v1254_v2 = vpop.f32.mrf.mxu0 }
 0x407   :  { %v337_v4 = vpack.c.bf16 %v1254_v2, %v1252_v62  ;;  %v937_v62 = vld [vmem:[%s1363_s4] ss:$0 sm:$0xff] }
 0x408   :  { %v998_v6 = vpop.f32.mrf.mxu1  ;;  %v1003_v7 = vpop.f32.mrf.mxu0 }
 0x40a   :  { %v334_v8 = vpop.f32.mrf.mxu0  ;;  %v384_v9 = vpop.f32.mrf.mxu1 }
 0x40b   :  { %v441_v10 = vsel %vm120_vm2, %v384_v9, -inf }
 0x40c   :  { %442 = vmax.xlane.f32.xlu1 %v441_v10  ;;  %v1004_v12 = vpop.f32.mrf.mxu0  ;;  %v1009_v13 = vpop.f32.mrf.mxu1 }
 0x40e   :  { %v387_v14 = vpop.f32.mrf.mxu1  ;;  %v435_v16 = vpop.f32.mrf.mxu0 }
 0x40f   :  { %v444_v17 = vsel %vm120_vm2, %v435_v16, -inf }
 0x410   :  { %v1010_v18 = vpop.f32.mrf.mxu1  ;;  %445 = vmax.xlane.f32.xlu0 %v444_v17  ;;  %v1015_v19 = vpop.f32.mrf.mxu0 }
 0x412   :  { %v438_v20 = vpop.f32.mrf.mxu0 }
 0x414   :  { %v1016_v21 = vpop.f32.mrf.mxu0 }
 0x426   :  { %513 = vrot.lane.b32.xlu0 %v1211_v15, %s1096_s29 }
 0x495   :  { %v443_v22 = vpop.xlane.xlu1 %442 }
 0x496   :  { %v447_v23 = vsub.f32 %v384_v9, %v443_v22 }
 0x498   :  { %v449_v24 = vmul.f32 1.442695, %v447_v23 }
 0x499   :  { %v446_v25 = vpop.xlane.xlu0 %445 }
 0x49a   :  { %1070 = vpow2.f32 %v449_v24  ;;  %v448_v26 = vsub.f32 %v435_v16, %v446_v25  ;;  %v714_v24 = vld [vmem:[%s1364_s7 + $0x8] sm:$0xff] }
 0x49c   :  { %v451_v27 = vmul.f32 1.442695, %v448_v26 }
 0x49d   :  { %v514_v28 = vpop.permute.xlu0 %513 }
 0x49e   :  { %1072 = vpow2.f32 %v451_v27  ;;  %v519_v29 = vsel %vm245_vm3, %v514_v28, 0 }
 0x49f   :  { %1024 = vmatpush3.bf16.msra.mxu0 %v519_v29 }
 0x4a0   :  { %1035 = vmatprep.subr.bf16.mxu0 %v1090_v0 }
 0x4a7   :  { %v1071_v30 = vpop.eup %1070 }
 0x4a8   :  { %v453_v31 = vsel %vm120_vm2, %v1071_v30, 0.0 }
 0x4a9   :  { %454 = vadd.xlane.f32.xlu1 %v453_v31 }
 0x4ab   :  { %v1073_v32 = vpop.eup %1072 }
 0x4ac   :  { %v456_v15 = vsel %vm120_vm2, %v1073_v32, 0.0 }
 0x4ad   :  { %457 = vadd.xlane.f32.xlu1 %v456_v15 }
 0x4be   :  { %465 = vrot.lane.b32.xlu1 %v1208_v11, %s1096_s29 }
 0x532   :  { %v455_v33 = vpop.xlane.xlu1 %454 }
 0x533   :  { %1074 = vrcp.f32 %v455_v33  ;;  %v938_v33 = vld [vmem:[%s1365_s5] ss:$0 sm:$0xff] }
 0x536   :  { %v458_v34 = vpop.xlane.xlu1 %457 }
 0x537   :  { %1076 = vrcp.f32 %v458_v34 }
 0x53a   :  { %v466_v35 = vpop.permute.xlu1 %465 }
 0x53b   :  { %v471_v36 = vsel %vm245_vm3, %v466_v35, 0 }
 0x53c   :  { %1018 = vmatpush3.bf16.msra.mxu1 %v471_v36 }
 0x53d   :  { %1029 = vmatprep.subr.bf16.mxu1 %v1090_v0 }
 0x540   :  { %v1075_v37 = vpop.eup %1074 }
 0x541   :  { %v461_v39 = vmul.f32 %v1075_v37, %v1071_v30  ;;  %v939_v37 = vld [vmem:[%s1366_s6] ss:$0 sm:$0xff] }
 0x543   :  { %v463_v40 = vpack.c.bf16 %v461_v39, %v461_v39 }
 0x544   :  { %v1077_v42 = vpop.eup %1076 }
 0x545   :  { %1020 = vmatmul.mubr.msk.bf16.vlgmr.msra.gmra.mxu1 %vm120_vm2, %v463_v40  ;;  %v462_v11 = vmul.f32 %v1077_v42, %v1073_v32  ;;  %v772_v42 = vld [vmem:[%s1367_s9 + $0x10] sm:$0xff] }
 0x546   :  { %1031 = vmatprep.mubr.msk.bf16.mxu1 %vm1091_vm0, %v1090_v0  ;;  %1030 = vmatpush3.bf16.msra.mxu1 %v567_v47  ;;  %v940_v47 = vld [vmem:[%s1368_s8] ss:$0 sm:$0xff] }
 0x547   :  { %v464_v43 = vpack.c.bf16 %v462_v11, %v462_v11  ;;  %1041 = vmatprep.subr.bf16.mxu1 %v1090_v0  ;;  %v773_v11 = vld [vmem:[%s1367_s9 + $0x18] sm:$0xff] }
 0x549   :  { %1026 = vmatmul.mubr.msk.bf16.vlgmr.msra.gmra.mxu0 %vm120_vm2, %v464_v43  ;;  %v776_v43 = vpack.c.bf16 %v773_v11, %v772_v42 }
 0x54a   :  { %1036 = vmatpush3.bf16.msra.mxu0 %v614_v44  ;;  %1037 = vmatprep.mubr.msk.bf16.mxu0 %vm1091_vm0, %v1090_v0  ;;  %v770_v44 = vld [vmem:[%s1367_s9] sm:$0xff] }
 0x54b   :  { %1047 = vmatprep.subr.bf16.mxu0 %v1090_v0  ;;  %v775_v46 = vpack.c.bf16 %v771_v45, %v770_v44 }
 0x551   :  { %1038 = vmatmul.mubr.msk.bf16.vlgmr.msra.gmra.mxu0 %vm120_vm2, %v337_v4 }
 0x552   :  { %1051 = vmatprep.mubr.msk.bf16.mxu0 %vm1091_vm0, %v1090_v0  ;;  %1048 = vmatpush3.bf16.msra.mxu0 %v776_v43 }
 0x553   :  { %1049 = vmatprep.subr.bf16.mxu0 %v1090_v0 }
 0x556   :  { %1050 = vmatpush3.bf16.msra.mxu0 %v775_v46 }
 0x605   :  { %v507_v48 = vpop.f32.mrf.mxu1 }
 0x607   :  { %v1021_v49 = vpop.f32.mrf.mxu1 }
 0x609   :  { %v510_v50 = vpop.f32.mrf.mxu1  ;;  %v555_v51 = vpop.f32.mrf.mxu0 }
 0x60a   :  { %v561_v52 = vpack.c.bf16 %v555_v51, %v507_v48 }
 0x60b   :  { %v1022_v53 = vpop.f32.mrf.mxu1  ;;  %v1027_v54 = vpop.f32.mrf.mxu0 }
 0x60c   :  { %1032 = vmatmul.mubr.msk.bf16.vlgmr.msra.gmra.mxu1 %vm120_vm2, %v561_v52 }
 0x60d   :  { %v558_v55 = vpop.f32.mrf.mxu0  ;;  %1043 = vmatprep.mubr.msk.bf16.mxu1 %vm1091_vm0, %v1090_v0 }
 0x60f   :  { %v1028_v56 = vpop.f32.mrf.mxu0 }
 0x610   :  { %v942_v56 = vld [vmem:[%s1369_s10] ss:$0 sm:$0xff] }
 0x611   :  { %v650_v57 = vpop.f32.mrf.mxu0 }
 0x613   :  { %v1039_v58 = vpop.f32.mrf.mxu0 }
 0x615   :  { %v653_v59 = vpop.f32.mrf.mxu0 }
 0x617   :  { %v1040_v60 = vpop.f32.mrf.mxu0 }
 0x6cc   :  { %v603_v61 = vpop.f32.mrf.mxu1 }
 0x6cd   :  { %v651_v63 = vadd.f32 %v650_v57, %v603_v61 }
 0x6ce   :  { %v1033_v1 = vpop.f32.mrf.mxu1 }
 0x6cf   :  { %v664_v2 = vadd.f32 %v937_v62, %v651_v63 }
 0x6d0   :  { %v606_v4 = vpop.f32.mrf.mxu1 }
 0x6d1   :  { %v654_v6 = vadd.f32 %v653_v59, %v606_v4  ;;  %v666_v7 = vadd.f32 %v664_v2, %v1189_v3 }
 0x6d2   :  { %v1034_v8 = vpop.f32.mrf.mxu1 }
 0x6d3   :  { %v665_v9 = vadd.f32 %v937_v62, %v654_v6  ;;  %v670_v10 = vsel %vm64_vm1, %v666_v7, 0.0 }
 0x6d4   :  { %671 = vadd.xlane.f32.xlu1 %v670_v10 }
 0x6d5   :  { %v667_v12 = vadd.f32 %v665_v9, %v1194_v5  ;;  %v713_v5 = vld [vmem:[%s1364_s7] sm:$0xff] }
 0x6d6   :  { %v716_v25 = vpack.c.bf16 %v714_v24, %v713_v5  ;;  %v944_v5 = vld [vmem:[%s1370_s11] ss:$0 sm:$0xff] }
 0x6d7   :  { %v673_v13 = vsel %vm64_vm1, %v667_v12, 0.0 }
 0x6d8   :  { %674 = vadd.xlane.f32.xlu0 %v673_v13  ;;  %1042 = vmatpush3.bf16.msra.mxu1 %v716_v25  ;;  %v945_v25 = vld [vmem:[%s1371_s12] ss:$0 sm:$0xff] }
 0x75d   :  { %v672_v14 = vpop.xlane.xlu1 %671 }
 0x75e   :  { %v677_v16 = vmul.f32 0.0625, %v672_v14 }
 0x760   :  { %v679_v17 = vsub.f32 %v666_v7, %v677_v16 }
 0x761   :  { %v675_v18 = vpop.xlane.xlu0 %674 }
 0x762   :  { %v678_v19 = vmul.f32 0.0625, %v675_v18  ;;  %v681_v20 = vmul.f32 %v679_v17, %v679_v17 }
 0x764   :  { %v680_v21 = vsub.f32 %v667_v12, %v678_v19  ;;  %v683_v22 = vsel %vm64_vm1, %v681_v20, 0.0 }
 0x765   :  { %684 = vadd.xlane.f32.xlu1 %v683_v22 }
 0x766   :  { %v682_v3 = vmul.f32 %v680_v21, %v680_v21 }
 0x768   :  { %v686_v23 = vsel %vm64_vm1, %v682_v3, 0.0 }
 0x769   :  { %687 = vadd.xlane.f32.xlu0 %v686_v23 }
 0x7ee   :  { %v685_v26 = vpop.xlane.xlu1 %684 }
 0x7ef   :  { %v689_v27 = vmul.f32 0.0625, %v685_v26 }
 0x7f1   :  { %v691_v28 = vadd.f32 1e-05, %v689_v27 }
 0x7f2   :  { %v688_v29 = vpop.xlane.xlu0 %687 }
 0x7f3   :  { %1078 = vrsqrt.f32 %v691_v28  ;;  %v690_v30 = vmul.f32 0.0625, %v688_v29 }
 0x7f5   :  { %v692_v31 = vadd.f32 1e-05, %v690_v30 }
 0x7f7   :  { %1080 = vrsqrt.f32 %v692_v31 }
 0x800   :  { %v1079_v32 = vpop.eup %1078 }
 0x801   :  { %v695_v15 = vmul.f32 %v1079_v32, %v679_v17 }
 0x803   :  { %v703_v36 = vmul.f32 %v938_v33, %v695_v15 }
 0x804   :  { %v1081_v34 = vpop.eup %1080 }
 0x805   :  { %v696_v35 = vmul.f32 %v1081_v34, %v680_v21  ;;  %v711_v39 = vadd.f32 %v939_v37, %v703_v36 }
 0x807   :  { %v704_v38 = vmul.f32 %v938_v33, %v696_v35 }
 0x809   :  { %v712_v40 = vadd.f32 %v939_v37, %v704_v38 }
 0x80b   :  { %v715_v41 = vpack.c.bf16 %v712_v40, %v711_v39 }
 0x80d   :  { %1044 = vmatmul.mubr.msk.bf16.vlgmr.msra.gmra.mxu1 %vm64_vm1, %v715_v41 }
 0x8cd   :  { %v761_v48 = vpop.f32.mrf.mxu1 }
 0x8ce   :  { %v762_v50 = vadd.f32 %v940_v47, %v761_v48 }
 0x8cf   :  { %v1045_v49 = vpop.f32.mrf.mxu1 }
 0x8d0   :  { %v768_v53 = vmax.f32 %v762_v50, 0.0  ;;  %v946_v49 = vld [vmem:[%s1372_s13] ss:$0 sm:$0xff] }
 0x8d1   :  { %v764_v51 = vpop.f32.mrf.mxu1 }
 0x8d2   :  { %v765_v52 = vadd.f32 %v940_v47, %v764_v51  ;;  %v947_v51 = vld [vmem:[%s1373_s14] ss:$0 sm:$0xff] }
 0x8d3   :  { %v1046_v0 = vpop.f32.mrf.mxu1 }
 0x8d4   :  { %v769_v54 = vmax.f32 %v765_v52, 0.0 }
 0x8d6   :  { %v774_v55 = vpack.c.bf16 %v769_v54, %v768_v53 }
 0x8d8   :  { %1052 = vmatmul.mubr.msk.bf16.vlgmr.msra.gmra.mxu0 %vm784_vm4, %v774_v55 }
 0x998   :  { %v822_v57 = vpop.f32.mrf.mxu0 }
 0x999   :  { %v823_v58 = vadd.f32 %v942_v56, %v822_v57 }
 0x99a   :  { %v1053_v59 = vpop.f32.mrf.mxu0 }
 0x99b   :  { %v829_v60 = vadd.f32 %v823_v58, %v711_v39 }
 0x99c   :  { %v825_v61 = vpop.f32.mrf.mxu0 }
 0x99d   :  { %v826_v62 = vadd.f32 %v942_v56, %v825_v61  ;;  %v833_v63 = vsel %vm64_vm1, %v829_v60, 0.0 }
 0x99e   :  { %834 = vadd.xlane.f32.xlu1 %v833_v63  ;;  %v1054_v1 = vpop.f32.mrf.mxu0 }
 0x99f   :  { %v830_v2 = vadd.f32 %v826_v62, %v712_v40 }
 0x9a1   :  { %v836_v4 = vsel %vm64_vm1, %v830_v2, 0.0 }
 0x9a2   :  { %837 = vadd.xlane.f32.xlu0 %v836_v4 }
 0xa27   :  { %v835_v6 = vpop.xlane.xlu1 %834 }
 0xa28   :  { %v839_v7 = vmul.f32 0.0625, %v835_v6 }
 0xa2a   :  { %v841_v8 = vsub.f32 %v829_v60, %v839_v7 }
 0xa2b   :  { %v838_v9 = vpop.xlane.xlu0 %837 }
 0xa2c   :  { %v840_v10 = vmul.f32 0.0625, %v838_v9  ;;  %v843_v12 = vmul.f32 %v841_v8, %v841_v8 }
 0xa2e   :  { %v842_v13 = vsub.f32 %v830_v2, %v840_v10  ;;  %v845_v14 = vsel %vm64_vm1, %v843_v12, 0.0 }
 0xa2f   :  { %846 = vadd.xlane.f32.xlu1 %v845_v14 }
 0xa30   :  { %v844_v16 = vmul.f32 %v842_v13, %v842_v13 }
 0xa32   :  { %v848_v17 = vsel %vm64_vm1, %v844_v16, 0.0 }
 0xa33   :  { %849 = vadd.xlane.f32.xlu0 %v848_v17 }
 0xab8   :  { %v847_v18 = vpop.xlane.xlu1 %846 }
 0xab9   :  { %v851_v19 = vmul.f32 0.0625, %v847_v18 }
 0xabb   :  { %v853_v20 = vadd.f32 1e-05, %v851_v19 }
 0xabc   :  { %v850_v21 = vpop.xlane.xlu0 %849 }
 0xabd   :  { %1082 = vrsqrt.f32 %v853_v20  ;;  %v852_v22 = vmul.f32 0.0625, %v850_v21 }
 0xabf   :  { %v854_v3 = vadd.f32 1e-05, %v852_v22 }
 0xac1   :  { %1084 = vrsqrt.f32 %v854_v3 }
 0xaca   :  { %v1083_v23 = vpop.eup %1082 }
 0xacb   :  { %v857_v24 = vmul.f32 %v1083_v23, %v841_v8 }
 0xacd   :  { %v865_v26 = vmul.f32 %v944_v5, %v857_v24 }
 0xace   :  { %v1085_v27 = vpop.eup %1084 }
 0xacf   :  { %v873_v28 = vadd.f32 %v945_v25, %v865_v26  ;;  %v858_v29 = vmul.f32 %v1085_v27, %v842_v13 }
 0xad1   :  { %v877_v30 = vsel %vm64_vm1, %v873_v28, 0.0  ;;  %v866_v31 = vmul.f32 %v944_v5, %v858_v29 }
 0xad2   :  { %878 = vadd.xlane.f32.xlu1 %v877_v30 }
 0xad3   :  { %v874_v32 = vadd.f32 %v945_v25, %v866_v31 }
 0xad5   :  { %v880_v15 = vsel %vm64_vm1, %v874_v32, 0.0 }
 0xad6   :  { %881 = vadd.xlane.f32.xlu0 %v880_v15 }
 0xb5b   :  { %v879_v33 = vpop.xlane.xlu1 %878 }
 0xb5c   :  { %v883_v34 = vmul.f32 0.0625, %v879_v33 }
 0xb5e   :  { %v885_v35 = vsub.f32 %v873_v28, %v883_v34 }
 0xb5f   :  { %v882_v36 = vpop.xlane.xlu0 %881 }
 0xb60   :  { %v884_v37 = vmul.f32 0.0625, %v882_v36  ;;  %v887_v38 = vmul.f32 %v885_v35, %v885_v35 }
 0xb62   :  { %v886_v39 = vsub.f32 %v874_v32, %v884_v37  ;;  %v889_v40 = vsel %vm64_vm1, %v887_v38, 0.0 }
 0xb63   :  { %890 = vadd.xlane.f32.xlu1 %v889_v40 }
 0xb64   :  { %v888_v41 = vmul.f32 %v886_v39, %v886_v39 }
 0xb66   :  { %v892_v42 = vsel %vm64_vm1, %v888_v41, 0.0 }
 0xb67   :  { %893 = vadd.xlane.f32.xlu0 %v892_v42 }
 0xbec   :  { %v891_v11 = vpop.xlane.xlu1 %890 }
 0xbed   :  { %v895_v43 = vmul.f32 0.0625, %v891_v11 }
 0xbef   :  { %v897_v44 = vadd.f32 1e-05, %v895_v43 }
 0xbf0   :  { %v894_v45 = vpop.xlane.xlu0 %893 }
 0xbf1   :  { %1086 = vrsqrt.f32 %v897_v44  ;;  %v896_v46 = vmul.f32 0.0625, %v894_v45 }
 0xbf3   :  { %v898_v47 = vadd.f32 1e-05, %v896_v46 }
 0xbf5   :  { %1088 = vrsqrt.f32 %v898_v47 }
 0xbfe   :  { %v1087_v48 = vpop.eup %1086 }
 0xbff   :  { %v901_v50 = vmul.f32 %v1087_v48, %v885_v35 }
 0xc01   :  { %v909_v52 = vmul.f32 %v946_v49, %v901_v50 }
 0xc02   :  { %v1089_v0 = vpop.eup %1088 }
 0xc03   :  { %v917_v53 = vadd.f32 %v947_v51, %v909_v52  ;;  %v902_v54 = vmul.f32 %v1089_v0, %v886_v39 }
 0xc05   :  { %919 = vst.msk [vmem:[%s1374_s15] sm:$0xff] %vm64_vm1, %v917_v53  ;;  %v910_v55 = vmul.f32 %v946_v49, %v902_v54 }
 0xc07   :  { %v918_v56 = vadd.f32 %v947_v51, %v910_v55 }
 0xc09   :  { %920 = vst.msk [vmem:[%s1374_s15 + $0x8] sm:$0xff] %vm64_vm1, %v918_v56 }

// kernel: vqvae_forward.10
= control target key start
LH: loop header
LB: loop body
LE: loop exit
PB: predicated region body
PF: predicated region fallthrough
CT: control target
= control target key end

     0   :  { %s1391_s0 = inlined_call_operand.vmem [shape: f32[16,16], index: 0, kind: input, shape index: {}]   ;;  %s1392_s1 = inlined_call_operand.vmem [shape: f32[16,32], index: 1, kind: input, shape index: {}]   ;;  %s1393_s2 = inlined_call_operand.vmem [shape: f32[16,32], index: 2, kind: input, shape index: {}]   ;;  %s1394_s3 = inlined_call_operand.vmem [shape: f32[1,32], index: 3, kind: input, shape index: {}]   ;;  %s1395_s4 = inlined_call_operand.vmem [shape: f32[32,16], index: 4, kind: input, shape index: {}]   ;;  %s1396_s5 = inlined_call_operand.vmem [shape: f32[1,16], index: 5, kind: input, shape index: {}]   ;;  %s1397_s6 = inlined_call_operand.vmem [shape: f32[32,16], index: 6, kind: input, shape index: {}]   ;;  %s1398_s7 = inlined_call_operand.vmem [shape: f32[1,16], index: 7, kind: input, shape index: {}]   ;;  %s1399_s8 = inlined_call_operand.vmem [shape: f32[32,16], index: 8, kind: input, shape index: {}]   ;;  %s1400_s9 = inlined_call_operand.vmem [shape: f32[32,16], index: 9, kind: input, shape index: {}]   ;;  %s1401_s10 = inlined_call_operand.vmem [shape: f32[16,32], index: 10, kind: input, shape index: {}]   ;;  %s1402_s11 = inlined_call_operand.vmem [shape: f32[1,32], index: 11, kind: input, shape index: {}]   ;;  %s1403_s12 = inlined_call_operand.vmem [shape: f32[16,32], index: 12, kind: input, shape index: {}]   ;;  %s1404_s13 = inlined_call_operand.vmem [shape: f32[1,32], index: 13, kind: input, shape index: {}]   ;;  %s1405_s14 = inlined_call_operand.vmem [shape: f32[16,32], index: 14, kind: output, shape index: {0}]   ;;  %s1406_s15 = inlined_call_operand.vmem [shape: f32[16,32], index: 15, kind: output, shape index: {1}]   ;;  %s1407_s16 = inlined_call_operand.hbm [shape: f32[1,1], index: 16, kind: output, shape index: {2}]   ;;  %s1408_s17 = inlined_call_operand.hbm [shape: f32[1,1], index: 17, kind: output, shape index: {3}]  }
   0x1   :  { %1411 = sst [smem:[#allocation8_spill]] %s1391_s0 }
   0x2   :  { %1412 = sst [smem:[#allocation9_spill]] %s1392_s1 }
   0x3   :  { %23 = vsyncpa [#allocation3], 0  ;;  %v58_v0 = vld [vmem:[%s1393_s2] sm:$0xff]  ;;  %v59_v1 = vld [vmem:[%s1393_s2 + $0x8] sm:$0xff]  ;;  %s1413_s0 = sld [smem:[#allocation8_spill]]  ;;  %v1057_v3 = vmov 0.0  }
   0x4   :  { %941 = vmatprep.subr.bf16.mxu0 %v1057_v3  ;;  %v61_v4 = vpack.c.bf16 %v59_v1, %v58_v0  ;;  %vm1058_vm0 = vmmov 0  }
   0x5   :  { %943 = vmatprep.mubr.msk.bf16.mxu0 %vm1058_vm0, %v1057_v3 }
   0x9   :  { %v54_v2 = vld [vmem:[%s1413_s0] sm:$0xff]  ;;  %v55_v5 = vld [vmem:[%s1413_s0 + $0x8] sm:$0xff] }
   0xa   :  { %24 = vsyncpa [#allocation5], 0  ;;  %v60_v6 = vpack.c.bf16 %v55_v5, %v54_v2  ;;  %947 = vmatprep.subr.bf16.mxu1 %v1057_v3  ;;  %951 = vmatprep.mubr.msk.bf16.mxu1 %vm1058_vm0, %v1057_v3  ;;  %vm69_vm1 = vcmask 130048   ;;  %v116_v7 = vld [vmem:[%s1395_s4 + $0x10] sm:$0xff]  ;;  %v117_v8 = vld [vmem:[%s1395_s4 + $0x18] sm:$0xff]  ;;  %vm128_vm2 = vcmask 261120  }
   0xb   :  { %942 = vmatpush3.bf16.msra.mxu0 %v61_v4  ;;  %v120_v9 = vpack.c.bf16 %v117_v8, %v116_v7  ;;  %v114_v10 = vld [vmem:[%s1395_s4] sm:$0xff]  ;;  %v115_v11 = vld [vmem:[%s1395_s4 + $0x8] sm:$0xff]  ;;  %v1202_v15 = vld [vmem:[%s1399_s8 + $0x10] sm:$0xff]  ;;  %s1414_s27 = sld [smem:[#allocation9_spill]]  ;;  %vm854_vm15 = vcmask 0   ;;  %s1059_s28 = smov [#allocation2]  }
   0xc   :  { %955 = vmatprep.subr.bf16.mxu0 %v1057_v3  ;;  %v119_v12 = vpack.c.bf16 %v115_v11, %v114_v10  ;;  %v1190_v13 = vld [vmem:[%s1399_s8] sm:$0xff]  ;;  %v1196_v14 = vld [vmem:[%s1399_s8 + $0x8] sm:$0xff]  ;;  %v1208_v16 = vld [vmem:[%s1399_s8 + $0x18] sm:$0xff]  ;;  %v338_v11 = vlaneseq  ;;  %s867_s29 = sshll.u32 %s1059_s28, 4  ;;  %s868_s29 = int_to_ptr.vmem [resolvable:$true] %s867_s29 }
   0xd   :  { %948 = vmatpush3.bf16.msra.mxu1 %v120_v9  ;;  %235 = vxpose.xlu0.b32.start [1/4] (short) (narrow) %v1190_v13, 16  ;;  %v893_v18 = vld [vmem:[%s1394_s3] ss:$0 sm:$0xff]  ;;  %v175_v1 = vld [vmem:[%s1397_s6 + $0x10] sm:$0xff]  ;;  %v176_v2 = vld [vmem:[%s1397_s6 + $0x18] sm:$0xff]  ;;  %s1017_s4 = scalar_lea.vmem %s868_s29, 32  ;;  %p1018_p1 = scmp.lt.s32.totalorder %s868_s29, %s868_s29 }
   0xe   :  { %944 = vmatmul.mubr.msk.bf16.vlgmr.msra.gmra.mxu0 %vm69_vm1, %v60_v6  ;;  %949 = vmatprep.subr.bf16.mxu1 %v1057_v3  ;;  %v895_v28 = vld [vmem:[%s1396_s5] ss:$0 sm:$0xff]  ;;  %v179_v5 = vpack.c.bf16 %v176_v2, %v175_v1  ;;  %v174_v6 = vld [vmem:[%s1397_s6 + $0x8] sm:$0xff] }
   0xf   :  { %959 = vmatprep.mubr.msk.bf16.mxu0 %vm1058_vm0, %v1057_v3  ;;  %v173_v4 = vld [vmem:[%s1397_s6] sm:$0xff]  ;;  %s1013_s6 = scalar_lea.vmem %s868_s29, 16 }
  0x10   :  { %956 = vmatpush3.bf16.msra.mxu0 %v179_v5  ;;  %v178_v7 = vpack.c.bf16 %v174_v6, %v173_v4  ;;  %p1014_p0 = scmp.ne.s32.totalorder %s868_s29, %s1013_s6  ;;  %p1019_p2 = scmp.lt.s32.totalorder %s1017_s4, %s1013_s6 }
  0x11   :  { %950 = vmatpush3.bf16.msra.mxu1 %v119_v12  ;;  %236 = vxpose.xlu0.b32.cont [2/4] (short) (narrow) %v1196_v14, 16  ;;  %v56_v8 = vld [vmem:[%s1414_s27] sm:$0xff]  ;;  %v57_v9 = vld [vmem:[%s1414_s27 + $0x8] sm:$0xff]  ;;  %v1266_v12 = vand.u32 127, %v338_v11 }
  0x12   :  { %963 = vmatprep.subr.bf16.mxu1 %v1057_v3  ;;  %957 = vmatprep.subr.bf16.mxu0 %v1057_v3  ;;  %v177_v10 = vpack.c.bf16 %v57_v9, %v56_v8  ;;  %p1020_p3 = por %p1019_p2, %p1018_p1 }
  0x14   :  { %958 = vmatpush3.bf16.msra.mxu0 %v178_v7  ;;  %p1021_p4 = pnand %p1020_p3, %p1014_p0 }
  0x15   :  { %237 = vxpose.xlu0.b32.cont [3/4] (short) (narrow) %v1202_v15, 16  ;;  %969 = vmatprep.subr.mxu0 %v1208_v16 }
  0x17   :  { %960 = vmatmul.mubr.msk.bf16.vlgmr.msra.gmra.mxu0 %vm128_vm2, %v177_v10 }
  0x18   :  { %970 = vmatpush3.msra.mxu0 %v1208_v16 }
  0x19   :  { %238 = vxpose.xlu0.b32.end [4/4] (short) (narrow) %v1208_v16, 16  ;;  %971 = vmatprep.subr.mxu0 %v1202_v15 }
  0x1a   :  { %972 = vmatpush3.msra.mxu0 %v1202_v15 }
  0x1b   :  { %973 = vmatprep.subr.mxu0 %v1196_v14 }
  0x1c   :  { %974 = vmatpush3.msra.mxu0 %v1196_v14 }
  0x1d   :  { %975 = vmatprep.subr.mxu0 %v1190_v13 }
  0x1e   :  { %976 = vmatpush3.msra.mxu0 %v1190_v13 }
  0x1f   :  { %980 = vmatprep.subr.bf16.mxu0 %v1057_v3 }
  0x89   :  { %v251_v24 = vpop.trf.xlu0 }
  0x8a   :  { %v325_v40 = vmul.f32 %v251_v24, %v251_v24 }
  0x8c   :  { %v327_v42 = vsel %vm128_vm2, %v325_v40, 0.0 }
  0x8d   :  { %v252_v26 = vpop.trf.xlu0 }
  0x8e   :  { %v276_v27 = vpack.c.bf16 %v252_v26, %v251_v24  ;;  %v326_v41 = vmul.f32 %v252_v26, %v252_v26  ;;  %v489_v24 = vld [vmem:[%s1400_s9 + $0x10] sm:$0xff]  ;;  %v487_v26 = vld [vmem:[%s1400_s9] sm:$0xff] }
  0x90   :  { %v328_v43 = vsel %vm128_vm2, %v326_v41, 0.0 }
  0x91   :  { %v329_v44 = vadd.f32 %v328_v43, %v327_v42 }
  0x93   :  { %v330_v45 = vrot.slane %v329_v44, 4 }
  0x95   :  { %v331_v46 = vadd.f32 %v330_v45, %v329_v44 }
  0x97   :  { %v332_v47 = vrot.slane %v331_v46, 2 }
  0x99   :  { %v333_v48 = vadd.f32 %v332_v47, %v331_v46 }
  0x9b   :  { %v334_v49 = vrot.slane %v333_v48, 1 }
  0x9d   :  { %v335_v55 = vadd.f32 %v334_v49, %v333_v48 }
  0xce   :  { %v107_v17 = vpop.f32.mrf.mxu0 }
  0xcf   :  { %v108_v21 = vadd.f32 %v893_v18, %v107_v17 }
  0xd0   :  { %v945_v19 = vpop.f32.mrf.mxu0 }
  0xd2   :  { %v110_v20 = vpop.f32.mrf.mxu0 }
  0xd3   :  { %v111_v22 = vadd.f32 %v893_v18, %v110_v20 }
  0xd4   :  { %v946_v23 = vpop.f32.mrf.mxu0 }
  0xd5   :  { %v118_v25 = vpack.c.bf16 %v111_v22, %v108_v21  ;;  %v490_v23 = vld [vmem:[%s1400_s9 + $0x18] sm:$0xff] }
  0xd7   :  { %952 = vmatmul.mubr.msk.bf16.vlgmr.msra.gmra.mxu1 %vm128_vm2, %v118_v25  ;;  %v488_v25 = vld [vmem:[%s1400_s9 + $0x8] sm:$0xff] }
  0xd8   :  { %965 = vmatprep.mubr.msk.bf16.mxu1 %vm1058_vm0, %v1057_v3  ;;  %964 = vmatpush3.bf16.msra.mxu1 %v276_v27 }
  0xd9   :  { %986 = vmatprep.subr.mxu1 %v490_v23 }
 0x197   :  { %v166_v29 = vpop.f32.mrf.mxu1 }
 0x198   :  { %v1220_v30 = vadd.f32 %v895_v28, %v166_v29 }
 0x199   :  { %v953_v31 = vpop.f32.mrf.mxu1 }
 0x19a   :  { %v267_v32 = vmul.f32 %v1220_v30, %v1220_v30 }
 0x19b   :  { %v169_v33 = vpop.f32.mrf.mxu1 }
 0x19c   :  { %v1224_v34 = vadd.f32 %v895_v28, %v169_v33  ;;  %v269_v35 = vsel %vm69_vm1, %v267_v32, 0.0 }
 0x19d   :  { %270 = vadd.xlane.f32.xlu1 %v269_v35  ;;  %v954_v36 = vpop.f32.mrf.mxu1 }
 0x19e   :  { %v275_v37 = vpack.c.bf16 %v1224_v34, %v1220_v30  ;;  %v268_v38 = vmul.f32 %v1224_v34, %v1224_v34 }
 0x1a0   :  { %966 = vmatmul.mubr.msk.bf16.vlgmr.msra.gmra.mxu1 %vm69_vm1, %v275_v37  ;;  %v272_v39 = vsel %vm69_vm1, %v268_v38, 0.0  ;;  %v224_v37 = vpop.f32.mrf.mxu0 }
 0x1a1   :  { %273 = vadd.xlane.f32.xlu1 %v272_v39  ;;  %987 = vmatpush3.msra.mxu1 %v490_v23  ;;  %v897_v39 = vld [vmem:[%s1398_s7] ss:$0 sm:$0xff] }
 0x1a2   :  { %988 = vmatprep.subr.mxu1 %v489_v24  ;;  %v961_v38 = vpop.f32.mrf.mxu0  ;;  %v1288_v40 = vadd.f32 %v897_v39, %v224_v37 }
 0x1a3   :  { %989 = vmatpush3.msra.mxu1 %v489_v24 }
 0x1a4   :  { %990 = vmatprep.subr.mxu1 %v488_v25  ;;  %v227_v41 = vpop.f32.mrf.mxu0  ;;  %v523_v42 = vmul.f32 %v1288_v40, %v1288_v40 }
 0x1a5   :  { %991 = vmatpush3.msra.mxu1 %v488_v25  ;;  %v1292_v44 = vadd.f32 %v897_v39, %v227_v41 }
 0x1a6   :  { %992 = vmatprep.subr.mxu1 %v487_v26  ;;  %v962_v43 = vpop.f32.mrf.mxu0  ;;  %v525_v45 = vsel %vm69_vm1, %v523_v42, 0.0 }
 0x1a7   :  { %993 = vmatpush3.msra.mxu1 %v487_v26  ;;  %v524_v46 = vmul.f32 %v1292_v44, %v1292_v44 }
 0x1a8   :  { %997 = vmatprep.subr.bf16.mxu1 %v1057_v3 }
 0x1a9   :  { %v528_v47 = vsel %vm69_vm1, %v524_v46, 0.0 }
 0x226   :  { %v271_v50 = vpop.xlane.xlu1 %270 }
 0x22a   :  { %v274_v59 = vpop.xlane.xlu1 %273 }
 0x260   :  { %v314_v51 = vpop.f32.mrf.mxu1 }
 0x261   :  { %v321_v52 = vmul.f32 2.0, %v314_v51 }
 0x262   :  { %v967_v53 = vpop.f32.mrf.mxu1 }
 0x263   :  { %v323_v54 = vsub.f32 %v271_v50, %v321_v52 }
 0x264   :  { %v317_v56 = vpop.f32.mrf.mxu1 }
 0x265   :  { %v322_v57 = vmul.f32 2.0, %v317_v56  ;;  %v336_v58 = vadd.f32 %v335_v55, %v323_v54 }
 0x266   :  { %v968_v60 = vpop.f32.mrf.mxu1 }
 0x267   :  { %v324_v61 = vsub.f32 %v274_v59, %v322_v57  ;;  %v340_v62 = vsel %vm128_vm2, %v336_v58, inf }
 0x268   :  { %341 = vmin.xlane.f32.xlu1 %v340_v62 }
 0x269   :  { %v337_v63 = vadd.f32 %v335_v55, %v324_v61 }
 0x26b   :  { %v343_v0 = vsel %vm128_vm2, %v337_v63, inf }
 0x26c   :  { %344 = vmin.xlane.f32.xlu1 %v343_v0 }
 0x2f1   :  { %v342_v17 = vpop.xlane.xlu1 %341 }
 0x2f2   :  { %vm346_vm3 = vcmp.le.f32.partialorder %v336_v58, %v342_v17 }
 0x2f3   :  { %v348_v16 = vsel %vm346_vm3, %v1266_v12, 32 }
 0x2f4   :  { %v350_v18 = vsel %vm128_vm2, %v348_v16, 2147483647 }
 0x2f5   :  { %v345_v15 = vpop.xlane.xlu1 %344  ;;  %v352_v19 = vshra.s32 %v350_v18, 16  ;;  %v351_v27 = vand.u32 65535, %v350_v18 }
 0x2f6   :  { %vm347_vm4 = vcmp.le.f32.partialorder %v337_v63, %v345_v15  ;;  %v531_v63 = vpack.c.bf16 %v1292_v44, %v1288_v40 }
 0x2f7   :  { %v349_v14 = vsel %vm347_vm4, %v1266_v12, 32  ;;  %v354_v20 = vcvt.s32.f32 %v352_v19  ;;  %v353_v29 = vcvt.s32.f32 %v351_v27 }
 0x2f8   :  { %v365_v21 = vsel %vm128_vm2, %v349_v14, 2147483647 }
 0x2f9   :  { %355 = vmin.xlane.f32.xlu0 %v354_v20  ;;  %v367_v13 = vshra.s32 %v365_v21, 16  ;;  %v366_v31 = vand.u32 65535, %v365_v21 }
 0x2fb   :  { %v369_v22 = vcvt.s32.f32 %v367_v13  ;;  %v368_v35 = vcvt.s32.f32 %v366_v31 }
 0x2fd   :  { %370 = vmin.xlane.f32.xlu1 %v369_v22  ;;  %526 = vadd.xlane.f32.xlu0 %v525_v45 }
 0x301   :  { %529 = vadd.xlane.f32.xlu0 %v528_v47 }
 0x382   :  { %v356_v28 = vpop.xlane.xlu0 %355 }
 0x383   :  { %vm357_vm5 = vcmp.eq.f32.partialorder %v354_v20, %v356_v28  ;;  %v362_v48 = vcvt.f32.s32 %v356_v28 }
 0x384   :  { %v358_v32 = vsel %vm357_vm5, %v353_v29, inf }
 0x385   :  { %359 = vmin.xlane.f32.xlu1 %v358_v32  ;;  %v363_v50 = vshll.u32 %v362_v48, 16 }
 0x386   :  { %v371_v33 = vpop.xlane.xlu1 %370 }
 0x387   :  { %vm372_vm6 = vcmp.eq.f32.partialorder %v369_v22, %v371_v33  ;;  %v377_v51 = vcvt.f32.s32 %v371_v33 }
 0x388   :  { %v373_v36 = vsel %vm372_vm6, %v368_v35, inf }
 0x389   :  { %374 = vmin.xlane.f32.xlu1 %v373_v36  ;;  %v378_v55 = vshll.u32 %v377_v51, 16 }
 0x3bc   :  { %491 = vxpose.xlu1.b32.start [1/4] (short) (narrow) %v487_v26, 16 }
 0x3c0   :  { %492 = vxpose.xlu1.b32.cont [2/4] (short) (narrow) %v488_v25, 16 }
 0x3c4   :  { %493 = vxpose.xlu1.b32.cont [3/4] (short) (narrow) %v489_v24, 16 }
 0x3c8   :  { %494 = vxpose.xlu1.b32.end [4/4] (short) (narrow) %v490_v23, 16 }
 0x40e   :  { %v360_v49 = vpop.xlane.xlu1 %359 }
 0x40f   :  { %v361_v52 = vcvt.f32.s32 %v360_v49 }
 0x411   :  { %v364_v53 = vadd.s32 %v363_v50, %v361_v52 }
 0x412   :  { %v375_v54 = vpop.xlane.xlu1 %374 }
 0x413   :  { %v376_v56 = vcvt.f32.s32 %v375_v54  ;;  %vm380_vm7 = vcmp.eq.s32.totalorder %v1266_v12, %v364_v53 }
 0x414   :  { %v900_v57 = vsel %vm380_vm7, 1.0, %v1057_v3 }
 0x415   :  { %v379_v58 = vadd.s32 %v378_v55, %v376_v56  ;;  %977 = vmatprep.mubr.msk.f32.mxu0 %vm128_vm2, %v900_v57  ;;  %v797_v57 = vld [vmem:[%s1403_s12] sm:$0xff] }
 0x417   :  { %vm381_vm8 = vcmp.eq.s32.totalorder %v1266_v12, %v379_v58  ;;  %v798_v58 = vld [vmem:[%s1403_s12 + $0x8] sm:$0xff] }
 0x418   :  { %v901_v59 = vsel %vm381_vm8, 1.0, %v1057_v3 }
 0x419   :  { %978 = vmatmul.mubr.msk.f32.vlgmr.msra.gmra.mxu0 %vm128_vm2, %v901_v59 }
 0x41a   :  { %982 = vmatprep.mubr.msk.bf16.mxu0 %vm1058_vm0, %v1057_v3 }
 0x438   :  { %v507_v60 = vpop.trf.xlu1 }
 0x439   :  { %v581_v8 = vmul.f32 %v507_v60, %v507_v60 }
 0x43b   :  { %v583_v10 = vsel %vm128_vm2, %v581_v8, 0.0  ;;  %v740_v8 = vld [vmem:[%s1401_s10] sm:$0xff] }
 0x43c   :  { %v508_v61 = vpop.trf.xlu1 }
 0x43d   :  { %v532_v62 = vpack.c.bf16 %v508_v61, %v507_v60  ;;  %v582_v7 = vmul.f32 %v508_v61, %v508_v61 }
 0x43f   :  { %981 = vmatpush3.bf16.msra.mxu0 %v532_v62  ;;  %v584_v9 = vsel %vm128_vm2, %v582_v7, 0.0 }
 0x440   :  { %1003 = vmatprep.subr.bf16.mxu0 %v1057_v3  ;;  %v585_v11 = vadd.f32 %v584_v9, %v583_v10  ;;  %v741_v9 = vld [vmem:[%s1401_s10 + $0x8] sm:$0xff] }
 0x442   :  { %983 = vmatmul.mubr.msk.bf16.vlgmr.msra.gmra.mxu0 %vm69_vm1, %v531_v63  ;;  %v586_v17 = vrot.slane %v585_v11, 4 }
 0x443   :  { %1005 = vmatprep.mubr.msk.bf16.mxu0 %vm1058_vm0, %v1057_v3 }
 0x444   :  { %v587_v16 = vadd.f32 %v586_v17, %v585_v11 }
 0x446   :  { %v588_v18 = vrot.slane %v587_v16, 2 }
 0x448   :  { %v589_v15 = vadd.f32 %v588_v18, %v587_v16  ;;  %v743_v18 = vpack.c.bf16 %v741_v9, %v740_v8 }
 0x44a   :  { %v590_v19 = vrot.slane %v589_v15, 1 }
 0x44c   :  { %v591_v22 = vadd.f32 %v590_v19, %v589_v15 }
 0x4d9   :  { %v1312_v0 = vpop.f32.mrf.mxu0 }
 0x4da   :  { %v468_v50 = vsub.f32 %v1312_v0, %v1224_v34  ;;  %v800_v34 = vpack.c.bf16 %v798_v58, %v797_v57 }
 0x4db   :  { %v1314_v1 = vpop.f32.mrf.mxu0 }
 0x4dc   :  { %v467_v2 = vsub.f32 %v1314_v1, %v1220_v30  ;;  %v742_v4 = vpack.c.bf16 %v1312_v0, %v1314_v1  ;;  %v527_v30 = vpop.xlane.xlu0 %526  ;;  %v470_v54 = vmul.f32 %v468_v50, %v468_v50  ;;  %1004 = vmatpush3.bf16.msra.mxu0 %v800_v34 }
 0x4de   :  { %v469_v5 = vmul.f32 %v467_v2, %v467_v2  ;;  %v474_v56 = vsel %vm69_vm1, %v470_v54, 0.0 }
 0x4e0   :  { %v471_v6 = vsel %vm69_vm1, %v469_v5, 0.0  ;;  %v530_v26 = vpop.xlane.xlu0 %529 }
 0x4e1   :  { %472 = vadd.xlane.f32.xlu1 %v471_v6 }
 0x502   :  { %v570_v14 = vpop.f32.mrf.mxu0 }
 0x503   :  { %v577_v20 = vmul.f32 2.0, %v570_v14 }
 0x504   :  { %v984_v21 = vpop.f32.mrf.mxu0 }
 0x505   :  { %v579_v13 = vsub.f32 %v527_v30, %v577_v20 }
 0x506   :  { %v573_v23 = vpop.f32.mrf.mxu0 }
 0x507   :  { %v578_v24 = vmul.f32 2.0, %v573_v23  ;;  %v592_v25 = vadd.f32 %v591_v22, %v579_v13 }
 0x508   :  { %v985_v27 = vpop.f32.mrf.mxu0 }
 0x509   :  { %v580_v28 = vsub.f32 %v530_v26, %v578_v24  ;;  %v594_v29 = vsel %vm128_vm2, %v592_v25, inf }
 0x50a   :  { %595 = vmin.xlane.f32.xlu0 %v594_v29 }
 0x50b   :  { %v593_v31 = vadd.f32 %v591_v22, %v580_v28 }
 0x50d   :  { %v597_v32 = vsel %vm128_vm2, %v593_v31, inf }
 0x50e   :  { %598 = vmin.xlane.f32.xlu0 %v597_v32 }
 0x56a   :  { %v473_v17 = vpop.xlane.xlu1 %472 }
 0x593   :  { %v596_v33 = vpop.xlane.xlu0 %595 }
 0x594   :  { %vm600_vm9 = vcmp.le.f32.partialorder %v592_v25, %v596_v33 }
 0x595   :  { %v602_v35 = vsel %vm600_vm9, %v1266_v12, 32 }
 0x596   :  { %v604_v36 = vsel %vm128_vm2, %v602_v35, 2147483647 }
 0x597   :  { %v599_v37 = vpop.xlane.xlu0 %598  ;;  %v606_v38 = vshra.s32 %v604_v36, 16  ;;  %v605_v46 = vand.u32 65535, %v604_v36 }
 0x598   :  { %vm601_vm10 = vcmp.le.f32.partialorder %v593_v31, %v599_v37 }
 0x599   :  { %v603_v39 = vsel %vm601_vm10, %v1266_v12, 32  ;;  %v608_v41 = vcvt.s32.f32 %v606_v38  ;;  %v607_v48 = vcvt.s32.f32 %v605_v46 }
 0x59a   :  { %v619_v42 = vsel %vm128_vm2, %v603_v39, 2147483647 }
 0x59b   :  { %609 = vmin.xlane.f32.xlu0 %v608_v41  ;;  %v621_v43 = vshra.s32 %v619_v42, 16  ;;  %v620_v49 = vand.u32 65535, %v619_v42 }
 0x59d   :  { %v623_v45 = vcvt.s32.f32 %v621_v43  ;;  %v622_v53 = vcvt.s32.f32 %v620_v49 }
 0x59f   :  { %624 = vmin.xlane.f32.xlu0 %v623_v45 }
 0x624   :  { %v610_v47 = vpop.xlane.xlu0 %609 }
 0x625   :  { %vm611_vm11 = vcmp.eq.f32.partialorder %v608_v41, %v610_v47  ;;  %v616_v59 = vcvt.f32.s32 %v610_v47 }
 0x626   :  { %v612_v51 = vsel %vm611_vm11, %v607_v48, inf }
 0x627   :  { %613 = vmin.xlane.f32.xlu0 %v612_v51  ;;  %v617_v61 = vshll.u32 %v616_v59, 16 }
 0x628   :  { %v625_v52 = vpop.xlane.xlu0 %624 }
 0x629   :  { %vm626_vm12 = vcmp.eq.f32.partialorder %v623_v45, %v625_v52  ;;  %v631_v62 = vcvt.f32.s32 %v625_v52 }
 0x62a   :  { %v627_v55 = vsel %vm626_vm12, %v622_v53, inf }
 0x62b   :  { %628 = vmin.xlane.f32.xlu0 %v627_v55  ;;  %v632_v6 = vshll.u32 %v631_v62, 16 }
 0x62f   :  { %475 = vadd.xlane.f32.xlu0 %v474_v56 }
 0x6b0   :  { %v614_v60 = vpop.xlane.xlu0 %613 }
 0x6b1   :  { %v615_v63 = vcvt.f32.s32 %v614_v60 }
 0x6b3   :  { %v618_v2 = vadd.s32 %v617_v61, %v615_v63 }
 0x6b4   :  { %v629_v5 = vpop.xlane.xlu0 %628 }
 0x6b5   :  { %v630_v7 = vcvt.f32.s32 %v629_v5  ;;  %vm634_vm13 = vcmp.eq.s32.totalorder %v1266_v12, %v618_v2 }
 0x6b6   :  { %v905_v10 = vsel %vm634_vm13, 1.0, %v1057_v3 }
 0x6b7   :  { %v633_v11 = vadd.s32 %v632_v6, %v630_v7  ;;  %994 = vmatprep.mubr.msk.f32.mxu1 %vm128_vm2, %v905_v10 }
 0x6b8   :  { %v476_v16 = vpop.xlane.xlu0 %475 }
 0x6b9   :  { %vm635_vm14 = vcmp.eq.s32.totalorder %v1266_v12, %v633_v11  ;;  %v477_v15 = vadd.f32 %v476_v16, %v473_v17 }
 0x6ba   :  { %v906_v19 = vsel %vm635_vm14, 1.0, %v1057_v3 }
 0x6bb   :  { %v478_v30 = vrot.slane %v477_v15, 4  ;;  %995 = vmatmul.mubr.msk.f32.vlgmr.msra.gmra.mxu1 %vm128_vm2, %v906_v19 }
 0x6bc   :  { %998 = vmatpush3.bf16.msra.mxu1 %v743_v18  ;;  %999 = vmatprep.mubr.msk.bf16.mxu1 %vm1058_vm0, %v1057_v3  ;;  %v909_v3 = vld [vmem:[%s1402_s11] ss:$0 sm:$0xff] }
 0x6bd   :  { %v479_v14 = vadd.f32 %v478_v30, %v477_v15 }
 0x6bf   :  { %v480_v20 = vrot.slane %v479_v14, 2  ;;  %1000 = vmatmul.mubr.msk.bf16.vlgmr.msra.gmra.mxu1 %vm69_vm1, %v742_v4 }
 0x6c1   :  { %v481_v21 = vadd.f32 %v480_v20, %v479_v14 }
 0x6c3   :  { %v482_v13 = vrot.slane %v481_v21, 1 }
 0x6c5   :  { %v483_v12 = vadd.f32 %v482_v13, %v481_v21 }
 0x6c7   :  { %v485_v22 = vmul.f32 0.00390625, %v483_v12 }
 0x6c9   :  { %v486_v23 = vmul.f32 1.25, %v485_v22 }
 0x6cb   :  { %855 = vst.msk [vmem:[#allocation2] sm:$0x1] %vm854_vm15, %v486_v23 }
 0x77b   :  { %v996_v24 = vpop.f32.mrf.mxu1 }
 0x77c   :  { %v722_v26 = vsub.f32 %v996_v24, %v1292_v44 }
 0x77d   :  { %v712_v25 = vpop.f32.mrf.mxu1 }
 0x77e   :  { %v721_v0 = vsub.f32 %v712_v25, %v1288_v40  ;;  %v799_v1 = vpack.c.bf16 %v996_v24, %v712_v25  ;;  %v724_v31 = vmul.f32 %v722_v26, %v722_v26 }
 0x77f   :  { %v788_v4 = vpop.f32.mrf.mxu1 }
 0x780   :  { %v723_v27 = vmul.f32 %v721_v0, %v721_v0  ;;  %v789_v28 = vadd.f32 %v909_v3, %v788_v4  ;;  %1006 = vmatmul.mubr.msk.bf16.vlgmr.msra.gmra.mxu0 %vm69_vm1, %v799_v1  ;;  %v728_v40 = vsel %vm69_vm1, %v724_v31, 0.0 }
 0x781   :  { %v1001_v29 = vpop.f32.mrf.mxu1 }
 0x782   :  { %795 = vst.msk [vmem:[%s1405_s14] sm:$0xff] %vm128_vm2, %v789_v28  ;;  %v725_v32 = vsel %vm69_vm1, %v723_v27, 0.0 }
 0x783   :  { %v791_v33 = vpop.f32.mrf.mxu1  ;;  %726 = vadd.xlane.f32.xlu0 %v725_v32 }
 0x784   :  { %v792_v44 = vadd.f32 %v909_v3, %v791_v33 }
 0x785   :  { %v1002_v35 = vpop.f32.mrf.mxu1 }
 0x786   :  { %796 = vst.msk [vmem:[%s1405_s14 + $0x8] sm:$0xff] %vm128_vm2, %v792_v44 }
 0x787   :  { %729 = vadd.xlane.f32.xlu0 %v728_v40 }
 0x788   :  { %1024 = shalt.err (!%p1021_p4)
}
 0x789   :  { %870 = dma.vmem_to_hbm [thread:$0]  %s868_s29, 16, %s1407_s16, [#allocation3]  }
 0x78a   :  { %s1060_s14 = smov [#allocation4]  }
 0x78b   :  { %s877_s18 = sshll.u32 %s1060_s14, 4  ;;  %s878_s18 = int_to_ptr.vmem [resolvable:$true] %s877_s18 }
 0x78c   :  { %s1033_s2 = scalar_lea.vmem %s878_s18, 16  ;;  %s1037_s8 = scalar_lea.vmem %s878_s18, 32 }
 0x78d   :  { %p1034_p5 = scmp.ne.s32.totalorder %s878_s18, %s1033_s2  ;;  %p1038_p6 = scmp.lt.s32.totalorder %s878_s18, %s878_s18 }
 0x78e   :  { %p1039_p7 = scmp.lt.s32.totalorder %s1037_s8, %s1033_s2 }
 0x790   :  { %p1040_p8 = por %p1039_p7, %p1038_p6 }
 0x792   :  { %p1041_p9 = pnand %p1040_p8, %p1034_p5 }
 0x80c   :  { %v727_v36 = vpop.xlane.xlu0 %726 }
 0x810   :  { %v730_v37 = vpop.xlane.xlu0 %729 }
 0x811   :  { %v731_v38 = vadd.f32 %v730_v37, %v727_v36 }
 0x813   :  { %v732_v39 = vrot.slane %v731_v38, 4 }
 0x815   :  { %v733_v41 = vadd.f32 %v732_v39, %v731_v38 }
 0x817   :  { %v734_v42 = vrot.slane %v733_v41, 2 }
 0x819   :  { %v735_v43 = vadd.f32 %v734_v42, %v733_v41 }
 0x81b   :  { %v736_v45 = vrot.slane %v735_v43, 1 }
 0x81d   :  { %v737_v46 = vadd.f32 %v736_v45, %v735_v43 }
 0x81f   :  { %v738_v47 = vmul.f32 0.00390625, %v737_v46 }
 0x821   :  { %v739_v48 = vmul.f32 1.25, %v738_v47 }
 0x823   :  { %856 = vst.msk [vmem:[#allocation4] sm:$0x1] %vm854_vm15, %v739_v48 }
 0x824   :  { %1044 = shalt.err (!%p1041_p9)
}
 0x825   :  { %880 = dma.vmem_to_hbm [thread:$0]  %s878_s18, 16, %s1408_s17, [#allocation5]   ;;  %v911_v49 = vld [vmem:[%s1404_s13] ss:$0 sm:$0xff] }
 0x840   :  { %v845_v50 = vpop.f32.mrf.mxu0 }
 0x841   :  { %v846_v51 = vadd.f32 %v911_v49, %v845_v50 }
 0x842   :  { %v1007_v52 = vpop.f32.mrf.mxu0 }
 0x843   :  { %852 = vst.msk [vmem:[%s1406_s15] sm:$0xff] %vm128_vm2, %v846_v51 }
 0x844   :  { %v848_v53 = vpop.f32.mrf.mxu0 }
 0x845   :  { %v849_v54 = vadd.f32 %v911_v49, %v848_v53 }
 0x846   :  { %v1008_v55 = vpop.f32.mrf.mxu0 }
 0x847   :  { %853 = vst.msk [vmem:[%s1406_s15 + $0x8] sm:$0xff] %vm128_vm2, %v849_v54 }
 0x848   :  { %1053 = dma.done.wait [#allocation3], 16  }
 0x849   :  { %1054 = vsyncadd [#allocation3], 4294967280 }
 0x84a   :  { %1055 = dma.done.wait [#allocation5], 16  }
 0x84b   :  { %1056 = vsyncadd [#allocation5], 4294967280 }
 0x84c   :  { %891 = vsyncpa [#allocation3], 1 }
 0x84d   :  { %892 = vsyncpa [#allocation5], 1 }

// kernel: vqvae_forward.9
= control target key start
LH: loop header
LB: loop body
LE: loop exit
PB: predicated region body
PF: predicated region fallthrough
CT: control target
= control target key end

     0   :  { %v2002_v0 = vmov 0.0   ;;  %v2003_v4 = vmov 1983009808   ;;  %v56_v6 = vlaneseq  ;;  %vm2004_vm0 = vmmov 0   ;;  %s2006_s17 = smov 64   ;;  %s2514_s3 = inlined_call_operand.vmem [shape: f32[32,96], index: 3, kind: input, shape index: {}]   ;;  %s2515_s1 = inlined_call_operand.vmem [shape: f32[16,96], index: 1, kind: input, shape index: {}]   ;;  %s2516_s0 = inlined_call_operand.vmem [shape: f32[8,2,16], index: 0, kind: input, shape index: {}]   ;;  %s2517_s4 = inlined_call_operand.vmem [shape: f32[1,96], index: 4, kind: input, shape index: {}]   ;;  %s2518_s2 = inlined_call_operand.vmem [shape: f32[1,96], index: 2, kind: input, shape index: {}]   ;;  %s2519_s7 = inlined_call_operand.vmem [shape: f32[32,96], index: 7, kind: input, shape index: {}]   ;;  %s2520_s5 = inlined_call_operand.vmem [shape: f32[32,96], index: 5, kind: input, shape index: {}]   ;;  %s2521_s8 = inlined_call_operand.vmem [shape: f32[1,96], index: 8, kind: input, shape index: {}]   ;;  %s2522_s6 = inlined_call_operand.vmem [shape: f32[1,96], index: 6, kind: input, shape index: {}]   ;;  %s2523_s9 = inlined_call_operand.vmem [shape: f32[8,2,32], index: 9, kind: output, shape index: {}]  }
   0x1   :  { %1764 = vmatprep.subr.bf16.mxu1 %v2002_v0  ;;  %v196_v1 = vld [vmem:[%s2514_s3 + $0x10] sm:$0xff]  ;;  %v197_v2 = vld [vmem:[%s2514_s3 + $0x18] sm:$0xff]  ;;  %v194_v3 = vld [vmem:[%s2514_s3] sm:$0xff]  ;;  %1758 = vmatprep.subr.bf16.mxu0 %v2002_v0  ;;  %v54_v5 = vunpack.c.l.s4 %v2003_v4  ;;  %v2005_v32 = vmov 0   ;;  %vm96_vm1 = vcmask 130048   ;;  %vm185_vm2 = vcmask 779264  }
   0x2   :  { %v2069_v7 = vpack.c.bf16 %v197_v2, %v196_v1  ;;  %v195_v8 = vld [vmem:[%s2514_s3 + $0x8] sm:$0xff]  ;;  %v41_v9 = vld [vmem:[%s2515_s1] sm:$0xff]  ;;  %1768 = vmatprep.mubr.msk.bf16.mxu1 %vm2004_vm0, %v2002_v0  ;;  %1760 = vmatprep.mubr.msk.bf16.mxu0 %vm2004_vm0, %v2002_v0  ;;  %v57_v24 = vshrl.u32 %v56_v6, 7  ;;  %vm208_vm3 = vcmask 261120   ;;  %vm282_vm4 = vcmask 254976  }
   0x3   :  { %v42_v10 = vld [vmem:[%s2515_s1 + $0x8] sm:$0xff]  ;;  %v33_v12 = vld [vmem:[%s2516_s0] sm:$0x3]  ;;  %v34_v13 = vld [vmem:[%s2516_s0 + $0x2] sm:$0x3]  ;;  %v55_v15 = vunpack.c.0.s8 %v54_v5  ;;  %v2094_v16 = vpack.c.bf16 %v195_v8, %v194_v3 }
   0x4   :  { %v88_v11 = vpack.c.bf16 %v42_v10, %v41_v9  ;;  %v35_v14 = vld [vmem:[%s2516_s0 + $0x4] sm:$0x3]  ;;  %1765 = vmatpush3.bf16.msra.mxu1 %v2069_v7  ;;  %v36_v17 = vld [vmem:[%s2516_s0 + $0x6] sm:$0x3]  ;;  %v37_v18 = vld [vmem:[%s2516_s0 + $0x8] sm:$0x3]  ;;  %v51_v22 = vcombine.low %v33_v12, %v34_v13 }
   0x5   :  { %v38_v19 = vld [vmem:[%s2516_s0 + $0xa] sm:$0x3]  ;;  %1766 = vmatprep.subr.bf16.mxu1 %v2002_v0  ;;  %v39_v20 = vld [vmem:[%s2516_s0 + $0xc] sm:$0x3]  ;;  %v40_v21 = vld [vmem:[%s2516_s0 + $0xe] sm:$0x3]  ;;  %v52_v23 = vcombine.low %v35_v14, %v36_v17  ;;  %v2113_v27 = vsub.s32 %v55_v15, %v57_v24 }
   0x6   :  { %1759 = vmatpush3.bf16.msra.mxu0 %v88_v11  ;;  %v68_v25 = vcombine.low %v37_v18, %v38_v19  ;;  %v69_v26 = vcombine.low %v39_v20, %v40_v21  ;;  %v2137_v36 = vld [vmem:[%s2517_s4] ss:$0 sm:$0xff] }
   0x7   :  { %1772 = vmatprep.subr.bf16.mxu0 %v2002_v0  ;;  %v59_v28 = vrot.slane %v51_v22, %v2113_v27  ;;  %v66_v29 = vrot.slane %v52_v23, %v2113_v27  ;;  %v1662_v39 = vld [vmem:[%s2518_s2] ss:$0 sm:$0xff]  ;;  %s2007_s2 = smov 96  }
   0x8   :  { %1767 = vmatpush3.bf16.msra.mxu1 %v2094_v16  ;;  %v76_v30 = vrot.slane %v68_v25, %v2113_v27  ;;  %v83_v31 = vrot.slane %v69_v26, %v2113_v27 }
   0x9   :  { %1780 = vmatprep.subr.bf16.mxu1 %v2002_v0  ;;  %v67_v33 = vcombine.low %v59_v28, %v66_v29 }
   0xa   :  { %v84_v34 = vcombine.low %v76_v30, %v83_v31 }
   0xb   :  { %1769 = vmatmul.mubr.bf16.vlgmr.msra.gmra.mxu1 %v2005_v32 }
   0xc   :  { %1781 = vmatpush3.bf16.msra.mxu1 %v2069_v7  ;;  %1784 = vmatprep.mubr.msk.bf16.mxu1 %vm2004_vm0, %v2002_v0  ;;  %v87_v35 = vpack.c.bf16 %v84_v34, %v67_v33 }
   0xd   :  { %1782 = vmatprep.subr.bf16.mxu1 %v2002_v0 }
   0xe   :  { %1761 = vmatmul.mubr.msk.bf16.vlgmr.msra.gmra.mxu0 %vm96_vm1, %v87_v35 }
   0xf   :  { %1773 = vmatpush3.bf16.msra.mxu0 %v2069_v7  ;;  %1776 = vmatprep.mubr.msk.bf16.mxu0 %vm2004_vm0, %v2002_v0 }
  0x10   :  { %1774 = vmatprep.subr.bf16.mxu0 %v2002_v0  ;;  %1783 = vmatpush3.bf16.msra.mxu1 %v2094_v16 }
  0x11   :  { %1796 = vmatprep.subr.bf16.mxu1 %v2002_v0 }
  0x13   :  { %1775 = vmatpush3.bf16.msra.mxu0 %v2094_v16 }
  0x14   :  { %1788 = vmatprep.subr.bf16.mxu0 %v2002_v0 }
  0xcb   :  { %v246_v37 = vpop.f32.mrf.mxu1 }
  0xcc   :  { %v247_v38 = vadd.f32 %v2137_v36, %v246_v37 }
  0xcd   :  { %v1770_v40 = vpop.f32.mrf.mxu1 }
  0xce   :  { %260 = vrot.lane.b32.xlu0 %v247_v38, %s2006_s17  ;;  %v134_v41 = vpop.f32.mrf.mxu0 }
  0xcf   :  { %v249_v42 = vpop.f32.mrf.mxu1  ;;  %v135_v43 = vadd.f32 %v1662_v39, %v134_v41 }
  0xd0   :  { %v1762_v45 = vpop.f32.mrf.mxu0 }
  0xd1   :  { %v1771_v44 = vpop.f32.mrf.mxu1  ;;  %v143_v46 = vcombine.high %v135_v43, %v135_v43  ;;  %v150_v47 = vrot.slane %v135_v43, %v2113_v27 }
  0xd2   :  { %v137_v48 = vpop.f32.mrf.mxu0 }
  0xd3   :  { %v157_v49 = vrot.slane %v143_v46, %v2113_v27  ;;  %v158_v50 = vcombine.high %v150_v47, %v150_v47  ;;  %186 = vst.msk [vmem:[#allocation2] sm:$0x3] %vm185_vm2, %v150_v47  ;;  %v138_v51 = vadd.f32 %v1662_v39, %v137_v48 }
  0xd4   :  { %v1763_v52 = vpop.f32.mrf.mxu0 }
  0xd5   :  { %v159_v53 = vcombine.high %v157_v49, %v157_v49  ;;  %187 = vst.msk [vmem:[#allocation2 + $0x2] sm:$0x3] %vm185_vm2, %v158_v50  ;;  %188 = vst.msk [vmem:[#allocation2 + $0x4] sm:$0x3] %vm185_vm2, %v157_v49  ;;  %v160_v54 = vcombine.high %v138_v51, %v138_v51  ;;  %v167_v55 = vrot.slane %v138_v51, %v2113_v27 }
  0xd7   :  { %189 = vst.msk [vmem:[#allocation2 + $0x6] sm:$0x3] %vm185_vm2, %v159_v53  ;;  %v174_v56 = vrot.slane %v160_v54, %v2113_v27  ;;  %v175_v57 = vcombine.high %v167_v55, %v167_v55  ;;  %190 = vst.msk [vmem:[#allocation2 + $0x8] sm:$0x3] %vm185_vm2, %v167_v55 }
  0xd9   :  { %v176_v58 = vcombine.high %v174_v56, %v174_v56  ;;  %191 = vst.msk [vmem:[#allocation2 + $0xa] sm:$0x3] %vm185_vm2, %v175_v57  ;;  %192 = vst.msk [vmem:[#allocation2 + $0xc] sm:$0x3] %vm185_vm2, %v174_v56 }
  0xda   :  { %v199_v59 = vld [vmem:[#allocation2] sm:$0x3] }
  0xdb   :  { %193 = vst.msk [vmem:[#allocation2 + $0xe] sm:$0x3] %vm185_vm2, %v176_v58  ;;  %v252_v60 = vadd.f32 %v247_v38, %v199_v59 }
  0xdc   :  { %v285_v21 = vld [vmem:[#allocation2 + $0x2] sm:$0x3]  ;;  %v366_v47 = vld [vmem:[#allocation2 + $0x4] sm:$0x3] }
  0xdd   :  { %v1665_v61 = vmul.f32 -1.442695, %v252_v60 }
  0xdf   :  { %1906 = vpow2.f32 %v1665_v61 }
  0xec   :  { %v1907_v62 = vpop.eup %1906 }
  0xed   :  { %v256_v63 = vadd.f32 1.0, %v1907_v62 }
  0xef   :  { %1908 = vrcp.f32 %v256_v63 }
  0xfc   :  { %v1909_v1 = vpop.eup %1908 }
  0xfd   :  { %v270_v8 = vsub.f32 1.0, %v1909_v1  ;;  %v276_v10 = vmul.f32 0.0, %v1909_v1 }
 0x140   :  { %v261_v2 = vpop.permute.xlu0 %260 }
 0x141   :  { %v263_v3 = vmul.f32 %v1909_v1, %v261_v2 }
 0x143   :  { %265 = vrot.lane.b32.xlu0 %v263_v3, %s2006_s17 }
 0x1b5   :  { %v266_v4 = vpop.permute.xlu0 %265 }
 0x1b6   :  { %v268_v5 = vadd.f32 %v266_v4, %v199_v59 }
 0x1b8   :  { %1910 = vtanh.f32 %v268_v5 }
 0x1c5   :  { %v1911_v6 = vpop.eup %1910 }
 0x1c6   :  { %272 = vrot.lane.b32.xlu1 %v1911_v6, %s2007_s2 }
 0x238   :  { %v273_v9 = vpop.permute.xlu1 %272 }
 0x239   :  { %v275_v11 = vmul.f32 %v273_v9, %v270_v8  ;;  %v447_v8 = vld [vmem:[#allocation2 + $0x6] sm:$0x3] }
 0x23b   :  { %v2158_v12 = vadd.f32 %v276_v10, %v275_v11 }
 0x23d   :  { %v286_v13 = vpack.c.bf16 %v2158_v12, %v2158_v12 }
 0x23f   :  { %288 = vrot.lane.b32.xlu1 %v286_v13, %s2007_s2 }
 0x2b1   :  { %v289_v14 = vpop.permute.xlu1 %288 }
 0x2b2   :  { %1777 = vmatmul.mubr.msk.bf16.vlgmr.msra.gmra.mxu0 %vm208_vm3, %v289_v14 }
 0x2b3   :  { %1789 = vmatpush3.bf16.msra.mxu0 %v2069_v7  ;;  %1792 = vmatprep.mubr.msk.bf16.mxu0 %vm2004_vm0, %v2002_v0 }
 0x2b4   :  { %1790 = vmatprep.subr.bf16.mxu0 %v2002_v0 }
 0x2b7   :  { %1791 = vmatpush3.bf16.msra.mxu0 %v2094_v16 }
 0x2b8   :  { %1804 = vmatprep.subr.bf16.mxu0 %v2002_v0 }
 0x372   :  { %v327_v15 = vpop.f32.mrf.mxu0 }
 0x373   :  { %v328_v17 = vadd.f32 %v2137_v36, %v327_v15 }
 0x374   :  { %v1778_v18 = vpop.f32.mrf.mxu0 }
 0x375   :  { %341 = vrot.lane.b32.xlu0 %v328_v17, %s2006_s17  ;;  %v333_v22 = vadd.f32 %v328_v17, %v285_v21 }
 0x376   :  { %v330_v19 = vpop.f32.mrf.mxu0 }
 0x377   :  { %v1667_v23 = vmul.f32 -1.442695, %v333_v22 }
 0x378   :  { %v1779_v20 = vpop.f32.mrf.mxu0 }
 0x379   :  { %1912 = vpow2.f32 %v1667_v23 }
 0x386   :  { %v1913_v24 = vpop.eup %1912 }
 0x387   :  { %v337_v25 = vadd.f32 1.0, %v1913_v24 }
 0x389   :  { %1914 = vrcp.f32 %v337_v25 }
 0x396   :  { %v1915_v26 = vpop.eup %1914 }
 0x397   :  { %v351_v34 = vsub.f32 1.0, %v1915_v26  ;;  %v357_v37 = vmul.f32 %v1915_v26, %v2158_v12 }
 0x3e7   :  { %v342_v28 = vpop.permute.xlu0 %341 }
 0x3e8   :  { %v344_v29 = vmul.f32 %v1915_v26, %v342_v28 }
 0x3ea   :  { %346 = vrot.lane.b32.xlu1 %v344_v29, %s2006_s17 }
 0x45c   :  { %v347_v30 = vpop.permute.xlu1 %346 }
 0x45d   :  { %v349_v31 = vadd.f32 %v347_v30, %v285_v21 }
 0x45f   :  { %1916 = vtanh.f32 %v349_v31 }
 0x46c   :  { %v1917_v33 = vpop.eup %1916 }
 0x46d   :  { %353 = vrot.lane.b32.xlu0 %v1917_v33, %s2007_s2 }
 0x4df   :  { %v354_v35 = vpop.permute.xlu0 %353 }
 0x4e0   :  { %v356_v38 = vmul.f32 %v354_v35, %v351_v34  ;;  %v528_v35 = vld [vmem:[#allocation2 + $0x8] sm:$0x3] }
 0x4e2   :  { %v2175_v39 = vadd.f32 %v357_v37, %v356_v38 }
 0x4e4   :  { %v367_v40 = vpack.c.bf16 %v2175_v39, %v2175_v39 }
 0x4e6   :  { %369 = vrot.lane.b32.xlu1 %v367_v40, %s2007_s2 }
 0x558   :  { %v370_v41 = vpop.permute.xlu1 %369 }
 0x559   :  { %1785 = vmatmul.mubr.msk.bf16.vlgmr.msra.gmra.mxu1 %vm208_vm3, %v370_v41 }
 0x55a   :  { %1797 = vmatpush3.bf16.msra.mxu1 %v2069_v7  ;;  %1800 = vmatprep.mubr.msk.bf16.mxu1 %vm2004_vm0, %v2002_v0 }
 0x55b   :  { %1798 = vmatprep.subr.bf16.mxu1 %v2002_v0 }
 0x55e   :  { %1799 = vmatpush3.bf16.msra.mxu1 %v2094_v16 }
 0x55f   :  { %1812 = vmatprep.subr.bf16.mxu1 %v2002_v0 }
 0x619   :  { %v408_v42 = vpop.f32.mrf.mxu1 }
 0x61a   :  { %v409_v43 = vadd.f32 %v2137_v36, %v408_v42 }
 0x61b   :  { %v1786_v44 = vpop.f32.mrf.mxu1 }
 0x61c   :  { %422 = vrot.lane.b32.xlu0 %v409_v43, %s2006_s17  ;;  %v414_v48 = vadd.f32 %v409_v43, %v366_v47 }
 0x61d   :  { %v411_v45 = vpop.f32.mrf.mxu1 }
 0x61e   :  { %v1669_v49 = vmul.f32 -1.442695, %v414_v48 }
 0x61f   :  { %v1787_v46 = vpop.f32.mrf.mxu1 }
 0x620   :  { %1918 = vpow2.f32 %v1669_v49 }
 0x62d   :  { %v1919_v50 = vpop.eup %1918 }
 0x62e   :  { %v418_v51 = vadd.f32 1.0, %v1919_v50 }
 0x630   :  { %1920 = vrcp.f32 %v418_v51 }
 0x63d   :  { %v1921_v52 = vpop.eup %1920 }
 0x63e   :  { %v432_v58 = vsub.f32 1.0, %v1921_v52  ;;  %v438_v60 = vmul.f32 %v1921_v52, %v2175_v39 }
 0x68e   :  { %v423_v53 = vpop.permute.xlu0 %422 }
 0x68f   :  { %v425_v54 = vmul.f32 %v1921_v52, %v423_v53 }
 0x691   :  { %427 = vrot.lane.b32.xlu1 %v425_v54, %s2006_s17 }
 0x703   :  { %v428_v55 = vpop.permute.xlu1 %427 }
 0x704   :  { %v430_v56 = vadd.f32 %v428_v55, %v366_v47 }
 0x706   :  { %1922 = vtanh.f32 %v430_v56 }
 0x713   :  { %v1923_v57 = vpop.eup %1922 }
 0x714   :  { %434 = vrot.lane.b32.xlu0 %v1923_v57, %s2007_s2 }
 0x786   :  { %v435_v59 = vpop.permute.xlu0 %434 }
 0x787   :  { %v437_v61 = vmul.f32 %v435_v59, %v432_v58 }
 0x789   :  { %v2192_v62 = vadd.f32 %v438_v60, %v437_v61  ;;  %v609_v60 = vld [vmem:[#allocation2 + $0xa] sm:$0x3] }
 0x78b   :  { %v448_v63 = vpack.c.bf16 %v2192_v62, %v2192_v62 }
 0x78d   :  { %450 = vrot.lane.b32.xlu1 %v448_v63, %s2007_s2 }
 0x7ff   :  { %v451_v1 = vpop.permute.xlu1 %450 }
 0x800   :  { %1793 = vmatmul.mubr.msk.bf16.vlgmr.msra.gmra.mxu0 %vm208_vm3, %v451_v1 }
 0x801   :  { %1805 = vmatpush3.bf16.msra.mxu0 %v2069_v7  ;;  %1808 = vmatprep.mubr.msk.bf16.mxu0 %vm2004_vm0, %v2002_v0 }
 0x802   :  { %1806 = vmatprep.subr.bf16.mxu0 %v2002_v0 }
 0x805   :  { %1807 = vmatpush3.bf16.msra.mxu0 %v2094_v16 }
 0x806   :  { %1820 = vmatprep.subr.bf16.mxu0 %v2002_v0 }
 0x8c0   :  { %v489_v2 = vpop.f32.mrf.mxu0 }
 0x8c1   :  { %v490_v3 = vadd.f32 %v2137_v36, %v489_v2 }
 0x8c2   :  { %v1794_v4 = vpop.f32.mrf.mxu0 }
 0x8c3   :  { %503 = vrot.lane.b32.xlu0 %v490_v3, %s2006_s17  ;;  %v495_v9 = vadd.f32 %v490_v3, %v447_v8 }
 0x8c4   :  { %v492_v5 = vpop.f32.mrf.mxu0 }
 0x8c5   :  { %v1671_v10 = vmul.f32 -1.442695, %v495_v9 }
 0x8c6   :  { %v1795_v6 = vpop.f32.mrf.mxu0 }
 0x8c7   :  { %1924 = vpow2.f32 %v1671_v10 }
 0x8d4   :  { %v1925_v11 = vpop.eup %1924 }
 0x8d5   :  { %v499_v13 = vadd.f32 1.0, %v1925_v11 }
 0x8d7   :  { %1926 = vrcp.f32 %v499_v13 }
 0x8e4   :  { %v1927_v14 = vpop.eup %1926 }
 0x8e5   :  { %v513_v21 = vsub.f32 1.0, %v1927_v14  ;;  %v519_v23 = vmul.f32 %v1927_v14, %v2192_v62 }
 0x935   :  { %v504_v15 = vpop.permute.xlu0 %503 }
 0x936   :  { %v506_v17 = vmul.f32 %v1927_v14, %v504_v15 }
 0x938   :  { %508 = vrot.lane.b32.xlu1 %v506_v17, %s2006_s17 }
 0x9aa   :  { %v509_v18 = vpop.permute.xlu1 %508 }
 0x9ab   :  { %v511_v19 = vadd.f32 %v509_v18, %v447_v8 }
 0x9ad   :  { %1928 = vtanh.f32 %v511_v19 }
 0x9ba   :  { %v1929_v20 = vpop.eup %1928 }
 0x9bb   :  { %515 = vrot.lane.b32.xlu0 %v1929_v20, %s2007_s2 }
 0xa2d   :  { %v516_v22 = vpop.permute.xlu0 %515 }
 0xa2e   :  { %v518_v24 = vmul.f32 %v516_v22, %v513_v21  ;;  %v690_v22 = vld [vmem:[#allocation2 + $0xc] sm:$0x3] }
 0xa30   :  { %v2209_v25 = vadd.f32 %v519_v23, %v518_v24 }
 0xa32   :  { %v529_v26 = vpack.c.bf16 %v2209_v25, %v2209_v25 }
 0xa34   :  { %531 = vrot.lane.b32.xlu1 %v529_v26, %s2007_s2 }
 0xaa6   :  { %v532_v28 = vpop.permute.xlu1 %531 }
 0xaa7   :  { %1801 = vmatmul.mubr.msk.bf16.vlgmr.msra.gmra.mxu1 %vm208_vm3, %v532_v28 }
 0xaa8   :  { %1813 = vmatpush3.bf16.msra.mxu1 %v2069_v7  ;;  %1816 = vmatprep.mubr.msk.bf16.mxu1 %vm2004_vm0, %v2002_v0 }
 0xaa9   :  { %1814 = vmatprep.subr.bf16.mxu1 %v2002_v0 }
 0xaac   :  { %1815 = vmatpush3.bf16.msra.mxu1 %v2094_v16 }
 0xaad   :  { %1828 = vmatprep.subr.bf16.mxu1 %v2002_v0 }
 0xb67   :  { %v570_v29 = vpop.f32.mrf.mxu1 }
 0xb68   :  { %v571_v30 = vadd.f32 %v2137_v36, %v570_v29 }
 0xb69   :  { %v1802_v31 = vpop.f32.mrf.mxu1 }
 0xb6a   :  { %584 = vrot.lane.b32.xlu0 %v571_v30, %s2006_s17  ;;  %v576_v37 = vadd.f32 %v571_v30, %v528_v35 }
 0xb6b   :  { %v573_v33 = vpop.f32.mrf.mxu1 }
 0xb6c   :  { %v1673_v38 = vmul.f32 -1.442695, %v576_v37 }
 0xb6d   :  { %v1803_v34 = vpop.f32.mrf.mxu1 }
 0xb6e   :  { %1930 = vpow2.f32 %v1673_v38 }
 0xb7b   :  { %v1931_v40 = vpop.eup %1930 }
 0xb7c   :  { %v580_v41 = vadd.f32 1.0, %v1931_v40 }
 0xb7e   :  { %1932 = vrcp.f32 %v580_v41 }
 0xb8b   :  { %v1933_v42 = vpop.eup %1932 }
 0xb8c   :  { %v594_v48 = vsub.f32 1.0, %v1933_v42  ;;  %v600_v50 = vmul.f32 %v1933_v42, %v2209_v25 }
 0xbdc   :  { %v585_v43 = vpop.permute.xlu0 %584 }
 0xbdd   :  { %v587_v44 = vmul.f32 %v1933_v42, %v585_v43 }
 0xbdf   :  { %589 = vrot.lane.b32.xlu1 %v587_v44, %s2006_s17 }
 0xc51   :  { %v590_v45 = vpop.permute.xlu1 %589 }
 0xc52   :  { %v592_v46 = vadd.f32 %v590_v45, %v528_v35 }
 0xc54   :  { %1934 = vtanh.f32 %v592_v46 }
 0xc61   :  { %v1935_v47 = vpop.eup %1934 }
 0xc62   :  { %596 = vrot.lane.b32.xlu0 %v1935_v47, %s2007_s2 }
 0xcd4   :  { %v597_v49 = vpop.permute.xlu0 %596 }
 0xcd5   :  { %v599_v51 = vmul.f32 %v597_v49, %v594_v48 }
 0xcd7   :  { %v2226_v52 = vadd.f32 %v600_v50, %v599_v51  ;;  %v771_v50 = vld [vmem:[#allocation2 + $0xe] sm:$0x3] }
 0xcd9   :  { %v610_v53 = vpack.c.bf16 %v2226_v52, %v2226_v52 }
 0xcdb   :  { %612 = vrot.lane.b32.xlu1 %v610_v53, %s2007_s2 }
 0xd4d   :  { %v613_v54 = vpop.permute.xlu1 %612 }
 0xd4e   :  { %1809 = vmatmul.mubr.msk.bf16.vlgmr.msra.gmra.mxu0 %vm208_vm3, %v613_v54 }
 0xd4f   :  { %1821 = vmatpush3.bf16.msra.mxu0 %v2069_v7  ;;  %1824 = vmatprep.mubr.msk.bf16.mxu0 %vm2004_vm0, %v2002_v0 }
 0xd50   :  { %1822 = vmatprep.subr.bf16.mxu0 %v2002_v0 }
 0xd53   :  { %1823 = vmatpush3.bf16.msra.mxu0 %v2094_v16 }
 0xd54   :  { %1836 = vmatprep.subr.bf16.mxu0 %v2002_v0 }
 0xe0e   :  { %v651_v55 = vpop.f32.mrf.mxu0 }
 0xe0f   :  { %v652_v56 = vadd.f32 %v2137_v36, %v651_v55 }
 0xe10   :  { %v1810_v57 = vpop.f32.mrf.mxu0 }
 0xe11   :  { %665 = vrot.lane.b32.xlu0 %v652_v56, %s2006_s17  ;;  %v657_v61 = vadd.f32 %v652_v56, %v609_v60 }
 0xe12   :  { %v654_v58 = vpop.f32.mrf.mxu0 }
 0xe13   :  { %v1675_v7 = vmul.f32 -1.442695, %v657_v61 }
 0xe14   :  { %v1811_v59 = vpop.f32.mrf.mxu0 }
 0xe15   :  { %1936 = vpow2.f32 %v1675_v7 }
 0xe22   :  { %v1937_v63 = vpop.eup %1936 }
 0xe23   :  { %v661_v1 = vadd.f32 1.0, %v1937_v63  ;;  %v1016_v63 = vld [vmem:[%s2519_s7 + $0x18] sm:$0xff] }
 0xe25   :  { %1938 = vrcp.f32 %v661_v1  ;;  %v1013_v1 = vld [vmem:[%s2519_s7] sm:$0xff] }
 0xe32   :  { %v1939_v2 = vpop.eup %1938 }
 0xe33   :  { %v675_v8 = vsub.f32 1.0, %v1939_v2  ;;  %v681_v10 = vmul.f32 %v1939_v2, %v2226_v52 }
 0xe83   :  { %v666_v3 = vpop.permute.xlu0 %665 }
 0xe84   :  { %v668_v16 = vmul.f32 %v1939_v2, %v666_v3  ;;  %v1014_v3 = vld [vmem:[%s2519_s7 + $0x8] sm:$0xff] }
 0xe86   :  { %670 = vrot.lane.b32.xlu1 %v668_v16, %s2006_s17  ;;  %v2295_v16 = vpack.c.bf16 %v1014_v3, %v1013_v1 }
 0xef8   :  { %v671_v4 = vpop.permute.xlu1 %670 }
 0xef9   :  { %v673_v5 = vadd.f32 %v671_v4, %v609_v60 }
 0xefb   :  { %1940 = vtanh.f32 %v673_v5  ;;  %v860_v5 = vld [vmem:[%s2520_s5 + $0x8] sm:$0xff] }
 0xf08   :  { %v1941_v6 = vpop.eup %1940 }
 0xf09   :  { %677 = vrot.lane.b32.xlu0 %v1941_v6, %s2007_s2 }
 0xf7b   :  { %v678_v9 = vpop.permute.xlu0 %677 }
 0xf7c   :  { %v680_v11 = vmul.f32 %v678_v9, %v675_v8 }
 0xf7e   :  { %v2243_v13 = vadd.f32 %v681_v10, %v680_v11 }
 0xf80   :  { %v691_v14 = vpack.c.bf16 %v2243_v13, %v2243_v13 }
 0xf82   :  { %693 = vrot.lane.b32.xlu1 %v691_v14, %s2007_s2 }
 0xff4   :  { %v694_v15 = vpop.permute.xlu1 %693 }
 0xff5   :  { %1817 = vmatmul.mubr.msk.bf16.vlgmr.msra.gmra.mxu1 %vm208_vm3, %v694_v15 }
 0xff6   :  { %1832 = vmatprep.mubr.msk.bf16.mxu1 %vm2004_vm0, %v2002_v0 }
0x10b5   :  { %v732_v17 = vpop.f32.mrf.mxu1 }
0x10b6   :  { %v733_v18 = vadd.f32 %v2137_v36, %v732_v17 }
0x10b7   :  { %v1818_v19 = vpop.f32.mrf.mxu1 }
0x10b8   :  { %746 = vrot.lane.b32.xlu0 %v733_v18, %s2006_s17  ;;  %v738_v23 = vadd.f32 %v733_v18, %v690_v22  ;;  %v2335_v18 = vld [vmem:[%s2521_s8] ss:$0 sm:$0xff] }
0x10b9   :  { %v735_v20 = vpop.f32.mrf.mxu1 }
0x10ba   :  { %v1677_v24 = vmul.f32 -1.442695, %v738_v23 }
0x10bb   :  { %v1819_v21 = vpop.f32.mrf.mxu1 }
0x10bc   :  { %1942 = vpow2.f32 %v1677_v24 }
0x10c9   :  { %v1943_v26 = vpop.eup %1942 }
0x10ca   :  { %v742_v28 = vadd.f32 1.0, %v1943_v26 }
0x10cc   :  { %1944 = vrcp.f32 %v742_v28 }
0x10d9   :  { %v1945_v29 = vpop.eup %1944 }
0x10da   :  { %v756_v37 = vsub.f32 1.0, %v1945_v29  ;;  %v762_v40 = vmul.f32 %v1945_v29, %v2243_v13 }
0x112a   :  { %v747_v30 = vpop.permute.xlu0 %746 }
0x112b   :  { %v749_v31 = vmul.f32 %v1945_v29, %v747_v30 }
0x112d   :  { %751 = vrot.lane.b32.xlu1 %v749_v31, %s2006_s17 }
0x119f   :  { %v752_v33 = vpop.permute.xlu1 %751 }
0x11a0   :  { %v754_v34 = vadd.f32 %v752_v33, %v690_v22 }
0x11a2   :  { %1946 = vtanh.f32 %v754_v34 }
0x11af   :  { %v1947_v35 = vpop.eup %1946 }
0x11b0   :  { %758 = vrot.lane.b32.xlu0 %v1947_v35, %s2007_s2 }
0x1222   :  { %v759_v38 = vpop.permute.xlu0 %758 }
0x1223   :  { %v761_v41 = vmul.f32 %v759_v38, %v756_v37 }
0x1225   :  { %v2256_v42 = vadd.f32 %v762_v40, %v761_v41 }
0x1227   :  { %v772_v43 = vpack.c.bf16 %v2256_v42, %v2256_v42 }
0x1229   :  { %774 = vrot.lane.b32.xlu1 %v772_v43, %s2007_s2 }
0x129b   :  { %v775_v44 = vpop.permute.xlu1 %774 }
0x129c   :  { %1825 = vmatmul.mubr.msk.bf16.vlgmr.msra.gmra.mxu0 %vm208_vm3, %v775_v44 }
0x129d   :  { %1840 = vmatprep.mubr.msk.bf16.mxu0 %vm2004_vm0, %v2002_v0 }
0x135c   :  { %v813_v45 = vpop.f32.mrf.mxu0 }
0x135d   :  { %v814_v46 = vadd.f32 %v2137_v36, %v813_v45 }
0x135e   :  { %v1826_v47 = vpop.f32.mrf.mxu0 }
0x135f   :  { %827 = vrot.lane.b32.xlu0 %v814_v46, %s2006_s17  ;;  %v819_v51 = vadd.f32 %v814_v46, %v771_v50 }
0x1360   :  { %v816_v48 = vpop.f32.mrf.mxu0 }
0x1361   :  { %v1679_v53 = vmul.f32 -1.442695, %v819_v51 }
0x1362   :  { %v1827_v49 = vpop.f32.mrf.mxu0 }
0x1363   :  { %1948 = vpow2.f32 %v1679_v53  ;;  %v1680_v49 = vld [vmem:[%s2522_s6] ss:$0 sm:$0xff] }
0x1370   :  { %v1949_v54 = vpop.eup %1948 }
0x1371   :  { %v823_v55 = vadd.f32 1.0, %v1949_v54 }
0x1373   :  { %1950 = vrcp.f32 %v823_v55 }
0x1380   :  { %v1951_v56 = vpop.eup %1950 }
0x1381   :  { %v837_v8 = vsub.f32 1.0, %v1951_v56  ;;  %v843_v10 = vmul.f32 %v1951_v56, %v2256_v42 }
0x13d1   :  { %v828_v57 = vpop.permute.xlu0 %827 }
0x13d2   :  { %v830_v58 = vmul.f32 %v1951_v56, %v828_v57 }
0x13d4   :  { %832 = vrot.lane.b32.xlu1 %v830_v58, %s2006_s17 }
0x13d8   :  { %279 = vrot.lane.b32.xlu1 %v2158_v12, %s2007_s2 }
0x13dc   :  { %441 = vrot.lane.b32.xlu1 %v2192_v62, %s2007_s2 }
0x13e0   :  { %603 = vrot.lane.b32.xlu1 %v2226_v52, %s2007_s2  ;;  %v1015_v52 = vld [vmem:[%s2519_s7 + $0x10] sm:$0xff] }
0x13e1   :  { %v2289_v2 = vpack.c.bf16 %v1016_v63, %v1015_v52 }
0x13e3   :  { %1837 = vmatpush3.bf16.msra.mxu0 %v2289_v2 }
0x13e4   :  { %765 = vrot.lane.b32.xlu1 %v2256_v42, %s2007_s2  ;;  %1838 = vmatprep.subr.bf16.mxu0 %v2002_v0 }
0x13e7   :  { %1839 = vmatpush3.bf16.msra.mxu0 %v2295_v16 }
0x13e8   :  { %1852 = vmatprep.subr.bf16.mxu0 %v2002_v0 }
0x13ea   :  { %1841 = vmatmul.mubr.bf16.vlgmr.msra.gmra.mxu0 %v2005_v32  ;;  %v862_v32 = vld [vmem:[%s2520_s5 + $0x18] sm:$0xff] }
0x13eb   :  { %1853 = vmatpush3.bf16.msra.mxu0 %v2289_v2  ;;  %1856 = vmatprep.mubr.msk.bf16.mxu0 %vm2004_vm0, %v2002_v0 }
0x13ec   :  { %1854 = vmatprep.subr.bf16.mxu0 %v2002_v0 }
0x13ef   :  { %1855 = vmatpush3.bf16.msra.mxu0 %v2295_v16 }
0x13f0   :  { %1868 = vmatprep.subr.bf16.mxu0 %v2002_v0 }
0x1446   :  { %v833_v36 = vpop.permute.xlu1 %832 }
0x1447   :  { %v835_v59 = vadd.f32 %v833_v36, %v771_v50 }
0x1449   :  { %1952 = vtanh.f32 %v835_v59 }
0x144a   :  { %v280_v60 = vpop.permute.xlu1 %279 }
0x144b   :  { %283 = vst.msk [vmem:[#allocation3] sm:$0x3] %vm282_vm4, %v280_v60 }
0x144e   :  { %v442_v61 = vpop.permute.xlu1 %441 }
0x144f   :  { %445 = vst.msk [vmem:[#allocation3 + $0x4] sm:$0x3] %vm282_vm4, %v442_v61 }
0x1452   :  { %v604_v12 = vpop.permute.xlu1 %603  ;;  %v851_v33 = vld [vmem:[#allocation3] sm:$0x3] }
0x1453   :  { %607 = vst.msk [vmem:[#allocation3 + $0x8] sm:$0x3] %vm282_vm4, %v604_v12 }
0x1456   :  { %v1953_v62 = vpop.eup %1952  ;;  %v766_v7 = vpop.permute.xlu1 %765  ;;  %v853_v29 = vld [vmem:[#allocation3 + $0x4] sm:$0x3] }
0x1457   :  { %769 = vst.msk [vmem:[#allocation3 + $0xc] sm:$0x3] %vm282_vm4, %v766_v7  ;;  %839 = vrot.lane.b32.xlu0 %v1953_v62, %s2007_s2 }
0x145a   :  { %v855_v34 = vld [vmem:[#allocation3 + $0x8] sm:$0x3] }
0x145b   :  { %360 = vrot.lane.b32.xlu0 %v2175_v39, %s2007_s2  ;;  %v861_v39 = vld [vmem:[%s2520_s5 + $0x10] sm:$0xff] }
0x145c   :  { %v909_v4 = vpack.c.bf16 %v862_v32, %v861_v39 }
0x145e   :  { %1829 = vmatpush3.bf16.msra.mxu1 %v909_v4  ;;  %v857_v38 = vld [vmem:[#allocation3 + $0xc] sm:$0x3] }
0x145f   :  { %522 = vrot.lane.b32.xlu0 %v2209_v25, %s2007_s2  ;;  %v859_v25 = vld [vmem:[%s2520_s5] sm:$0xff]  ;;  %1830 = vmatprep.subr.bf16.mxu1 %v2002_v0 }
0x1460   :  { %v908_v6 = vpack.c.bf16 %v860_v5, %v859_v25 }
0x1462   :  { %1831 = vmatpush3.bf16.msra.mxu1 %v908_v6 }
0x1463   :  { %684 = vrot.lane.b32.xlu0 %v2243_v13, %s2007_s2  ;;  %1844 = vmatprep.subr.bf16.mxu1 %v2002_v0 }
0x14aa   :  { %v1061_v19 = vpop.f32.mrf.mxu0 }
0x14ab   :  { %v1062_v20 = vadd.f32 %v2335_v18, %v1061_v19 }
0x14ac   :  { %v1842_v21 = vpop.f32.mrf.mxu0 }
0x14ad   :  { %1075 = vrot.lane.b32.xlu1 %v1062_v20, %s2006_s17 }
0x14ae   :  { %v1064_v22 = vpop.f32.mrf.mxu0 }
0x14b0   :  { %v1843_v23 = vpop.f32.mrf.mxu0 }
0x14c9   :  { %v840_v9 = vpop.permute.xlu0 %839 }
0x14ca   :  { %v842_v11 = vmul.f32 %v840_v9, %v837_v8 }
0x14cc   :  { %v844_v13 = vadd.f32 %v843_v10, %v842_v11 }
0x14cd   :  { %v361_v14 = vpop.permute.xlu0 %360 }
0x14ce   :  { %364 = vst.msk [vmem:[#allocation3 + $0x2] sm:$0x3] %vm282_vm4, %v361_v14  ;;  %846 = vrot.lane.b32.xlu0 %v844_v13, %s2007_s2 }
0x14d1   :  { %v523_v15 = vpop.permute.xlu0 %522 }
0x14d2   :  { %526 = vst.msk [vmem:[#allocation3 + $0x6] sm:$0x3] %vm282_vm4, %v523_v15 }
0x14d5   :  { %v685_v17 = vpop.permute.xlu0 %684  ;;  %v852_v28 = vld [vmem:[#allocation3 + $0x2] sm:$0x3] }
0x14d6   :  { %688 = vst.msk [vmem:[#allocation3 + $0xa] sm:$0x3] %vm282_vm4, %v685_v17  ;;  %v871_v35 = vcombine.low %v851_v33, %v852_v28 }
0x14d8   :  { %v879_v43 = vrot.slane %v871_v35, %v2113_v27 }
0x14d9   :  { %v854_v26 = vld [vmem:[#allocation3 + $0x6] sm:$0x3] }
0x14da   :  { %v872_v31 = vcombine.low %v853_v29, %v854_v26 }
0x14dc   :  { %v886_v41 = vrot.slane %v872_v31, %v2113_v27 }
0x14dd   :  { %v856_v30 = vld [vmem:[#allocation3 + $0xa] sm:$0x3] }
0x14de   :  { %v888_v37 = vcombine.low %v855_v34, %v856_v30  ;;  %v887_v46 = vcombine.low %v879_v43, %v886_v41 }
0x14e0   :  { %v896_v44 = vrot.slane %v888_v37, %v2113_v27 }
0x151f   :  { %v1076_v25 = vpop.permute.xlu1 %1075 }
0x1540   :  { %v847_v24 = vpop.permute.xlu0 %846 }
0x1541   :  { %850 = vst.msk [vmem:[#allocation3 + $0xe] sm:$0x3] %vm282_vm4, %v847_v24 }
0x1548   :  { %v858_v40 = vld [vmem:[#allocation3 + $0xe] sm:$0x3] }
0x1549   :  { %v889_v42 = vcombine.low %v857_v38, %v858_v40 }
0x154b   :  { %v903_v45 = vrot.slane %v889_v42, %v2113_v27 }
0x154d   :  { %v904_v47 = vcombine.low %v896_v44, %v903_v45 }
0x154f   :  { %v907_v48 = vpack.c.bf16 %v904_v47, %v887_v46 }
0x1551   :  { %1833 = vmatmul.mubr.msk.bf16.vlgmr.msra.gmra.mxu1 %vm208_vm3, %v907_v48 }
0x1552   :  { %1845 = vmatpush3.bf16.msra.mxu1 %v2289_v2  ;;  %1848 = vmatprep.mubr.msk.bf16.mxu1 %vm2004_vm0, %v2002_v0 }
0x1553   :  { %1846 = vmatprep.subr.bf16.mxu1 %v2002_v0 }
0x1556   :  { %1847 = vmatpush3.bf16.msra.mxu1 %v2295_v16 }
0x1557   :  { %1860 = vmatprep.subr.bf16.mxu1 %v2002_v0 }
0x1611   :  { %v954_v50 = vpop.f32.mrf.mxu1 }
0x1612   :  { %v955_v51 = vadd.f32 %v1680_v49, %v954_v50 }
0x1613   :  { %v1834_v53 = vpop.f32.mrf.mxu1 }
0x1614   :  { %v963_v54 = vcombine.high %v955_v51, %v955_v51  ;;  %v970_v55 = vrot.slane %v955_v51, %v2113_v27 }
0x1615   :  { %v957_v56 = vpop.f32.mrf.mxu1 }
0x1616   :  { %v977_v57 = vrot.slane %v963_v54, %v2113_v27  ;;  %v978_v58 = vcombine.high %v970_v55, %v970_v55  ;;  %1005 = vst.msk [vmem:[#allocation2] sm:$0x3] %vm185_vm2, %v970_v55  ;;  %v958_v36 = vadd.f32 %v1680_v49, %v957_v56 }
0x1617   :  { %v1835_v59 = vpop.f32.mrf.mxu1 }
0x1618   :  { %v979_v60 = vcombine.high %v977_v57, %v977_v57  ;;  %1006 = vst.msk [vmem:[#allocation2 + $0x2] sm:$0x3] %vm185_vm2, %v978_v58  ;;  %1007 = vst.msk [vmem:[#allocation2 + $0x4] sm:$0x3] %vm185_vm2, %v977_v57  ;;  %v980_v61 = vcombine.high %v958_v36, %v958_v36  ;;  %v987_v12 = vrot.slane %v958_v36, %v2113_v27 }
0x161a   :  { %1008 = vst.msk [vmem:[#allocation2 + $0x6] sm:$0x3] %vm185_vm2, %v979_v60  ;;  %v994_v62 = vrot.slane %v980_v61, %v2113_v27  ;;  %v995_v7 = vcombine.high %v987_v12, %v987_v12  ;;  %1009 = vst.msk [vmem:[#allocation2 + $0x8] sm:$0x3] %vm185_vm2, %v987_v12 }
0x161c   :  { %v996_v52 = vcombine.high %v994_v62, %v994_v62  ;;  %1010 = vst.msk [vmem:[#allocation2 + $0xa] sm:$0x3] %vm185_vm2, %v995_v7  ;;  %1011 = vst.msk [vmem:[#allocation2 + $0xc] sm:$0x3] %vm185_vm2, %v994_v62 }
0x161d   :  { %v1018_v63 = vld [vmem:[#allocation2] sm:$0x3] }
0x161e   :  { %1012 = vst.msk [vmem:[#allocation2 + $0xe] sm:$0x3] %vm185_vm2, %v996_v52  ;;  %v1067_v1 = vadd.f32 %v1062_v20, %v1018_v63 }
0x161f   :  { %v1098_v24 = vld [vmem:[#allocation2 + $0x2] sm:$0x3]  ;;  %v1178_v53 = vld [vmem:[#allocation2 + $0x4] sm:$0x3] }
0x1620   :  { %v1683_v3 = vmul.f32 -1.442695, %v1067_v1 }
0x1622   :  { %1954 = vpow2.f32 %v1683_v3 }
0x162f   :  { %v1955_v39 = vpop.eup %1954 }
0x1630   :  { %v1071_v32 = vadd.f32 1.0, %v1955_v39 }
0x1632   :  { %1956 = vrcp.f32 %v1071_v32 }
0x163f   :  { %v1957_v4 = vpop.eup %1956 }
0x1640   :  { %v1078_v27 = vmul.f32 %v1957_v4, %v1076_v25  ;;  %v1085_v9 = vsub.f32 1.0, %v1957_v4  ;;  %v1091_v11 = vmul.f32 0.0, %v1957_v4 }
0x1642   :  { %1080 = vrot.lane.b32.xlu0 %v1078_v27, %s2006_s17 }
0x16b4   :  { %v1081_v5 = vpop.permute.xlu0 %1080 }
0x16b5   :  { %v1083_v6 = vadd.f32 %v1081_v5, %v1018_v63 }
0x16b7   :  { %1958 = vtanh.f32 %v1083_v6  ;;  %v1258_v6 = vld [vmem:[#allocation2 + $0x6] sm:$0x3] }
0x16c4   :  { %v1959_v8 = vpop.eup %1958 }
0x16c5   :  { %1087 = vrot.lane.b32.xlu1 %v1959_v8, %s2007_s2 }
0x1737   :  { %v1088_v10 = vpop.permute.xlu1 %1087 }
0x1738   :  { %v1090_v13 = vmul.f32 %v1088_v10, %v1085_v9 }
0x173a   :  { %v2368_v14 = vadd.f32 %v1091_v11, %v1090_v13 }
0x173c   :  { %v1099_v15 = vpack.c.bf16 %v2368_v14, %v2368_v14 }
0x173e   :  { %1101 = vrot.lane.b32.xlu0 %v1099_v15, %s2007_s2 }
0x17b0   :  { %v1102_v17 = vpop.permute.xlu0 %1101 }
0x17b1   :  { %1849 = vmatmul.mubr.msk.bf16.vlgmr.msra.gmra.mxu1 %vm208_vm3, %v1102_v17 }
0x17b2   :  { %1861 = vmatpush3.bf16.msra.mxu1 %v2289_v2  ;;  %1864 = vmatprep.mubr.msk.bf16.mxu1 %vm2004_vm0, %v2002_v0 }
0x17b3   :  { %1862 = vmatprep.subr.bf16.mxu1 %v2002_v0 }
0x17b6   :  { %1863 = vmatpush3.bf16.msra.mxu1 %v2295_v16 }
0x17b7   :  { %1876 = vmatprep.subr.bf16.mxu1 %v2002_v0 }
0x1871   :  { %v1140_v19 = vpop.f32.mrf.mxu1 }
0x1872   :  { %v1141_v20 = vadd.f32 %v2335_v18, %v1140_v19 }
0x1873   :  { %v1850_v21 = vpop.f32.mrf.mxu1 }
0x1874   :  { %1154 = vrot.lane.b32.xlu1 %v1141_v20, %s2006_s17  ;;  %v1146_v26 = vadd.f32 %v1141_v20, %v1098_v24 }
0x1875   :  { %v1143_v22 = vpop.f32.mrf.mxu1 }
0x1876   :  { %v1685_v28 = vmul.f32 -1.442695, %v1146_v26 }
0x1877   :  { %v1851_v23 = vpop.f32.mrf.mxu1 }
0x1878   :  { %1960 = vpow2.f32 %v1685_v28 }
0x1885   :  { %v1961_v29 = vpop.eup %1960 }
0x1886   :  { %v1150_v30 = vadd.f32 1.0, %v1961_v29 }
0x1888   :  { %1962 = vrcp.f32 %v1150_v30 }
0x1895   :  { %v1963_v31 = vpop.eup %1962 }
0x1896   :  { %v1164_v40 = vsub.f32 1.0, %v1963_v31  ;;  %v1170_v42 = vmul.f32 %v1963_v31, %v2368_v14 }
0x18e6   :  { %v1155_v33 = vpop.permute.xlu1 %1154 }
0x18e7   :  { %v1157_v34 = vmul.f32 %v1963_v31, %v1155_v33 }
0x18e9   :  { %1159 = vrot.lane.b32.xlu0 %v1157_v34, %s2006_s17 }
0x195b   :  { %v1160_v35 = vpop.permute.xlu0 %1159 }
0x195c   :  { %v1162_v37 = vadd.f32 %v1160_v35, %v1098_v24 }
0x195e   :  { %1964 = vtanh.f32 %v1162_v37 }
0x196b   :  { %v1965_v38 = vpop.eup %1964 }
0x196c   :  { %1166 = vrot.lane.b32.xlu1 %v1965_v38, %s2007_s2  ;;  %v1338_v38 = vld [vmem:[#allocation2 + $0x8] sm:$0x3] }
0x19de   :  { %v1167_v41 = vpop.permute.xlu1 %1166 }
0x19df   :  { %v1169_v43 = vmul.f32 %v1167_v41, %v1164_v40 }
0x19e1   :  { %v2385_v44 = vadd.f32 %v1170_v42, %v1169_v43 }
0x19e3   :  { %v1179_v45 = vpack.c.bf16 %v2385_v44, %v2385_v44 }
0x19e5   :  { %1181 = vrot.lane.b32.xlu0 %v1179_v45, %s2007_s2 }
0x1a57   :  { %v1182_v46 = vpop.permute.xlu0 %1181 }
0x1a58   :  { %1857 = vmatmul.mubr.msk.bf16.vlgmr.msra.gmra.mxu0 %vm208_vm3, %v1182_v46 }
0x1a59   :  { %1869 = vmatpush3.bf16.msra.mxu0 %v2289_v2  ;;  %1872 = vmatprep.mubr.msk.bf16.mxu0 %vm2004_vm0, %v2002_v0 }
0x1a5a   :  { %1870 = vmatprep.subr.bf16.mxu0 %v2002_v0 }
0x1a5d   :  { %1871 = vmatpush3.bf16.msra.mxu0 %v2295_v16 }
0x1a5e   :  { %1884 = vmatprep.subr.bf16.mxu0 %v2002_v0 }
0x1b18   :  { %v1220_v47 = vpop.f32.mrf.mxu0 }
0x1b19   :  { %v1221_v48 = vadd.f32 %v2335_v18, %v1220_v47 }
0x1b1a   :  { %v1858_v49 = vpop.f32.mrf.mxu0 }
0x1b1b   :  { %1234 = vrot.lane.b32.xlu1 %v1221_v48, %s2006_s17  ;;  %v1226_v54 = vadd.f32 %v1221_v48, %v1178_v53 }
0x1b1c   :  { %v1223_v50 = vpop.f32.mrf.mxu0 }
0x1b1d   :  { %v1688_v55 = vmul.f32 -1.442695, %v1226_v54 }
0x1b1e   :  { %v1859_v51 = vpop.f32.mrf.mxu0 }
0x1b1f   :  { %1966 = vpow2.f32 %v1688_v55 }
0x1b2c   :  { %v1967_v56 = vpop.eup %1966 }
0x1b2d   :  { %v1230_v57 = vadd.f32 1.0, %v1967_v56 }
0x1b2f   :  { %1968 = vrcp.f32 %v1230_v57 }
0x1b3c   :  { %v1969_v58 = vpop.eup %1968 }
0x1b3d   :  { %v1244_v62 = vsub.f32 1.0, %v1969_v58  ;;  %v1250_v52 = vmul.f32 %v1969_v58, %v2385_v44 }
0x1b8d   :  { %v1235_v36 = vpop.permute.xlu1 %1234 }
0x1b8e   :  { %v1237_v59 = vmul.f32 %v1969_v58, %v1235_v36 }
0x1b90   :  { %1239 = vrot.lane.b32.xlu0 %v1237_v59, %s2006_s17 }
0x1c02   :  { %v1240_v60 = vpop.permute.xlu0 %1239 }
0x1c03   :  { %v1242_v61 = vadd.f32 %v1240_v60, %v1178_v53 }
0x1c05   :  { %1970 = vtanh.f32 %v1242_v61 }
0x1c12   :  { %v1971_v12 = vpop.eup %1970 }
0x1c13   :  { %1246 = vrot.lane.b32.xlu1 %v1971_v12, %s2007_s2 }
0x1c85   :  { %v1247_v7 = vpop.permute.xlu1 %1246 }
0x1c86   :  { %v1249_v63 = vmul.f32 %v1247_v7, %v1244_v62  ;;  %v1418_v62 = vld [vmem:[#allocation2 + $0xa] sm:$0x3] }
0x1c88   :  { %v2402_v1 = vadd.f32 %v1250_v52, %v1249_v63 }
0x1c8a   :  { %v1259_v3 = vpack.c.bf16 %v2402_v1, %v2402_v1 }
0x1c8c   :  { %1261 = vrot.lane.b32.xlu0 %v1259_v3, %s2007_s2 }
0x1cfe   :  { %v1262_v39 = vpop.permute.xlu0 %1261 }
0x1cff   :  { %1865 = vmatmul.mubr.msk.bf16.vlgmr.msra.gmra.mxu1 %vm208_vm3, %v1262_v39 }
0x1d00   :  { %1877 = vmatpush3.bf16.msra.mxu1 %v2289_v2  ;;  %1880 = vmatprep.mubr.msk.bf16.mxu1 %vm2004_vm0, %v2002_v0 }
0x1d01   :  { %1878 = vmatprep.subr.bf16.mxu1 %v2002_v0 }
0x1d04   :  { %1879 = vmatpush3.bf16.msra.mxu1 %v2295_v16 }
0x1d05   :  { %1892 = vmatprep.subr.bf16.mxu1 %v2002_v0 }
0x1dbf   :  { %v1300_v32 = vpop.f32.mrf.mxu1 }
0x1dc0   :  { %v1301_v25 = vadd.f32 %v2335_v18, %v1300_v32 }
0x1dc1   :  { %v1866_v4 = vpop.f32.mrf.mxu1 }
0x1dc2   :  { %1314 = vrot.lane.b32.xlu1 %v1301_v25, %s2006_s17  ;;  %v1306_v8 = vadd.f32 %v1301_v25, %v1258_v6 }
0x1dc3   :  { %v1303_v27 = vpop.f32.mrf.mxu1 }
0x1dc4   :  { %v1691_v9 = vmul.f32 -1.442695, %v1306_v8 }
0x1dc5   :  { %v1867_v5 = vpop.f32.mrf.mxu1 }
0x1dc6   :  { %1972 = vpow2.f32 %v1691_v9 }
0x1dd3   :  { %v1973_v10 = vpop.eup %1972 }
0x1dd4   :  { %v1310_v11 = vadd.f32 1.0, %v1973_v10 }
0x1dd6   :  { %1974 = vrcp.f32 %v1310_v11 }
0x1de3   :  { %v1975_v13 = vpop.eup %1974 }
0x1de4   :  { %v1324_v22 = vsub.f32 1.0, %v1975_v13  ;;  %v1330_v24 = vmul.f32 %v1975_v13, %v2402_v1 }
0x1e34   :  { %v1315_v15 = vpop.permute.xlu1 %1314 }
0x1e35   :  { %v1317_v17 = vmul.f32 %v1975_v13, %v1315_v15 }
0x1e37   :  { %1319 = vrot.lane.b32.xlu0 %v1317_v17, %s2006_s17 }
0x1ea9   :  { %v1320_v19 = vpop.permute.xlu0 %1319 }
0x1eaa   :  { %v1322_v20 = vadd.f32 %v1320_v19, %v1258_v6 }
0x1eac   :  { %1976 = vtanh.f32 %v1322_v20  ;;  %v1498_v20 = vld [vmem:[#allocation2 + $0xc] sm:$0x3] }
0x1eb9   :  { %v1977_v21 = vpop.eup %1976 }
0x1eba   :  { %1326 = vrot.lane.b32.xlu1 %v1977_v21, %s2007_s2 }
0x1f2c   :  { %v1327_v23 = vpop.permute.xlu1 %1326 }
0x1f2d   :  { %v1329_v26 = vmul.f32 %v1327_v23, %v1324_v22 }
0x1f2f   :  { %v2419_v28 = vadd.f32 %v1330_v24, %v1329_v26 }
0x1f31   :  { %v1339_v29 = vpack.c.bf16 %v2419_v28, %v2419_v28 }
0x1f33   :  { %1341 = vrot.lane.b32.xlu0 %v1339_v29, %s2007_s2 }
0x1fa5   :  { %v1342_v30 = vpop.permute.xlu0 %1341 }
0x1fa6   :  { %1873 = vmatmul.mubr.msk.bf16.vlgmr.msra.gmra.mxu0 %vm208_vm3, %v1342_v30 }
0x1fa7   :  { %1885 = vmatpush3.bf16.msra.mxu0 %v2289_v2  ;;  %1888 = vmatprep.mubr.msk.bf16.mxu0 %vm2004_vm0, %v2002_v0 }
0x1fa8   :  { %1886 = vmatprep.subr.bf16.mxu0 %v2002_v0 }
0x1fab   :  { %1887 = vmatpush3.bf16.msra.mxu0 %v2295_v16 }
0x2066   :  { %v1380_v31 = vpop.f32.mrf.mxu0 }
0x2067   :  { %v1381_v33 = vadd.f32 %v2335_v18, %v1380_v31 }
0x2068   :  { %v1874_v34 = vpop.f32.mrf.mxu0 }
0x2069   :  { %1394 = vrot.lane.b32.xlu1 %v1381_v33, %s2006_s17  ;;  %v1386_v40 = vadd.f32 %v1381_v33, %v1338_v38 }
0x206a   :  { %v1383_v35 = vpop.f32.mrf.mxu0 }
0x206b   :  { %v1694_v41 = vmul.f32 -1.442695, %v1386_v40 }
0x206c   :  { %v1875_v37 = vpop.f32.mrf.mxu0 }
0x206d   :  { %1978 = vpow2.f32 %v1694_v41 }
0x207a   :  { %v1979_v42 = vpop.eup %1978 }
0x207b   :  { %v1390_v43 = vadd.f32 1.0, %v1979_v42 }
0x207d   :  { %1980 = vrcp.f32 %v1390_v43 }
0x208a   :  { %v1981_v45 = vpop.eup %1980 }
0x208b   :  { %v1404_v51 = vsub.f32 1.0, %v1981_v45  ;;  %v1410_v54 = vmul.f32 %v1981_v45, %v2419_v28 }
0x20db   :  { %v1395_v46 = vpop.permute.xlu1 %1394 }
0x20dc   :  { %v1397_v47 = vmul.f32 %v1981_v45, %v1395_v46 }
0x20de   :  { %1399 = vrot.lane.b32.xlu0 %v1397_v47, %s2006_s17 }
0x2150   :  { %v1400_v48 = vpop.permute.xlu0 %1399 }
0x2151   :  { %v1402_v49 = vadd.f32 %v1400_v48, %v1338_v38 }
0x2153   :  { %1982 = vtanh.f32 %v1402_v49 }
0x2160   :  { %v1983_v50 = vpop.eup %1982 }
0x2161   :  { %1406 = vrot.lane.b32.xlu1 %v1983_v50, %s2007_s2  ;;  %v1578_v50 = vld [vmem:[#allocation2 + $0xe] sm:$0x3] }
0x21d3   :  { %v1407_v53 = vpop.permute.xlu1 %1406 }
0x21d4   :  { %v1409_v55 = vmul.f32 %v1407_v53, %v1404_v51 }
0x21d6   :  { %v2435_v56 = vadd.f32 %v1410_v54, %v1409_v55 }
0x21d8   :  { %v1419_v57 = vpack.c.bf16 %v2435_v56, %v2435_v56 }
0x21da   :  { %1421 = vrot.lane.b32.xlu0 %v1419_v57, %s2007_s2 }
0x224c   :  { %v1422_v58 = vpop.permute.xlu0 %1421 }
0x224d   :  { %1881 = vmatmul.mubr.msk.bf16.vlgmr.msra.gmra.mxu1 %vm208_vm3, %v1422_v58 }
0x224e   :  { %1893 = vmatpush3.bf16.msra.mxu1 %v2289_v2  ;;  %1896 = vmatprep.mubr.msk.bf16.mxu1 %vm2004_vm0, %v2002_v0 }
0x224f   :  { %1894 = vmatprep.subr.bf16.mxu1 %v2002_v0 }
0x2252   :  { %1895 = vmatpush3.bf16.msra.mxu1 %v2295_v16 }
0x230d   :  { %v1460_v36 = vpop.f32.mrf.mxu1 }
0x230e   :  { %v1461_v59 = vadd.f32 %v2335_v18, %v1460_v36 }
0x230f   :  { %v1882_v60 = vpop.f32.mrf.mxu1 }
0x2310   :  { %1474 = vrot.lane.b32.xlu1 %v1461_v59, %s2006_s17  ;;  %v1466_v7 = vadd.f32 %v1461_v59, %v1418_v62 }
0x2311   :  { %v1463_v61 = vpop.f32.mrf.mxu1 }
0x2312   :  { %v1697_v52 = vmul.f32 -1.442695, %v1466_v7 }
0x2313   :  { %v1883_v12 = vpop.f32.mrf.mxu1 }
0x2314   :  { %1984 = vpow2.f32 %v1697_v52 }
0x2321   :  { %v1985_v2 = vpop.eup %1984 }
0x2322   :  { %v1470_v63 = vadd.f32 1.0, %v1985_v2 }
0x2324   :  { %1986 = vrcp.f32 %v1470_v63 }
0x2331   :  { %v1987_v3 = vpop.eup %1986 }
0x2332   :  { %v1484_v4 = vsub.f32 1.0, %v1987_v3  ;;  %v1490_v5 = vmul.f32 %v1987_v3, %v2435_v56 }
0x2382   :  { %v1475_v39 = vpop.permute.xlu1 %1474 }
0x2383   :  { %v1477_v0 = vmul.f32 %v1987_v3, %v1475_v39 }
0x2385   :  { %1479 = vrot.lane.b32.xlu0 %v1477_v0, %s2006_s17 }
0x23f7   :  { %v1480_v16 = vpop.permute.xlu0 %1479 }
0x23f8   :  { %v1482_v32 = vadd.f32 %v1480_v16, %v1418_v62 }
0x23fa   :  { %1988 = vtanh.f32 %v1482_v32 }
0x2407   :  { %v1989_v25 = vpop.eup %1988 }
0x2408   :  { %1486 = vrot.lane.b32.xlu1 %v1989_v25, %s2007_s2 }
0x247a   :  { %v1487_v27 = vpop.permute.xlu1 %1486 }
0x247b   :  { %v1489_v6 = vmul.f32 %v1487_v27, %v1484_v4 }
0x247d   :  { %v2451_v8 = vadd.f32 %v1490_v5, %v1489_v6 }
0x247f   :  { %v1499_v9 = vpack.c.bf16 %v2451_v8, %v2451_v8 }
0x2481   :  { %1501 = vrot.lane.b32.xlu0 %v1499_v9, %s2007_s2 }
0x24f3   :  { %v1502_v10 = vpop.permute.xlu0 %1501 }
0x24f4   :  { %1889 = vmatmul.mubr.msk.bf16.vlgmr.msra.gmra.mxu0 %vm208_vm3, %v1502_v10 }
0x25b4   :  { %v1540_v11 = vpop.f32.mrf.mxu0 }
0x25b5   :  { %v1541_v13 = vadd.f32 %v2335_v18, %v1540_v11 }
0x25b6   :  { %v1890_v15 = vpop.f32.mrf.mxu0 }
0x25b7   :  { %1554 = vrot.lane.b32.xlu1 %v1541_v13, %s2006_s17  ;;  %v1546_v21 = vadd.f32 %v1541_v13, %v1498_v20 }
0x25b8   :  { %v1543_v17 = vpop.f32.mrf.mxu0 }
0x25b9   :  { %v1700_v22 = vmul.f32 -1.442695, %v1546_v21 }
0x25ba   :  { %v1891_v19 = vpop.f32.mrf.mxu0 }
0x25bb   :  { %1990 = vpow2.f32 %v1700_v22 }
0x25c8   :  { %v1991_v23 = vpop.eup %1990 }
0x25c9   :  { %v1550_v24 = vadd.f32 1.0, %v1991_v23 }
0x25cb   :  { %1992 = vrcp.f32 %v1550_v24 }
0x25d8   :  { %v1993_v26 = vpop.eup %1992 }
0x25d9   :  { %v1564_v35 = vsub.f32 1.0, %v1993_v26  ;;  %v1570_v38 = vmul.f32 %v1993_v26, %v2451_v8 }
0x2629   :  { %v1555_v29 = vpop.permute.xlu1 %1554 }
0x262a   :  { %v1557_v30 = vmul.f32 %v1993_v26, %v1555_v29 }
0x262c   :  { %1559 = vrot.lane.b32.xlu0 %v1557_v30, %s2006_s17 }
0x269e   :  { %v1560_v31 = vpop.permute.xlu0 %1559 }
0x269f   :  { %v1562_v33 = vadd.f32 %v1560_v31, %v1498_v20 }
0x26a1   :  { %1994 = vtanh.f32 %v1562_v33 }
0x26ae   :  { %v1995_v34 = vpop.eup %1994 }
0x26af   :  { %1566 = vrot.lane.b32.xlu1 %v1995_v34, %s2007_s2 }
0x2721   :  { %v1567_v37 = vpop.permute.xlu1 %1566 }
0x2722   :  { %v1569_v40 = vmul.f32 %v1567_v37, %v1564_v35 }
0x2724   :  { %v1571_v41 = vadd.f32 %v1570_v38, %v1569_v40 }
0x2726   :  { %v1579_v42 = vpack.c.bf16 %v1571_v41, %v1571_v41 }
0x2728   :  { %1581 = vrot.lane.b32.xlu0 %v1579_v42, %s2007_s2 }
0x279a   :  { %v1582_v43 = vpop.permute.xlu0 %1581 }
0x279b   :  { %1897 = vmatmul.mubr.msk.bf16.vlgmr.msra.gmra.mxu1 %vm208_vm3, %v1582_v43 }
0x285b   :  { %v1620_v45 = vpop.f32.mrf.mxu1 }
0x285c   :  { %v1621_v46 = vadd.f32 %v2335_v18, %v1620_v45 }
0x285d   :  { %v1898_v47 = vpop.f32.mrf.mxu1 }
0x285e   :  { %1634 = vrot.lane.b32.xlu1 %v1621_v46, %s2006_s17  ;;  %v1626_v51 = vadd.f32 %v1621_v46, %v1578_v50 }
0x285f   :  { %v1623_v48 = vpop.f32.mrf.mxu1 }
0x2860   :  { %v1703_v53 = vmul.f32 -1.442695, %v1626_v51 }
0x2861   :  { %v1899_v49 = vpop.f32.mrf.mxu1 }
0x2862   :  { %1996 = vpow2.f32 %v1703_v53 }
0x286f   :  { %v1997_v54 = vpop.eup %1996 }
0x2870   :  { %v1630_v55 = vadd.f32 1.0, %v1997_v54 }
0x2872   :  { %1998 = vrcp.f32 %v1630_v55 }
0x287f   :  { %v1999_v57 = vpop.eup %1998 }
0x2880   :  { %v1644_v12 = vsub.f32 1.0, %v1999_v57  ;;  %v1650_v7 = vmul.f32 %v1999_v57, %v1571_v41 }
0x28d0   :  { %v1635_v58 = vpop.permute.xlu1 %1634 }
0x28d1   :  { %v1637_v36 = vmul.f32 %v1999_v57, %v1635_v58 }
0x28d3   :  { %1639 = vrot.lane.b32.xlu0 %v1637_v36, %s2006_s17 }
0x28d7   :  { %1094 = vrot.lane.b32.xlu0 %v2368_v14, %s2007_s2 }
0x28db   :  { %1253 = vrot.lane.b32.xlu0 %v2402_v1, %s2007_s2 }
0x28df   :  { %1413 = vrot.lane.b32.xlu0 %v2435_v56, %s2007_s2 }
0x28e3   :  { %1573 = vrot.lane.b32.xlu0 %v1571_v41, %s2007_s2 }
0x2945   :  { %v1640_v18 = vpop.permute.xlu0 %1639 }
0x2946   :  { %v1642_v59 = vadd.f32 %v1640_v18, %v1578_v50 }
0x2948   :  { %2000 = vtanh.f32 %v1642_v59 }
0x2949   :  { %v1095_v60 = vpop.permute.xlu0 %1094 }
0x294a   :  { %1097 = vst.msk [vmem:[%s2523_s9] sm:$0x3] %vm282_vm4, %v1095_v60 }
0x294d   :  { %v1254_v61 = vpop.permute.xlu0 %1253 }
0x294e   :  { %1689 = vst.msk [vmem:[%s2523_s9 + $0x4] sm:$0x3] %vm282_vm4, %v1254_v61 }
0x2951   :  { %v1414_v14 = vpop.permute.xlu0 %1413 }
0x2952   :  { %1695 = vst.msk [vmem:[%s2523_s9 + $0x8] sm:$0x3] %vm282_vm4, %v1414_v14 }
0x2955   :  { %v2001_v1 = vpop.eup %2000  ;;  %v1574_v56 = vpop.permute.xlu0 %1573 }
0x2956   :  { %1701 = vst.msk [vmem:[%s2523_s9 + $0xc] sm:$0x3] %vm282_vm4, %v1574_v56  ;;  %1646 = vrot.lane.b32.xlu1 %v2001_v1, %s2007_s2 }
0x295a   :  { %1173 = vrot.lane.b32.xlu1 %v2385_v44, %s2007_s2 }
0x295e   :  { %1333 = vrot.lane.b32.xlu1 %v2419_v28, %s2007_s2 }
0x2962   :  { %1493 = vrot.lane.b32.xlu1 %v2451_v8, %s2007_s2 }
0x29c8   :  { %v1647_v62 = vpop.permute.xlu1 %1646 }
0x29c9   :  { %v1649_v52 = vmul.f32 %v1647_v62, %v1644_v12 }
0x29cb   :  { %v1651_v2 = vadd.f32 %v1650_v7, %v1649_v52 }
0x29cc   :  { %v1174_v63 = vpop.permute.xlu1 %1173 }
0x29cd   :  { %1686 = vst.msk [vmem:[%s2523_s9 + $0x2] sm:$0x3] %vm282_vm4, %v1174_v63  ;;  %1653 = vrot.lane.b32.xlu1 %v1651_v2, %s2007_s2 }
0x29d0   :  { %v1334_v44 = vpop.permute.xlu1 %1333 }
0x29d1   :  { %1692 = vst.msk [vmem:[%s2523_s9 + $0x6] sm:$0x3] %vm282_vm4, %v1334_v44 }
0x29d4   :  { %v1494_v28 = vpop.permute.xlu1 %1493 }
0x29d5   :  { %1698 = vst.msk [vmem:[%s2523_s9 + $0xa] sm:$0x3] %vm282_vm4, %v1494_v28 }
0x2a3f   :  { %v1654_v3 = vpop.permute.xlu1 %1653 }
0x2a40   :  { %1704 = vst.msk [vmem:[%s2523_s9 + $0xe] sm:$0x3] %vm282_vm4, %v1654_v3 }

// kernel: vqvae_forward.13
= control target key start
LH: loop header
LB: loop body
LE: loop exit
PB: predicated region body
PF: predicated region fallthrough
CT: control target
= control target key end

     0   :  { %v148_v3 = vmov 0.0   ;;  %vm149_vm0 = vmmov 0   ;;  %s209_s0 = inlined_call_operand.vmem [shape: f32[16,64], index: 0, kind: input, shape index: {}]   ;;  %s210_s1 = inlined_call_operand.vmem [shape: f32[64,16], index: 1, kind: input, shape index: {}]   ;;  %s211_s2 = inlined_call_operand.vmem [shape: f32[1,16], index: 2, kind: input, shape index: {}]   ;;  %s212_s3 = inlined_call_operand.hbm [shape: f32[16,16], index: 3, kind: output, shape index: {}]  }
   0x1   :  { %v24_v0 = vld [vmem:[%s210_s1 + $0x30] sm:$0xff]  ;;  %v25_v1 = vld [vmem:[%s210_s1 + $0x38] sm:$0xff]  ;;  %v22_v2 = vld [vmem:[%s210_s1 + $0x20] sm:$0xff]  ;;  %109 = vmatprep.subr.bf16.mxu0 %v148_v3  ;;  %117 = vmatprep.mubr.msk.bf16.mxu0 %vm149_vm0, %v148_v3 }
   0x2   :  { %v30_v4 = vpack.c.bf16 %v25_v1, %v24_v0  ;;  %v23_v5 = vld [vmem:[%s210_s1 + $0x28] sm:$0xff] }
   0x3   :  { %v29_v6 = vpack.c.bf16 %v23_v5, %v22_v2 }
   0x4   :  { %110 = vmatpush3.bf16.msra.mxu0 %v30_v4 }
   0x5   :  { %8 = vsyncpa [#allocation3], 0  ;;  %111 = vmatprep.subr.bf16.mxu0 %v148_v3  ;;  %v20_v7 = vld [vmem:[%s210_s1 + $0x10] sm:$0xff]  ;;  %v21_v8 = vld [vmem:[%s210_s1 + $0x18] sm:$0xff]  ;;  %vm38_vm1 = vcmask 523264   ;;  %vm83_vm2 = vcmask 130048  }
   0x6   :  { %v28_v9 = vpack.c.bf16 %v21_v8, %v20_v7  ;;  %v18_v10 = vld [vmem:[%s210_s1] sm:$0xff]  ;;  %v19_v11 = vld [vmem:[%s210_s1 + $0x8] sm:$0xff]  ;;  %s150_s1 = smov [#allocation2]  }
   0x7   :  { %v27_v12 = vpack.c.bf16 %v19_v11, %v18_v10  ;;  %v16_v13 = vld [vmem:[%s209_s0] sm:$0xff]  ;;  %v17_v14 = vld [vmem:[%s209_s0 + $0x8] sm:$0xff]  ;;  %s91_s7 = sshll.u32 %s150_s1, 4  ;;  %s92_s7 = int_to_ptr.vmem [resolvable:$true] %s91_s7 }
   0x8   :  { %112 = vmatpush3.bf16.msra.mxu0 %v29_v6  ;;  %v26_v15 = vpack.c.bf16 %v17_v14, %v16_v13  ;;  %v102_v16 = vld [vmem:[%s211_s2] ss:$0 sm:$0xff]  ;;  %s126_s0 = scalar_lea.vmem %s92_s7, 256  ;;  %p131_p1 = scmp.lt.s32.totalorder %s92_s7, %s92_s7 }
   0x9   :  { %113 = vmatprep.subr.bf16.mxu0 %v148_v3  ;;  %p127_p0 = scmp.ne.s32.totalorder %s92_s7, %s126_s0  ;;  %p132_p2 = scmp.lt.s32.totalorder %s126_s0, %s126_s0 }
   0xb   :  { %p133_p3 = por %p132_p2, %p131_p1 }
   0xc   :  { %114 = vmatpush3.bf16.msra.mxu0 %v28_v9 }
   0xd   :  { %115 = vmatprep.subr.bf16.mxu0 %v148_v3  ;;  %p134_p4 = pnand %p133_p3, %p127_p0 }
  0x10   :  { %116 = vmatpush3.bf16.msra.mxu0 %v27_v12 }
  0x13   :  { %118 = vmatmul.mubr.msk.bf16.vlgmr.msra.gmra.mxu0 %vm38_vm1, %v26_v15 }
  0xd3   :  { %v76_v17 = vpop.f32.mrf.mxu0 }
  0xd4   :  { %v77_v18 = vadd.f32 %v102_v16, %v76_v17 }
  0xd5   :  { %v119_v19 = vpop.f32.mrf.mxu0 }
  0xd6   :  { %84 = vst.msk [vmem:[#allocation2] sm:$0xff] %vm83_vm2, %v77_v18 }
  0xd7   :  { %v79_v20 = vpop.f32.mrf.mxu0 }
  0xd8   :  { %v80_v21 = vadd.f32 %v102_v16, %v79_v20 }
  0xd9   :  { %v120_v22 = vpop.f32.mrf.mxu0 }
  0xda   :  { %85 = vst.msk [vmem:[#allocation2 + $0x8] sm:$0xff] %vm83_vm2, %v80_v21 }
  0xdb   :  { %137 = shalt.err (!%p134_p4)
}
  0xdc   :  { %s151_s2 = smov 128   ;;  %s152_s8 = smov 8  }
  0xdd   :  { %97 = dma.vmem_to_hbm [thread:$0]  %s92_s7, 256, %s212_s3, [#allocation3], %s151_s2, %s151_s2, %s152_s8  }
  0xde   :  { %146 = dma.done.wait [#allocation3], 256  }
  0xdf   :  { %147 = vsyncadd [#allocation3], 4294967040 }
  0xe0   :  { %101 = vsyncpa [#allocation3], 1 }

// kernel: vqvae_forward.11
= control target key start
LH: loop header
LB: loop body
LE: loop exit
PB: predicated region body
PF: predicated region fallthrough
CT: control target
= control target key end

     0   :  { %v1096_v3 = vmov 0   ;;  %vm90_vm0 = vcmask 523264   ;;  %v1097_v28 = vmov 0.0   ;;  %v80_v29 = vlaneseq  ;;  %s1101_s18 = smov 96   ;;  %s1450_s1 = inlined_call_operand.vmem [shape: f32[64,192], index: 1, kind: input, shape index: {}]   ;;  %s1451_s13 = inlined_call_operand.vmem [shape: f32[1,64], index: 13, kind: input, shape index: {}, may-alias: {11,13}]   ;;  %s1452_s14 = inlined_call_operand.vmem [shape: f32[1,64], index: 14, kind: input, shape index: {}, may-alias: {12,14}]   ;;  %s1453_s0 = inlined_call_operand.vmem [shape: f32[2,8,64], index: 0, kind: input, shape index: {}]   ;;  %s1454_s2 = inlined_call_operand.vmem [shape: f32[1,192], index: 2, kind: input, shape index: {}]   ;;  %s1455_s3 = inlined_call_operand.vmem [shape: f32[64,64], index: 3, kind: input, shape index: {}]   ;;  %s1456_s4 = inlined_call_operand.vmem [shape: f32[1,64], index: 4, kind: input, shape index: {}]   ;;  %s1457_s7 = inlined_call_operand.vmem [shape: f32[64,64], index: 7, kind: input, shape index: {}]   ;;  %s1458_s9 = inlined_call_operand.vmem [shape: f32[64,64], index: 9, kind: input, shape index: {}]   ;;  %s1459_s5 = inlined_call_operand.vmem [shape: f32[1,64], index: 5, kind: input, shape index: {}]   ;;  %s1460_s6 = inlined_call_operand.vmem [shape: f32[1,64], index: 6, kind: input, shape index: {}]   ;;  %s1461_s8 = inlined_call_operand.vmem [shape: f32[1,64], index: 8, kind: input, shape index: {}]   ;;  %s1462_s10 = inlined_call_operand.vmem [shape: f32[1,64], index: 10, kind: input, shape index: {}]   ;;  %s1463_s11 = inlined_call_operand.vmem [shape: f32[1,64], index: 11, kind: input, shape index: {}, may-alias: {11,13}]   ;;  %s1464_s12 = inlined_call_operand.vmem [shape: f32[1,64], index: 12, kind: input, shape index: {}, may-alias: {12,14}]   ;;  %s1465_s15 = inlined_call_operand.vmem [shape: f32[2,8,64], index: 15, kind: output, shape index: {}]  }
   0x1   :  { %v66_v0 = vld [vmem:[%s1450_s1 + $0x68] sm:$0xff]  ;;  %v68_v1 = vld [vmem:[%s1450_s1 + $0x78] sm:$0xff]  ;;  %v65_v2 = vld [vmem:[%s1450_s1 + $0x60] sm:$0xff]  ;;  %126 = vmatprep.mubr.bf16.mxu0 %v1096_v3  ;;  %978 = vmatprep.subr.bf16.mxu1 %v1097_v28  ;;  %vm1098_vm1 = vmmov 0   ;;  %vm280_vm2 = vcmask 1043456   ;;  %vm154_vm3 = vcmask 261120  }
   0x2   :  { %v77_v4 = vpack.c.bf16 %v68_v1, %v66_v0  ;;  %v67_v5 = vld [vmem:[%s1450_s1 + $0x70] sm:$0xff]  ;;  %v62_v6 = vld [vmem:[%s1450_s1 + $0x48] sm:$0xff]  ;;  %v64_v7 = vld [vmem:[%s1450_s1 + $0x58] sm:$0xff]  ;;  %v81_v30 = vshrl.u32 %v80_v29, 7  ;;  %980 = vmatprep.mubr.msk.bf16.mxu1 %vm1098_vm1, %v1097_v28  ;;  %vm250_vm4 = vcmask 64512  }
   0x3   :  { %v76_v8 = vpack.c.bf16 %v67_v5, %v65_v2  ;;  %v75_v9 = vpack.c.bf16 %v64_v7, %v62_v6  ;;  %v61_v10 = vld [vmem:[%s1450_s1 + $0x40] sm:$0xff]  ;;  %v63_v11 = vld [vmem:[%s1450_s1 + $0x50] sm:$0xff]  ;;  %v58_v12 = vld [vmem:[%s1450_s1 + $0x28] sm:$0xff] }
   0x4   :  { %102 = vmatprep.subr.bf16.mxu0 %v77_v4  ;;  %v60_v13 = vld [vmem:[%s1450_s1 + $0x38] sm:$0xff]  ;;  %v74_v14 = vpack.c.bf16 %v63_v11, %v61_v10  ;;  %v57_v16 = vld [vmem:[%s1450_s1 + $0x20] sm:$0xff]  ;;  %v59_v17 = vld [vmem:[%s1450_s1 + $0x30] sm:$0xff]  ;;  %v82_v31 = vsub.s32 0, %v81_v30  ;;  %v86_v33 = vsub.s32 1, %v81_v30 }
   0x5   :  { %103 = vmatpush1.bf16.msra.mxu0 %v76_v8  ;;  %v73_v15 = vpack.c.bf16 %v60_v13, %v58_v12  ;;  %v54_v18 = vld [vmem:[%s1450_s1 + $0x8] sm:$0xff]  ;;  %v56_v19 = vld [vmem:[%s1450_s1 + $0x18] sm:$0xff]  ;;  %v72_v20 = vpack.c.bf16 %v59_v17, %v57_v16  ;;  %v53_v22 = vld [vmem:[%s1450_s1] sm:$0xff] }
   0x6   :  { %104 = vmatprep.subr.bf16.mxu0 %v75_v9  ;;  %v71_v21 = vpack.c.bf16 %v56_v19, %v54_v18  ;;  %v55_v23 = vld [vmem:[%s1450_s1 + $0x10] sm:$0xff]  ;;  %v1233_v25 = vld [vmem:[%s1453_s0] sm:$0xff]  ;;  %v1238_v26 = vld [vmem:[%s1453_s0 + $0x8] sm:$0xff]  ;;  %s1099_s0 = smov 64  }
   0x7   :  { %v70_v24 = vpack.c.bf16 %v55_v23, %v53_v22  ;;  %v69_v27 = vpack.c.bf16 %v1238_v26, %v1233_v25  ;;  %v78_v32 = vld [vmem:[%s1454_s2] sm:$0x3]  ;;  %s1100_s2 = smov 32  }
   0x8   :  { %v83_v34 = vrot.slane %v78_v32, %v82_v31  ;;  %v87_v35 = vrot.slane %v78_v32, %v86_v33 }
   0x9   :  { %105 = vmatpush1.bf16.msra.mxu0 %v74_v14 }
   0xa   :  { %106 = vmatprep.subr.bf16.mxu0 %v73_v15 }
   0xd   :  { %107 = vmatpush1.bf16.msra.mxu0 %v72_v20 }
   0xe   :  { %108 = vmatprep.subr.bf16.mxu0 %v71_v21 }
  0x11   :  { %109 = vmatpush1.bf16.msra.mxu0 %v70_v24 }
  0x12   :  { %990 = vmatprep.subr.bf16.mxu0 %v1097_v28 }
  0x14   :  { %926 = vmatmul.mubr.msk.bf16.vlgmr.msra.gmra.mxu0 %vm90_vm0, %v69_v27 }
  0x15   :  { %992 = vmatprep.mubr.msk.bf16.mxu0 %vm1098_vm1, %v1097_v28 }
  0xd4   :  { %v128_v36 = vpop.f32.mrf.mxu0 }
  0xd5   :  { %v129_v37 = vadd.f32 %v128_v36, %v83_v34 }
  0xd6   :  { %v130_v38 = vpop.f32.mrf.mxu0 }
  0xd7   :  { %v131_v39 = vadd.f32 %v130_v38, %v87_v35  ;;  %v149_v40 = vpack.c.bf16 %v129_v37, %v129_v37  ;;  %v145_v48 = vmul.f32 0.17677669, %v129_v37 }
  0xd8   :  { %v132_v41 = vpop.f32.mrf.mxu0 }
  0xd9   :  { %v1252_v42 = vpack.c.bf16 %v131_v39, %v131_v39  ;;  %v133_v43 = vadd.f32 %v132_v41, %v83_v34  ;;  %152 = vrot.lane.b32.xlu0 %v149_v40, %s1099_s0  ;;  %v147_v51 = vpack.c.bf16 %v145_v48, %v145_v48 }
  0xda   :  { %v134_v49 = vpop.f32.mrf.mxu0 }
  0xdb   :  { %v282_v44 = vsel %vm280_vm2, %v1252_v42, 0  ;;  %v150_v45 = vpack.c.bf16 %v133_v43, %v133_v43  ;;  %v135_v52 = vadd.f32 %v134_v49, %v87_v35  ;;  %v146_v54 = vmul.f32 0.17677669, %v133_v43 }
  0xdc   :  { %991 = vmatpush3.bf16.msra.mxu0 %v282_v44 }
  0xdd   :  { %202 = vrot.lane.b32.xlu0 %v150_v45, %s1099_s0  ;;  %1002 = vmatprep.subr.bf16.mxu0 %v1097_v28  ;;  %v1264_v55 = vpack.c.bf16 %v135_v52, %v135_v52  ;;  %v148_v56 = vpack.c.bf16 %v146_v54, %v146_v54 }
  0xdf   :  { %v328_v57 = vsel %vm280_vm2, %v1264_v55, 0 }
 0x14b   :  { %v153_v46 = vpop.permute.xlu0 %152 }
 0x14c   :  { %v159_v47 = vsel %vm154_vm3, %v153_v46, 0 }
 0x14d   :  { %979 = vmatpush3.bf16.xpose.msra.mxu1 %v159_v47 }
 0x14e   :  { %984 = vmatprep.subr.bf16.mxu1 %v1097_v28 }
 0x14f   :  { %v203_v50 = vpop.permute.xlu0 %202 }
 0x150   :  { %v208_v53 = vsel %vm154_vm3, %v203_v50, 0 }
 0x154   :  { %981 = vmatmul.mubr.msk.bf16.vlgmr.msra.gmra.mxu1 %vm154_vm3, %v147_v51 }
 0x155   :  { %985 = vmatpush3.bf16.xpose.msra.mxu1 %v208_v53  ;;  %986 = vmatprep.mubr.msk.bf16.mxu1 %vm1098_vm1, %v1097_v28 }
 0x156   :  { %996 = vmatprep.subr.bf16.mxu1 %v1097_v28 }
 0x15c   :  { %987 = vmatmul.mubr.msk.bf16.vlgmr.msra.gmra.mxu1 %vm154_vm3, %v148_v56 }
 0x15d   :  { %997 = vmatpush3.bf16.msra.mxu1 %v328_v57  ;;  %998 = vmatprep.mubr.msk.bf16.mxu1 %vm1098_vm1, %v1097_v28 }
 0x15e   :  { %1008 = vmatprep.subr.bf16.mxu1 %v1097_v28 }
 0x214   :  { %v195_v58 = vpop.f32.mrf.mxu1 }
 0x215   :  { %v251_v59 = vsel %vm250_vm4, %v195_v58, -inf }
 0x216   :  { %252 = vmax.xlane.f32.xlu1 %v251_v59  ;;  %v982_v60 = vpop.f32.mrf.mxu1 }
 0x218   :  { %v198_v61 = vpop.f32.mrf.mxu1 }
 0x21a   :  { %v983_v62 = vpop.f32.mrf.mxu1 }
 0x21c   :  { %v244_v63 = vpop.f32.mrf.mxu1 }
 0x21d   :  { %v254_v0 = vsel %vm250_vm4, %v244_v63, -inf }
 0x21e   :  { %255 = vmax.xlane.f32.xlu1 %v254_v0  ;;  %v988_v1 = vpop.f32.mrf.mxu1 }
 0x220   :  { %v247_v2 = vpop.f32.mrf.mxu1 }
 0x222   :  { %v989_v3 = vpop.f32.mrf.mxu1 }
 0x22f   :  { %376 = vrot.lane.b32.xlu1 %v149_v40, %s1100_s2 }
 0x233   :  { %427 = vrot.lane.b32.xlu1 %v150_v45, %s1100_s2 }
 0x29f   :  { %v253_v4 = vpop.xlane.xlu1 %252 }
 0x2a0   :  { %v257_v5 = vsub.f32 %v195_v58, %v253_v4 }
 0x2a2   :  { %v259_v6 = vmul.f32 1.442695, %v257_v5 }
 0x2a4   :  { %1072 = vpow2.f32 %v259_v6  ;;  %v140_v6 = vld [vmem:[%s1455_s3 + $0x18] sm:$0xff] }
 0x2a7   :  { %v256_v7 = vpop.xlane.xlu1 %255 }
 0x2a8   :  { %v258_v8 = vsub.f32 %v244_v63, %v256_v7 }
 0x2aa   :  { %v261_v9 = vmul.f32 1.442695, %v258_v8 }
 0x2ab   :  { %v377_v14 = vpop.permute.xlu1 %376 }
 0x2ac   :  { %1074 = vpow2.f32 %v261_v9  ;;  %v382_v21 = vsel %vm154_vm3, %v377_v14, 0  ;;  %v143_v14 = vld [vmem:[%s1455_s3 + $0x30] sm:$0xff] }
 0x2af   :  { %v428_v16 = vpop.permute.xlu1 %427 }
 0x2b0   :  { %v433_v29 = vsel %vm154_vm3, %v428_v16, 0 }
 0x2b1   :  { %v1073_v10 = vpop.eup %1072 }
 0x2b2   :  { %v263_v11 = vsel %vm250_vm4, %v1073_v10, 0.0 }
 0x2b3   :  { %264 = vadd.xlane.f32.xlu0 %v263_v11  ;;  %v137_v11 = vld [vmem:[%s1455_s3] sm:$0xff] }
 0x2b9   :  { %v1075_v12 = vpop.eup %1074 }
 0x2ba   :  { %v266_v13 = vsel %vm250_vm4, %v1075_v12, 0.0 }
 0x2bb   :  { %267 = vadd.xlane.f32.xlu1 %v266_v13 }
 0x2cc   :  { %374 = vrot.lane.b32.xlu1 %v147_v51, %s1101_s18 }
 0x2d0   :  { %425 = vrot.lane.b32.xlu1 %v148_v56, %s1101_s18 }
 0x33c   :  { %v265_v15 = vpop.xlane.xlu0 %264 }
 0x33d   :  { %1076 = vrcp.f32 %v265_v15  ;;  %v144_v15 = vld [vmem:[%s1455_s3 + $0x38] sm:$0xff] }
 0x33e   :  { %v599_v16 = vpack.c.bf16 %v144_v15, %v143_v14 }
 0x344   :  { %v268_v17 = vpop.xlane.xlu1 %267 }
 0x345   :  { %1078 = vrcp.f32 %v268_v17  ;;  %v141_v17 = vld [vmem:[%s1455_s3 + $0x20] sm:$0xff] }
 0x348   :  { %v375_v27 = vpop.permute.xlu1 %374 }
 0x34a   :  { %v1077_v18 = vpop.eup %1076 }
 0x34b   :  { %v271_v19 = vmul.f32 %v1077_v18, %v1073_v10  ;;  %v142_v18 = vld [vmem:[%s1455_s3 + $0x28] sm:$0xff] }
 0x34c   :  { %v426_v30 = vpop.permute.xlu1 %425 }
 0x34d   :  { %v273_v20 = vpack.c.bf16 %v271_v19, %v271_v19  ;;  %v598_v19 = vpack.c.bf16 %v142_v18, %v141_v17 }
 0x34f   :  { %993 = vmatmul.mubr.msk.bf16.vlgmr.msra.gmra.mxu0 %vm250_vm4, %v273_v20 }
 0x350   :  { %1003 = vmatpush3.bf16.xpose.msra.mxu0 %v382_v21  ;;  %1004 = vmatprep.mubr.msk.bf16.mxu0 %vm1098_vm1, %v1097_v28 }
 0x351   :  { %1014 = vmatprep.subr.bf16.mxu0 %v1097_v28 }
 0x352   :  { %v1079_v22 = vpop.eup %1078 }
 0x353   :  { %v272_v23 = vmul.f32 %v1079_v22, %v1075_v12  ;;  %v138_v12 = vld [vmem:[%s1455_s3 + $0x8] sm:$0xff] }
 0x354   :  { %v371_v13 = vpack.c.bf16 %v138_v12, %v137_v11 }
 0x355   :  { %v274_v24 = vpack.c.bf16 %v272_v23, %v272_v23 }
 0x357   :  { %999 = vmatmul.mubr.msk.bf16.vlgmr.msra.gmra.mxu1 %vm250_vm4, %v274_v24  ;;  %1005 = vmatmul.mubr.msk.bf16.vlgmr.msra.gmra.mxu0 %vm154_vm3, %v375_v27 }
 0x358   :  { %1009 = vmatpush3.bf16.xpose.msra.mxu1 %v433_v29  ;;  %1010 = vmatprep.mubr.msk.bf16.mxu1 %vm1098_vm1, %v1097_v28 }
 0x359   :  { %1020 = vmatprep.subr.bf16.mxu1 %v1097_v28  ;;  %1016 = vmatprep.mubr.msk.bf16.mxu0 %vm1098_vm1, %v1097_v28 }
 0x35f   :  { %1011 = vmatmul.mubr.msk.bf16.vlgmr.msra.gmra.mxu1 %vm154_vm3, %v426_v30 }
 0x360   :  { %1022 = vmatprep.mubr.msk.bf16.mxu1 %vm1098_vm1, %v1097_v28 }
 0x40f   :  { %v1294_v31 = vpop.f32.mrf.mxu0 }
 0x411   :  { %v994_v32 = vpop.f32.mrf.mxu0 }
 0x413   :  { %v321_v33 = vpop.f32.mrf.mxu0 }
 0x415   :  { %v995_v34 = vpop.f32.mrf.mxu0 }
 0x417   :  { %v1296_v35 = vpop.f32.mrf.mxu1  ;;  %v418_v36 = vpop.f32.mrf.mxu0 }
 0x418   :  { %v370_v37 = vpack.c.bf16 %v1296_v35, %v1294_v31  ;;  %v475_v38 = vsel %vm250_vm4, %v418_v36, -inf }
 0x419   :  { %476 = vmax.xlane.f32.xlu0 %v475_v38  ;;  %v1000_v39 = vpop.f32.mrf.mxu1  ;;  %v1006_v40 = vpop.f32.mrf.mxu0 }
 0x41b   :  { %v367_v41 = vpop.f32.mrf.mxu1  ;;  %v421_v43 = vpop.f32.mrf.mxu0 }
 0x41d   :  { %v1001_v44 = vpop.f32.mrf.mxu1  ;;  %v1007_v45 = vpop.f32.mrf.mxu0 }
 0x41f   :  { %v469_v46 = vpop.f32.mrf.mxu1 }
 0x420   :  { %v478_v47 = vsel %vm250_vm4, %v469_v46, -inf }
 0x421   :  { %479 = vmax.xlane.f32.xlu1 %v478_v47  ;;  %v1012_v48 = vpop.f32.mrf.mxu1 }
 0x423   :  { %v472_v49 = vpop.f32.mrf.mxu1 }
 0x425   :  { %v1013_v50 = vpop.f32.mrf.mxu1 }
 0x42f   :  { %500 = vrot.lane.b32.xlu0 %v1252_v42, %s1101_s18 }
 0x4a2   :  { %v477_v51 = vpop.xlane.xlu0 %476 }
 0x4a3   :  { %v481_v52 = vsub.f32 %v418_v36, %v477_v51 }
 0x4a5   :  { %v483_v53 = vmul.f32 1.442695, %v481_v52 }
 0x4a6   :  { %v501_v54 = vpop.permute.xlu0 %500 }
 0x4a7   :  { %1080 = vpow2.f32 %v483_v53  ;;  %v506_v56 = vsel %vm280_vm2, %v501_v54, 0 }
 0x4a8   :  { %1015 = vmatpush3.bf16.msra.mxu0 %v506_v56 }
 0x4a9   :  { %1026 = vmatprep.subr.bf16.mxu0 %v1097_v28 }
 0x4aa   :  { %v480_v57 = vpop.xlane.xlu1 %479 }
 0x4ab   :  { %v482_v58 = vsub.f32 %v469_v46, %v480_v57 }
 0x4ad   :  { %v485_v59 = vmul.f32 1.442695, %v482_v58 }
 0x4af   :  { %1082 = vpow2.f32 %v485_v59 }
 0x4b4   :  { %v1081_v60 = vpop.eup %1080 }
 0x4b5   :  { %v487_v61 = vsel %vm250_vm4, %v1081_v60, 0.0 }
 0x4b6   :  { %488 = vadd.xlane.f32.xlu0 %v487_v61 }
 0x4bc   :  { %v1083_v62 = vpop.eup %1082 }
 0x4bd   :  { %v490_v42 = vsel %vm250_vm4, %v1083_v62, 0.0 }
 0x4be   :  { %491 = vadd.xlane.f32.xlu0 %v490_v42  ;;  %v749_v42 = vld [vmem:[%s1457_s7 + $0x28] sm:$0xff] }
 0x4d4   :  { %549 = vrot.lane.b32.xlu0 %v1264_v55, %s1101_s18  ;;  %v139_v55 = vld [vmem:[%s1455_s3 + $0x10] sm:$0xff] }
 0x4d5   :  { %v372_v9 = vpack.c.bf16 %v140_v6, %v139_v55  ;;  %v816_v55 = vld [vmem:[%s1458_s9 + $0x30] sm:$0xff]  ;;  %v817_v6 = vld [vmem:[%s1458_s9 + $0x38] sm:$0xff] }
 0x53f   :  { %v489_v63 = vpop.xlane.xlu0 %488 }
 0x540   :  { %1084 = vrcp.f32 %v489_v63 }
 0x547   :  { %v492_v0 = vpop.xlane.xlu0 %491 }
 0x548   :  { %1086 = vrcp.f32 %v492_v0  ;;  %v746_v0 = vld [vmem:[%s1457_s7 + $0x10] sm:$0xff] }
 0x54b   :  { %v550_v1 = vpop.permute.xlu0 %549 }
 0x54c   :  { %v555_v2 = vsel %vm280_vm2, %v550_v1, 0  ;;  %v747_v1 = vld [vmem:[%s1457_s7 + $0x18] sm:$0xff] }
 0x54d   :  { %v1085_v3 = vpop.eup %1084  ;;  %1021 = vmatpush3.bf16.msra.mxu1 %v555_v2  ;;  %v754_v2 = vpack.c.bf16 %v747_v1, %v746_v0 }
 0x54e   :  { %v495_v4 = vmul.f32 %v1085_v3, %v1081_v60  ;;  %1034 = vmatprep.subr.bf16.mxu1 %v1097_v28  ;;  %v751_v60 = vld [vmem:[%s1457_s7 + $0x38] sm:$0xff]  ;;  %v744_v3 = vld [vmem:[%s1457_s7] sm:$0xff] }
 0x550   :  { %v497_v5 = vpack.c.bf16 %v495_v4, %v495_v4  ;;  %v745_v4 = vld [vmem:[%s1457_s7 + $0x8] sm:$0xff] }
 0x552   :  { %1017 = vmatmul.mubr.msk.bf16.vlgmr.msra.gmra.mxu0 %vm250_vm4, %v497_v5  ;;  %v753_v5 = vpack.c.bf16 %v745_v4, %v744_v3 }
 0x553   :  { %1030 = vmatprep.mubr.msk.bf16.mxu0 %vm1098_vm1, %v1097_v28  ;;  %1027 = vmatpush3.bf16.msra.mxu0 %v599_v16  ;;  %v938_v16 = vld [vmem:[%s1459_s5] ss:$0 sm:$0xff] }
 0x554   :  { %1028 = vmatprep.subr.bf16.mxu0 %v1097_v28 }
 0x555   :  { %v1087_v7 = vpop.eup %1086 }
 0x556   :  { %v496_v8 = vmul.f32 %v1087_v7, %v1083_v62  ;;  %v748_v62 = vld [vmem:[%s1457_s7 + $0x20] sm:$0xff]  ;;  %v822_v7 = vpack.c.bf16 %v817_v6, %v816_v55 }
 0x557   :  { %1029 = vmatpush3.bf16.msra.mxu0 %v598_v19  ;;  %v755_v63 = vpack.c.bf16 %v749_v42, %v748_v62 }
 0x558   :  { %v498_v10 = vpack.c.bf16 %v496_v8, %v496_v8  ;;  %1042 = vmatprep.subr.bf16.mxu0 %v1097_v28 }
 0x55a   :  { %1023 = vmatmul.mubr.msk.bf16.vlgmr.msra.gmra.mxu1 %vm250_vm4, %v498_v10 }
 0x55b   :  { %1035 = vmatpush3.bf16.msra.mxu1 %v372_v9  ;;  %1038 = vmatprep.mubr.msk.bf16.mxu1 %vm1098_vm1, %v1097_v28 }
 0x55c   :  { %1036 = vmatprep.subr.bf16.mxu1 %v1097_v28 }
 0x55f   :  { %1037 = vmatpush3.bf16.msra.mxu1 %v371_v13 }
 0x560   :  { %1054 = vmatprep.subr.bf16.mxu1 %v1097_v28 }
 0x562   :  { %1039 = vmatmul.mubr.msk.bf16.vlgmr.msra.gmra.mxu1 %vm154_vm3, %v370_v37  ;;  %v937_v37 = vld [vmem:[%s1456_s4] ss:$0 sm:$0xff] }
 0x563   :  { %1062 = vmatprep.mubr.msk.bf16.mxu1 %vm1098_vm1, %v1097_v28  ;;  %1055 = vmatpush3.bf16.msra.mxu1 %v822_v7 }
 0x564   :  { %1056 = vmatprep.subr.bf16.mxu1 %v1097_v28 }
 0x612   :  { %v542_v20 = vpop.f32.mrf.mxu0 }
 0x614   :  { %v1018_v21 = vpop.f32.mrf.mxu0 }
 0x616   :  { %v545_v22 = vpop.f32.mrf.mxu0 }
 0x618   :  { %v1019_v23 = vpop.f32.mrf.mxu0 }
 0x61a   :  { %v591_v24 = vpop.f32.mrf.mxu1 }
 0x61b   :  { %v597_v27 = vpack.c.bf16 %v591_v24, %v542_v20  ;;  %v939_v20 = vld [vmem:[%s1460_s6] ss:$0 sm:$0xff] }
 0x61c   :  { %v1024_v29 = vpop.f32.mrf.mxu1 }
 0x61d   :  { %1031 = vmatmul.mubr.msk.bf16.vlgmr.msra.gmra.mxu0 %vm154_vm3, %v597_v27  ;;  %v814_v27 = vld [vmem:[%s1458_s9 + $0x20] sm:$0xff]  ;;  %v815_v29 = vld [vmem:[%s1458_s9 + $0x28] sm:$0xff] }
 0x61e   :  { %v594_v30 = vpop.f32.mrf.mxu1  ;;  %1050 = vmatprep.mubr.msk.bf16.mxu0 %vm1098_vm1, %v1097_v28 }
 0x61f   :  { %v821_v30 = vpack.c.bf16 %v815_v29, %v814_v27 }
 0x620   :  { %v1025_v31 = vpop.f32.mrf.mxu1 }
 0x621   :  { %1057 = vmatpush3.bf16.msra.mxu1 %v821_v30  ;;  %v812_v31 = vld [vmem:[%s1458_s9 + $0x10] sm:$0xff] }
 0x622   :  { %v681_v32 = vpop.f32.mrf.mxu1  ;;  %1058 = vmatprep.subr.bf16.mxu1 %v1097_v28 }
 0x624   :  { %v1040_v33 = vpop.f32.mrf.mxu1 }
 0x626   :  { %v684_v34 = vpop.f32.mrf.mxu1 }
 0x628   :  { %v1041_v35 = vpop.f32.mrf.mxu1 }
 0x629   :  { %v811_v35 = vld [vmem:[%s1458_s9 + $0x8] sm:$0xff] }
 0x6dd   :  { %v637_v36 = vpop.f32.mrf.mxu0 }
 0x6de   :  { %v682_v38 = vadd.f32 %v681_v32, %v637_v36  ;;  %v813_v32 = vld [vmem:[%s1458_s9 + $0x18] sm:$0xff] }
 0x6df   :  { %v1032_v39 = vpop.f32.mrf.mxu0  ;;  %v820_v33 = vpack.c.bf16 %v813_v32, %v812_v31 }
 0x6e0   :  { %v695_v40 = vadd.f32 %v937_v37, %v682_v38 }
 0x6e1   :  { %v640_v41 = vpop.f32.mrf.mxu0  ;;  %1059 = vmatpush3.bf16.msra.mxu1 %v820_v33 }
 0x6e2   :  { %v685_v43 = vadd.f32 %v684_v34, %v640_v41  ;;  %v697_v44 = vadd.f32 %v695_v40, %v1233_v25  ;;  %1060 = vmatprep.subr.bf16.mxu1 %v1097_v28  ;;  %v810_v34 = vld [vmem:[%s1458_s9] sm:$0xff] }
 0x6e3   :  { %v1033_v45 = vpop.f32.mrf.mxu0  ;;  %v819_v36 = vpack.c.bf16 %v811_v35, %v810_v34 }
 0x6e4   :  { %v696_v46 = vadd.f32 %v937_v37, %v685_v43  ;;  %v701_v47 = vsel %vm90_vm0, %v697_v44, 0.0  ;;  %v940_v37 = vld [vmem:[%s1461_s8] ss:$0 sm:$0xff] }
 0x6e5   :  { %702 = vadd.xlane.f32.xlu0 %v701_v47  ;;  %1061 = vmatpush3.bf16.msra.mxu1 %v819_v36  ;;  %v942_v47 = vld [vmem:[%s1462_s10] ss:$0 sm:$0xff] }
 0x6e6   :  { %v698_v48 = vadd.f32 %v696_v46, %v1238_v26  ;;  %v750_v26 = vld [vmem:[%s1457_s7 + $0x30] sm:$0xff] }
 0x6e7   :  { %v756_v61 = vpack.c.bf16 %v751_v60, %v750_v26 }
 0x6e8   :  { %v704_v49 = vsel %vm90_vm0, %v698_v48, 0.0 }
 0x6e9   :  { %705 = vadd.xlane.f32.xlu1 %v704_v49  ;;  %1043 = vmatpush3.bf16.msra.mxu0 %v756_v61 }
 0x6ea   :  { %1044 = vmatprep.subr.bf16.mxu0 %v1097_v28 }
 0x6ed   :  { %1045 = vmatpush3.bf16.msra.mxu0 %v755_v63 }
 0x6ee   :  { %1046 = vmatprep.subr.bf16.mxu0 %v1097_v28 }
 0x6f1   :  { %1047 = vmatpush3.bf16.msra.mxu0 %v754_v2 }
 0x6f2   :  { %1048 = vmatprep.subr.bf16.mxu0 %v1097_v28 }
 0x6f5   :  { %1049 = vmatpush3.bf16.msra.mxu0 %v753_v5 }
 0x76e   :  { %v703_v50 = vpop.xlane.xlu0 %702 }
 0x76f   :  { %v708_v51 = vmul.f32 0.015625, %v703_v50 }
 0x771   :  { %v710_v52 = vsub.f32 %v697_v44, %v708_v51 }
 0x772   :  { %v706_v53 = vpop.xlane.xlu1 %705 }
 0x773   :  { %v709_v54 = vmul.f32 0.015625, %v706_v53  ;;  %v712_v56 = vmul.f32 %v710_v52, %v710_v52 }
 0x775   :  { %v711_v57 = vsub.f32 %v698_v48, %v709_v54  ;;  %v714_v58 = vsel %vm90_vm0, %v712_v56, 0.0 }
 0x776   :  { %715 = vadd.xlane.f32.xlu1 %v714_v58 }
 0x777   :  { %v713_v25 = vmul.f32 %v711_v57, %v711_v57 }
 0x779   :  { %v717_v59 = vsel %vm90_vm0, %v713_v25, 0.0 }
 0x77a   :  { %718 = vadd.xlane.f32.xlu1 %v717_v59 }
 0x7ff   :  { %v716_v8 = vpop.xlane.xlu1 %715 }
 0x800   :  { %v720_v9 = vmul.f32 0.015625, %v716_v8  ;;  %v944_v8 = vld [vmem:[%s1463_s11] ss:$0 sm:$0xff] }
 0x802   :  { %v722_v10 = vadd.f32 1e-05, %v720_v9 }
 0x803   :  { %v719_v11 = vpop.xlane.xlu1 %718 }
 0x804   :  { %1088 = vrsqrt.f32 %v722_v10  ;;  %v721_v12 = vmul.f32 0.015625, %v719_v11  ;;  %v945_v10 = vld [vmem:[%s1464_s12] ss:$0 sm:$0xff] }
 0x806   :  { %v723_v13 = vadd.f32 1e-05, %v721_v12 }
 0x808   :  { %1090 = vrsqrt.f32 %v723_v13 }
 0x811   :  { %v1089_v14 = vpop.eup %1088 }
 0x812   :  { %v726_v15 = vmul.f32 %v1089_v14, %v710_v52 }
 0x814   :  { %v734_v19 = vmul.f32 %v938_v16, %v726_v15 }
 0x815   :  { %v1091_v17 = vpop.eup %1090 }
 0x816   :  { %v727_v18 = vmul.f32 %v1091_v17, %v711_v57  ;;  %v742_v22 = vadd.f32 %v939_v20, %v734_v19 }
 0x818   :  { %v735_v21 = vmul.f32 %v938_v16, %v727_v18 }
 0x81a   :  { %v743_v23 = vadd.f32 %v939_v20, %v735_v21 }
 0x81c   :  { %v752_v24 = vpack.c.bf16 %v743_v23, %v742_v22 }
 0x81e   :  { %1051 = vmatmul.mubr.msk.bf16.vlgmr.msra.gmra.mxu0 %vm90_vm0, %v752_v24 }
 0x8de   :  { %v801_v38 = vpop.f32.mrf.mxu0 }
 0x8df   :  { %v802_v40 = vadd.f32 %v940_v37, %v801_v38 }
 0x8e0   :  { %v1052_v39 = vpop.f32.mrf.mxu0 }
 0x8e1   :  { %v808_v44 = vmax.f32 %v802_v40, 0.0 }
 0x8e2   :  { %v804_v41 = vpop.f32.mrf.mxu0 }
 0x8e3   :  { %v805_v43 = vadd.f32 %v940_v37, %v804_v41 }
 0x8e4   :  { %v1053_v28 = vpop.f32.mrf.mxu0 }
 0x8e5   :  { %v809_v45 = vmax.f32 %v805_v43, 0.0 }
 0x8e7   :  { %v818_v46 = vpack.c.bf16 %v809_v45, %v808_v44 }
 0x8e9   :  { %1063 = vmatmul.mubr.msk.bf16.vlgmr.msra.gmra.mxu1 %vm90_vm0, %v818_v46 }
 0x9a9   :  { %v867_v48 = vpop.f32.mrf.mxu1 }
 0x9aa   :  { %v868_v49 = vadd.f32 %v942_v47, %v867_v48 }
 0x9ab   :  { %v1064_v50 = vpop.f32.mrf.mxu1 }
 0x9ac   :  { %v874_v51 = vadd.f32 %v868_v49, %v742_v22 }
 0x9ad   :  { %v870_v52 = vpop.f32.mrf.mxu1 }
 0x9ae   :  { %v871_v53 = vadd.f32 %v942_v47, %v870_v52  ;;  %v878_v54 = vsel %vm90_vm0, %v874_v51, 0.0 }
 0x9af   :  { %879 = vadd.xlane.f32.xlu1 %v878_v54  ;;  %v1065_v56 = vpop.f32.mrf.mxu1 }
 0x9b0   :  { %v875_v57 = vadd.f32 %v871_v53, %v743_v23 }
 0x9b2   :  { %v881_v58 = vsel %vm90_vm0, %v875_v57, 0.0 }
 0x9b3   :  { %882 = vadd.xlane.f32.xlu1 %v881_v58 }
 0xa38   :  { %v880_v25 = vpop.xlane.xlu1 %879 }
 0xa39   :  { %v884_v59 = vmul.f32 0.015625, %v880_v25 }
 0xa3b   :  { %v886_v26 = vsub.f32 %v874_v51, %v884_v59 }
 0xa3c   :  { %v883_v60 = vpop.xlane.xlu1 %882 }
 0xa3d   :  { %v885_v61 = vmul.f32 0.015625, %v883_v60  ;;  %v888_v62 = vmul.f32 %v886_v26, %v886_v26 }
 0xa3f   :  { %v887_v42 = vsub.f32 %v875_v57, %v885_v61  ;;  %v890_v63 = vsel %vm90_vm0, %v888_v62, 0.0 }
 0xa40   :  { %891 = vadd.xlane.f32.xlu1 %v890_v63 }
 0xa41   :  { %v889_v0 = vmul.f32 %v887_v42, %v887_v42 }
 0xa43   :  { %v893_v1 = vsel %vm90_vm0, %v889_v0, 0.0 }
 0xa44   :  { %894 = vadd.xlane.f32.xlu1 %v893_v1 }
 0xac9   :  { %v892_v2 = vpop.xlane.xlu1 %891 }
 0xaca   :  { %v896_v3 = vmul.f32 0.015625, %v892_v2 }
 0xacc   :  { %v898_v4 = vadd.f32 1e-05, %v896_v3 }
 0xacd   :  { %v895_v5 = vpop.xlane.xlu1 %894 }
 0xace   :  { %1092 = vrsqrt.f32 %v898_v4  ;;  %v897_v55 = vmul.f32 0.015625, %v895_v5 }
 0xad0   :  { %v899_v6 = vadd.f32 1e-05, %v897_v55 }
 0xad2   :  { %1094 = vrsqrt.f32 %v899_v6 }
 0xadb   :  { %v1093_v7 = vpop.eup %1092 }
 0xadc   :  { %v902_v9 = vmul.f32 %v1093_v7, %v886_v26 }
 0xade   :  { %v910_v11 = vmul.f32 %v944_v8, %v902_v9 }
 0xadf   :  { %v1095_v12 = vpop.eup %1094 }
 0xae0   :  { %v918_v13 = vadd.f32 %v945_v10, %v910_v11  ;;  %v903_v14 = vmul.f32 %v1095_v12, %v887_v42 }
 0xae2   :  { %920 = vst.msk [vmem:[%s1465_s15] sm:$0xff] %vm90_vm0, %v918_v13  ;;  %v911_v15 = vmul.f32 %v944_v8, %v903_v14 }
 0xae4   :  { %v919_v16 = vadd.f32 %v945_v10, %v911_v15 }
 0xae6   :  { %921 = vst.msk [vmem:[%s1465_s15 + $0x8] sm:$0xff] %vm90_vm0, %v919_v16 }

// kernel: vqvae_forward.12
= control target key start
LH: loop header
LB: loop body
LE: loop exit
PB: predicated region body
PF: predicated region fallthrough
CT: control target
= control target key end

     0   :  { %v1146_v3 = vmov 0   ;;  %vm90_vm0 = vcmask 523264   ;;  %v1147_v28 = vmov 0.0   ;;  %v80_v29 = vlaneseq  ;;  %s1151_s25 = smov 96   ;;  %s1510_s1 = inlined_call_operand.vmem [shape: f32[64,192], index: 1, kind: input, shape index: {}]   ;;  %s1511_s0 = inlined_call_operand.vmem [shape: f32[2,8,64], index: 0, kind: input, shape index: {}]   ;;  %s1512_s2 = inlined_call_operand.vmem [shape: f32[1,192], index: 2, kind: input, shape index: {}]   ;;  %s1513_s3 = inlined_call_operand.vmem [shape: f32[64,64], index: 3, kind: input, shape index: {}]   ;;  %s1514_s4 = inlined_call_operand.vmem [shape: f32[1,64], index: 4, kind: input, shape index: {}]   ;;  %s1515_s7 = inlined_call_operand.vmem [shape: f32[64,64], index: 7, kind: input, shape index: {}]   ;;  %s1516_s9 = inlined_call_operand.vmem [shape: f32[64,64], index: 9, kind: input, shape index: {}]   ;;  %s1517_s5 = inlined_call_operand.vmem [shape: f32[1,64], index: 5, kind: input, shape index: {}]   ;;  %s1518_s6 = inlined_call_operand.vmem [shape: f32[1,64], index: 6, kind: input, shape index: {}]   ;;  %s1519_s8 = inlined_call_operand.vmem [shape: f32[1,64], index: 8, kind: input, shape index: {}]   ;;  %s1520_s10 = inlined_call_operand.vmem [shape: f32[1,64], index: 10, kind: input, shape index: {}]   ;;  %s1521_s11 = inlined_call_operand.vmem [shape: f32[1,64], index: 11, kind: input, shape index: {}]   ;;  %s1522_s12 = inlined_call_operand.vmem [shape: f32[1,64], index: 12, kind: input, shape index: {}]   ;;  %s1523_s13 = inlined_call_operand.vmem [shape: f32[1,64], index: 13, kind: input, shape index: {}]   ;;  %s1524_s14 = inlined_call_operand.vmem [shape: f32[1,64], index: 14, kind: input, shape index: {}]   ;;  %s1525_s15 = inlined_call_operand.vmem [shape: f32[2,8,64], index: 15, kind: output, shape index: {}]  }
   0x1   :  { %v66_v0 = vld [vmem:[%s1510_s1 + $0x68] sm:$0xff]  ;;  %v68_v1 = vld [vmem:[%s1510_s1 + $0x78] sm:$0xff]  ;;  %v65_v2 = vld [vmem:[%s1510_s1 + $0x60] sm:$0xff]  ;;  %126 = vmatprep.mubr.bf16.mxu0 %v1146_v3  ;;  %1024 = vmatprep.subr.bf16.mxu1 %v1147_v28  ;;  %vm1148_vm1 = vmmov 0   ;;  %vm280_vm2 = vcmask 1043456   ;;  %vm154_vm3 = vcmask 261120  }
   0x2   :  { %v77_v4 = vpack.c.bf16 %v68_v1, %v66_v0  ;;  %v67_v5 = vld [vmem:[%s1510_s1 + $0x70] sm:$0xff]  ;;  %v62_v6 = vld [vmem:[%s1510_s1 + $0x48] sm:$0xff]  ;;  %v64_v7 = vld [vmem:[%s1510_s1 + $0x58] sm:$0xff]  ;;  %v81_v30 = vshrl.u32 %v80_v29, 7  ;;  %1026 = vmatprep.mubr.msk.bf16.mxu1 %vm1148_vm1, %v1147_v28  ;;  %vm250_vm4 = vcmask 64512  }
   0x3   :  { %v76_v8 = vpack.c.bf16 %v67_v5, %v65_v2  ;;  %v75_v9 = vpack.c.bf16 %v64_v7, %v62_v6  ;;  %v61_v10 = vld [vmem:[%s1510_s1 + $0x40] sm:$0xff]  ;;  %v63_v11 = vld [vmem:[%s1510_s1 + $0x50] sm:$0xff]  ;;  %v58_v12 = vld [vmem:[%s1510_s1 + $0x28] sm:$0xff] }
   0x4   :  { %102 = vmatprep.subr.bf16.mxu0 %v77_v4  ;;  %v60_v13 = vld [vmem:[%s1510_s1 + $0x38] sm:$0xff]  ;;  %v74_v14 = vpack.c.bf16 %v63_v11, %v61_v10  ;;  %v57_v16 = vld [vmem:[%s1510_s1 + $0x20] sm:$0xff]  ;;  %v59_v17 = vld [vmem:[%s1510_s1 + $0x30] sm:$0xff]  ;;  %v82_v31 = vsub.s32 0, %v81_v30  ;;  %v86_v33 = vsub.s32 1, %v81_v30 }
   0x5   :  { %103 = vmatpush1.bf16.msra.mxu0 %v76_v8  ;;  %v73_v15 = vpack.c.bf16 %v60_v13, %v58_v12  ;;  %v54_v18 = vld [vmem:[%s1510_s1 + $0x8] sm:$0xff]  ;;  %v56_v19 = vld [vmem:[%s1510_s1 + $0x18] sm:$0xff]  ;;  %v72_v20 = vpack.c.bf16 %v59_v17, %v57_v16  ;;  %v53_v22 = vld [vmem:[%s1510_s1] sm:$0xff] }
   0x6   :  { %104 = vmatprep.subr.bf16.mxu0 %v75_v9  ;;  %v71_v21 = vpack.c.bf16 %v56_v19, %v54_v18  ;;  %v55_v23 = vld [vmem:[%s1510_s1 + $0x10] sm:$0xff]  ;;  %v1283_v25 = vld [vmem:[%s1511_s0] sm:$0xff]  ;;  %v1288_v26 = vld [vmem:[%s1511_s0 + $0x8] sm:$0xff]  ;;  %s1149_s0 = smov 64  }
   0x7   :  { %v70_v24 = vpack.c.bf16 %v55_v23, %v53_v22  ;;  %v69_v27 = vpack.c.bf16 %v1288_v26, %v1283_v25  ;;  %v78_v32 = vld [vmem:[%s1512_s2] sm:$0x3]  ;;  %s1150_s2 = smov 32  }
   0x8   :  { %v83_v34 = vrot.slane %v78_v32, %v82_v31  ;;  %v87_v35 = vrot.slane %v78_v32, %v86_v33 }
   0x9   :  { %105 = vmatpush1.bf16.msra.mxu0 %v74_v14 }
   0xa   :  { %106 = vmatprep.subr.bf16.mxu0 %v73_v15 }
   0xd   :  { %107 = vmatpush1.bf16.msra.mxu0 %v72_v20 }
   0xe   :  { %108 = vmatprep.subr.bf16.mxu0 %v71_v21 }
  0x11   :  { %109 = vmatpush1.bf16.msra.mxu0 %v70_v24 }
  0x12   :  { %1036 = vmatprep.subr.bf16.mxu0 %v1147_v28 }
  0x14   :  { %970 = vmatmul.mubr.msk.bf16.vlgmr.msra.gmra.mxu0 %vm90_vm0, %v69_v27 }
  0x15   :  { %1038 = vmatprep.mubr.msk.bf16.mxu0 %vm1148_vm1, %v1147_v28 }
  0xd4   :  { %v128_v36 = vpop.f32.mrf.mxu0 }
  0xd5   :  { %v129_v37 = vadd.f32 %v128_v36, %v83_v34 }
  0xd6   :  { %v130_v38 = vpop.f32.mrf.mxu0 }
  0xd7   :  { %v131_v39 = vadd.f32 %v130_v38, %v87_v35  ;;  %v149_v40 = vpack.c.bf16 %v129_v37, %v129_v37  ;;  %v145_v48 = vmul.f32 0.17677669, %v129_v37 }
  0xd8   :  { %v132_v41 = vpop.f32.mrf.mxu0 }
  0xd9   :  { %v1302_v42 = vpack.c.bf16 %v131_v39, %v131_v39  ;;  %v133_v43 = vadd.f32 %v132_v41, %v83_v34  ;;  %152 = vrot.lane.b32.xlu0 %v149_v40, %s1149_s0  ;;  %v147_v51 = vpack.c.bf16 %v145_v48, %v145_v48 }
  0xda   :  { %v134_v49 = vpop.f32.mrf.mxu0 }
  0xdb   :  { %v282_v44 = vsel %vm280_vm2, %v1302_v42, 0  ;;  %v150_v45 = vpack.c.bf16 %v133_v43, %v133_v43  ;;  %v135_v52 = vadd.f32 %v134_v49, %v87_v35  ;;  %v146_v54 = vmul.f32 0.17677669, %v133_v43 }
  0xdc   :  { %1037 = vmatpush3.bf16.msra.mxu0 %v282_v44 }
  0xdd   :  { %202 = vrot.lane.b32.xlu0 %v150_v45, %s1149_s0  ;;  %1048 = vmatprep.subr.bf16.mxu0 %v1147_v28  ;;  %v1314_v55 = vpack.c.bf16 %v135_v52, %v135_v52  ;;  %v148_v56 = vpack.c.bf16 %v146_v54, %v146_v54 }
  0xdf   :  { %v328_v57 = vsel %vm280_vm2, %v1314_v55, 0 }
 0x14b   :  { %v153_v46 = vpop.permute.xlu0 %152 }
 0x14c   :  { %v159_v47 = vsel %vm154_vm3, %v153_v46, 0 }
 0x14d   :  { %1025 = vmatpush3.bf16.xpose.msra.mxu1 %v159_v47 }
 0x14e   :  { %1030 = vmatprep.subr.bf16.mxu1 %v1147_v28 }
 0x14f   :  { %v203_v50 = vpop.permute.xlu0 %202 }
 0x150   :  { %v208_v53 = vsel %vm154_vm3, %v203_v50, 0 }
 0x154   :  { %1027 = vmatmul.mubr.msk.bf16.vlgmr.msra.gmra.mxu1 %vm154_vm3, %v147_v51 }
 0x155   :  { %1031 = vmatpush3.bf16.xpose.msra.mxu1 %v208_v53  ;;  %1032 = vmatprep.mubr.msk.bf16.mxu1 %vm1148_vm1, %v1147_v28 }
 0x156   :  { %1042 = vmatprep.subr.bf16.mxu1 %v1147_v28 }
 0x15c   :  { %1033 = vmatmul.mubr.msk.bf16.vlgmr.msra.gmra.mxu1 %vm154_vm3, %v148_v56 }
 0x15d   :  { %1043 = vmatpush3.bf16.msra.mxu1 %v328_v57  ;;  %1044 = vmatprep.mubr.msk.bf16.mxu1 %vm1148_vm1, %v1147_v28 }
 0x15e   :  { %1054 = vmatprep.subr.bf16.mxu1 %v1147_v28 }
 0x214   :  { %v195_v58 = vpop.f32.mrf.mxu1 }
 0x215   :  { %v251_v59 = vsel %vm250_vm4, %v195_v58, -inf }
 0x216   :  { %252 = vmax.xlane.f32.xlu1 %v251_v59  ;;  %v1028_v60 = vpop.f32.mrf.mxu1 }
 0x218   :  { %v198_v61 = vpop.f32.mrf.mxu1 }
 0x21a   :  { %v1029_v62 = vpop.f32.mrf.mxu1 }
 0x21c   :  { %v244_v63 = vpop.f32.mrf.mxu1 }
 0x21d   :  { %v254_v0 = vsel %vm250_vm4, %v244_v63, -inf }
 0x21e   :  { %255 = vmax.xlane.f32.xlu1 %v254_v0  ;;  %v1034_v1 = vpop.f32.mrf.mxu1 }
 0x220   :  { %v247_v2 = vpop.f32.mrf.mxu1 }
 0x222   :  { %v1035_v3 = vpop.f32.mrf.mxu1 }
 0x22f   :  { %376 = vrot.lane.b32.xlu1 %v149_v40, %s1150_s2 }
 0x233   :  { %427 = vrot.lane.b32.xlu1 %v150_v45, %s1150_s2 }
 0x29f   :  { %v253_v4 = vpop.xlane.xlu1 %252 }
 0x2a0   :  { %v257_v5 = vsub.f32 %v195_v58, %v253_v4 }
 0x2a2   :  { %v259_v6 = vmul.f32 1.442695, %v257_v5 }
 0x2a4   :  { %1118 = vpow2.f32 %v259_v6  ;;  %v140_v6 = vld [vmem:[%s1513_s3 + $0x18] sm:$0xff] }
 0x2a7   :  { %v256_v7 = vpop.xlane.xlu1 %255 }
 0x2a8   :  { %v258_v8 = vsub.f32 %v244_v63, %v256_v7 }
 0x2aa   :  { %v261_v9 = vmul.f32 1.442695, %v258_v8 }
 0x2ab   :  { %v377_v14 = vpop.permute.xlu1 %376 }
 0x2ac   :  { %1120 = vpow2.f32 %v261_v9  ;;  %v382_v21 = vsel %vm154_vm3, %v377_v14, 0  ;;  %v143_v14 = vld [vmem:[%s1513_s3 + $0x30] sm:$0xff] }
 0x2af   :  { %v428_v16 = vpop.permute.xlu1 %427 }
 0x2b0   :  { %v433_v29 = vsel %vm154_vm3, %v428_v16, 0 }
 0x2b1   :  { %v1119_v10 = vpop.eup %1118 }
 0x2b2   :  { %v263_v11 = vsel %vm250_vm4, %v1119_v10, 0.0 }
 0x2b3   :  { %264 = vadd.xlane.f32.xlu0 %v263_v11  ;;  %v137_v11 = vld [vmem:[%s1513_s3] sm:$0xff] }
 0x2b9   :  { %v1121_v12 = vpop.eup %1120 }
 0x2ba   :  { %v266_v13 = vsel %vm250_vm4, %v1121_v12, 0.0 }
 0x2bb   :  { %267 = vadd.xlane.f32.xlu1 %v266_v13 }
 0x2cc   :  { %374 = vrot.lane.b32.xlu1 %v147_v51, %s1151_s25 }
 0x2d0   :  { %425 = vrot.lane.b32.xlu1 %v148_v56, %s1151_s25 }
 0x33c   :  { %v265_v15 = vpop.xlane.xlu0 %264 }
 0x33d   :  { %1122 = vrcp.f32 %v265_v15  ;;  %v144_v15 = vld [vmem:[%s1513_s3 + $0x38] sm:$0xff] }
 0x33e   :  { %v599_v16 = vpack.c.bf16 %v144_v15, %v143_v14 }
 0x344   :  { %v268_v17 = vpop.xlane.xlu1 %267 }
 0x345   :  { %1124 = vrcp.f32 %v268_v17  ;;  %v141_v17 = vld [vmem:[%s1513_s3 + $0x20] sm:$0xff] }
 0x348   :  { %v375_v27 = vpop.permute.xlu1 %374 }
 0x34a   :  { %v1123_v18 = vpop.eup %1122 }
 0x34b   :  { %v271_v19 = vmul.f32 %v1123_v18, %v1119_v10  ;;  %v142_v18 = vld [vmem:[%s1513_s3 + $0x28] sm:$0xff] }
 0x34c   :  { %v426_v30 = vpop.permute.xlu1 %425 }
 0x34d   :  { %v273_v20 = vpack.c.bf16 %v271_v19, %v271_v19  ;;  %v598_v19 = vpack.c.bf16 %v142_v18, %v141_v17 }
 0x34f   :  { %1039 = vmatmul.mubr.msk.bf16.vlgmr.msra.gmra.mxu0 %vm250_vm4, %v273_v20 }
 0x350   :  { %1049 = vmatpush3.bf16.xpose.msra.mxu0 %v382_v21  ;;  %1050 = vmatprep.mubr.msk.bf16.mxu0 %vm1148_vm1, %v1147_v28 }
 0x351   :  { %1060 = vmatprep.subr.bf16.mxu0 %v1147_v28 }
 0x352   :  { %v1125_v22 = vpop.eup %1124 }
 0x353   :  { %v272_v23 = vmul.f32 %v1125_v22, %v1121_v12  ;;  %v138_v12 = vld [vmem:[%s1513_s3 + $0x8] sm:$0xff] }
 0x354   :  { %v371_v13 = vpack.c.bf16 %v138_v12, %v137_v11 }
 0x355   :  { %v274_v24 = vpack.c.bf16 %v272_v23, %v272_v23 }
 0x357   :  { %1045 = vmatmul.mubr.msk.bf16.vlgmr.msra.gmra.mxu1 %vm250_vm4, %v274_v24  ;;  %1051 = vmatmul.mubr.msk.bf16.vlgmr.msra.gmra.mxu0 %vm154_vm3, %v375_v27 }
 0x358   :  { %1055 = vmatpush3.bf16.xpose.msra.mxu1 %v433_v29  ;;  %1056 = vmatprep.mubr.msk.bf16.mxu1 %vm1148_vm1, %v1147_v28 }
 0x359   :  { %1066 = vmatprep.subr.bf16.mxu1 %v1147_v28  ;;  %1062 = vmatprep.mubr.msk.bf16.mxu0 %vm1148_vm1, %v1147_v28 }
 0x35f   :  { %1057 = vmatmul.mubr.msk.bf16.vlgmr.msra.gmra.mxu1 %vm154_vm3, %v426_v30 }
 0x360   :  { %1068 = vmatprep.mubr.msk.bf16.mxu1 %vm1148_vm1, %v1147_v28 }
 0x40f   :  { %v1344_v31 = vpop.f32.mrf.mxu0 }
 0x411   :  { %v1040_v32 = vpop.f32.mrf.mxu0 }
 0x413   :  { %v321_v33 = vpop.f32.mrf.mxu0 }
 0x415   :  { %v1041_v34 = vpop.f32.mrf.mxu0 }
 0x417   :  { %v1346_v35 = vpop.f32.mrf.mxu1  ;;  %v418_v36 = vpop.f32.mrf.mxu0 }
 0x418   :  { %v370_v37 = vpack.c.bf16 %v1346_v35, %v1344_v31  ;;  %v475_v38 = vsel %vm250_vm4, %v418_v36, -inf }
 0x419   :  { %476 = vmax.xlane.f32.xlu0 %v475_v38  ;;  %v1046_v39 = vpop.f32.mrf.mxu1  ;;  %v1052_v40 = vpop.f32.mrf.mxu0 }
 0x41b   :  { %v367_v41 = vpop.f32.mrf.mxu1  ;;  %v421_v43 = vpop.f32.mrf.mxu0 }
 0x41d   :  { %v1047_v44 = vpop.f32.mrf.mxu1  ;;  %v1053_v45 = vpop.f32.mrf.mxu0 }
 0x41f   :  { %v469_v46 = vpop.f32.mrf.mxu1 }
 0x420   :  { %v478_v47 = vsel %vm250_vm4, %v469_v46, -inf }
 0x421   :  { %479 = vmax.xlane.f32.xlu1 %v478_v47  ;;  %v1058_v48 = vpop.f32.mrf.mxu1 }
 0x423   :  { %v472_v49 = vpop.f32.mrf.mxu1 }
 0x425   :  { %v1059_v50 = vpop.f32.mrf.mxu1 }
 0x42f   :  { %500 = vrot.lane.b32.xlu0 %v1302_v42, %s1151_s25 }
 0x4a2   :  { %v477_v51 = vpop.xlane.xlu0 %476 }
 0x4a3   :  { %v481_v52 = vsub.f32 %v418_v36, %v477_v51 }
 0x4a5   :  { %v483_v53 = vmul.f32 1.442695, %v481_v52 }
 0x4a6   :  { %v501_v54 = vpop.permute.xlu0 %500 }
 0x4a7   :  { %1126 = vpow2.f32 %v483_v53  ;;  %v506_v56 = vsel %vm280_vm2, %v501_v54, 0 }
 0x4a8   :  { %1061 = vmatpush3.bf16.msra.mxu0 %v506_v56 }
 0x4a9   :  { %1072 = vmatprep.subr.bf16.mxu0 %v1147_v28 }
 0x4aa   :  { %v480_v57 = vpop.xlane.xlu1 %479 }
 0x4ab   :  { %v482_v58 = vsub.f32 %v469_v46, %v480_v57 }
 0x4ad   :  { %v485_v59 = vmul.f32 1.442695, %v482_v58 }
 0x4af   :  { %1128 = vpow2.f32 %v485_v59 }
 0x4b4   :  { %v1127_v60 = vpop.eup %1126 }
 0x4b5   :  { %v487_v61 = vsel %vm250_vm4, %v1127_v60, 0.0 }
 0x4b6   :  { %488 = vadd.xlane.f32.xlu0 %v487_v61 }
 0x4bc   :  { %v1129_v62 = vpop.eup %1128 }
 0x4bd   :  { %v490_v42 = vsel %vm250_vm4, %v1129_v62, 0.0 }
 0x4be   :  { %491 = vadd.xlane.f32.xlu0 %v490_v42  ;;  %v749_v42 = vld [vmem:[%s1515_s7 + $0x28] sm:$0xff] }
 0x4d4   :  { %549 = vrot.lane.b32.xlu0 %v1314_v55, %s1151_s25  ;;  %v139_v55 = vld [vmem:[%s1513_s3 + $0x10] sm:$0xff] }
 0x4d5   :  { %v372_v9 = vpack.c.bf16 %v140_v6, %v139_v55  ;;  %v816_v55 = vld [vmem:[%s1516_s9 + $0x30] sm:$0xff]  ;;  %v817_v6 = vld [vmem:[%s1516_s9 + $0x38] sm:$0xff] }
 0x53f   :  { %v489_v63 = vpop.xlane.xlu0 %488 }
 0x540   :  { %1130 = vrcp.f32 %v489_v63 }
 0x547   :  { %v492_v0 = vpop.xlane.xlu0 %491 }
 0x548   :  { %1132 = vrcp.f32 %v492_v0  ;;  %v746_v0 = vld [vmem:[%s1515_s7 + $0x10] sm:$0xff] }
 0x54b   :  { %v550_v1 = vpop.permute.xlu0 %549 }
 0x54c   :  { %v555_v2 = vsel %vm280_vm2, %v550_v1, 0  ;;  %v747_v1 = vld [vmem:[%s1515_s7 + $0x18] sm:$0xff] }
 0x54d   :  { %v1131_v3 = vpop.eup %1130  ;;  %1067 = vmatpush3.bf16.msra.mxu1 %v555_v2  ;;  %v754_v2 = vpack.c.bf16 %v747_v1, %v746_v0 }
 0x54e   :  { %v495_v4 = vmul.f32 %v1131_v3, %v1127_v60  ;;  %1080 = vmatprep.subr.bf16.mxu1 %v1147_v28  ;;  %v751_v60 = vld [vmem:[%s1515_s7 + $0x38] sm:$0xff]  ;;  %v744_v3 = vld [vmem:[%s1515_s7] sm:$0xff] }
 0x550   :  { %v497_v5 = vpack.c.bf16 %v495_v4, %v495_v4  ;;  %v745_v4 = vld [vmem:[%s1515_s7 + $0x8] sm:$0xff] }
 0x552   :  { %1063 = vmatmul.mubr.msk.bf16.vlgmr.msra.gmra.mxu0 %vm250_vm4, %v497_v5  ;;  %v753_v5 = vpack.c.bf16 %v745_v4, %v744_v3 }
 0x553   :  { %1076 = vmatprep.mubr.msk.bf16.mxu0 %vm1148_vm1, %v1147_v28  ;;  %1073 = vmatpush3.bf16.msra.mxu0 %v599_v16  ;;  %v982_v16 = vld [vmem:[%s1517_s5] ss:$0 sm:$0xff] }
 0x554   :  { %1074 = vmatprep.subr.bf16.mxu0 %v1147_v28 }
 0x555   :  { %v1133_v7 = vpop.eup %1132 }
 0x556   :  { %v496_v8 = vmul.f32 %v1133_v7, %v1129_v62  ;;  %v748_v62 = vld [vmem:[%s1515_s7 + $0x20] sm:$0xff]  ;;  %v822_v7 = vpack.c.bf16 %v817_v6, %v816_v55 }
 0x557   :  { %1075 = vmatpush3.bf16.msra.mxu0 %v598_v19  ;;  %v755_v63 = vpack.c.bf16 %v749_v42, %v748_v62 }
 0x558   :  { %v498_v10 = vpack.c.bf16 %v496_v8, %v496_v8  ;;  %1088 = vmatprep.subr.bf16.mxu0 %v1147_v28 }
 0x55a   :  { %1069 = vmatmul.mubr.msk.bf16.vlgmr.msra.gmra.mxu1 %vm250_vm4, %v498_v10 }
 0x55b   :  { %1081 = vmatpush3.bf16.msra.mxu1 %v372_v9  ;;  %1084 = vmatprep.mubr.msk.bf16.mxu1 %vm1148_vm1, %v1147_v28 }
 0x55c   :  { %1082 = vmatprep.subr.bf16.mxu1 %v1147_v28 }
 0x55f   :  { %1083 = vmatpush3.bf16.msra.mxu1 %v371_v13 }
 0x560   :  { %1100 = vmatprep.subr.bf16.mxu1 %v1147_v28 }
 0x562   :  { %1085 = vmatmul.mubr.msk.bf16.vlgmr.msra.gmra.mxu1 %vm154_vm3, %v370_v37  ;;  %v981_v37 = vld [vmem:[%s1514_s4] ss:$0 sm:$0xff] }
 0x563   :  { %1108 = vmatprep.mubr.msk.bf16.mxu1 %vm1148_vm1, %v1147_v28  ;;  %1101 = vmatpush3.bf16.msra.mxu1 %v822_v7 }
 0x564   :  { %1102 = vmatprep.subr.bf16.mxu1 %v1147_v28 }
 0x612   :  { %v542_v20 = vpop.f32.mrf.mxu0 }
 0x614   :  { %v1064_v21 = vpop.f32.mrf.mxu0 }
 0x616   :  { %v545_v22 = vpop.f32.mrf.mxu0 }
 0x618   :  { %v1065_v23 = vpop.f32.mrf.mxu0 }
 0x61a   :  { %v591_v24 = vpop.f32.mrf.mxu1 }
 0x61b   :  { %v597_v27 = vpack.c.bf16 %v591_v24, %v542_v20  ;;  %v983_v20 = vld [vmem:[%s1518_s6] ss:$0 sm:$0xff] }
 0x61c   :  { %v1070_v29 = vpop.f32.mrf.mxu1 }
 0x61d   :  { %1077 = vmatmul.mubr.msk.bf16.vlgmr.msra.gmra.mxu0 %vm154_vm3, %v597_v27  ;;  %v814_v27 = vld [vmem:[%s1516_s9 + $0x20] sm:$0xff]  ;;  %v815_v29 = vld [vmem:[%s1516_s9 + $0x28] sm:$0xff] }
 0x61e   :  { %v594_v30 = vpop.f32.mrf.mxu1  ;;  %1096 = vmatprep.mubr.msk.bf16.mxu0 %vm1148_vm1, %v1147_v28 }
 0x61f   :  { %v821_v30 = vpack.c.bf16 %v815_v29, %v814_v27 }
 0x620   :  { %v1071_v31 = vpop.f32.mrf.mxu1 }
 0x621   :  { %1103 = vmatpush3.bf16.msra.mxu1 %v821_v30  ;;  %v812_v31 = vld [vmem:[%s1516_s9 + $0x10] sm:$0xff] }
 0x622   :  { %v681_v32 = vpop.f32.mrf.mxu1  ;;  %1104 = vmatprep.subr.bf16.mxu1 %v1147_v28 }
 0x624   :  { %v1086_v33 = vpop.f32.mrf.mxu1 }
 0x626   :  { %v684_v34 = vpop.f32.mrf.mxu1 }
 0x628   :  { %v1087_v35 = vpop.f32.mrf.mxu1 }
 0x629   :  { %v811_v35 = vld [vmem:[%s1516_s9 + $0x8] sm:$0xff] }
 0x6dd   :  { %v637_v36 = vpop.f32.mrf.mxu0 }
 0x6de   :  { %v682_v38 = vadd.f32 %v681_v32, %v637_v36  ;;  %v813_v32 = vld [vmem:[%s1516_s9 + $0x18] sm:$0xff] }
 0x6df   :  { %v1078_v39 = vpop.f32.mrf.mxu0  ;;  %v820_v33 = vpack.c.bf16 %v813_v32, %v812_v31 }
 0x6e0   :  { %v695_v40 = vadd.f32 %v981_v37, %v682_v38 }
 0x6e1   :  { %v640_v41 = vpop.f32.mrf.mxu0  ;;  %1105 = vmatpush3.bf16.msra.mxu1 %v820_v33 }
 0x6e2   :  { %v685_v43 = vadd.f32 %v684_v34, %v640_v41  ;;  %v697_v44 = vadd.f32 %v695_v40, %v1283_v25  ;;  %1106 = vmatprep.subr.bf16.mxu1 %v1147_v28  ;;  %v810_v34 = vld [vmem:[%s1516_s9] sm:$0xff] }
 0x6e3   :  { %v1079_v45 = vpop.f32.mrf.mxu0  ;;  %v819_v36 = vpack.c.bf16 %v811_v35, %v810_v34 }
 0x6e4   :  { %v696_v46 = vadd.f32 %v981_v37, %v685_v43  ;;  %v701_v47 = vsel %vm90_vm0, %v697_v44, 0.0  ;;  %v984_v37 = vld [vmem:[%s1519_s8] ss:$0 sm:$0xff] }
 0x6e5   :  { %702 = vadd.xlane.f32.xlu0 %v701_v47  ;;  %1107 = vmatpush3.bf16.msra.mxu1 %v819_v36  ;;  %v986_v47 = vld [vmem:[%s1520_s10] ss:$0 sm:$0xff] }
 0x6e6   :  { %v698_v48 = vadd.f32 %v696_v46, %v1288_v26  ;;  %v750_v26 = vld [vmem:[%s1515_s7 + $0x30] sm:$0xff] }
 0x6e7   :  { %v756_v61 = vpack.c.bf16 %v751_v60, %v750_v26 }
 0x6e8   :  { %v704_v49 = vsel %vm90_vm0, %v698_v48, 0.0 }
 0x6e9   :  { %705 = vadd.xlane.f32.xlu1 %v704_v49  ;;  %1089 = vmatpush3.bf16.msra.mxu0 %v756_v61 }
 0x6ea   :  { %1090 = vmatprep.subr.bf16.mxu0 %v1147_v28 }
 0x6ed   :  { %1091 = vmatpush3.bf16.msra.mxu0 %v755_v63 }
 0x6ee   :  { %1092 = vmatprep.subr.bf16.mxu0 %v1147_v28 }
 0x6f1   :  { %1093 = vmatpush3.bf16.msra.mxu0 %v754_v2 }
 0x6f2   :  { %1094 = vmatprep.subr.bf16.mxu0 %v1147_v28 }
 0x6f5   :  { %1095 = vmatpush3.bf16.msra.mxu0 %v753_v5 }
 0x76e   :  { %v703_v50 = vpop.xlane.xlu0 %702 }
 0x76f   :  { %v708_v51 = vmul.f32 0.015625, %v703_v50 }
 0x771   :  { %v710_v52 = vsub.f32 %v697_v44, %v708_v51 }
 0x772   :  { %v706_v53 = vpop.xlane.xlu1 %705 }
 0x773   :  { %v709_v54 = vmul.f32 0.015625, %v706_v53  ;;  %v712_v56 = vmul.f32 %v710_v52, %v710_v52 }
 0x775   :  { %v711_v57 = vsub.f32 %v698_v48, %v709_v54  ;;  %v714_v58 = vsel %vm90_vm0, %v712_v56, 0.0 }
 0x776   :  { %715 = vadd.xlane.f32.xlu1 %v714_v58 }
 0x777   :  { %v713_v25 = vmul.f32 %v711_v57, %v711_v57 }
 0x779   :  { %v717_v59 = vsel %vm90_vm0, %v713_v25, 0.0 }
 0x77a   :  { %718 = vadd.xlane.f32.xlu1 %v717_v59 }
 0x7ff   :  { %v716_v8 = vpop.xlane.xlu1 %715 }
 0x800   :  { %v720_v9 = vmul.f32 0.015625, %v716_v8  ;;  %v988_v8 = vld [vmem:[%s1521_s11] ss:$0 sm:$0xff] }
 0x802   :  { %v722_v10 = vadd.f32 1e-05, %v720_v9 }
 0x803   :  { %v719_v11 = vpop.xlane.xlu1 %718 }
 0x804   :  { %1134 = vrsqrt.f32 %v722_v10  ;;  %v721_v12 = vmul.f32 0.015625, %v719_v11  ;;  %v989_v10 = vld [vmem:[%s1522_s12] ss:$0 sm:$0xff] }
 0x806   :  { %v723_v13 = vadd.f32 1e-05, %v721_v12 }
 0x808   :  { %1136 = vrsqrt.f32 %v723_v13 }
 0x811   :  { %v1135_v14 = vpop.eup %1134 }
 0x812   :  { %v726_v15 = vmul.f32 %v1135_v14, %v710_v52 }
 0x814   :  { %v734_v19 = vmul.f32 %v982_v16, %v726_v15 }
 0x815   :  { %v1137_v17 = vpop.eup %1136 }
 0x816   :  { %v727_v18 = vmul.f32 %v1137_v17, %v711_v57  ;;  %v742_v22 = vadd.f32 %v983_v20, %v734_v19 }
 0x818   :  { %v735_v21 = vmul.f32 %v982_v16, %v727_v18 }
 0x81a   :  { %v743_v23 = vadd.f32 %v983_v20, %v735_v21 }
 0x81c   :  { %v752_v24 = vpack.c.bf16 %v743_v23, %v742_v22 }
 0x81e   :  { %1097 = vmatmul.mubr.msk.bf16.vlgmr.msra.gmra.mxu0 %vm90_vm0, %v752_v24 }
 0x8de   :  { %v801_v38 = vpop.f32.mrf.mxu0 }
 0x8df   :  { %v802_v40 = vadd.f32 %v984_v37, %v801_v38 }
 0x8e0   :  { %v1098_v39 = vpop.f32.mrf.mxu0 }
 0x8e1   :  { %v808_v44 = vmax.f32 %v802_v40, 0.0  ;;  %v990_v39 = vld [vmem:[%s1523_s13] ss:$0 sm:$0xff] }
 0x8e2   :  { %v804_v41 = vpop.f32.mrf.mxu0 }
 0x8e3   :  { %v805_v43 = vadd.f32 %v984_v37, %v804_v41  ;;  %v991_v41 = vld [vmem:[%s1524_s14] ss:$0 sm:$0xff] }
 0x8e4   :  { %v1099_v28 = vpop.f32.mrf.mxu0 }
 0x8e5   :  { %v809_v45 = vmax.f32 %v805_v43, 0.0 }
 0x8e7   :  { %v818_v46 = vpack.c.bf16 %v809_v45, %v808_v44 }
 0x8e9   :  { %1109 = vmatmul.mubr.msk.bf16.vlgmr.msra.gmra.mxu1 %vm90_vm0, %v818_v46 }
 0x9a9   :  { %v867_v48 = vpop.f32.mrf.mxu1 }
 0x9aa   :  { %v868_v49 = vadd.f32 %v986_v47, %v867_v48 }
 0x9ab   :  { %v1110_v50 = vpop.f32.mrf.mxu1 }
 0x9ac   :  { %v874_v51 = vadd.f32 %v868_v49, %v742_v22 }
 0x9ad   :  { %v870_v52 = vpop.f32.mrf.mxu1 }
 0x9ae   :  { %v871_v53 = vadd.f32 %v986_v47, %v870_v52  ;;  %v878_v54 = vsel %vm90_vm0, %v874_v51, 0.0 }
 0x9af   :  { %879 = vadd.xlane.f32.xlu1 %v878_v54  ;;  %v1111_v56 = vpop.f32.mrf.mxu1 }
 0x9b0   :  { %v875_v57 = vadd.f32 %v871_v53, %v743_v23 }
 0x9b2   :  { %v881_v58 = vsel %vm90_vm0, %v875_v57, 0.0 }
 0x9b3   :  { %882 = vadd.xlane.f32.xlu1 %v881_v58 }
 0xa38   :  { %v880_v25 = vpop.xlane.xlu1 %879 }
 0xa39   :  { %v884_v59 = vmul.f32 0.015625, %v880_v25 }
 0xa3b   :  { %v886_v26 = vsub.f32 %v874_v51, %v884_v59 }
 0xa3c   :  { %v883_v60 = vpop.xlane.xlu1 %882 }
 0xa3d   :  { %v885_v61 = vmul.f32 0.015625, %v883_v60  ;;  %v888_v62 = vmul.f32 %v886_v26, %v886_v26 }
 0xa3f   :  { %v887_v42 = vsub.f32 %v875_v57, %v885_v61  ;;  %v890_v63 = vsel %vm90_vm0, %v888_v62, 0.0 }
 0xa40   :  { %891 = vadd.xlane.f32.xlu1 %v890_v63 }
 0xa41   :  { %v889_v0 = vmul.f32 %v887_v42, %v887_v42 }
 0xa43   :  { %v893_v1 = vsel %vm90_vm0, %v889_v0, 0.0 }
 0xa44   :  { %894 = vadd.xlane.f32.xlu1 %v893_v1 }
 0xac9   :  { %v892_v2 = vpop.xlane.xlu1 %891 }
 0xaca   :  { %v896_v3 = vmul.f32 0.015625, %v892_v2 }
 0xacc   :  { %v898_v4 = vadd.f32 1e-05, %v896_v3 }
 0xacd   :  { %v895_v5 = vpop.xlane.xlu1 %894 }
 0xace   :  { %1138 = vrsqrt.f32 %v898_v4  ;;  %v897_v55 = vmul.f32 0.015625, %v895_v5 }
 0xad0   :  { %v899_v6 = vadd.f32 1e-05, %v897_v55 }
 0xad2   :  { %1140 = vrsqrt.f32 %v899_v6 }
 0xadb   :  { %v1139_v7 = vpop.eup %1138 }
 0xadc   :  { %v902_v9 = vmul.f32 %v1139_v7, %v886_v26 }
 0xade   :  { %v910_v11 = vmul.f32 %v988_v8, %v902_v9 }
 0xadf   :  { %v1141_v12 = vpop.eup %1140 }
 0xae0   :  { %v918_v13 = vadd.f32 %v989_v10, %v910_v11  ;;  %v903_v14 = vmul.f32 %v1141_v12, %v887_v42 }
 0xae2   :  { %v922_v15 = vsel %vm90_vm0, %v918_v13, 0.0  ;;  %v911_v16 = vmul.f32 %v988_v8, %v903_v14 }
 0xae3   :  { %923 = vadd.xlane.f32.xlu1 %v922_v15 }
 0xae4   :  { %v919_v17 = vadd.f32 %v989_v10, %v911_v16 }
 0xae6   :  { %v925_v18 = vsel %vm90_vm0, %v919_v17, 0.0 }
 0xae7   :  { %926 = vadd.xlane.f32.xlu0 %v925_v18 }
 0xb6c   :  { %v924_v19 = vpop.xlane.xlu1 %923 }
 0xb6d   :  { %v928_v20 = vmul.f32 0.015625, %v924_v19 }
 0xb6f   :  { %v930_v21 = vsub.f32 %v918_v13, %v928_v20 }
 0xb70   :  { %v927_v22 = vpop.xlane.xlu0 %926 }
 0xb71   :  { %v929_v23 = vmul.f32 0.015625, %v927_v22  ;;  %v932_v24 = vmul.f32 %v930_v21, %v930_v21 }
 0xb73   :  { %v931_v27 = vsub.f32 %v919_v17, %v929_v23  ;;  %v934_v29 = vsel %vm90_vm0, %v932_v24, 0.0 }
 0xb74   :  { %935 = vadd.xlane.f32.xlu1 %v934_v29 }
 0xb75   :  { %v933_v30 = vmul.f32 %v931_v27, %v931_v27 }
 0xb77   :  { %v937_v31 = vsel %vm90_vm0, %v933_v30, 0.0 }
 0xb78   :  { %938 = vadd.xlane.f32.xlu0 %v937_v31 }
 0xbfd   :  { %v936_v32 = vpop.xlane.xlu1 %935 }
 0xbfe   :  { %v940_v33 = vmul.f32 0.015625, %v936_v32 }
 0xc00   :  { %v942_v34 = vadd.f32 1e-05, %v940_v33 }
 0xc01   :  { %v939_v35 = vpop.xlane.xlu0 %938 }
 0xc02   :  { %1142 = vrsqrt.f32 %v942_v34  ;;  %v941_v36 = vmul.f32 0.015625, %v939_v35 }
 0xc04   :  { %v943_v37 = vadd.f32 1e-05, %v941_v36 }
 0xc06   :  { %1144 = vrsqrt.f32 %v943_v37 }
 0xc0f   :  { %v1143_v38 = vpop.eup %1142 }
 0xc10   :  { %v946_v40 = vmul.f32 %v1143_v38, %v930_v21 }
 0xc12   :  { %v954_v43 = vmul.f32 %v990_v39, %v946_v40 }
 0xc13   :  { %v1145_v28 = vpop.eup %1144 }
 0xc14   :  { %v962_v44 = vadd.f32 %v991_v41, %v954_v43  ;;  %v947_v45 = vmul.f32 %v1145_v28, %v931_v27 }
 0xc16   :  { %964 = vst.msk [vmem:[%s1525_s15] sm:$0xff] %vm90_vm0, %v962_v44  ;;  %v955_v46 = vmul.f32 %v990_v39, %v947_v45 }
 0xc18   :  { %v963_v47 = vadd.f32 %v991_v41, %v955_v46 }
 0xc1a   :  { %965 = vst.msk [vmem:[%s1525_s15 + $0x8] sm:$0xff] %vm90_vm0, %v963_v47 }

</bundles_post_ra>
